<compile_context>
chip_gen: v7x
topology: tpu7x:2x2x1
jax: 0.10.0
libtpu: 0.0.40
codegen_flags: <defaults>
</compile_context>

<pallas_src>
import functools

import numpy as np
import jax
import jax.numpy as jnp
from jax.experimental import pallas as pl
from jax.experimental.pallas import tpu as pltpu

NF = 8      # n_feats (scaled-down test size)
EXP = 6     # InvertedResidual expansion factor
RED = 4     # channel-attention reduction


# ================================ fused kernel ===================================

def _first_block_kernel(x_ref, masks_ref,
                        we_ref, wd_ref, wp_ref,
                        caw1_ref, cab1_ref, caw2_ref, cab2_ref,
                        wc2_ref, wc3_ref, wc4_ref,
                        c2_ref, c3_ref, c4_ref,
                        cat_ref, *, width, n_img):
    c = x_ref.shape[0]                  # n_feats
    lanes = x_ref.shape[1]              # images_per_step * H * W (lane axis)
    hw = lanes // n_img                 # lanes per image
    dw_dtype = wd_ref.dtype             # bf16 on v6e/v7x, f32 on v5e/older

    # Static 3x3 depthwise tap table: flat lane shift + index of the precomputed
    # border mask (center tap excluded -> its mask is all-ones and is skipped).
    taps = []
    mj = 0
    for dh in (-1, 0, 1):
        for dw_ in (-1, 0, 1):
            if dh == 0 and dw_ == 0:
                continue
            k = (dh + 1) * 3 + (dw_ + 1)
            taps.append((k, (-(dh * width + dw_)) % lanes, mj))
            mj += 1

    def bf(a):                          # bf16 MXU operands
        return a.astype(jnp.bfloat16)

    def mm(w_bf16, a_bf16):             # bf16 in, f32 accumulate
        return jnp.dot(w_bf16, a_bf16, preferred_element_type=jnp.float32)

    def inverted_residual(i, a):
        # 1x1 expand -> ReLU6
        h = jnp.clip(mm(we_ref[i], bf(a)), 0.0, 6.0)            # (HID, lanes) f32
        # 3x3 depthwise -> ReLU6: XLU lane rolls + precomputed border masks.
        hd = h.astype(dw_dtype)
        coefs = [wd_ref[i, k] for k in range(9)]                # 9 x (HID, 1), hoisted
        acc = hd * coefs[4]                                     # center tap: no roll/mask
        for k, shift, m in taps:
            acc = acc + pltpu.roll(hd, shift, 1) * masks_ref[m] * coefs[k]
        hd = jnp.clip(acc, 0.0, 6.0)
        # 1x1 project (linear)
        p = mm(wp_ref[i], bf(hd))                               # (C, lanes) f32
        # SE channel attention, segmented per image over the folded lane axis
        # (f32 VPU/XLU; sigmoid on EUP).
        s_cols = []
        for b in range(n_img):
            p_b = p[:, b * hw:(b + 1) * hw]
            gap = jnp.mean(p_b, axis=1, keepdims=True)          # (C, 1)
            z = jnp.maximum(
                jnp.sum(caw1_ref[i] * gap, axis=0, keepdims=True) + cab1_ref[i], 0.0)
            s = jax.nn.sigmoid(
                jnp.sum(caw2_ref[i] * z, axis=1, keepdims=True) + cab2_ref[i])
            s_cols.append(jnp.broadcast_to(s, (c, hw)))
        s_full = s_cols[0] if n_img == 1 else jnp.concatenate(s_cols, axis=1)
        return a + p * s_full

    def basic(w_ref, nseg):             # ReLU(W @ cat(...)): ONE wide-K dot
        return jnp.maximum(mm(w_ref[...], bf(cat_ref[pl.ds(0, nseg * c), :])), 0.0)

    x = x_ref[...]                                              # (C, lanes) f32
    cat_ref[pl.ds(0, c), :] = x
    b1 = inverted_residual(0, x)
    cat_ref[pl.ds(c, c), :] = b1
    c2 = basic(wc2_ref, 2)
    b2 = inverted_residual(1, c2)
    cat_ref[pl.ds(2 * c, c), :] = b2
    c3 = basic(wc3_ref, 3)
    b3 = inverted_residual(2, c3)
    cat_ref[pl.ds(3 * c, c), :] = b3
    c4 = basic(wc4_ref, 4)

    c2_ref[...] = c2
    c3_ref[...] = c3
    c4_ref[...] = c4


# ================================ host wrapper ===================================

def _dw_compute_dtype():
    """bf16 depthwise math only on chips with a bf16 VPU (v6e/v7x); f32 otherwise."""
    try:
        kind = jax.devices()[0].device_kind.lower()
    except Exception:
        kind = ""
    return jnp.bfloat16 if ("v6" in kind or "v7" in kind) else jnp.float32


def first_block_forward(x_nchw, params, images_per_step=None):
    """x_nchw: (N, C, H, W) f32.  Returns [c2, c3, c4], each (N, C, H, W)."""
    n, cch, h, w = x_nchw.shape
    hw = h * w
    b = n if images_per_step is None else images_per_step   # images folded per step
    assert n % b == 0, "batch must be divisible by images_per_step"
    g = n // b
    lanes = b * hw
    # Lane-dense layout with 128-aligned per-image segments (16x16 -> 256, OK).
    assert hw % 128 == 0, "H*W must be a multiple of 128 (tile the lane axis otherwise)"

    dw_dtype = _dw_compute_dtype()

    # NCHW -> (G, C, B*HW): fold `b` images onto the lane axis per grid step
    # (tiny one-time HBM transpose; keeps every in-kernel op lane-dense).
    x_flat = (x_nchw.astype(jnp.float32)
              .reshape(g, b, cch, hw).transpose(0, 2, 1, 3).reshape(g, cch, lanes))

    # 8 non-center 3x3 border masks, periodic per image (also kill cross-image
    # bleed of the lane rolls).  Built once at trace time -> resident in VMEM.
    col = np.arange(hw)
    xi, yi = col % w, col // w
    rows = []
    for dh in (-1, 0, 1):
        for dw_ in (-1, 0, 1):
            if dh == 0 and dw_ == 0:
                continue
            valid = ((xi + dw_ >= 0) & (xi + dw_ < w) &
                     (yi + dh >= 0) & (yi + dh < h))
            rows.append(np.tile(valid.astype(np.float32), b))
    masks = jnp.asarray(np.stack(rows)[:, None, :], dtype=dw_dtype)   # (8, 1, lanes)

    weights = (masks,
               params["we"], params["wd"].astype(dw_dtype), params["wp"],
               params["caw1"], params["cab1"], params["caw2"], params["cab2"],
               params["wc2"], params["wc3"], params["wc4"])

    def full_spec(a):                     # whole (tiny) weight resident in VMEM
        zeros = (0,) * a.ndim
        return pl.BlockSpec(a.shape, lambda i, _z=zeros: _z)

    def act_spec():                       # one lane-folded image group per grid step
        return pl.BlockSpec((None, cch, lanes), lambda i: (i, 0, 0))

    kernel = functools.partial(_first_block_kernel, width=w, n_img=b)

    outs = pl.pallas_call(
        kernel,
        out_shape=tuple(jax.ShapeDtypeStruct((g, cch, lanes), jnp.float32)
                        for _ in range(3)),
        grid_spec=pltpu.PrefetchScalarGridSpec(
            num_scalar_prefetch=0,
            grid=(g,),
            in_specs=[act_spec()] + [full_spec(a) for a in weights],
            out_specs=[act_spec() for _ in range(3)],
            # Persistent staging buffer for the dense concats (f32 keeps every
            # C-row segment exactly (8,128)-tile aligned for C=8).
            scratch_shapes=[pltpu.VMEM((4 * cch, lanes), jnp.float32)],
        ),
        compiler_params=pltpu.CompilerParams(
            dimension_semantics=("parallel",)),
    )(x_flat, *weights)

    def unfold(o):
        return (o.reshape(g, cch, b, hw).transpose(0, 2, 1, 3)
                 .reshape(n, cch, h, w))
    return [unfold(o) for o in outs]


# ================================ parameters =====================================

def init_params(key, n_feats=NF, exp=EXP, reduction=RED):
    hid = n_feats * exp
    cred = max(n_feats // reduction, 1)
    ks = jax.random.split(key, 10)

    def nrm(k, shape, scale=0.1):
        return scale * jax.random.normal(k, shape, jnp.float32)

    bf16 = jnp.bfloat16
    return {
        # 3 InvertedResidual blocks, stacked on a leading axis of 3
        "we":   nrm(ks[0], (3, hid, n_feats)).astype(bf16),   # 1x1 expand
        "wd":   nrm(ks[1], (3, 9, hid, 1)),                   # 3x3 depthwise taps
        "wp":   nrm(ks[2], (3, n_feats, hid)).astype(bf16),   # 1x1 project
        "caw1": nrm(ks[3], (3, n_feats, cred)),               # SE fc1, stored [c, r]
        "cab1": nrm(ks[4], (3, 1, cred), 0.01),
        "caw2": nrm(ks[5], (3, n_feats, cred)),               # SE fc2, stored [c, r]
        "cab2": nrm(ks[6], (3, n_feats, 1), 0.01),
        # BasicBlock 1x1 convs (bias-free conv + ReLU)
        "wc2":  nrm(ks[7], (n_feats, 2 * n_feats)).astype(bf16),
        "wc3":  nrm(ks[8], (n_feats, 3 * n_feats)).astype(bf16),
        "wc4":  nrm(ks[9], (n_feats, 4 * n_feats)).astype(bf16),
    }


# ============================ pure-JAX reference =================================

def first_block_reference(x_nchw, params):
    """NCHW f32 reference with an independent (padded-slice) depthwise formulation."""
    n, c, h, w = x_nchw.shape
    x = x_nchw.astype(jnp.float32)

    def conv1x1(wt, a):                           # wt (Cout, Cin)
        return jnp.einsum("oc,nchw->nohw", wt.astype(jnp.float32), a)

    def dwconv3x3(wd_i, a):                       # wd_i (9, Chid, 1)
        ap = jnp.pad(a, ((0, 0), (0, 0), (1, 1), (1, 1)))
        out = jnp.zeros_like(a)
        for kh in range(3):
            for kw in range(3):
                out = out + (ap[:, :, kh:kh + h, kw:kw + w]
                             * wd_i[kh * 3 + kw, :, 0][None, :, None, None])
        return out

    def inverted_residual(i, a):
        hh = jnp.clip(conv1x1(params["we"][i], a), 0.0, 6.0)
        hh = jnp.clip(dwconv3x3(params["wd"][i], hh), 0.0, 6.0)
        p = conv1x1(params["wp"][i], hh)
        gap = jnp.mean(p, axis=(2, 3))                                    # (N, C)
        z = jnp.maximum(jnp.einsum("nc,cr->nr", gap, params["caw1"][i])
                        + params["cab1"][i][0], 0.0)                      # (N, CRED)
        s = jax.nn.sigmoid(jnp.einsum("nr,cr->nc", z, params["caw2"][i])
                           + params["cab2"][i][:, 0])                     # (N, C)
        return a + p * s[:, :, None, None]

    def basic(wt, pieces):
        return jnp.maximum(conv1x1(wt, jnp.concatenate(pieces, axis=1)), 0.0)

    b1 = inverted_residual(0, x)
    c2 = basic(params["wc2"], [x, b1])
    b2 = inverted_residual(1, c2)
    c3 = basic(params["wc3"], [x, b1, b2])
    b3 = inverted_residual(2, c3)
    c4 = basic(params["wc4"], [x, b1, b2, b3])
    return [c2, c3, c4]


# ===================================== main ======================================

if __name__ == "__main__":
    N, C, H, W = 2, NF, 16, 16
    root = jax.random.PRNGKey(0)
    pkey, xkey = jax.random.split(root)
    params = init_params(pkey)
    x = jax.random.normal(xkey, (N, C, H, W), jnp.float32)

    run = jax.jit(first_block_forward)
    outs = jax.block_until_ready(run(x, params))
    refs = jax.block_until_ready(jax.jit(first_block_reference)(x, params))

    for o, r in zip(outs, refs):
        assert o.shape == (N, C, H, W), o.shape
        assert bool(jnp.all(jnp.isfinite(o)))
        # bf16 MXU operands (and bf16 depthwise on v6e/v7x) vs an all-f32 reference.
        assert bool(jnp.allclose(o, r, rtol=7e-2, atol=7e-2)), \
            float(jnp.max(jnp.abs(o - r)))
    print("KERNEL_OK")
</pallas_src>

<mosaic_0001>
module attributes {stable_mosaic.version = 11 : i64} {
  func.func @_first_block_kernel(%arg0: i32, %arg1: memref<1x8x512xf32, #tpu.memory_space<vmem>>, %arg2: memref<8x1x512xf32, #tpu.memory_space<vmem>>, %arg3: memref<3x48x8xbf16, #tpu.memory_space<vmem>>, %arg4: memref<3x9x48x1xf32, #tpu.memory_space<vmem>>, %arg5: memref<3x8x48xbf16, #tpu.memory_space<vmem>>, %arg6: memref<3x8x2xf32, #tpu.memory_space<vmem>>, %arg7: memref<3x1x2xf32, #tpu.memory_space<vmem>>, %arg8: memref<3x8x2xf32, #tpu.memory_space<vmem>>, %arg9: memref<3x8x1xf32, #tpu.memory_space<vmem>>, %arg10: memref<8x16xbf16, #tpu.memory_space<vmem>>, %arg11: memref<8x24xbf16, #tpu.memory_space<vmem>>, %arg12: memref<8x32xbf16, #tpu.memory_space<vmem>>, %arg13: memref<1x8x512xf32, #tpu.memory_space<vmem>>, %arg14: memref<1x8x512xf32, #tpu.memory_space<vmem>>, %arg15: memref<1x8x512xf32, #tpu.memory_space<vmem>>, %arg16: memref<32x512xf32, #tpu.memory_space<vmem>>) attributes {dimension_semantics = [#tpu.dimension_semantics<parallel>], iteration_bounds = array<i64: 1>, scalar_prefetch = 0 : i64, scratch_operands = 1 : i64, tpu.core_type = #tpu.core_type<tc>, window_params = [{transform_indices = @transform_0, window_bounds = array<i64: 1, 8, 512>}, {pipeline_mode = #tpu.pipeline_mode<synchronous>, transform_indices = @transform_1, window_bounds = array<i64: 8, 1, 512>}, {pipeline_mode = #tpu.pipeline_mode<synchronous>, transform_indices = @transform_2, window_bounds = array<i64: 3, 48, 8>}, {pipeline_mode = #tpu.pipeline_mode<synchronous>, transform_indices = @transform_3, window_bounds = array<i64: 3, 9, 48, 1>}, {pipeline_mode = #tpu.pipeline_mode<synchronous>, transform_indices = @transform_4, window_bounds = array<i64: 3, 8, 48>}, {pipeline_mode = #tpu.pipeline_mode<synchronous>, transform_indices = @transform_5, window_bounds = array<i64: 3, 8, 2>}, {pipeline_mode = #tpu.pipeline_mode<synchronous>, transform_indices = @transform_6, window_bounds = array<i64: 3, 1, 2>}, {pipeline_mode = #tpu.pipeline_mode<synchronous>, transform_indices = @transform_7, window_bounds = array<i64: 3, 8, 2>}, {pipeline_mode = #tpu.pipeline_mode<synchronous>, transform_indices = @transform_8, window_bounds = array<i64: 3, 8, 1>}, {pipeline_mode = #tpu.pipeline_mode<synchronous>, transform_indices = @transform_9, window_bounds = array<i64: 8, 16>}, {pipeline_mode = #tpu.pipeline_mode<synchronous>, transform_indices = @transform_10, window_bounds = array<i64: 8, 24>}, {pipeline_mode = #tpu.pipeline_mode<synchronous>, transform_indices = @transform_11, window_bounds = array<i64: 8, 32>}, {transform_indices = @transform_12, window_bounds = array<i64: 1, 8, 512>}, {transform_indices = @transform_13, window_bounds = array<i64: 1, 8, 512>}, {transform_indices = @transform_14, window_bounds = array<i64: 1, 8, 512>}]} {
    %c0 = arith.constant 0 : index
    %c0_0 = arith.constant 0 : index
    %c0_1 = arith.constant 0 : index
    %0 = vector.load %arg1[%c0, %c0_0, %c0_1] : memref<1x8x512xf32, #tpu.memory_space<vmem>>, vector<1x8x512xf32>
    %1 = vector.shape_cast %0 : vector<1x8x512xf32> to vector<8x512xf32>
    %c0_2 = arith.constant 0 : index
    %c0_3 = arith.constant 0 : index
    %2 = vector.load %arg16[%c0_2, %c0_3] : memref<32x512xf32, #tpu.memory_space<vmem>>, vector<8x512xf32>
    tpu.vector_store %arg16[%c0_2, %c0_3], %1 {strides = array<i32>} : memref<32x512xf32, #tpu.memory_space<vmem>>, vector<8x512xf32>,
    %c0_4 = arith.constant 0 : index
    %c0_5 = arith.constant 0 : index
    %c0_6 = arith.constant 0 : index
    %3 = vector.load %arg3[%c0_4, %c0_5, %c0_6] : memref<3x48x8xbf16, #tpu.memory_space<vmem>>, vector<1x48x8xbf16>
    %4 = vector.shape_cast %3 : vector<1x48x8xbf16> to vector<48x8xbf16>
    %5 = arith.truncf %1 : vector<8x512xf32> to vector<8x512xbf16>
    %cst = arith.constant dense<0.000000e+00> : vector<48x512xf32>
    %6 = tpu.matmul %4, %5, %cst {dimension_numbers = #tpu.dot_dimension_numbers<[1], [0], [0], [1], [0, 0, 1, 1], [], []>} : vector<48x8xbf16>, vector<8x512xbf16>, vector<48x512xf32> -> vector<48x512xf32>
    %cst_7 = arith.constant 0.000000e+00 : f32
    %cst_8 = arith.constant 6.000000e+00 : f32
    %7 = vector.broadcast %cst_7 : f32 to vector<48x512xf32>
    %8 = arith.maximumf %7, %6 : vector<48x512xf32>
    %9 = vector.broadcast %cst_8 : f32 to vector<48x512xf32>
    %10 = arith.minimumf %9, %8 : vector<48x512xf32>
    %c0_9 = arith.constant 0 : index
    %c0_10 = arith.constant 0 : index
    %c0_11 = arith.constant 0 : index
    %c0_12 = arith.constant 0 : index
    %11 = vector.load %arg4[%c0_9, %c0_10, %c0_11, %c0_12] : memref<3x9x48x1xf32, #tpu.memory_space<vmem>>, vector<1x1x48x1xf32>
    %12 = vector.shape_cast %11 : vector<1x1x48x1xf32> to vector<48x1xf32>
    %c0_13 = arith.constant 0 : index
    %c1 = arith.constant 1 : index
    %c0_14 = arith.constant 0 : index
    %c0_15 = arith.constant 0 : index
    %13 = vector.load %arg4[%c0_13, %c1, %c0_14, %c0_15] : memref<3x9x48x1xf32, #tpu.memory_space<vmem>>, vector<1x1x48x1xf32>
    %14 = vector.shape_cast %13 : vector<1x1x48x1xf32> to vector<48x1xf32>
    %c0_16 = arith.constant 0 : index
    %c2 = arith.constant 2 : index
    %c0_17 = arith.constant 0 : index
    %c0_18 = arith.constant 0 : index
    %15 = vector.load %arg4[%c0_16, %c2, %c0_17, %c0_18] : memref<3x9x48x1xf32, #tpu.memory_space<vmem>>, vector<1x1x48x1xf32>
    %16 = vector.shape_cast %15 : vector<1x1x48x1xf32> to vector<48x1xf32>
    %c0_19 = arith.constant 0 : index
    %c3 = arith.constant 3 : index
    %c0_20 = arith.constant 0 : index
    %c0_21 = arith.constant 0 : index
    %17 = vector.load %arg4[%c0_19, %c3, %c0_20, %c0_21] : memref<3x9x48x1xf32, #tpu.memory_space<vmem>>, vector<1x1x48x1xf32>
    %18 = vector.shape_cast %17 : vector<1x1x48x1xf32> to vector<48x1xf32>
    %c0_22 = arith.constant 0 : index
    %c4 = arith.constant 4 : index
    %c0_23 = arith.constant 0 : index
    %c0_24 = arith.constant 0 : index
    %19 = vector.load %arg4[%c0_22, %c4, %c0_23, %c0_24] : memref<3x9x48x1xf32, #tpu.memory_space<vmem>>, vector<1x1x48x1xf32>
    %20 = vector.shape_cast %19 : vector<1x1x48x1xf32> to vector<48x1xf32>
    %c0_25 = arith.constant 0 : index
    %c5 = arith.constant 5 : index
    %c0_26 = arith.constant 0 : index
    %c0_27 = arith.constant 0 : index
    %21 = vector.load %arg4[%c0_25, %c5, %c0_26, %c0_27] : memref<3x9x48x1xf32, #tpu.memory_space<vmem>>, vector<1x1x48x1xf32>
    %22 = vector.shape_cast %21 : vector<1x1x48x1xf32> to vector<48x1xf32>
    %c0_28 = arith.constant 0 : index
    %c6 = arith.constant 6 : index
    %c0_29 = arith.constant 0 : index
    %c0_30 = arith.constant 0 : index
    %23 = vector.load %arg4[%c0_28, %c6, %c0_29, %c0_30] : memref<3x9x48x1xf32, #tpu.memory_space<vmem>>, vector<1x1x48x1xf32>
    %24 = vector.shape_cast %23 : vector<1x1x48x1xf32> to vector<48x1xf32>
    %c0_31 = arith.constant 0 : index
    %c7 = arith.constant 7 : index
    %c0_32 = arith.constant 0 : index
    %c0_33 = arith.constant 0 : index
    %25 = vector.load %arg4[%c0_31, %c7, %c0_32, %c0_33] : memref<3x9x48x1xf32, #tpu.memory_space<vmem>>, vector<1x1x48x1xf32>
    %26 = vector.shape_cast %25 : vector<1x1x48x1xf32> to vector<48x1xf32>
    %c0_34 = arith.constant 0 : index
    %c8 = arith.constant 8 : index
    %c0_35 = arith.constant 0 : index
    %c0_36 = arith.constant 0 : index
    %27 = vector.load %arg4[%c0_34, %c8, %c0_35, %c0_36] : memref<3x9x48x1xf32, #tpu.memory_space<vmem>>, vector<1x1x48x1xf32>
    %28 = vector.shape_cast %27 : vector<1x1x48x1xf32> to vector<48x1xf32>
    %29 = vector.broadcast %20 : vector<48x1xf32> to vector<48x512xf32>
    %30 = arith.mulf %10, %29 : vector<48x512xf32>
    %c17_i32 = arith.constant 17 : i32
    %31 = tpu.dynamic_rotate %10 by %c17_i32 dim 1 : vector<48x512xf32>, i32 -> vector<48x512xf32>
    %c0_37 = arith.constant 0 : index
    %c0_38 = arith.constant 0 : index
    %c0_39 = arith.constant 0 : index
    %32 = vector.load %arg2[%c0_37, %c0_38, %c0_39] : memref<8x1x512xf32, #tpu.memory_space<vmem>>, vector<1x1x512xf32>
    %33 = vector.shape_cast %32 : vector<1x1x512xf32> to vector<1x512xf32>
    %34 = vector.broadcast %33 : vector<1x512xf32> to vector<48x512xf32>
    %35 = arith.mulf %31, %34 : vector<48x512xf32>
    %36 = vector.broadcast %12 : vector<48x1xf32> to vector<48x512xf32>
    %37 = arith.mulf %35, %36 : vector<48x512xf32>
    %38 = arith.addf %30, %37 : vector<48x512xf32>
    %c16_i32 = arith.constant 16 : i32
    %39 = tpu.dynamic_rotate %10 by %c16_i32 dim 1 : vector<48x512xf32>, i32 -> vector<48x512xf32>
    %c1_40 = arith.constant 1 : index
    %c0_41 = arith.constant 0 : index
    %c0_42 = arith.constant 0 : index
    %40 = vector.load %arg2[%c1_40, %c0_41, %c0_42] : memref<8x1x512xf32, #tpu.memory_space<vmem>>, vector<1x1x512xf32>
    %41 = vector.shape_cast %40 : vector<1x1x512xf32> to vector<1x512xf32>
    %42 = vector.broadcast %41 : vector<1x512xf32> to vector<48x512xf32>
    %43 = arith.mulf %39, %42 : vector<48x512xf32>
    %44 = vector.broadcast %14 : vector<48x1xf32> to vector<48x512xf32>
    %45 = arith.mulf %43, %44 : vector<48x512xf32>
    %46 = arith.addf %38, %45 : vector<48x512xf32>
    %c15_i32 = arith.constant 15 : i32
    %47 = tpu.dynamic_rotate %10 by %c15_i32 dim 1 : vector<48x512xf32>, i32 -> vector<48x512xf32>
    %c2_43 = arith.constant 2 : index
    %c0_44 = arith.constant 0 : index
    %c0_45 = arith.constant 0 : index
    %48 = vector.load %arg2[%c2_43, %c0_44, %c0_45] : memref<8x1x512xf32, #tpu.memory_space<vmem>>, vector<1x1x512xf32>
    %49 = vector.shape_cast %48 : vector<1x1x512xf32> to vector<1x512xf32>
    %50 = vector.broadcast %49 : vector<1x512xf32> to vector<48x512xf32>
    %51 = arith.mulf %47, %50 : vector<48x512xf32>
    %52 = vector.broadcast %16 : vector<48x1xf32> to vector<48x512xf32>
    %53 = arith.mulf %51, %52 : vector<48x512xf32>
    %54 = arith.addf %46, %53 : vector<48x512xf32>
    %c1_i32 = arith.constant 1 : i32
    %55 = tpu.dynamic_rotate %10 by %c1_i32 dim 1 : vector<48x512xf32>, i32 -> vector<48x512xf32>
    %c3_46 = arith.constant 3 : index
    %c0_47 = arith.constant 0 : index
    %c0_48 = arith.constant 0 : index
    %56 = vector.load %arg2[%c3_46, %c0_47, %c0_48] : memref<8x1x512xf32, #tpu.memory_space<vmem>>, vector<1x1x512xf32>
    %57 = vector.shape_cast %56 : vector<1x1x512xf32> to vector<1x512xf32>
    %58 = vector.broadcast %57 : vector<1x512xf32> to vector<48x512xf32>
    %59 = arith.mulf %55, %58 : vector<48x512xf32>
    %60 = vector.broadcast %18 : vector<48x1xf32> to vector<48x512xf32>
    %61 = arith.mulf %59, %60 : vector<48x512xf32>
    %62 = arith.addf %54, %61 : vector<48x512xf32>
    %c511_i32 = arith.constant 511 : i32
    %63 = tpu.dynamic_rotate %10 by %c511_i32 dim 1 : vector<48x512xf32>, i32 -> vector<48x512xf32>
    %c4_49 = arith.constant 4 : index
    %c0_50 = arith.constant 0 : index
    %c0_51 = arith.constant 0 : index
    %64 = vector.load %arg2[%c4_49, %c0_50, %c0_51] : memref<8x1x512xf32, #tpu.memory_space<vmem>>, vector<1x1x512xf32>
    %65 = vector.shape_cast %64 : vector<1x1x512xf32> to vector<1x512xf32>
    %66 = vector.broadcast %65 : vector<1x512xf32> to vector<48x512xf32>
    %67 = arith.mulf %63, %66 : vector<48x512xf32>
    %68 = vector.broadcast %22 : vector<48x1xf32> to vector<48x512xf32>
    %69 = arith.mulf %67, %68 : vector<48x512xf32>
    %70 = arith.addf %62, %69 : vector<48x512xf32>
    %c497_i32 = arith.constant 497 : i32
    %71 = tpu.dynamic_rotate %10 by %c497_i32 dim 1 : vector<48x512xf32>, i32 -> vector<48x512xf32>
    %c5_52 = arith.constant 5 : index
    %c0_53 = arith.constant 0 : index
    %c0_54 = arith.constant 0 : index
    %72 = vector.load %arg2[%c5_52, %c0_53, %c0_54] : memref<8x1x512xf32, #tpu.memory_space<vmem>>, vector<1x1x512xf32>
    %73 = vector.shape_cast %72 : vector<1x1x512xf32> to vector<1x512xf32>
    %74 = vector.broadcast %73 : vector<1x512xf32> to vector<48x512xf32>
    %75 = arith.mulf %71, %74 : vector<48x512xf32>
    %76 = vector.broadcast %24 : vector<48x1xf32> to vector<48x512xf32>
    %77 = arith.mulf %75, %76 : vector<48x512xf32>
    %78 = arith.addf %70, %77 : vector<48x512xf32>
    %c496_i32 = arith.constant 496 : i32
    %79 = tpu.dynamic_rotate %10 by %c496_i32 dim 1 : vector<48x512xf32>, i32 -> vector<48x512xf32>
    %c6_55 = arith.constant 6 : index
    %c0_56 = arith.constant 0 : index
    %c0_57 = arith.constant 0 : index
    %80 = vector.load %arg2[%c6_55, %c0_56, %c0_57] : memref<8x1x512xf32, #tpu.memory_space<vmem>>, vector<1x1x512xf32>
    %81 = vector.shape_cast %80 : vector<1x1x512xf32> to vector<1x512xf32>
    %82 = vector.broadcast %81 : vector<1x512xf32> to vector<48x512xf32>
    %83 = arith.mulf %79, %82 : vector<48x512xf32>
    %84 = vector.broadcast %26 : vector<48x1xf32> to vector<48x512xf32>
    %85 = arith.mulf %83, %84 : vector<48x512xf32>
    %86 = arith.addf %78, %85 : vector<48x512xf32>
    %c495_i32 = arith.constant 495 : i32
    %87 = tpu.dynamic_rotate %10 by %c495_i32 dim 1 : vector<48x512xf32>, i32 -> vector<48x512xf32>
    %c7_58 = arith.constant 7 : index
    %c0_59 = arith.constant 0 : index
    %c0_60 = arith.constant 0 : index
    %88 = vector.load %arg2[%c7_58, %c0_59, %c0_60] : memref<8x1x512xf32, #tpu.memory_space<vmem>>, vector<1x1x512xf32>
    %89 = vector.shape_cast %88 : vector<1x1x512xf32> to vector<1x512xf32>
    %90 = vector.broadcast %89 : vector<1x512xf32> to vector<48x512xf32>
    %91 = arith.mulf %87, %90 : vector<48x512xf32>
    %92 = vector.broadcast %28 : vector<48x1xf32> to vector<48x512xf32>
    %93 = arith.mulf %91, %92 : vector<48x512xf32>
    %94 = arith.addf %86, %93 : vector<48x512xf32>
    %cst_61 = arith.constant 0.000000e+00 : f32
    %cst_62 = arith.constant 6.000000e+00 : f32
    %95 = vector.broadcast %cst_61 : f32 to vector<48x512xf32>
    %96 = arith.maximumf %95, %94 : vector<48x512xf32>
    %97 = vector.broadcast %cst_62 : f32 to vector<48x512xf32>
    %98 = arith.minimumf %97, %96 : vector<48x512xf32>
    %c0_63 = arith.constant 0 : index
    %c0_64 = arith.constant 0 : index
    %c0_65 = arith.constant 0 : index
    %99 = vector.load %arg5[%c0_63, %c0_64, %c0_65] : memref<3x8x48xbf16, #tpu.memory_space<vmem>>, vector<1x8x48xbf16>
    %100 = vector.shape_cast %99 : vector<1x8x48xbf16> to vector<8x48xbf16>
    %101 = arith.truncf %98 : vector<48x512xf32> to vector<48x512xbf16>
    %cst_66 = arith.constant dense<0.000000e+00> : vector<8x512xf32>
    %102 = tpu.matmul %100, %101, %cst_66 {dimension_numbers = #tpu.dot_dimension_numbers<[1], [0], [0], [1], [0, 0, 1, 1], [], []>} : vector<8x48xbf16>, vector<48x512xbf16>, vector<8x512xf32> -> vector<8x512xf32>
    %103 = vector.extract_strided_slice %102 {offsets = [0, 0], sizes = [8, 256], strides = [1, 1]} : vector<8x512xf32> to vector<8x256xf32>
    %cst_67 = arith.constant dense<0.000000e+00> : vector<8xf32>
    %104 = vector.multi_reduction <add>, %103, %cst_67 [1] : vector<8x256xf32> to vector<8xf32>
    %105 = vector.shape_cast %104 : vector<8xf32> to vector<8x1xf32>
    %cst_68 = arith.constant 2.560000e+02 : f32
    %106 = vector.broadcast %cst_68 : f32 to vector<8x1xf32>
    %107 = arith.divf %105, %106 : vector<8x1xf32>
    %c0_69 = arith.constant 0 : index
    %c0_70 = arith.constant 0 : index
    %c0_71 = arith.constant 0 : index
    %108 = vector.load %arg6[%c0_69, %c0_70, %c0_71] : memref<3x8x2xf32, #tpu.memory_space<vmem>>, vector<1x8x2xf32>
    %109 = vector.shape_cast %108 : vector<1x8x2xf32> to vector<8x2xf32>
    %110 = vector.broadcast %107 : vector<8x1xf32> to vector<8x2xf32>
    %111 = arith.mulf %109, %110 : vector<8x2xf32>
    %cst_72 = arith.constant dense<0.000000e+00> : vector<2xf32>
    %112 = vector.multi_reduction <add>, %111, %cst_72 [0] : vector<8x2xf32> to vector<2xf32>
    %113 = vector.shape_cast %112 : vector<2xf32> to vector<1x2xf32>
    %c0_73 = arith.constant 0 : index
    %c0_74 = arith.constant 0 : index
    %c0_75 = arith.constant 0 : index
    %114 = vector.load %arg7[%c0_73, %c0_74, %c0_75] : memref<3x1x2xf32, #tpu.memory_space<vmem>>, vector<1x1x2xf32>
    %115 = vector.shape_cast %114 : vector<1x1x2xf32> to vector<1x2xf32>
    %116 = arith.addf %113, %115 : vector<1x2xf32>
    %cst_76 = arith.constant 0.000000e+00 : f32
    %117 = vector.broadcast %cst_76 : f32 to vector<1x2xf32>
    %118 = arith.maximumf %116, %117 : vector<1x2xf32>
    %c0_77 = arith.constant 0 : index
    %c0_78 = arith.constant 0 : index
    %c0_79 = arith.constant 0 : index
    %119 = vector.load %arg8[%c0_77, %c0_78, %c0_79] : memref<3x8x2xf32, #tpu.memory_space<vmem>>, vector<1x8x2xf32>
    %120 = vector.shape_cast %119 : vector<1x8x2xf32> to vector<8x2xf32>
    %121 = vector.broadcast %118 : vector<1x2xf32> to vector<8x2xf32>
    %122 = arith.mulf %120, %121 : vector<8x2xf32>
    %cst_80 = arith.constant dense<0.000000e+00> : vector<8xf32>
    %123 = vector.multi_reduction <add>, %122, %cst_80 [1] : vector<8x2xf32> to vector<8xf32>
    %124 = vector.shape_cast %123 : vector<8xf32> to vector<8x1xf32>
    %c0_81 = arith.constant 0 : index
    %c0_82 = arith.constant 0 : index
    %c0_83 = arith.constant 0 : index
    %125 = vector.load %arg9[%c0_81, %c0_82, %c0_83] : memref<3x8x1xf32, #tpu.memory_space<vmem>>, vector<1x8x1xf32>
    %126 = vector.shape_cast %125 : vector<1x8x1xf32> to vector<8x1xf32>
    %127 = arith.addf %124, %126 : vector<8x1xf32>
    %128 = arith.negf %127 : vector<8x1xf32>
    %129 = math.exp %128 : vector<8x1xf32>
    %cst_84 = arith.constant 1.000000e+00 : f32
    %130 = vector.broadcast %cst_84 : f32 to vector<8x1xf32>
    %131 = arith.addf %130, %129 : vector<8x1xf32>
    %132 = arith.divf %130, %131 : vector<8x1xf32>
    %133 = vector.shape_cast %132 : vector<8x1xf32> to vector<8x1xf32>
    %134 = vector.broadcast %133 : vector<8x1xf32> to vector<8x256xf32>
    %135 = vector.extract_strided_slice %102 {offsets = [0, 256], sizes = [8, 256], strides = [1, 1]} : vector<8x512xf32> to vector<8x256xf32>
    %cst_85 = arith.constant dense<0.000000e+00> : vector<8xf32>
    %136 = vector.multi_reduction <add>, %135, %cst_85 [1] : vector<8x256xf32> to vector<8xf32>
    %137 = vector.shape_cast %136 : vector<8xf32> to vector<8x1xf32>
    %cst_86 = arith.constant 2.560000e+02 : f32
    %138 = vector.broadcast %cst_86 : f32 to vector<8x1xf32>
    %139 = arith.divf %137, %138 : vector<8x1xf32>
    %c0_87 = arith.constant 0 : index
    %c0_88 = arith.constant 0 : index
    %c0_89 = arith.constant 0 : index
    %140 = vector.load %arg6[%c0_87, %c0_88, %c0_89] : memref<3x8x2xf32, #tpu.memory_space<vmem>>, vector<1x8x2xf32>
    %141 = vector.shape_cast %140 : vector<1x8x2xf32> to vector<8x2xf32>
    %142 = vector.broadcast %139 : vector<8x1xf32> to vector<8x2xf32>
    %143 = arith.mulf %141, %142 : vector<8x2xf32>
    %cst_90 = arith.constant dense<0.000000e+00> : vector<2xf32>
    %144 = vector.multi_reduction <add>, %143, %cst_90 [0] : vector<8x2xf32> to vector<2xf32>
    %145 = vector.shape_cast %144 : vector<2xf32> to vector<1x2xf32>
    %c0_91 = arith.constant 0 : index
    %c0_92 = arith.constant 0 : index
    %c0_93 = arith.constant 0 : index
    %146 = vector.load %arg7[%c0_91, %c0_92, %c0_93] : memref<3x1x2xf32, #tpu.memory_space<vmem>>, vector<1x1x2xf32>
    %147 = vector.shape_cast %146 : vector<1x1x2xf32> to vector<1x2xf32>
    %148 = arith.addf %145, %147 : vector<1x2xf32>
    %cst_94 = arith.constant 0.000000e+00 : f32
    %149 = vector.broadcast %cst_94 : f32 to vector<1x2xf32>
    %150 = arith.maximumf %148, %149 : vector<1x2xf32>
    %c0_95 = arith.constant 0 : index
    %c0_96 = arith.constant 0 : index
    %c0_97 = arith.constant 0 : index
    %151 = vector.load %arg8[%c0_95, %c0_96, %c0_97] : memref<3x8x2xf32, #tpu.memory_space<vmem>>, vector<1x8x2xf32>
    %152 = vector.shape_cast %151 : vector<1x8x2xf32> to vector<8x2xf32>
    %153 = vector.broadcast %150 : vector<1x2xf32> to vector<8x2xf32>
    %154 = arith.mulf %152, %153 : vector<8x2xf32>
    %cst_98 = arith.constant dense<0.000000e+00> : vector<8xf32>
    %155 = vector.multi_reduction <add>, %154, %cst_98 [1] : vector<8x2xf32> to vector<8xf32>
    %156 = vector.shape_cast %155 : vector<8xf32> to vector<8x1xf32>
    %c0_99 = arith.constant 0 : index
    %c0_100 = arith.constant 0 : index
    %c0_101 = arith.constant 0 : index
    %157 = vector.load %arg9[%c0_99, %c0_100, %c0_101] : memref<3x8x1xf32, #tpu.memory_space<vmem>>, vector<1x8x1xf32>
    %158 = vector.shape_cast %157 : vector<1x8x1xf32> to vector<8x1xf32>
    %159 = arith.addf %156, %158 : vector<8x1xf32>
    %160 = arith.negf %159 : vector<8x1xf32>
    %161 = math.exp %160 : vector<8x1xf32>
    %cst_102 = arith.constant 1.000000e+00 : f32
    %162 = vector.broadcast %cst_102 : f32 to vector<8x1xf32>
    %163 = arith.addf %162, %161 : vector<8x1xf32>
    %164 = arith.divf %162, %163 : vector<8x1xf32>
    %165 = vector.shape_cast %164 : vector<8x1xf32> to vector<8x1xf32>
    %166 = vector.broadcast %165 : vector<8x1xf32> to vector<8x256xf32>
    %167 = tpu.concatenate %134, %166 in 1 : vector<8x256xf32>, vector<8x256xf32> -> vector<8x512xf32>
    %168 = arith.mulf %102, %167 : vector<8x512xf32>
    %169 = arith.addf %1, %168 : vector<8x512xf32>
    %c8_103 = arith.constant 8 : index
    %c0_104 = arith.constant 0 : index
    %170 = vector.load %arg16[%c8_103, %c0_104] : memref<32x512xf32, #tpu.memory_space<vmem>>, vector<8x512xf32>
    tpu.vector_store %arg16[%c8_103, %c0_104], %169 {strides = array<i32>} : memref<32x512xf32, #tpu.memory_space<vmem>>, vector<8x512xf32>,
    %c0_105 = arith.constant 0 : index
    %c0_106 = arith.constant 0 : index
    %171 = vector.load %arg10[%c0_105, %c0_106] : memref<8x16xbf16, #tpu.memory_space<vmem>>, vector<8x16xbf16>
    %c0_107 = arith.constant 0 : index
    %c0_108 = arith.constant 0 : index
    %172 = vector.load %arg16[%c0_107, %c0_108] : memref<32x512xf32, #tpu.memory_space<vmem>>, vector<16x512xf32>
    %173 = arith.truncf %172 : vector<16x512xf32> to vector<16x512xbf16>
    %cst_109 = arith.constant dense<0.000000e+00> : vector<8x512xf32>
    %174 = tpu.matmul %171, %173, %cst_109 {dimension_numbers = #tpu.dot_dimension_numbers<[1], [0], [0], [1], [0, 0, 1, 1], [], []>} : vector<8x16xbf16>, vector<16x512xbf16>, vector<8x512xf32> -> vector<8x512xf32>
    %cst_110 = arith.constant 0.000000e+00 : f32
    %175 = vector.broadcast %cst_110 : f32 to vector<8x512xf32>
    %176 = arith.maximumf %174, %175 : vector<8x512xf32>
    %c1_111 = arith.constant 1 : index
    %c0_112 = arith.constant 0 : index
    %c0_113 = arith.constant 0 : index
    %177 = vector.load %arg3[%c1_111, %c0_112, %c0_113] : memref<3x48x8xbf16, #tpu.memory_space<vmem>>, vector<1x48x8xbf16>
    %178 = vector.shape_cast %177 : vector<1x48x8xbf16> to vector<48x8xbf16>
    %179 = arith.truncf %176 : vector<8x512xf32> to vector<8x512xbf16>
    %cst_114 = arith.constant dense<0.000000e+00> : vector<48x512xf32>
    %180 = tpu.matmul %178, %179, %cst_114 {dimension_numbers = #tpu.dot_dimension_numbers<[1], [0], [0], [1], [0, 0, 1, 1], [], []>} : vector<48x8xbf16>, vector<8x512xbf16>, vector<48x512xf32> -> vector<48x512xf32>
    %cst_115 = arith.constant 0.000000e+00 : f32
    %cst_116 = arith.constant 6.000000e+00 : f32
    %181 = vector.broadcast %cst_115 : f32 to vector<48x512xf32>
    %182 = arith.maximumf %181, %180 : vector<48x512xf32>
    %183 = vector.broadcast %cst_116 : f32 to vector<48x512xf32>
    %184 = arith.minimumf %183, %182 : vector<48x512xf32>
    %c1_117 = arith.constant 1 : index
    %c0_118 = arith.constant 0 : index
    %c0_119 = arith.constant 0 : index
    %c0_120 = arith.constant 0 : index
    %185 = vector.load %arg4[%c1_117, %c0_118, %c0_119, %c0_120] : memref<3x9x48x1xf32, #tpu.memory_space<vmem>>, vector<1x1x48x1xf32>
    %186 = vector.shape_cast %185 : vector<1x1x48x1xf32> to vector<48x1xf32>
    %c1_121 = arith.constant 1 : index
    %c1_122 = arith.constant 1 : index
    %c0_123 = arith.constant 0 : index
    %c0_124 = arith.constant 0 : index
    %187 = vector.load %arg4[%c1_121, %c1_122, %c0_123, %c0_124] : memref<3x9x48x1xf32, #tpu.memory_space<vmem>>, vector<1x1x48x1xf32>
    %188 = vector.shape_cast %187 : vector<1x1x48x1xf32> to vector<48x1xf32>
    %c1_125 = arith.constant 1 : index
    %c2_126 = arith.constant 2 : index
    %c0_127 = arith.constant 0 : index
    %c0_128 = arith.constant 0 : index
    %189 = vector.load %arg4[%c1_125, %c2_126, %c0_127, %c0_128] : memref<3x9x48x1xf32, #tpu.memory_space<vmem>>, vector<1x1x48x1xf32>
    %190 = vector.shape_cast %189 : vector<1x1x48x1xf32> to vector<48x1xf32>
    %c1_129 = arith.constant 1 : index
    %c3_130 = arith.constant 3 : index
    %c0_131 = arith.constant 0 : index
    %c0_132 = arith.constant 0 : index
    %191 = vector.load %arg4[%c1_129, %c3_130, %c0_131, %c0_132] : memref<3x9x48x1xf32, #tpu.memory_space<vmem>>, vector<1x1x48x1xf32>
    %192 = vector.shape_cast %191 : vector<1x1x48x1xf32> to vector<48x1xf32>
    %c1_133 = arith.constant 1 : index
    %c4_134 = arith.constant 4 : index
    %c0_135 = arith.constant 0 : index
    %c0_136 = arith.constant 0 : index
    %193 = vector.load %arg4[%c1_133, %c4_134, %c0_135, %c0_136] : memref<3x9x48x1xf32, #tpu.memory_space<vmem>>, vector<1x1x48x1xf32>
    %194 = vector.shape_cast %193 : vector<1x1x48x1xf32> to vector<48x1xf32>
    %c1_137 = arith.constant 1 : index
    %c5_138 = arith.constant 5 : index
    %c0_139 = arith.constant 0 : index
    %c0_140 = arith.constant 0 : index
    %195 = vector.load %arg4[%c1_137, %c5_138, %c0_139, %c0_140] : memref<3x9x48x1xf32, #tpu.memory_space<vmem>>, vector<1x1x48x1xf32>
    %196 = vector.shape_cast %195 : vector<1x1x48x1xf32> to vector<48x1xf32>
    %c1_141 = arith.constant 1 : index
    %c6_142 = arith.constant 6 : index
    %c0_143 = arith.constant 0 : index
    %c0_144 = arith.constant 0 : index
    %197 = vector.load %arg4[%c1_141, %c6_142, %c0_143, %c0_144] : memref<3x9x48x1xf32, #tpu.memory_space<vmem>>, vector<1x1x48x1xf32>
    %198 = vector.shape_cast %197 : vector<1x1x48x1xf32> to vector<48x1xf32>
    %c1_145 = arith.constant 1 : index
    %c7_146 = arith.constant 7 : index
    %c0_147 = arith.constant 0 : index
    %c0_148 = arith.constant 0 : index
    %199 = vector.load %arg4[%c1_145, %c7_146, %c0_147, %c0_148] : memref<3x9x48x1xf32, #tpu.memory_space<vmem>>, vector<1x1x48x1xf32>
    %200 = vector.shape_cast %199 : vector<1x1x48x1xf32> to vector<48x1xf32>
    %c1_149 = arith.constant 1 : index
    %c8_150 = arith.constant 8 : index
    %c0_151 = arith.constant 0 : index
    %c0_152 = arith.constant 0 : index
    %201 = vector.load %arg4[%c1_149, %c8_150, %c0_151, %c0_152] : memref<3x9x48x1xf32, #tpu.memory_space<vmem>>, vector<1x1x48x1xf32>
    %202 = vector.shape_cast %201 : vector<1x1x48x1xf32> to vector<48x1xf32>
    %203 = vector.broadcast %194 : vector<48x1xf32> to vector<48x512xf32>
    %204 = arith.mulf %184, %203 : vector<48x512xf32>
    %c17_i32_153 = arith.constant 17 : i32
    %205 = tpu.dynamic_rotate %184 by %c17_i32_153 dim 1 : vector<48x512xf32>, i32 -> vector<48x512xf32>
    %c0_154 = arith.constant 0 : index
    %c0_155 = arith.constant 0 : index
    %c0_156 = arith.constant 0 : index
    %206 = vector.load %arg2[%c0_154, %c0_155, %c0_156] : memref<8x1x512xf32, #tpu.memory_space<vmem>>, vector<1x1x512xf32>
    %207 = vector.shape_cast %206 : vector<1x1x512xf32> to vector<1x512xf32>
    %208 = vector.broadcast %207 : vector<1x512xf32> to vector<48x512xf32>
    %209 = arith.mulf %205, %208 : vector<48x512xf32>
    %210 = vector.broadcast %186 : vector<48x1xf32> to vector<48x512xf32>
    %211 = arith.mulf %209, %210 : vector<48x512xf32>
    %212 = arith.addf %204, %211 : vector<48x512xf32>
    %c16_i32_157 = arith.constant 16 : i32
    %213 = tpu.dynamic_rotate %184 by %c16_i32_157 dim 1 : vector<48x512xf32>, i32 -> vector<48x512xf32>
    %c1_158 = arith.constant 1 : index
    %c0_159 = arith.constant 0 : index
    %c0_160 = arith.constant 0 : index
    %214 = vector.load %arg2[%c1_158, %c0_159, %c0_160] : memref<8x1x512xf32, #tpu.memory_space<vmem>>, vector<1x1x512xf32>
    %215 = vector.shape_cast %214 : vector<1x1x512xf32> to vector<1x512xf32>
    %216 = vector.broadcast %215 : vector<1x512xf32> to vector<48x512xf32>
    %217 = arith.mulf %213, %216 : vector<48x512xf32>
    %218 = vector.broadcast %188 : vector<48x1xf32> to vector<48x512xf32>
    %219 = arith.mulf %217, %218 : vector<48x512xf32>
    %220 = arith.addf %212, %219 : vector<48x512xf32>
    %c15_i32_161 = arith.constant 15 : i32
    %221 = tpu.dynamic_rotate %184 by %c15_i32_161 dim 1 : vector<48x512xf32>, i32 -> vector<48x512xf32>
    %c2_162 = arith.constant 2 : index
    %c0_163 = arith.constant 0 : index
    %c0_164 = arith.constant 0 : index
    %222 = vector.load %arg2[%c2_162, %c0_163, %c0_164] : memref<8x1x512xf32, #tpu.memory_space<vmem>>, vector<1x1x512xf32>
    %223 = vector.shape_cast %222 : vector<1x1x512xf32> to vector<1x512xf32>
    %224 = vector.broadcast %223 : vector<1x512xf32> to vector<48x512xf32>
    %225 = arith.mulf %221, %224 : vector<48x512xf32>
    %226 = vector.broadcast %190 : vector<48x1xf32> to vector<48x512xf32>
    %227 = arith.mulf %225, %226 : vector<48x512xf32>
    %228 = arith.addf %220, %227 : vector<48x512xf32>
    %c1_i32_165 = arith.constant 1 : i32
    %229 = tpu.dynamic_rotate %184 by %c1_i32_165 dim 1 : vector<48x512xf32>, i32 -> vector<48x512xf32>
    %c3_166 = arith.constant 3 : index
    %c0_167 = arith.constant 0 : index
    %c0_168 = arith.constant 0 : index
    %230 = vector.load %arg2[%c3_166, %c0_167, %c0_168] : memref<8x1x512xf32, #tpu.memory_space<vmem>>, vector<1x1x512xf32>
    %231 = vector.shape_cast %230 : vector<1x1x512xf32> to vector<1x512xf32>
    %232 = vector.broadcast %231 : vector<1x512xf32> to vector<48x512xf32>
    %233 = arith.mulf %229, %232 : vector<48x512xf32>
    %234 = vector.broadcast %192 : vector<48x1xf32> to vector<48x512xf32>
    %235 = arith.mulf %233, %234 : vector<48x512xf32>
    %236 = arith.addf %228, %235 : vector<48x512xf32>
    %c511_i32_169 = arith.constant 511 : i32
    %237 = tpu.dynamic_rotate %184 by %c511_i32_169 dim 1 : vector<48x512xf32>, i32 -> vector<48x512xf32>
    %c4_170 = arith.constant 4 : index
    %c0_171 = arith.constant 0 : index
    %c0_172 = arith.constant 0 : index
    %238 = vector.load %arg2[%c4_170, %c0_171, %c0_172] : memref<8x1x512xf32, #tpu.memory_space<vmem>>, vector<1x1x512xf32>
    %239 = vector.shape_cast %238 : vector<1x1x512xf32> to vector<1x512xf32>
    %240 = vector.broadcast %239 : vector<1x512xf32> to vector<48x512xf32>
    %241 = arith.mulf %237, %240 : vector<48x512xf32>
    %242 = vector.broadcast %196 : vector<48x1xf32> to vector<48x512xf32>
    %243 = arith.mulf %241, %242 : vector<48x512xf32>
    %244 = arith.addf %236, %243 : vector<48x512xf32>
    %c497_i32_173 = arith.constant 497 : i32
    %245 = tpu.dynamic_rotate %184 by %c497_i32_173 dim 1 : vector<48x512xf32>, i32 -> vector<48x512xf32>
    %c5_174 = arith.constant 5 : index
    %c0_175 = arith.constant 0 : index
    %c0_176 = arith.constant 0 : index
    %246 = vector.load %arg2[%c5_174, %c0_175, %c0_176] : memref<8x1x512xf32, #tpu.memory_space<vmem>>, vector<1x1x512xf32>
    %247 = vector.shape_cast %246 : vector<1x1x512xf32> to vector<1x512xf32>
    %248 = vector.broadcast %247 : vector<1x512xf32> to vector<48x512xf32>
    %249 = arith.mulf %245, %248 : vector<48x512xf32>
    %250 = vector.broadcast %198 : vector<48x1xf32> to vector<48x512xf32>
    %251 = arith.mulf %249, %250 : vector<48x512xf32>
    %252 = arith.addf %244, %251 : vector<48x512xf32>
    %c496_i32_177 = arith.constant 496 : i32
    %253 = tpu.dynamic_rotate %184 by %c496_i32_177 dim 1 : vector<48x512xf32>, i32 -> vector<48x512xf32>
    %c6_178 = arith.constant 6 : index
    %c0_179 = arith.constant 0 : index
    %c0_180 = arith.constant 0 : index
    %254 = vector.load %arg2[%c6_178, %c0_179, %c0_180] : memref<8x1x512xf32, #tpu.memory_space<vmem>>, vector<1x1x512xf32>
    %255 = vector.shape_cast %254 : vector<1x1x512xf32> to vector<1x512xf32>
    %256 = vector.broadcast %255 : vector<1x512xf32> to vector<48x512xf32>
    %257 = arith.mulf %253, %256 : vector<48x512xf32>
    %258 = vector.broadcast %200 : vector<48x1xf32> to vector<48x512xf32>
    %259 = arith.mulf %257, %258 : vector<48x512xf32>
    %260 = arith.addf %252, %259 : vector<48x512xf32>
    %c495_i32_181 = arith.constant 495 : i32
    %261 = tpu.dynamic_rotate %184 by %c495_i32_181 dim 1 : vector<48x512xf32>, i32 -> vector<48x512xf32>
    %c7_182 = arith.constant 7 : index
    %c0_183 = arith.constant 0 : index
    %c0_184 = arith.constant 0 : index
    %262 = vector.load %arg2[%c7_182, %c0_183, %c0_184] : memref<8x1x512xf32, #tpu.memory_space<vmem>>, vector<1x1x512xf32>
    %263 = vector.shape_cast %262 : vector<1x1x512xf32> to vector<1x512xf32>
    %264 = vector.broadcast %263 : vector<1x512xf32> to vector<48x512xf32>
    %265 = arith.mulf %261, %264 : vector<48x512xf32>
    %266 = vector.broadcast %202 : vector<48x1xf32> to vector<48x512xf32>
    %267 = arith.mulf %265, %266 : vector<48x512xf32>
    %268 = arith.addf %260, %267 : vector<48x512xf32>
    %cst_185 = arith.constant 0.000000e+00 : f32
    %cst_186 = arith.constant 6.000000e+00 : f32
    %269 = vector.broadcast %cst_185 : f32 to vector<48x512xf32>
    %270 = arith.maximumf %269, %268 : vector<48x512xf32>
    %271 = vector.broadcast %cst_186 : f32 to vector<48x512xf32>
    %272 = arith.minimumf %271, %270 : vector<48x512xf32>
    %c1_187 = arith.constant 1 : index
    %c0_188 = arith.constant 0 : index
    %c0_189 = arith.constant 0 : index
    %273 = vector.load %arg5[%c1_187, %c0_188, %c0_189] : memref<3x8x48xbf16, #tpu.memory_space<vmem>>, vector<1x8x48xbf16>
    %274 = vector.shape_cast %273 : vector<1x8x48xbf16> to vector<8x48xbf16>
    %275 = arith.truncf %272 : vector<48x512xf32> to vector<48x512xbf16>
    %cst_190 = arith.constant dense<0.000000e+00> : vector<8x512xf32>
    %276 = tpu.matmul %274, %275, %cst_190 {dimension_numbers = #tpu.dot_dimension_numbers<[1], [0], [0], [1], [0, 0, 1, 1], [], []>} : vector<8x48xbf16>, vector<48x512xbf16>, vector<8x512xf32> -> vector<8x512xf32>
    %277 = vector.extract_strided_slice %276 {offsets = [0, 0], sizes = [8, 256], strides = [1, 1]} : vector<8x512xf32> to vector<8x256xf32>
    %cst_191 = arith.constant dense<0.000000e+00> : vector<8xf32>
    %278 = vector.multi_reduction <add>, %277, %cst_191 [1] : vector<8x256xf32> to vector<8xf32>
    %279 = vector.shape_cast %278 : vector<8xf32> to vector<8x1xf32>
    %cst_192 = arith.constant 2.560000e+02 : f32
    %280 = vector.broadcast %cst_192 : f32 to vector<8x1xf32>
    %281 = arith.divf %279, %280 : vector<8x1xf32>
    %c1_193 = arith.constant 1 : index
    %c0_194 = arith.constant 0 : index
    %c0_195 = arith.constant 0 : index
    %282 = vector.load %arg6[%c1_193, %c0_194, %c0_195] : memref<3x8x2xf32, #tpu.memory_space<vmem>>, vector<1x8x2xf32>
    %283 = vector.shape_cast %282 : vector<1x8x2xf32> to vector<8x2xf32>
    %284 = vector.broadcast %281 : vector<8x1xf32> to vector<8x2xf32>
    %285 = arith.mulf %283, %284 : vector<8x2xf32>
    %cst_196 = arith.constant dense<0.000000e+00> : vector<2xf32>
    %286 = vector.multi_reduction <add>, %285, %cst_196 [0] : vector<8x2xf32> to vector<2xf32>
    %287 = vector.shape_cast %286 : vector<2xf32> to vector<1x2xf32>
    %c1_197 = arith.constant 1 : index
    %c0_198 = arith.constant 0 : index
    %c0_199 = arith.constant 0 : index
    %288 = vector.load %arg7[%c1_197, %c0_198, %c0_199] : memref<3x1x2xf32, #tpu.memory_space<vmem>>, vector<1x1x2xf32>
    %289 = vector.shape_cast %288 : vector<1x1x2xf32> to vector<1x2xf32>
    %290 = arith.addf %287, %289 : vector<1x2xf32>
    %cst_200 = arith.constant 0.000000e+00 : f32
    %291 = vector.broadcast %cst_200 : f32 to vector<1x2xf32>
    %292 = arith.maximumf %290, %291 : vector<1x2xf32>
    %c1_201 = arith.constant 1 : index
    %c0_202 = arith.constant 0 : index
    %c0_203 = arith.constant 0 : index
    %293 = vector.load %arg8[%c1_201, %c0_202, %c0_203] : memref<3x8x2xf32, #tpu.memory_space<vmem>>, vector<1x8x2xf32>
    %294 = vector.shape_cast %293 : vector<1x8x2xf32> to vector<8x2xf32>
    %295 = vector.broadcast %292 : vector<1x2xf32> to vector<8x2xf32>
    %296 = arith.mulf %294, %295 : vector<8x2xf32>
    %cst_204 = arith.constant dense<0.000000e+00> : vector<8xf32>
    %297 = vector.multi_reduction <add>, %296, %cst_204 [1] : vector<8x2xf32> to vector<8xf32>
    %298 = vector.shape_cast %297 : vector<8xf32> to vector<8x1xf32>
    %c1_205 = arith.constant 1 : index
    %c0_206 = arith.constant 0 : index
    %c0_207 = arith.constant 0 : index
    %299 = vector.load %arg9[%c1_205, %c0_206, %c0_207] : memref<3x8x1xf32, #tpu.memory_space<vmem>>, vector<1x8x1xf32>
    %300 = vector.shape_cast %299 : vector<1x8x1xf32> to vector<8x1xf32>
    %301 = arith.addf %298, %300 : vector<8x1xf32>
    %302 = arith.negf %301 : vector<8x1xf32>
    %303 = math.exp %302 : vector<8x1xf32>
    %cst_208 = arith.constant 1.000000e+00 : f32
    %304 = vector.broadcast %cst_208 : f32 to vector<8x1xf32>
    %305 = arith.addf %304, %303 : vector<8x1xf32>
    %306 = arith.divf %304, %305 : vector<8x1xf32>
    %307 = vector.shape_cast %306 : vector<8x1xf32> to vector<8x1xf32>
    %308 = vector.broadcast %307 : vector<8x1xf32> to vector<8x256xf32>
    %309 = vector.extract_strided_slice %276 {offsets = [0, 256], sizes = [8, 256], strides = [1, 1]} : vector<8x512xf32> to vector<8x256xf32>
    %cst_209 = arith.constant dense<0.000000e+00> : vector<8xf32>
    %310 = vector.multi_reduction <add>, %309, %cst_209 [1] : vector<8x256xf32> to vector<8xf32>
    %311 = vector.shape_cast %310 : vector<8xf32> to vector<8x1xf32>
    %cst_210 = arith.constant 2.560000e+02 : f32
    %312 = vector.broadcast %cst_210 : f32 to vector<8x1xf32>
    %313 = arith.divf %311, %312 : vector<8x1xf32>
    %c1_211 = arith.constant 1 : index
    %c0_212 = arith.constant 0 : index
    %c0_213 = arith.constant 0 : index
    %314 = vector.load %arg6[%c1_211, %c0_212, %c0_213] : memref<3x8x2xf32, #tpu.memory_space<vmem>>, vector<1x8x2xf32>
    %315 = vector.shape_cast %314 : vector<1x8x2xf32> to vector<8x2xf32>
    %316 = vector.broadcast %313 : vector<8x1xf32> to vector<8x2xf32>
    %317 = arith.mulf %315, %316 : vector<8x2xf32>
    %cst_214 = arith.constant dense<0.000000e+00> : vector<2xf32>
    %318 = vector.multi_reduction <add>, %317, %cst_214 [0] : vector<8x2xf32> to vector<2xf32>
    %319 = vector.shape_cast %318 : vector<2xf32> to vector<1x2xf32>
    %c1_215 = arith.constant 1 : index
    %c0_216 = arith.constant 0 : index
    %c0_217 = arith.constant 0 : index
    %320 = vector.load %arg7[%c1_215, %c0_216, %c0_217] : memref<3x1x2xf32, #tpu.memory_space<vmem>>, vector<1x1x2xf32>
    %321 = vector.shape_cast %320 : vector<1x1x2xf32> to vector<1x2xf32>
    %322 = arith.addf %319, %321 : vector<1x2xf32>
    %cst_218 = arith.constant 0.000000e+00 : f32
    %323 = vector.broadcast %cst_218 : f32 to vector<1x2xf32>
    %324 = arith.maximumf %322, %323 : vector<1x2xf32>
    %c1_219 = arith.constant 1 : index
    %c0_220 = arith.constant 0 : index
    %c0_221 = arith.constant 0 : index
    %325 = vector.load %arg8[%c1_219, %c0_220, %c0_221] : memref<3x8x2xf32, #tpu.memory_space<vmem>>, vector<1x8x2xf32>
    %326 = vector.shape_cast %325 : vector<1x8x2xf32> to vector<8x2xf32>
    %327 = vector.broadcast %324 : vector<1x2xf32> to vector<8x2xf32>
    %328 = arith.mulf %326, %327 : vector<8x2xf32>
    %cst_222 = arith.constant dense<0.000000e+00> : vector<8xf32>
    %329 = vector.multi_reduction <add>, %328, %cst_222 [1] : vector<8x2xf32> to vector<8xf32>
    %330 = vector.shape_cast %329 : vector<8xf32> to vector<8x1xf32>
    %c1_223 = arith.constant 1 : index
    %c0_224 = arith.constant 0 : index
    %c0_225 = arith.constant 0 : index
    %331 = vector.load %arg9[%c1_223, %c0_224, %c0_225] : memref<3x8x1xf32, #tpu.memory_space<vmem>>, vector<1x8x1xf32>
    %332 = vector.shape_cast %331 : vector<1x8x1xf32> to vector<8x1xf32>
    %333 = arith.addf %330, %332 : vector<8x1xf32>
    %334 = arith.negf %333 : vector<8x1xf32>
    %335 = math.exp %334 : vector<8x1xf32>
    %cst_226 = arith.constant 1.000000e+00 : f32
    %336 = vector.broadcast %cst_226 : f32 to vector<8x1xf32>
    %337 = arith.addf %336, %335 : vector<8x1xf32>
    %338 = arith.divf %336, %337 : vector<8x1xf32>
    %339 = vector.shape_cast %338 : vector<8x1xf32> to vector<8x1xf32>
    %340 = vector.broadcast %339 : vector<8x1xf32> to vector<8x256xf32>
    %341 = tpu.concatenate %308, %340 in 1 : vector<8x256xf32>, vector<8x256xf32> -> vector<8x512xf32>
    %342 = arith.mulf %276, %341 : vector<8x512xf32>
    %343 = arith.addf %176, %342 : vector<8x512xf32>
    %c16 = arith.constant 16 : index
    %c0_227 = arith.constant 0 : index
    %344 = vector.load %arg16[%c16, %c0_227] : memref<32x512xf32, #tpu.memory_space<vmem>>, vector<8x512xf32>
    tpu.vector_store %arg16[%c16, %c0_227], %343 {strides = array<i32>} : memref<32x512xf32, #tpu.memory_space<vmem>>, vector<8x512xf32>,
    %c0_228 = arith.constant 0 : index
    %c0_229 = arith.constant 0 : index
    %345 = vector.load %arg11[%c0_228, %c0_229] : memref<8x24xbf16, #tpu.memory_space<vmem>>, vector<8x24xbf16>
    %c0_230 = arith.constant 0 : index
    %c0_231 = arith.constant 0 : index
    %346 = vector.load %arg16[%c0_230, %c0_231] : memref<32x512xf32, #tpu.memory_space<vmem>>, vector<24x512xf32>
    %347 = arith.truncf %346 : vector<24x512xf32> to vector<24x512xbf16>
    %cst_232 = arith.constant dense<0.000000e+00> : vector<8x512xf32>
    %348 = tpu.matmul %345, %347, %cst_232 {dimension_numbers = #tpu.dot_dimension_numbers<[1], [0], [0], [1], [0, 0, 1, 1], [], []>} : vector<8x24xbf16>, vector<24x512xbf16>, vector<8x512xf32> -> vector<8x512xf32>
    %cst_233 = arith.constant 0.000000e+00 : f32
    %349 = vector.broadcast %cst_233 : f32 to vector<8x512xf32>
    %350 = arith.maximumf %348, %349 : vector<8x512xf32>
    %c2_234 = arith.constant 2 : index
    %c0_235 = arith.constant 0 : index
    %c0_236 = arith.constant 0 : index
    %351 = vector.load %arg3[%c2_234, %c0_235, %c0_236] : memref<3x48x8xbf16, #tpu.memory_space<vmem>>, vector<1x48x8xbf16>
    %352 = vector.shape_cast %351 : vector<1x48x8xbf16> to vector<48x8xbf16>
    %353 = arith.truncf %350 : vector<8x512xf32> to vector<8x512xbf16>
    %cst_237 = arith.constant dense<0.000000e+00> : vector<48x512xf32>
    %354 = tpu.matmul %352, %353, %cst_237 {dimension_numbers = #tpu.dot_dimension_numbers<[1], [0], [0], [1], [0, 0, 1, 1], [], []>} : vector<48x8xbf16>, vector<8x512xbf16>, vector<48x512xf32> -> vector<48x512xf32>
    %cst_238 = arith.constant 0.000000e+00 : f32
    %cst_239 = arith.constant 6.000000e+00 : f32
    %355 = vector.broadcast %cst_238 : f32 to vector<48x512xf32>
    %356 = arith.maximumf %355, %354 : vector<48x512xf32>
    %357 = vector.broadcast %cst_239 : f32 to vector<48x512xf32>
    %358 = arith.minimumf %357, %356 : vector<48x512xf32>
    %c2_240 = arith.constant 2 : index
    %c0_241 = arith.constant 0 : index
    %c0_242 = arith.constant 0 : index
    %c0_243 = arith.constant 0 : index
    %359 = vector.load %arg4[%c2_240, %c0_241, %c0_242, %c0_243] : memref<3x9x48x1xf32, #tpu.memory_space<vmem>>, vector<1x1x48x1xf32>
    %360 = vector.shape_cast %359 : vector<1x1x48x1xf32> to vector<48x1xf32>
    %c2_244 = arith.constant 2 : index
    %c1_245 = arith.constant 1 : index
    %c0_246 = arith.constant 0 : index
    %c0_247 = arith.constant 0 : index
    %361 = vector.load %arg4[%c2_244, %c1_245, %c0_246, %c0_247] : memref<3x9x48x1xf32, #tpu.memory_space<vmem>>, vector<1x1x48x1xf32>
    %362 = vector.shape_cast %361 : vector<1x1x48x1xf32> to vector<48x1xf32>
    %c2_248 = arith.constant 2 : index
    %c2_249 = arith.constant 2 : index
    %c0_250 = arith.constant 0 : index
    %c0_251 = arith.constant 0 : index
    %363 = vector.load %arg4[%c2_248, %c2_249, %c0_250, %c0_251] : memref<3x9x48x1xf32, #tpu.memory_space<vmem>>, vector<1x1x48x1xf32>
    %364 = vector.shape_cast %363 : vector<1x1x48x1xf32> to vector<48x1xf32>
    %c2_252 = arith.constant 2 : index
    %c3_253 = arith.constant 3 : index
    %c0_254 = arith.constant 0 : index
    %c0_255 = arith.constant 0 : index
    %365 = vector.load %arg4[%c2_252, %c3_253, %c0_254, %c0_255] : memref<3x9x48x1xf32, #tpu.memory_space<vmem>>, vector<1x1x48x1xf32>
    %366 = vector.shape_cast %365 : vector<1x1x48x1xf32> to vector<48x1xf32>
    %c2_256 = arith.constant 2 : index
    %c4_257 = arith.constant 4 : index
    %c0_258 = arith.constant 0 : index
    %c0_259 = arith.constant 0 : index
    %367 = vector.load %arg4[%c2_256, %c4_257, %c0_258, %c0_259] : memref<3x9x48x1xf32, #tpu.memory_space<vmem>>, vector<1x1x48x1xf32>
    %368 = vector.shape_cast %367 : vector<1x1x48x1xf32> to vector<48x1xf32>
    %c2_260 = arith.constant 2 : index
    %c5_261 = arith.constant 5 : index
    %c0_262 = arith.constant 0 : index
    %c0_263 = arith.constant 0 : index
    %369 = vector.load %arg4[%c2_260, %c5_261, %c0_262, %c0_263] : memref<3x9x48x1xf32, #tpu.memory_space<vmem>>, vector<1x1x48x1xf32>
    %370 = vector.shape_cast %369 : vector<1x1x48x1xf32> to vector<48x1xf32>
    %c2_264 = arith.constant 2 : index
    %c6_265 = arith.constant 6 : index
    %c0_266 = arith.constant 0 : index
    %c0_267 = arith.constant 0 : index
    %371 = vector.load %arg4[%c2_264, %c6_265, %c0_266, %c0_267] : memref<3x9x48x1xf32, #tpu.memory_space<vmem>>, vector<1x1x48x1xf32>
    %372 = vector.shape_cast %371 : vector<1x1x48x1xf32> to vector<48x1xf32>
    %c2_268 = arith.constant 2 : index
    %c7_269 = arith.constant 7 : index
    %c0_270 = arith.constant 0 : index
    %c0_271 = arith.constant 0 : index
    %373 = vector.load %arg4[%c2_268, %c7_269, %c0_270, %c0_271] : memref<3x9x48x1xf32, #tpu.memory_space<vmem>>, vector<1x1x48x1xf32>
    %374 = vector.shape_cast %373 : vector<1x1x48x1xf32> to vector<48x1xf32>
    %c2_272 = arith.constant 2 : index
    %c8_273 = arith.constant 8 : index
    %c0_274 = arith.constant 0 : index
    %c0_275 = arith.constant 0 : index
    %375 = vector.load %arg4[%c2_272, %c8_273, %c0_274, %c0_275] : memref<3x9x48x1xf32, #tpu.memory_space<vmem>>, vector<1x1x48x1xf32>
    %376 = vector.shape_cast %375 : vector<1x1x48x1xf32> to vector<48x1xf32>
    %377 = vector.broadcast %368 : vector<48x1xf32> to vector<48x512xf32>
    %378 = arith.mulf %358, %377 : vector<48x512xf32>
    %c17_i32_276 = arith.constant 17 : i32
    %379 = tpu.dynamic_rotate %358 by %c17_i32_276 dim 1 : vector<48x512xf32>, i32 -> vector<48x512xf32>
    %c0_277 = arith.constant 0 : index
    %c0_278 = arith.constant 0 : index
    %c0_279 = arith.constant 0 : index
    %380 = vector.load %arg2[%c0_277, %c0_278, %c0_279] : memref<8x1x512xf32, #tpu.memory_space<vmem>>, vector<1x1x512xf32>
    %381 = vector.shape_cast %380 : vector<1x1x512xf32> to vector<1x512xf32>
    %382 = vector.broadcast %381 : vector<1x512xf32> to vector<48x512xf32>
    %383 = arith.mulf %379, %382 : vector<48x512xf32>
    %384 = vector.broadcast %360 : vector<48x1xf32> to vector<48x512xf32>
    %385 = arith.mulf %383, %384 : vector<48x512xf32>
    %386 = arith.addf %378, %385 : vector<48x512xf32>
    %c16_i32_280 = arith.constant 16 : i32
    %387 = tpu.dynamic_rotate %358 by %c16_i32_280 dim 1 : vector<48x512xf32>, i32 -> vector<48x512xf32>
    %c1_281 = arith.constant 1 : index
    %c0_282 = arith.constant 0 : index
    %c0_283 = arith.constant 0 : index
    %388 = vector.load %arg2[%c1_281, %c0_282, %c0_283] : memref<8x1x512xf32, #tpu.memory_space<vmem>>, vector<1x1x512xf32>
    %389 = vector.shape_cast %388 : vector<1x1x512xf32> to vector<1x512xf32>
    %390 = vector.broadcast %389 : vector<1x512xf32> to vector<48x512xf32>
    %391 = arith.mulf %387, %390 : vector<48x512xf32>
    %392 = vector.broadcast %362 : vector<48x1xf32> to vector<48x512xf32>
    %393 = arith.mulf %391, %392 : vector<48x512xf32>
    %394 = arith.addf %386, %393 : vector<48x512xf32>
    %c15_i32_284 = arith.constant 15 : i32
    %395 = tpu.dynamic_rotate %358 by %c15_i32_284 dim 1 : vector<48x512xf32>, i32 -> vector<48x512xf32>
    %c2_285 = arith.constant 2 : index
    %c0_286 = arith.constant 0 : index
    %c0_287 = arith.constant 0 : index
    %396 = vector.load %arg2[%c2_285, %c0_286, %c0_287] : memref<8x1x512xf32, #tpu.memory_space<vmem>>, vector<1x1x512xf32>
    %397 = vector.shape_cast %396 : vector<1x1x512xf32> to vector<1x512xf32>
    %398 = vector.broadcast %397 : vector<1x512xf32> to vector<48x512xf32>
    %399 = arith.mulf %395, %398 : vector<48x512xf32>
    %400 = vector.broadcast %364 : vector<48x1xf32> to vector<48x512xf32>
    %401 = arith.mulf %399, %400 : vector<48x512xf32>
    %402 = arith.addf %394, %401 : vector<48x512xf32>
    %c1_i32_288 = arith.constant 1 : i32
    %403 = tpu.dynamic_rotate %358 by %c1_i32_288 dim 1 : vector<48x512xf32>, i32 -> vector<48x512xf32>
    %c3_289 = arith.constant 3 : index
    %c0_290 = arith.constant 0 : index
    %c0_291 = arith.constant 0 : index
    %404 = vector.load %arg2[%c3_289, %c0_290, %c0_291] : memref<8x1x512xf32, #tpu.memory_space<vmem>>, vector<1x1x512xf32>
    %405 = vector.shape_cast %404 : vector<1x1x512xf32> to vector<1x512xf32>
    %406 = vector.broadcast %405 : vector<1x512xf32> to vector<48x512xf32>
    %407 = arith.mulf %403, %406 : vector<48x512xf32>
    %408 = vector.broadcast %366 : vector<48x1xf32> to vector<48x512xf32>
    %409 = arith.mulf %407, %408 : vector<48x512xf32>
    %410 = arith.addf %402, %409 : vector<48x512xf32>
    %c511_i32_292 = arith.constant 511 : i32
    %411 = tpu.dynamic_rotate %358 by %c511_i32_292 dim 1 : vector<48x512xf32>, i32 -> vector<48x512xf32>
    %c4_293 = arith.constant 4 : index
    %c0_294 = arith.constant 0 : index
    %c0_295 = arith.constant 0 : index
    %412 = vector.load %arg2[%c4_293, %c0_294, %c0_295] : memref<8x1x512xf32, #tpu.memory_space<vmem>>, vector<1x1x512xf32>
    %413 = vector.shape_cast %412 : vector<1x1x512xf32> to vector<1x512xf32>
    %414 = vector.broadcast %413 : vector<1x512xf32> to vector<48x512xf32>
    %415 = arith.mulf %411, %414 : vector<48x512xf32>
    %416 = vector.broadcast %370 : vector<48x1xf32> to vector<48x512xf32>
    %417 = arith.mulf %415, %416 : vector<48x512xf32>
    %418 = arith.addf %410, %417 : vector<48x512xf32>
    %c497_i32_296 = arith.constant 497 : i32
    %419 = tpu.dynamic_rotate %358 by %c497_i32_296 dim 1 : vector<48x512xf32>, i32 -> vector<48x512xf32>
    %c5_297 = arith.constant 5 : index
    %c0_298 = arith.constant 0 : index
    %c0_299 = arith.constant 0 : index
    %420 = vector.load %arg2[%c5_297, %c0_298, %c0_299] : memref<8x1x512xf32, #tpu.memory_space<vmem>>, vector<1x1x512xf32>
    %421 = vector.shape_cast %420 : vector<1x1x512xf32> to vector<1x512xf32>
    %422 = vector.broadcast %421 : vector<1x512xf32> to vector<48x512xf32>
    %423 = arith.mulf %419, %422 : vector<48x512xf32>
    %424 = vector.broadcast %372 : vector<48x1xf32> to vector<48x512xf32>
    %425 = arith.mulf %423, %424 : vector<48x512xf32>
    %426 = arith.addf %418, %425 : vector<48x512xf32>
    %c496_i32_300 = arith.constant 496 : i32
    %427 = tpu.dynamic_rotate %358 by %c496_i32_300 dim 1 : vector<48x512xf32>, i32 -> vector<48x512xf32>
    %c6_301 = arith.constant 6 : index
    %c0_302 = arith.constant 0 : index
    %c0_303 = arith.constant 0 : index
    %428 = vector.load %arg2[%c6_301, %c0_302, %c0_303] : memref<8x1x512xf32, #tpu.memory_space<vmem>>, vector<1x1x512xf32>
    %429 = vector.shape_cast %428 : vector<1x1x512xf32> to vector<1x512xf32>
    %430 = vector.broadcast %429 : vector<1x512xf32> to vector<48x512xf32>
    %431 = arith.mulf %427, %430 : vector<48x512xf32>
    %432 = vector.broadcast %374 : vector<48x1xf32> to vector<48x512xf32>
    %433 = arith.mulf %431, %432 : vector<48x512xf32>
    %434 = arith.addf %426, %433 : vector<48x512xf32>
    %c495_i32_304 = arith.constant 495 : i32
    %435 = tpu.dynamic_rotate %358 by %c495_i32_304 dim 1 : vector<48x512xf32>, i32 -> vector<48x512xf32>
    %c7_305 = arith.constant 7 : index
    %c0_306 = arith.constant 0 : index
    %c0_307 = arith.constant 0 : index
    %436 = vector.load %arg2[%c7_305, %c0_306, %c0_307] : memref<8x1x512xf32, #tpu.memory_space<vmem>>, vector<1x1x512xf32>
    %437 = vector.shape_cast %436 : vector<1x1x512xf32> to vector<1x512xf32>
    %438 = vector.broadcast %437 : vector<1x512xf32> to vector<48x512xf32>
    %439 = arith.mulf %435, %438 : vector<48x512xf32>
    %440 = vector.broadcast %376 : vector<48x1xf32> to vector<48x512xf32>
    %441 = arith.mulf %439, %440 : vector<48x512xf32>
    %442 = arith.addf %434, %441 : vector<48x512xf32>
    %cst_308 = arith.constant 0.000000e+00 : f32
    %cst_309 = arith.constant 6.000000e+00 : f32
    %443 = vector.broadcast %cst_308 : f32 to vector<48x512xf32>
    %444 = arith.maximumf %443, %442 : vector<48x512xf32>
    %445 = vector.broadcast %cst_309 : f32 to vector<48x512xf32>
    %446 = arith.minimumf %445, %444 : vector<48x512xf32>
    %c2_310 = arith.constant 2 : index
    %c0_311 = arith.constant 0 : index
    %c0_312 = arith.constant 0 : index
    %447 = vector.load %arg5[%c2_310, %c0_311, %c0_312] : memref<3x8x48xbf16, #tpu.memory_space<vmem>>, vector<1x8x48xbf16>
    %448 = vector.shape_cast %447 : vector<1x8x48xbf16> to vector<8x48xbf16>
    %449 = arith.truncf %446 : vector<48x512xf32> to vector<48x512xbf16>
    %cst_313 = arith.constant dense<0.000000e+00> : vector<8x512xf32>
    %450 = tpu.matmul %448, %449, %cst_313 {dimension_numbers = #tpu.dot_dimension_numbers<[1], [0], [0], [1], [0, 0, 1, 1], [], []>} : vector<8x48xbf16>, vector<48x512xbf16>, vector<8x512xf32> -> vector<8x512xf32>
    %451 = vector.extract_strided_slice %450 {offsets = [0, 0], sizes = [8, 256], strides = [1, 1]} : vector<8x512xf32> to vector<8x256xf32>
    %cst_314 = arith.constant dense<0.000000e+00> : vector<8xf32>
    %452 = vector.multi_reduction <add>, %451, %cst_314 [1] : vector<8x256xf32> to vector<8xf32>
    %453 = vector.shape_cast %452 : vector<8xf32> to vector<8x1xf32>
    %cst_315 = arith.constant 2.560000e+02 : f32
    %454 = vector.broadcast %cst_315 : f32 to vector<8x1xf32>
    %455 = arith.divf %453, %454 : vector<8x1xf32>
    %c2_316 = arith.constant 2 : index
    %c0_317 = arith.constant 0 : index
    %c0_318 = arith.constant 0 : index
    %456 = vector.load %arg6[%c2_316, %c0_317, %c0_318] : memref<3x8x2xf32, #tpu.memory_space<vmem>>, vector<1x8x2xf32>
    %457 = vector.shape_cast %456 : vector<1x8x2xf32> to vector<8x2xf32>
    %458 = vector.broadcast %455 : vector<8x1xf32> to vector<8x2xf32>
    %459 = arith.mulf %457, %458 : vector<8x2xf32>
    %cst_319 = arith.constant dense<0.000000e+00> : vector<2xf32>
    %460 = vector.multi_reduction <add>, %459, %cst_319 [0] : vector<8x2xf32> to vector<2xf32>
    %461 = vector.shape_cast %460 : vector<2xf32> to vector<1x2xf32>
    %c2_320 = arith.constant 2 : index
    %c0_321 = arith.constant 0 : index
    %c0_322 = arith.constant 0 : index
    %462 = vector.load %arg7[%c2_320, %c0_321, %c0_322] : memref<3x1x2xf32, #tpu.memory_space<vmem>>, vector<1x1x2xf32>
    %463 = vector.shape_cast %462 : vector<1x1x2xf32> to vector<1x2xf32>
    %464 = arith.addf %461, %463 : vector<1x2xf32>
    %cst_323 = arith.constant 0.000000e+00 : f32
    %465 = vector.broadcast %cst_323 : f32 to vector<1x2xf32>
    %466 = arith.maximumf %464, %465 : vector<1x2xf32>
    %c2_324 = arith.constant 2 : index
    %c0_325 = arith.constant 0 : index
    %c0_326 = arith.constant 0 : index
    %467 = vector.load %arg8[%c2_324, %c0_325, %c0_326] : memref<3x8x2xf32, #tpu.memory_space<vmem>>, vector<1x8x2xf32>
    %468 = vector.shape_cast %467 : vector<1x8x2xf32> to vector<8x2xf32>
    %469 = vector.broadcast %466 : vector<1x2xf32> to vector<8x2xf32>
    %470 = arith.mulf %468, %469 : vector<8x2xf32>
    %cst_327 = arith.constant dense<0.000000e+00> : vector<8xf32>
    %471 = vector.multi_reduction <add>, %470, %cst_327 [1] : vector<8x2xf32> to vector<8xf32>
    %472 = vector.shape_cast %471 : vector<8xf32> to vector<8x1xf32>
    %c2_328 = arith.constant 2 : index
    %c0_329 = arith.constant 0 : index
    %c0_330 = arith.constant 0 : index
    %473 = vector.load %arg9[%c2_328, %c0_329, %c0_330] : memref<3x8x1xf32, #tpu.memory_space<vmem>>, vector<1x8x1xf32>
    %474 = vector.shape_cast %473 : vector<1x8x1xf32> to vector<8x1xf32>
    %475 = arith.addf %472, %474 : vector<8x1xf32>
    %476 = arith.negf %475 : vector<8x1xf32>
    %477 = math.exp %476 : vector<8x1xf32>
    %cst_331 = arith.constant 1.000000e+00 : f32
    %478 = vector.broadcast %cst_331 : f32 to vector<8x1xf32>
    %479 = arith.addf %478, %477 : vector<8x1xf32>
    %480 = arith.divf %478, %479 : vector<8x1xf32>
    %481 = vector.shape_cast %480 : vector<8x1xf32> to vector<8x1xf32>
    %482 = vector.broadcast %481 : vector<8x1xf32> to vector<8x256xf32>
    %483 = vector.extract_strided_slice %450 {offsets = [0, 256], sizes = [8, 256], strides = [1, 1]} : vector<8x512xf32> to vector<8x256xf32>
    %cst_332 = arith.constant dense<0.000000e+00> : vector<8xf32>
    %484 = vector.multi_reduction <add>, %483, %cst_332 [1] : vector<8x256xf32> to vector<8xf32>
    %485 = vector.shape_cast %484 : vector<8xf32> to vector<8x1xf32>
    %cst_333 = arith.constant 2.560000e+02 : f32
    %486 = vector.broadcast %cst_333 : f32 to vector<8x1xf32>
    %487 = arith.divf %485, %486 : vector<8x1xf32>
    %c2_334 = arith.constant 2 : index
    %c0_335 = arith.constant 0 : index
    %c0_336 = arith.constant 0 : index
    %488 = vector.load %arg6[%c2_334, %c0_335, %c0_336] : memref<3x8x2xf32, #tpu.memory_space<vmem>>, vector<1x8x2xf32>
    %489 = vector.shape_cast %488 : vector<1x8x2xf32> to vector<8x2xf32>
    %490 = vector.broadcast %487 : vector<8x1xf32> to vector<8x2xf32>
    %491 = arith.mulf %489, %490 : vector<8x2xf32>
    %cst_337 = arith.constant dense<0.000000e+00> : vector<2xf32>
    %492 = vector.multi_reduction <add>, %491, %cst_337 [0] : vector<8x2xf32> to vector<2xf32>
    %493 = vector.shape_cast %492 : vector<2xf32> to vector<1x2xf32>
    %c2_338 = arith.constant 2 : index
    %c0_339 = arith.constant 0 : index
    %c0_340 = arith.constant 0 : index
    %494 = vector.load %arg7[%c2_338, %c0_339, %c0_340] : memref<3x1x2xf32, #tpu.memory_space<vmem>>, vector<1x1x2xf32>
    %495 = vector.shape_cast %494 : vector<1x1x2xf32> to vector<1x2xf32>
    %496 = arith.addf %493, %495 : vector<1x2xf32>
    %cst_341 = arith.constant 0.000000e+00 : f32
    %497 = vector.broadcast %cst_341 : f32 to vector<1x2xf32>
    %498 = arith.maximumf %496, %497 : vector<1x2xf32>
    %c2_342 = arith.constant 2 : index
    %c0_343 = arith.constant 0 : index
    %c0_344 = arith.constant 0 : index
    %499 = vector.load %arg8[%c2_342, %c0_343, %c0_344] : memref<3x8x2xf32, #tpu.memory_space<vmem>>, vector<1x8x2xf32>
    %500 = vector.shape_cast %499 : vector<1x8x2xf32> to vector<8x2xf32>
    %501 = vector.broadcast %498 : vector<1x2xf32> to vector<8x2xf32>
    %502 = arith.mulf %500, %501 : vector<8x2xf32>
    %cst_345 = arith.constant dense<0.000000e+00> : vector<8xf32>
    %503 = vector.multi_reduction <add>, %502, %cst_345 [1] : vector<8x2xf32> to vector<8xf32>
    %504 = vector.shape_cast %503 : vector<8xf32> to vector<8x1xf32>
    %c2_346 = arith.constant 2 : index
    %c0_347 = arith.constant 0 : index
    %c0_348 = arith.constant 0 : index
    %505 = vector.load %arg9[%c2_346, %c0_347, %c0_348] : memref<3x8x1xf32, #tpu.memory_space<vmem>>, vector<1x8x1xf32>
    %506 = vector.shape_cast %505 : vector<1x8x1xf32> to vector<8x1xf32>
    %507 = arith.addf %504, %506 : vector<8x1xf32>
    %508 = arith.negf %507 : vector<8x1xf32>
    %509 = math.exp %508 : vector<8x1xf32>
    %cst_349 = arith.constant 1.000000e+00 : f32
    %510 = vector.broadcast %cst_349 : f32 to vector<8x1xf32>
    %511 = arith.addf %510, %509 : vector<8x1xf32>
    %512 = arith.divf %510, %511 : vector<8x1xf32>
    %513 = vector.shape_cast %512 : vector<8x1xf32> to vector<8x1xf32>
    %514 = vector.broadcast %513 : vector<8x1xf32> to vector<8x256xf32>
    %515 = tpu.concatenate %482, %514 in 1 : vector<8x256xf32>, vector<8x256xf32> -> vector<8x512xf32>
    %516 = arith.mulf %450, %515 : vector<8x512xf32>
    %517 = arith.addf %350, %516 : vector<8x512xf32>
    %c24 = arith.constant 24 : index
    %c0_350 = arith.constant 0 : index
    %518 = vector.load %arg16[%c24, %c0_350] : memref<32x512xf32, #tpu.memory_space<vmem>>, vector<8x512xf32>
    tpu.vector_store %arg16[%c24, %c0_350], %517 {strides = array<i32>} : memref<32x512xf32, #tpu.memory_space<vmem>>, vector<8x512xf32>,
    %c0_351 = arith.constant 0 : index
    %c0_352 = arith.constant 0 : index
    %519 = vector.load %arg12[%c0_351, %c0_352] : memref<8x32xbf16, #tpu.memory_space<vmem>>, vector<8x32xbf16>
    %c0_353 = arith.constant 0 : index
    %c0_354 = arith.constant 0 : index
    %520 = vector.load %arg16[%c0_353, %c0_354] : memref<32x512xf32, #tpu.memory_space<vmem>>, vector<32x512xf32>
    %521 = arith.truncf %520 : vector<32x512xf32> to vector<32x512xbf16>
    %cst_355 = arith.constant dense<0.000000e+00> : vector<8x512xf32>
    %522 = tpu.matmul %519, %521, %cst_355 {dimension_numbers = #tpu.dot_dimension_numbers<[1], [0], [0], [1], [0, 0, 1, 1], [], []>} : vector<8x32xbf16>, vector<32x512xbf16>, vector<8x512xf32> -> vector<8x512xf32>
    %cst_356 = arith.constant 0.000000e+00 : f32
    %523 = vector.broadcast %cst_356 : f32 to vector<8x512xf32>
    %524 = arith.maximumf %522, %523 : vector<8x512xf32>
    %c0_357 = arith.constant 0 : index
    %c0_358 = arith.constant 0 : index
    %c0_359 = arith.constant 0 : index
    %525 = vector.load %arg13[%c0_357, %c0_358, %c0_359] : memref<1x8x512xf32, #tpu.memory_space<vmem>>, vector<1x8x512xf32>
    %526 = vector.shape_cast %525 : vector<1x8x512xf32> to vector<8x512xf32>
    %527 = vector.shape_cast %176 : vector<8x512xf32> to vector<1x8x512xf32>
    tpu.vector_store %arg13[%c0_357, %c0_358, %c0_359], %527 {strides = array<i32>} : memref<1x8x512xf32, #tpu.memory_space<vmem>>, vector<1x8x512xf32>,
    %c0_360 = arith.constant 0 : index
    %c0_361 = arith.constant 0 : index
    %c0_362 = arith.constant 0 : index
    %528 = vector.load %arg14[%c0_360, %c0_361, %c0_362] : memref<1x8x512xf32, #tpu.memory_space<vmem>>, vector<1x8x512xf32>
    %529 = vector.shape_cast %528 : vector<1x8x512xf32> to vector<8x512xf32>
    %530 = vector.shape_cast %350 : vector<8x512xf32> to vector<1x8x512xf32>
    tpu.vector_store %arg14[%c0_360, %c0_361, %c0_362], %530 {strides = array<i32>} : memref<1x8x512xf32, #tpu.memory_space<vmem>>, vector<1x8x512xf32>,
    %c0_363 = arith.constant 0 : index
    %c0_364 = arith.constant 0 : index
    %c0_365 = arith.constant 0 : index
    %531 = vector.load %arg15[%c0_363, %c0_364, %c0_365] : memref<1x8x512xf32, #tpu.memory_space<vmem>>, vector<1x8x512xf32>
    %532 = vector.shape_cast %531 : vector<1x8x512xf32> to vector<8x512xf32>
    %533 = vector.shape_cast %524 : vector<8x512xf32> to vector<1x8x512xf32>
    tpu.vector_store %arg15[%c0_363, %c0_364, %c0_365], %533 {strides = array<i32>} : memref<1x8x512xf32, #tpu.memory_space<vmem>>, vector<1x8x512xf32>,
    return
  }
  func.func @transform_0(%arg0: i32) -> (i32, i32, i32) {
    %c0_i32 = arith.constant 0 : i32
    %c0_i32_0 = arith.constant 0 : i32
    %c0_i32_1 = arith.constant 0 : i32
    return %arg0, %c0_i32, %c0_i32_0 : i32, i32, i32
  }
  func.func @transform_1(%arg0: i32) -> (i32, i32, i32) {
    %c0_i32 = arith.constant 0 : i32
    %c0_i32_0 = arith.constant 0 : i32
    %c0_i32_1 = arith.constant 0 : i32
    %c0_i32_2 = arith.constant 0 : i32
    return %c0_i32, %c0_i32_0, %c0_i32_1 : i32, i32, i32
  }
  func.func @transform_2(%arg0: i32) -> (i32, i32, i32) {
    %c0_i32 = arith.constant 0 : i32
    %c0_i32_0 = arith.constant 0 : i32
    %c0_i32_1 = arith.constant 0 : i32
    %c0_i32_2 = arith.constant 0 : i32
    return %c0_i32, %c0_i32_0, %c0_i32_1 : i32, i32, i32
  }
  func.func @transform_3(%arg0: i32) -> (i32, i32, i32, i32) {
    %c0_i32 = arith.constant 0 : i32
    %c0_i32_0 = arith.constant 0 : i32
    %c0_i32_1 = arith.constant 0 : i32
    %c0_i32_2 = arith.constant 0 : i32
    %c0_i32_3 = arith.constant 0 : i32
    return %c0_i32, %c0_i32_0, %c0_i32_1, %c0_i32_2 : i32, i32, i32, i32
  }
  func.func @transform_4(%arg0: i32) -> (i32, i32, i32) {
    %c0_i32 = arith.constant 0 : i32
    %c0_i32_0 = arith.constant 0 : i32
    %c0_i32_1 = arith.constant 0 : i32
    %c0_i32_2 = arith.constant 0 : i32
    return %c0_i32, %c0_i32_0, %c0_i32_1 : i32, i32, i32
  }
  func.func @transform_5(%arg0: i32) -> (i32, i32, i32) {
    %c0_i32 = arith.constant 0 : i32
    %c0_i32_0 = arith.constant 0 : i32
    %c0_i32_1 = arith.constant 0 : i32
    %c0_i32_2 = arith.constant 0 : i32
    return %c0_i32, %c0_i32_0, %c0_i32_1 : i32, i32, i32
  }
  func.func @transform_6(%arg0: i32) -> (i32, i32, i32) {
    %c0_i32 = arith.constant 0 : i32
    %c0_i32_0 = arith.constant 0 : i32
    %c0_i32_1 = arith.constant 0 : i32
    %c0_i32_2 = arith.constant 0 : i32
    return %c0_i32, %c0_i32_0, %c0_i32_1 : i32, i32, i32
  }
  func.func @transform_7(%arg0: i32) -> (i32, i32, i32) {
    %c0_i32 = arith.constant 0 : i32
    %c0_i32_0 = arith.constant 0 : i32
    %c0_i32_1 = arith.constant 0 : i32
    %c0_i32_2 = arith.constant 0 : i32
    return %c0_i32, %c0_i32_0, %c0_i32_1 : i32, i32, i32
  }
  func.func @transform_8(%arg0: i32) -> (i32, i32, i32) {
    %c0_i32 = arith.constant 0 : i32
    %c0_i32_0 = arith.constant 0 : i32
    %c0_i32_1 = arith.constant 0 : i32
    %c0_i32_2 = arith.constant 0 : i32
    return %c0_i32, %c0_i32_0, %c0_i32_1 : i32, i32, i32
  }
  func.func @transform_9(%arg0: i32) -> (i32, i32) {
    %c0_i32 = arith.constant 0 : i32
    %c0_i32_0 = arith.constant 0 : i32
    %c0_i32_1 = arith.constant 0 : i32
    return %c0_i32, %c0_i32_0 : i32, i32
  }
  func.func @transform_10(%arg0: i32) -> (i32, i32) {
    %c0_i32 = arith.constant 0 : i32
    %c0_i32_0 = arith.constant 0 : i32
    %c0_i32_1 = arith.constant 0 : i32
    return %c0_i32, %c0_i32_0 : i32, i32
  }
  func.func @transform_11(%arg0: i32) -> (i32, i32) {
    %c0_i32 = arith.constant 0 : i32
    %c0_i32_0 = arith.constant 0 : i32
    %c0_i32_1 = arith.constant 0 : i32
    return %c0_i32, %c0_i32_0 : i32, i32
  }
  func.func @transform_12(%arg0: i32) -> (i32, i32, i32) {
    %c0_i32 = arith.constant 0 : i32
    %c0_i32_0 = arith.constant 0 : i32
    %c0_i32_1 = arith.constant 0 : i32
    return %arg0, %c0_i32, %c0_i32_0 : i32, i32, i32
  }
  func.func @transform_13(%arg0: i32) -> (i32, i32, i32) {
    %c0_i32 = arith.constant 0 : i32
    %c0_i32_0 = arith.constant 0 : i32
    %c0_i32_1 = arith.constant 0 : i32
    return %arg0, %c0_i32, %c0_i32_0 : i32, i32, i32
  }
  func.func @transform_14(%arg0: i32) -> (i32, i32, i32) {
    %c0_i32 = arith.constant 0 : i32
    %c0_i32_0 = arith.constant 0 : i32
    %c0_i32_1 = arith.constant 0 : i32
    return %arg0, %c0_i32, %c0_i32_0 : i32, i32, i32
  }
}

</mosaic_0001>

<bundles_post_ra>
// kernel: first_block_forward.1
= control target key start
LH: loop header
LB: loop body
LE: loop exit
PB: predicated region body
PF: predicated region fallthrough
CT: control target
= control target key end

     0   :  { %vm88_vm0 = vcmask 1043456   ;;  %v14428_v3 = vmov 0   ;;  %vm78_vm1 = vcmask 64512   ;;  %s7165_s19 = smov 17   ;;  %s7166_s20 = smov 16   ;;  %vm2037_vm10 = vcmask 392192   ;;  %s14413_s0 = inlined_call_operand.vmem [shape: f32[1,8,512], index: 0, kind: input, shape index: {}]   ;;  %s14414_s2 = inlined_call_operand.vmem [shape: bf16[3,48,8], index: 2, kind: input, shape index: {}]   ;;  %s14415_s3 = inlined_call_operand.vmem [shape: f32[3,9,48,1], index: 3, kind: input, shape index: {}]   ;;  %s14416_s1 = inlined_call_operand.vmem [shape: f32[8,1,512], index: 1, kind: input, shape index: {}]   ;;  %s14417_s4 = inlined_call_operand.vmem [shape: bf16[3,8,48], index: 4, kind: input, shape index: {}]   ;;  %s14418_s5 = inlined_call_operand.vmem [shape: f32[3,8,2], index: 5, kind: input, shape index: {}]   ;;  %s14419_s6 = inlined_call_operand.vmem [shape: f32[3,1,2], index: 6, kind: input, shape index: {}]   ;;  %s14420_s7 = inlined_call_operand.vmem [shape: f32[3,8,2], index: 7, kind: input, shape index: {}]   ;;  %s14421_s8 = inlined_call_operand.vmem [shape: f32[3,8,1], index: 8, kind: input, shape index: {}]   ;;  %s14422_s9 = inlined_call_operand.vmem [shape: bf16[8,16], index: 9, kind: input, shape index: {}]   ;;  %s14423_s12 = inlined_call_operand.vmem [shape: f32[1,8,512], index: 12, kind: output, shape index: {0}]   ;;  %s14424_s10 = inlined_call_operand.vmem [shape: bf16[8,24], index: 10, kind: input, shape index: {}]   ;;  %s14425_s13 = inlined_call_operand.vmem [shape: f32[1,8,512], index: 13, kind: output, shape index: {1}]   ;;  %s14426_s11 = inlined_call_operand.vmem [shape: bf16[8,32], index: 11, kind: input, shape index: {}]   ;;  %s14427_s14 = inlined_call_operand.vmem [shape: f32[1,8,512], index: 14, kind: output, shape index: {2}]  }
   0x1   :  { %v46_v0 = vld [vmem:[%s14413_s0 + $0x8] sm:$0xff]  ;;  %v45_v1 = vld [vmem:[%s14413_s0] sm:$0xff]  ;;  %v48_v2 = vld [vmem:[%s14413_s0 + $0x18] sm:$0xff]  ;;  %133 = vmatprep.mubr.bf16.mxu0 %v14428_v3  ;;  %196 = vmatprep.mubr.bf16.mxu1 %v14428_v3  ;;  %s7167_s21 = smov 15   ;;  %s7168_s22 = smov 1   ;;  %vm2130_vm11 = vcmask 15360  }
   0x2   :  { %v60_v4 = vpack.c.bf16 %v46_v0, %v46_v0  ;;  %v59_v5 = vpack.c.bf16 %v45_v1, %v45_v1  ;;  %v62_v6 = vpack.c.bf16 %v48_v2, %v48_v2  ;;  %v47_v7 = vld [vmem:[%s14413_s0 + $0x10] sm:$0xff]  ;;  %7118 = vset.pattern.permute.xlu1 %v14428_v3  ;;  %7117 = vset.pattern.permute.xlu0 %v14428_v3  ;;  %v7119_v10 = vld [vmem:[%s14414_s2] sm:$0xff]   ;;  %v6886_v14 = vld [vmem:[%s14415_s3 + $0xc8] sm:$0xff]  ;;  %s7169_s23 = smov 127   ;;  %s7170_s28 = smov 113   ;;  %vm2222_vm12 = vcmask 130048  }
   0x3   :  { %v61_v8 = vpack.c.bf16 %v47_v7, %v47_v7  ;;  %v6885_v12 = vld [vmem:[%s14415_s3 + $0xc0] sm:$0xff]  ;;  %v276_v15 = vld [vmem:[%s14415_s3 + $0x8] sm:$0xff]  ;;  %v6867_v16 = vld [vmem:[%s14415_s3 + $0x30] sm:$0xff]  ;;  %s14690_s15 = smov 112   ;;  %s14688_s30 = smov 111   ;;  %vm4474_vm13 = vcmask 195584  }
   0x4   :  { %6859 = vmatprep.subr.msk.bf16.mxu0 %vm88_vm0, %v60_v4  ;;  %v90_v9 = vsel %vm88_vm0, %v59_v5, 0  ;;  %6863 = vmatprep.subr.msk.bf16.mxu1 %vm88_vm0, %v62_v6  ;;  %v275_v13 = vld [vmem:[%s14415_s3] sm:$0xff]  ;;  %v7120_v17 = vld [vmem:[%s14414_s2 + $0x8] sm:$0xff]   ;;  %v6868_v18 = vld [vmem:[%s14415_s3 + $0x38] sm:$0xff]  ;;  %s15543_s27 = smov 111   ;;  %vm6742_vm14 = vcmask 261120  }
   0x5   :  { %102 = vmatpush1.bf16.msra.mxu0 %v90_v9  ;;  %v96_v11 = vsel %vm88_vm0, %v61_v8, 0  ;;  %339 = vperm.xlu0 %7117, %v6885_v12   ;;  %v6887_v19 = vld [vmem:[%s14415_s3 + $0xd0] sm:$0xff]  ;;  %v6888_v20 = vld [vmem:[%s14415_s3 + $0xd8] sm:$0xff]  ;;  %v6873_v24 = vld [vmem:[%s14415_s3 + $0x60] sm:$0xff] }
   0x6   :  { %165 = vmatpush1.bf16.msra.mxu1 %v96_v11  ;;  %514 = vperm.xlu1 %7118, %v275_v13   ;;  %v277_v21 = vld [vmem:[%s14415_s3 + $0x10] sm:$0xff]  ;;  %v278_v23 = vld [vmem:[%s14415_s3 + $0x18] sm:$0xff]  ;;  %v6874_v25 = vld [vmem:[%s14415_s3 + $0x68] sm:$0xff] }
   0x7   :  { %v7121_v22 = vld [vmem:[%s14414_s2 + $0x10] sm:$0xff]   ;;  %v6869_v26 = vld [vmem:[%s14415_s3 + $0x40] sm:$0xff]  ;;  %v6870_v27 = vld [vmem:[%s14415_s3 + $0x48] sm:$0xff] }
   0x8   :  { %6860 = vmatmul.mubr.msk.bf16.vlgmr.msra.gmra.mrb[0].mxu0 %vm78_vm1, %v7119_v10  ;;  %v6879_v28 = vld [vmem:[%s14415_s3 + $0x90] sm:$0xff]  ;;  %v6880_v29 = vld [vmem:[%s14415_s3 + $0x98] sm:$0xff]  ;;  %v6889_v30 = vld [vmem:[%s14415_s3 + $0xe0] sm:$0xff] }
   0x9   :  { %6864 = vmatmul.mubr.msk.bf16.vlgmr.msra.gmra.mrb[0].mxu1 %vm78_vm1, %v7119_v10  ;;  %143 = vmatprep.mubr.bf16.mxu0 %v14428_v3  ;;  %v6890_v31 = vld [vmem:[%s14415_s3 + $0xe8] sm:$0xff]  ;;  %v279_v32 = vld [vmem:[%s14415_s3 + $0x20] sm:$0xff]  ;;  %v6875_v34 = vld [vmem:[%s14415_s3 + $0x70] sm:$0xff] }
   0xa   :  { %206 = vmatprep.mubr.bf16.mxu1 %v14428_v3  ;;  %344 = vperm.xlu0 %7117, %v6886_v14   ;;  %v280_v33 = vld [vmem:[%s14415_s3 + $0x28] sm:$0xff]  ;;  %v6876_v35 = vld [vmem:[%s14415_s3 + $0x78] sm:$0xff]  ;;  %v6891_v36 = vld [vmem:[%s14415_s3 + $0xf0] sm:$0xff] }
   0xb   :  { %519 = vperm.xlu1 %7118, %v276_v15   ;;  %v6892_v37 = vld [vmem:[%s14415_s3 + $0xf8] sm:$0xff]  ;;  %v6871_v38 = vld [vmem:[%s14415_s3 + $0x50] sm:$0xff]  ;;  %v6881_v40 = vld [vmem:[%s14415_s3 + $0xa0] sm:$0xff] }
   0xc   :  { %v6872_v39 = vld [vmem:[%s14415_s3 + $0x58] sm:$0xff]  ;;  %v6882_v41 = vld [vmem:[%s14415_s3 + $0xa8] sm:$0xff]  ;;  %v6897_v42 = vld [vmem:[%s14415_s3 + $0x120] sm:$0xff] }
   0xd   :  { %v6898_v43 = vld [vmem:[%s14415_s3 + $0x128] sm:$0xff]  ;;  %v6877_v44 = vld [vmem:[%s14415_s3 + $0x80] sm:$0xff]  ;;  %v6903_v48 = vld [vmem:[%s14415_s3 + $0x150] sm:$0xff] }
   0xe   :  { %712 = vperm.xlu0 %7117, %v6867_v16   ;;  %v6878_v45 = vld [vmem:[%s14415_s3 + $0x88] sm:$0xff]  ;;  %v6893_v46 = vld [vmem:[%s14415_s3 + $0x100] sm:$0xff]  ;;  %v6904_v49 = vld [vmem:[%s14415_s3 + $0x158] sm:$0xff] }
   0xf   :  { %717 = vperm.xlu1 %7118, %v6868_v18   ;;  %v6894_v47 = vld [vmem:[%s14415_s3 + $0x108] sm:$0xff] }
  0x10   :  { %6861 = vmatmul.mubr.msk.bf16.gmra.mrb[4].mxu0 %vm78_vm1, %v7120_v17 }
  0x11   :  { %6865 = vmatmul.mubr.msk.bf16.gmra.mrb[4].mxu1 %vm78_vm1, %v7120_v17  ;;  %153 = vmatprep.mubr.bf16.mxu0 %v14428_v3 }
  0x12   :  { %216 = vmatprep.mubr.bf16.mxu1 %v14428_v3  ;;  %349 = vperm.xlu0 %7117, %v6887_v19  }
  0x13   :  { %354 = vperm.xlu1 %7118, %v6888_v20  }
  0x16   :  { %524 = vperm.xlu0 %7117, %v277_v21  }
  0x17   :  { %529 = vperm.xlu1 %7118, %v278_v23  }
  0x18   :  { %6862 = vmatmul.mubr.msk.bf16.gmra.mrb[8].mxu0 %vm78_vm1, %v7121_v22 }
  0x19   :  { %6866 = vmatmul.mubr.msk.bf16.gmra.mrb[8].mxu1 %vm78_vm1, %v7121_v22  ;;  %2073 = vmatprep.mubr.bf16.mxu0 %v14428_v3 }
  0x1a   :  { %910 = vperm.xlu0 %7117, %v6873_v24   ;;  %2114 = vmatprep.mubr.bf16.mxu1 %v14428_v3 }
  0x1b   :  { %915 = vperm.xlu1 %7118, %v6874_v25  }
  0x1e   :  { %722 = vperm.xlu0 %7117, %v6869_v26  }
  0x1f   :  { %727 = vperm.xlu1 %7118, %v6870_v27  }
  0x22   :  { %1108 = vperm.xlu0 %7117, %v6879_v28  }
  0x23   :  { %1113 = vperm.xlu1 %7118, %v6880_v29  }
  0x26   :  { %359 = vperm.xlu0 %7117, %v6889_v30  }
  0x27   :  { %364 = vperm.xlu1 %7118, %v6890_v31  }
  0x2a   :  { %534 = vperm.xlu0 %7117, %v279_v32  }
  0x2b   :  { %539 = vperm.xlu1 %7118, %v280_v33  }
  0x2e   :  { %920 = vperm.xlu0 %7117, %v6875_v34  }
  0x2f   :  { %925 = vperm.xlu1 %7118, %v6876_v35  }
  0x32   :  { %1306 = vperm.xlu0 %7117, %v6891_v36  }
  0x33   :  { %1311 = vperm.xlu1 %7118, %v6892_v37  }
  0x36   :  { %732 = vperm.xlu0 %7117, %v6871_v38  }
  0x37   :  { %737 = vperm.xlu1 %7118, %v6872_v39  }
  0x3a   :  { %1118 = vperm.xlu0 %7117, %v6881_v40  }
  0x3b   :  { %1123 = vperm.xlu1 %7118, %v6882_v41  }
  0x3e   :  { %1504 = vperm.xlu0 %7117, %v6897_v42  }
  0x3f   :  { %1509 = vperm.xlu1 %7118, %v6898_v43  }
  0x42   :  { %930 = vperm.xlu0 %7117, %v6877_v44  }
  0x43   :  { %935 = vperm.xlu1 %7118, %v6878_v45  }
  0x46   :  { %1316 = vperm.xlu0 %7117, %v6893_v46  }
  0x47   :  { %1321 = vperm.xlu1 %7118, %v6894_v47  }
  0x4a   :  { %1702 = vperm.xlu0 %7117, %v6903_v48  }
  0x4b   :  { %1707 = vperm.xlu1 %7118, %v6904_v49  }
  0x84   :  { %v7415_v1 = vpop.permute.xlu0 %339 }
  0x85   :  { %v7441_v12 = vpop.permute.xlu1 %514 }
  0x89   :  { %v7445_v13 = vpop.permute.xlu0 %344 }
  0x8a   :  { %v7467_v22 = vpop.permute.xlu1 %519 }
  0x8d   :  { %v7473_v23 = vpop.permute.xlu0 %712 }
  0x8e   :  { %v7477_v24 = vpop.permute.xlu1 %717 }
  0x8f   :  { %15011 = vst [vmem:[#allocation3_spill] sm:$0xff] %v7477_v24 }
  0x91   :  { %v7483_v25 = vpop.permute.xlu0 %349 }
  0x92   :  { %v7487_v26 = vpop.permute.xlu1 %354 }
  0x95   :  { %v7493_v27 = vpop.permute.xlu0 %524 }
  0x96   :  { %15012 = vst [vmem:[#allocation4_spill] sm:$0xff] %v7493_v27  ;;  %v7498_v29 = vpop.permute.xlu1 %529 }
  0x97   :  { %15013 = vst [vmem:[#allocation5_spill] sm:$0xff] %v7498_v29 }
  0x99   :  { %v7508_v33 = vpop.permute.xlu0 %910 }
  0x9a   :  { %15014 = vst [vmem:[#allocation6_spill] sm:$0xff] %v7508_v33  ;;  %v7515_v36 = vpop.permute.xlu1 %915 }
  0x9b   :  { %15015 = vst [vmem:[#allocation7_spill] sm:$0xff] %v7515_v36 }
  0x9d   :  { %v7525_v39 = vpop.permute.xlu0 %722 }
  0x9e   :  { %15016 = vst [vmem:[#allocation8_spill] sm:$0xff] %v7525_v39  ;;  %v7529_v40 = vpop.permute.xlu1 %727 }
  0x9f   :  { %15017 = vst [vmem:[#allocation9_spill] sm:$0xff] %v7529_v40 }
  0xa1   :  { %v7535_v41 = vpop.permute.xlu0 %1108 }
  0xa2   :  { %15018 = vst [vmem:[#allocation10_spill] sm:$0xff] %v7535_v41  ;;  %v7539_v42 = vpop.permute.xlu1 %1113 }
  0xa3   :  { %15019 = vst [vmem:[#allocation11_spill] sm:$0xff] %v7539_v42 }
  0xa5   :  { %v7545_v43 = vpop.permute.xlu0 %359 }
  0xa6   :  { %v7549_v44 = vpop.permute.xlu1 %364 }
  0xa9   :  { %v7555_v45 = vpop.permute.xlu0 %534 }
  0xaa   :  { %15020 = vst [vmem:[#allocation12_spill] sm:$0xff] %v7555_v45  ;;  %v7559_v46 = vpop.permute.xlu1 %539 }
  0xab   :  { %15021 = vst [vmem:[#allocation13_spill] sm:$0xff] %v7559_v46 }
  0xad   :  { %v7565_v47 = vpop.permute.xlu0 %920 }
  0xae   :  { %15022 = vst [vmem:[#allocation14_spill] sm:$0xff] %v7565_v47  ;;  %v7569_v48 = vpop.permute.xlu1 %925 }
  0xaf   :  { %15023 = vst [vmem:[#allocation15_spill] sm:$0xff] %v7569_v48 }
  0xb1   :  { %v7575_v49 = vpop.permute.xlu0 %1306 }
  0xb2   :  { %15024 = vst [vmem:[#allocation16_spill] sm:$0xff] %v7575_v49 }
  0xdb   :  { %v135_v50 = vpop.f32.mrb[0].mxu0 }
  0xdc   :  { %v227_v51 = vmax.f32 %v135_v50, 0.0  ;;  %v7397_v52 = vpop.f32.mrb[1].mxu0  ;;  %v198_v53 = vpop.f32.mrb[0].mxu1 }
  0xdd   :  { %v229_v54 = vmax.f32 %v198_v53, 0.0  ;;  %v139_v55 = vpop.f32.mrb[2].mxu0  ;;  %v7399_v56 = vpop.f32.mrb[1].mxu1  ;;  %v228_v28 = vmax.f32 %v7397_v52, 0.0 }
  0xde   :  { %v7401_v57 = vmin.f32 %v227_v51, 6.0  ;;  %v231_v58 = vmax.f32 %v139_v55, 0.0  ;;  %v7403_v59 = vpop.f32.mrb[3].mxu0  ;;  %v202_v60 = vpop.f32.mrb[2].mxu1  ;;  %v230_v32 = vmax.f32 %v7399_v56, 0.0 }
  0xdf   :  { %v7405_v61 = vpop.f32.mrb[3].mxu1  ;;  %v7407_v62 = vmin.f32 %v229_v54, 6.0  ;;  %v233_v0 = vmax.f32 %v202_v60, 0.0  ;;  %v232_v30 = vmax.f32 %v7403_v59, 0.0  ;;  %v7505_v31 = vmin.f32 %v228_v28, 6.0  ;;  %v7580_v51 = vpop.permute.xlu1 %1311 }
  0xe0   :  { %v7409_v63 = vmin.f32 %v231_v58, 6.0  ;;  %391 = vrot.lane.b32.xlu0 %v7401_v57, %s7165_s19  ;;  %v234_v35 = vmax.f32 %v7405_v61, 0.0  ;;  %v7519_v37 = vmin.f32 %v230_v32, 6.0  ;;  %15025 = vst [vmem:[#allocation17_spill] sm:$0xff] %v7580_v51  ;;  %v7590_v55 = vpop.permute.xlu0 %732 }
  0xe1   :  { %v7419_v4 = vmin.f32 %v233_v0, 6.0  ;;  %v7512_v34 = vmin.f32 %v232_v30, 6.0  ;;  %15027 = vst [vmem:[#allocation19_spill] sm:$0xff] %v7590_v55 }
  0xe2   :  { %393 = vrot.lane.b32.xlu1 %v7409_v63, %s7165_s19  ;;  %v7523_v38 = vmin.f32 %v234_v35, 6.0 }
  0xe3   :  { %v7417_v2 = vpop.f32.mrb[4].mxu0  ;;  %v7597_v59 = vpop.permute.xlu1 %737 }
  0xe4   :  { %415 = vrot.lane.b32.xlu0 %v7407_v62, %s7165_s19  ;;  %v7423_v5 = vpop.f32.mrb[4].mxu1  ;;  %v7425_v6 = vpop.f32.mrb[5].mxu0  ;;  %v235_v50 = vmax.f32 %v7417_v2, 0.0  ;;  %15029 = vst [vmem:[#allocation21_spill] sm:$0xff] %v7597_v59 }
  0xe5   :  { %v7427_v7 = vpop.f32.mrb[5].mxu1  ;;  %v7429_v8 = vpop.f32.mrb[6].mxu0  ;;  %v237_v53 = vmax.f32 %v7423_v5, 0.0  ;;  %v236_v32 = vmax.f32 %v7425_v6, 0.0 }
  0xe6   :  { %417 = vrot.lane.b32.xlu1 %v7419_v4, %s7165_s19  ;;  %v7433_v9 = vpop.f32.mrb[6].mxu1  ;;  %v7435_v10 = vpop.f32.mrb[7].mxu0  ;;  %v239_v52 = vmax.f32 %v7429_v8, 0.0  ;;  %v7586_v54 = vmin.f32 %v235_v50, 6.0 }
  0xe7   :  { %v7437_v11 = vpop.f32.mrb[7].mxu1  ;;  %v241_v56 = vmax.f32 %v7433_v9, 0.0  ;;  %v7599_v60 = vmin.f32 %v237_v53, 6.0  ;;  %v7607_v0 = vpop.permute.xlu0 %1118  ;;  %v240_v50 = vmax.f32 %v7435_v10, 0.0  ;;  %v238_v53 = vmax.f32 %v7427_v7, 0.0 }
  0xe8   :  { %590 = vrot.lane.b32.xlu0 %v7401_v57, %s7166_s20  ;;  %15026 = vst [vmem:[#allocation18_spill] sm:$0xff] %v7586_v54  ;;  %v7593_v58 = vmin.f32 %v239_v52, 6.0  ;;  %15032 = vst [vmem:[#allocation24_spill] sm:$0xff] %v7607_v0  ;;  %v7611_v2 = vpop.permute.xlu1 %1123  ;;  %v7649_v52 = vmin.f32 %v236_v32, 6.0  ;;  %v242_v3 = vmax.f32 %v7437_v11, 0.0 }
  0xe9   :  { %15030 = vst [vmem:[#allocation22_spill] sm:$0xff] %v7599_v60  ;;  %v7603_v61 = vmin.f32 %v241_v56, 6.0  ;;  %15033 = vst [vmem:[#allocation25_spill] sm:$0xff] %v7611_v2  ;;  %v7656_v6 = vmin.f32 %v240_v50, 6.0  ;;  %v7663_v10 = vmin.f32 %v238_v53, 6.0 }
  0xea   :  { %592 = vrot.lane.b32.xlu1 %v7409_v63, %s7166_s20  ;;  %15028 = vst [vmem:[#allocation20_spill] sm:$0xff] %v7593_v58  ;;  %15040 = vst [vmem:[#allocation32_spill] sm:$0xff] %v7649_v52  ;;  %v7669_v7 = vmin.f32 %v242_v3, 6.0 }
  0xeb   :  { %v7447_v14 = vpop.f32.mrb[8].mxu0  ;;  %15031 = vst [vmem:[#allocation23_spill] sm:$0xff] %v7603_v61  ;;  %v7617_v5 = vpop.permute.xlu0 %1504  ;;  %15042 = vst [vmem:[#allocation34_spill] sm:$0xff] %v7656_v6 }
  0xec   :  { %614 = vrot.lane.b32.xlu0 %v7407_v62, %s7166_s20  ;;  %v7451_v15 = vpop.f32.mrb[8].mxu1  ;;  %v7453_v16 = vpop.f32.mrb[9].mxu0  ;;  %15034 = vst [vmem:[#allocation26_spill] sm:$0xff] %v7617_v5  ;;  %15044 = vst [vmem:[#allocation36_spill] sm:$0xff] %v7663_v10  ;;  %v243_v46 = vmax.f32 %v7447_v14, 0.0 }
  0xed   :  { %v7455_v17 = vpop.f32.mrb[9].mxu1  ;;  %v7457_v18 = vpop.f32.mrb[10].mxu0  ;;  %15045 = vst [vmem:[#allocation37_spill] sm:$0xff] %v7669_v7  ;;  %v245_v5 = vmax.f32 %v7451_v15, 0.0 }
  0xee   :  { %616 = vrot.lane.b32.xlu1 %v7419_v4, %s7166_s20  ;;  %v7461_v19 = vpop.f32.mrb[10].mxu1  ;;  %v7463_v20 = vpop.f32.mrb[11].mxu0  ;;  %v7718_v45 = vmin.f32 %v243_v46, 6.0  ;;  %v246_v27 = vmax.f32 %v7455_v17, 0.0 }
  0xef   :  { %v7465_v21 = vpop.f32.mrb[11].mxu1  ;;  %v7621_v8 = vpop.permute.xlu1 %1509  ;;  %v249_v14 = vmax.f32 %v7461_v19, 0.0 }
  0xf0   :  { %788 = vrot.lane.b32.xlu0 %v7401_v57, %s7167_s21  ;;  %15035 = vst [vmem:[#allocation27_spill] sm:$0xff] %v7621_v8  ;;  %v7627_v9 = vpop.permute.xlu0 %930  ;;  %v250_v49 = vmax.f32 %v7465_v21, 0.0 }
  0xf1   :  { %15036 = vst [vmem:[#allocation28_spill] sm:$0xff] %v7627_v9  ;;  %v7737_v15 = vmin.f32 %v249_v14, 6.0  ;;  %v248_v14 = vmax.f32 %v7463_v20, 0.0  ;;  %v7775_v20 = vmin.f32 %v246_v27, 6.0 }
  0xf2   :  { %790 = vrot.lane.b32.xlu1 %v7409_v63, %s7167_s21  ;;  %v7781_v17 = vmin.f32 %v250_v49, 6.0 }
  0xf3   :  { %v7631_v28 = vpop.permute.xlu1 %935  ;;  %15050 = vst [vmem:[#allocation42_spill] sm:$0xff] %v7737_v15  ;;  %15056 = vst [vmem:[#allocation48_spill] sm:$0xff] %v7775_v20 }
  0xf4   :  { %812 = vrot.lane.b32.xlu0 %v7407_v62, %s7167_s21  ;;  %15037 = vst [vmem:[#allocation29_spill] sm:$0xff] %v7631_v28  ;;  %v7637_v30 = vpop.permute.xlu0 %1316  ;;  %15057 = vst [vmem:[#allocation49_spill] sm:$0xff] %v7781_v17 }
  0xf5   :  { %15038 = vst [vmem:[#allocation30_spill] sm:$0xff] %v7637_v30 }
  0xf6   :  { %814 = vrot.lane.b32.xlu1 %v7419_v4, %s7167_s21 }
  0xf7   :  { %v7642_v35 = vpop.permute.xlu1 %1321 }
  0xf8   :  { %986 = vrot.lane.b32.xlu0 %v7401_v57, %s7168_s22  ;;  %15039 = vst [vmem:[#allocation31_spill] sm:$0xff] %v7642_v35  ;;  %v7652_v56 = vpop.permute.xlu0 %1702 }
  0xf9   :  { %15041 = vst [vmem:[#allocation33_spill] sm:$0xff] %v7652_v56  ;;  %v247_v56 = vmax.f32 %v7457_v18, 0.0  ;;  %v7731_v18 = vmin.f32 %v245_v5, 6.0  ;;  %v244_v5 = vmax.f32 %v7453_v16, 0.0  ;;  %v7768_v16 = vmin.f32 %v248_v14, 6.0 }
  0xfa   :  { %988 = vrot.lane.b32.xlu1 %v7409_v63, %s7168_s22 }
  0xfb   :  { %v7659_v35 = vpop.permute.xlu1 %1707  ;;  %v7725_v0 = vmin.f32 %v247_v56, 6.0  ;;  %15048 = vst [vmem:[#allocation40_spill] sm:$0xff] %v7731_v18  ;;  %v7761_v29 = vmin.f32 %v244_v5, 6.0 }
  0xfc   :  { %1010 = vrot.lane.b32.xlu0 %v7407_v62, %s7168_s22  ;;  %15043 = vst [vmem:[#allocation35_spill] sm:$0xff] %v7659_v35 }
  0xfe   :  { %1012 = vrot.lane.b32.xlu1 %v7419_v4, %s7168_s22 }
 0x100   :  { %1184 = vrot.lane.b32.xlu0 %v7401_v57, %s7169_s23 }
 0x102   :  { %1186 = vrot.lane.b32.xlu1 %v7409_v63, %s7169_s23 }
 0x104   :  { %1208 = vrot.lane.b32.xlu0 %v7407_v62, %s7169_s23 }
 0x106   :  { %1210 = vrot.lane.b32.xlu1 %v7419_v4, %s7169_s23 }
 0x108   :  { %403 = vrot.lane.b32.xlu0 %v7505_v31, %s7165_s19 }
 0x10a   :  { %405 = vrot.lane.b32.xlu1 %v7512_v34, %s7165_s19 }
 0x10c   :  { %427 = vrot.lane.b32.xlu0 %v7519_v37, %s7165_s19 }
 0x10e   :  { %429 = vrot.lane.b32.xlu1 %v7523_v38, %s7165_s19 }
 0x110   :  { %602 = vrot.lane.b32.xlu0 %v7505_v31, %s7166_s20 }
 0x112   :  { %604 = vrot.lane.b32.xlu1 %v7512_v34, %s7166_s20 }
 0x114   :  { %626 = vrot.lane.b32.xlu0 %v7519_v37, %s7166_s20 }
 0x116   :  { %628 = vrot.lane.b32.xlu1 %v7523_v38, %s7166_s20 }
 0x118   :  { %800 = vrot.lane.b32.xlu0 %v7505_v31, %s7167_s21 }
 0x11a   :  { %802 = vrot.lane.b32.xlu1 %v7512_v34, %s7167_s21 }
 0x11c   :  { %824 = vrot.lane.b32.xlu0 %v7519_v37, %s7167_s21 }
 0x11e   :  { %826 = vrot.lane.b32.xlu1 %v7523_v38, %s7167_s21 }
 0x120   :  { %998 = vrot.lane.b32.xlu0 %v7505_v31, %s7168_s22 }
 0x122   :  { %1000 = vrot.lane.b32.xlu1 %v7512_v34, %s7168_s22 }
 0x124   :  { %1022 = vrot.lane.b32.xlu0 %v7519_v37, %s7168_s22 }
 0x126   :  { %1024 = vrot.lane.b32.xlu1 %v7523_v38, %s7168_s22 }
 0x128   :  { %1196 = vrot.lane.b32.xlu0 %v7505_v31, %s7169_s23 }
 0x12a   :  { %1198 = vrot.lane.b32.xlu1 %v7512_v34, %s7169_s23 }
 0x12c   :  { %1220 = vrot.lane.b32.xlu0 %v7519_v37, %s7169_s23 }
 0x12e   :  { %1222 = vrot.lane.b32.xlu1 %v7523_v38, %s7169_s23 }
 0x130   :  { %395 = vrot.lane.b32.xlu0 %v7586_v54, %s7165_s19 }
 0x132   :  { %397 = vrot.lane.b32.xlu1 %v7593_v58, %s7165_s19 }
 0x134   :  { %419 = vrot.lane.b32.xlu0 %v7599_v60, %s7165_s19 }
 0x136   :  { %421 = vrot.lane.b32.xlu1 %v7603_v61, %s7165_s19 }
 0x138   :  { %594 = vrot.lane.b32.xlu0 %v7586_v54, %s7166_s20 }
 0x13a   :  { %596 = vrot.lane.b32.xlu1 %v7593_v58, %s7166_s20 }
 0x13c   :  { %618 = vrot.lane.b32.xlu0 %v7599_v60, %s7166_s20 }
 0x13e   :  { %620 = vrot.lane.b32.xlu1 %v7603_v61, %s7166_s20 }
 0x140   :  { %792 = vrot.lane.b32.xlu0 %v7586_v54, %s7167_s21 }
 0x142   :  { %794 = vrot.lane.b32.xlu1 %v7593_v58, %s7167_s21 }
 0x144   :  { %816 = vrot.lane.b32.xlu0 %v7599_v60, %s7167_s21 }
 0x146   :  { %818 = vrot.lane.b32.xlu1 %v7603_v61, %s7167_s21 }
 0x148   :  { %990 = vrot.lane.b32.xlu0 %v7586_v54, %s7168_s22 }
 0x14a   :  { %992 = vrot.lane.b32.xlu1 %v7593_v58, %s7168_s22 }
 0x14c   :  { %1014 = vrot.lane.b32.xlu0 %v7599_v60, %s7168_s22 }
 0x14e   :  { %1016 = vrot.lane.b32.xlu1 %v7603_v61, %s7168_s22 }
 0x150   :  { %407 = vrot.lane.b32.xlu0 %v7649_v52, %s7165_s19 }
 0x152   :  { %v7665_v32 = vpop.permute.xlu0 %391  ;;  %409 = vrot.lane.b32.xlu1 %v7656_v6, %s7165_s19 }
 0x154   :  { %v7671_v30 = vpop.permute.xlu1 %393  ;;  %431 = vrot.lane.b32.xlu0 %v7663_v10, %s7165_s19 }
 0x156   :  { %v7675_v11 = vpop.permute.xlu0 %415  ;;  %433 = vrot.lane.b32.xlu1 %v7669_v7, %s7165_s19 }
 0x158   :  { %v7679_v50 = vpop.permute.xlu1 %417  ;;  %606 = vrot.lane.b32.xlu0 %v7649_v52, %s7166_s20 }
 0x15a   :  { %v7683_v53 = vpop.permute.xlu0 %590  ;;  %608 = vrot.lane.b32.xlu1 %v7656_v6, %s7166_s20 }
 0x15c   :  { %v7687_v3 = vpop.permute.xlu1 %592  ;;  %630 = vrot.lane.b32.xlu0 %v7663_v10, %s7166_s20 }
 0x15e   :  { %v7691_v28 = vpop.permute.xlu0 %614  ;;  %632 = vrot.lane.b32.xlu1 %v7669_v7, %s7166_s20 }
 0x160   :  { %v7695_v9 = vpop.permute.xlu1 %616  ;;  %804 = vrot.lane.b32.xlu0 %v7649_v52, %s7167_s21 }
 0x162   :  { %v7699_v59 = vpop.permute.xlu0 %788  ;;  %806 = vrot.lane.b32.xlu1 %v7656_v6, %s7167_s21 }
 0x164   :  { %v7703_v55 = vpop.permute.xlu1 %790  ;;  %828 = vrot.lane.b32.xlu0 %v7663_v10, %s7167_s21 }
 0x166   :  { %v7708_v35 = vpop.permute.xlu0 %812  ;;  %830 = vrot.lane.b32.xlu1 %v7669_v7, %s7167_s21 }
 0x168   :  { %v7713_v8 = vpop.permute.xlu1 %814  ;;  %1002 = vrot.lane.b32.xlu0 %v7649_v52, %s7168_s22 }
 0x16a   :  { %v7720_v2 = vpop.permute.xlu0 %986  ;;  %1004 = vrot.lane.b32.xlu1 %v7656_v6, %s7168_s22 }
 0x16b   :  { %15046 = vst [vmem:[#allocation38_spill] sm:$0xff] %v7720_v2 }
 0x16c   :  { %v7727_v48 = vpop.permute.xlu1 %988  ;;  %399 = vrot.lane.b32.xlu0 %v7718_v45, %s7165_s19 }
 0x16d   :  { %15047 = vst [vmem:[#allocation39_spill] sm:$0xff] %v7727_v48 }
 0x16e   :  { %v7733_v47 = vpop.permute.xlu0 %1010  ;;  %401 = vrot.lane.b32.xlu1 %v7725_v0, %s7165_s19 }
 0x16f   :  { %15049 = vst [vmem:[#allocation41_spill] sm:$0xff] %v7733_v47 }
 0x170   :  { %v7739_v46 = vpop.permute.xlu1 %1012  ;;  %423 = vrot.lane.b32.xlu0 %v7731_v18, %s7165_s19 }
 0x171   :  { %15051 = vst [vmem:[#allocation43_spill] sm:$0xff] %v7739_v46  ;;  %v6884_v46 = vld [vmem:[%s14415_s3 + $0xb8] sm:$0xff] }
 0x172   :  { %v7743_v19 = vpop.permute.xlu0 %1184  ;;  %425 = vrot.lane.b32.xlu1 %v7737_v15, %s7165_s19 }
 0x173   :  { %15052 = vst [vmem:[#allocation44_spill] sm:$0xff] %v7743_v19  ;;  %v6883_v19 = vld [vmem:[%s14415_s3 + $0xb0] sm:$0xff] }
 0x174   :  { %v7747_v56 = vpop.permute.xlu1 %1186  ;;  %598 = vrot.lane.b32.xlu0 %v7718_v45, %s7166_s20 }
 0x175   :  { %15053 = vst [vmem:[#allocation45_spill] sm:$0xff] %v7747_v56 }
 0x176   :  { %v7752_v40 = vpop.permute.xlu0 %1208  ;;  %600 = vrot.lane.b32.xlu1 %v7725_v0, %s7166_s20 }
 0x177   :  { %15054 = vst [vmem:[#allocation46_spill] sm:$0xff] %v7752_v40 }
 0x178   :  { %v7757_v39 = vpop.permute.xlu1 %1210  ;;  %622 = vrot.lane.b32.xlu0 %v7731_v18, %s7166_s20 }
 0x179   :  { %15055 = vst [vmem:[#allocation47_spill] sm:$0xff] %v7757_v39 }
 0x17a   :  { %v7764_v51 = vpop.permute.xlu0 %403  ;;  %624 = vrot.lane.b32.xlu1 %v7737_v15, %s7166_s20 }
 0x17c   :  { %v7771_v42 = vpop.permute.xlu1 %405  ;;  %411 = vrot.lane.b32.xlu0 %v7761_v29, %s7165_s19 }
 0x17e   :  { %v7777_v5 = vpop.permute.xlu0 %427  ;;  %413 = vrot.lane.b32.xlu1 %v7768_v16, %s7165_s19 }
 0x180   :  { %v7783_v39 = vpop.permute.xlu1 %429  ;;  %435 = vrot.lane.b32.xlu0 %v7775_v20, %s7165_s19 }
 0x182   :  { %v7787_v21 = vpop.permute.xlu0 %602  ;;  %437 = vrot.lane.b32.xlu1 %v7781_v17, %s7165_s19 }
 0x184   :  { %v7791_v14 = vpop.permute.xlu1 %604  ;;  %610 = vrot.lane.b32.xlu0 %v7761_v29, %s7166_s20 }
 0x186   :  { %v7795_v27 = vpop.permute.xlu0 %626  ;;  %612 = vrot.lane.b32.xlu1 %v7768_v16, %s7166_s20 }
 0x188   :  { %v7799_v49 = vpop.permute.xlu1 %628  ;;  %634 = vrot.lane.b32.xlu0 %v7775_v20, %s7166_s20 }
 0x18a   :  { %v7803_v56 = vpop.permute.xlu0 %800  ;;  %636 = vrot.lane.b32.xlu1 %v7781_v17, %s7166_s20 }
 0x18c   :  { %v7807_v41 = vpop.permute.xlu1 %802  ;;  %1026 = vrot.lane.b32.xlu0 %v7663_v10, %s7168_s22 }
 0x18e   :  { %v7814_v40 = vpop.permute.xlu0 %824  ;;  %1028 = vrot.lane.b32.xlu1 %v7669_v7, %s7168_s22 }
 0x18f   :  { %15058 = vst [vmem:[#allocation50_spill] sm:$0xff] %v7814_v40 }
 0x190   :  { %v7821_v48 = vpop.permute.xlu1 %826  ;;  %1128 = vperm.xlu0 %7117, %v6883_v19  }
 0x191   :  { %15059 = vst [vmem:[#allocation51_spill] sm:$0xff] %v7821_v48 }
 0x192   :  { %v7823_v47 = vpop.permute.xlu0 %998  ;;  %1133 = vperm.xlu1 %7118, %v6884_v46  }
 0x193   :  { %15060 = vst [vmem:[#allocation52_spill] sm:$0xff] %v7823_v47 }
 0x194   :  { %v7825_v2 = vpop.permute.xlu1 %1000  ;;  %1382 = vrot.lane.b32.xlu0 %v7401_v57, %s7170_s28 }
 0x195   :  { %15061 = vst [vmem:[#allocation53_spill] sm:$0xff] %v7825_v2 }
 0x196   :  { %v7829_v36 = vpop.permute.xlu0 %1022  ;;  %1384 = vrot.lane.b32.xlu1 %v7409_v63, %s7170_s28 }
 0x197   :  { %15062 = vst [vmem:[#allocation54_spill] sm:$0xff] %v7829_v36 }
 0x198   :  { %v7833_v33 = vpop.permute.xlu1 %1024  ;;  %1394 = vrot.lane.b32.xlu0 %v7505_v31, %s7170_s28 }
 0x199   :  { %15063 = vst [vmem:[#allocation55_spill] sm:$0xff] %v7833_v33 }
 0x19a   :  { %v7837_v19 = vpop.permute.xlu0 %1196  ;;  %1396 = vrot.lane.b32.xlu1 %v7512_v34, %s7170_s28 }
 0x19b   :  { %15064 = vst [vmem:[#allocation56_spill] sm:$0xff] %v7837_v19  ;;  %v6899_v19 = vld [vmem:[%s14415_s3 + $0x130] sm:$0xff] }
 0x19c   :  { %v7841_v46 = vpop.permute.xlu1 %1198  ;;  %1406 = vrot.lane.b32.xlu0 %v7407_v62, %s7170_s28 }
 0x19d   :  { %15065 = vst [vmem:[#allocation57_spill] sm:$0xff] %v7841_v46 }
 0x19e   :  { %v7845_v2 = vpop.permute.xlu0 %1220  ;;  %1408 = vrot.lane.b32.xlu1 %v7419_v4, %s7170_s28 }
 0x19f   :  { %15066 = vst [vmem:[#allocation58_spill] sm:$0xff] %v7845_v2  ;;  %v6900_v2 = vld [vmem:[%s14415_s3 + $0x138] sm:$0xff] }
 0x1a0   :  { %v7849_v36 = vpop.permute.xlu1 %1222  ;;  %1418 = vrot.lane.b32.xlu0 %v7519_v37, %s7170_s28 }
 0x1a1   :  { %15067 = vst [vmem:[#allocation59_spill] sm:$0xff] %v7849_v36  ;;  %v6909_v36 = vld [vmem:[%s14415_s3 + $0x180] sm:$0xff] }
 0x1a2   :  { %v7856_v33 = vpop.permute.xlu0 %395  ;;  %1420 = vrot.lane.b32.xlu1 %v7523_v38, %s7170_s28 }
 0x1a3   :  { %15068 = vst [vmem:[#allocation60_spill] sm:$0xff] %v7856_v33  ;;  %v6910_v33 = vld [vmem:[%s14415_s3 + $0x188] sm:$0xff] }
 0x1a4   :  { %v7863_v46 = vpop.permute.xlu1 %397  ;;  %1514 = vperm.xlu0 %7117, %v6899_v19  }
 0x1a5   :  { %15069 = vst [vmem:[#allocation61_spill] sm:$0xff] %v7863_v46 }
 0x1a6   :  { %v7868_v47 = vpop.permute.xlu0 %419  ;;  %1519 = vperm.xlu1 %7118, %v6900_v2  }
 0x1a7   :  { %15070 = vst [vmem:[#allocation62_spill] sm:$0xff] %v7868_v47 }
 0x1a8   :  { %v7873_v48 = vpop.permute.xlu1 %421  ;;  %1900 = vperm.xlu0 %7117, %v6909_v36  }
 0x1a9   :  { %15071 = vst [vmem:[#allocation63_spill] sm:$0xff] %v7873_v48 }
 0x1aa   :  { %v7875_v24 = vpop.permute.xlu0 %594  ;;  %1905 = vperm.xlu1 %7118, %v6910_v33  }
 0x1ab   :  { %15072 = vst [vmem:[#allocation64_spill] sm:$0xff] %v7875_v24  ;;  %v6896_v24 = vld [vmem:[%s14415_s3 + $0x118] sm:$0xff] }
 0x1ac   :  { %v7877_v40 = vpop.permute.xlu1 %596  ;;  %796 = vrot.lane.b32.xlu0 %v7718_v45, %s7167_s21 }
 0x1ad   :  { %15073 = vst [vmem:[#allocation65_spill] sm:$0xff] %v7877_v40 }
 0x1ae   :  { %v7881_v19 = vpop.permute.xlu0 %618  ;;  %798 = vrot.lane.b32.xlu1 %v7725_v0, %s7167_s21 }
 0x1af   :  { %15074 = vst [vmem:[#allocation66_spill] sm:$0xff] %v7881_v19 }
 0x1b0   :  { %v7885_v2 = vpop.permute.xlu1 %620  ;;  %808 = vrot.lane.b32.xlu0 %v7761_v29, %s7167_s21 }
 0x1b1   :  { %15075 = vst [vmem:[#allocation67_spill] sm:$0xff] %v7885_v2 }
 0x1b2   :  { %v7889_v46 = vpop.permute.xlu0 %792  ;;  %810 = vrot.lane.b32.xlu1 %v7768_v16, %s7167_s21 }
 0x1b3   :  { %15076 = vst [vmem:[#allocation68_spill] sm:$0xff] %v7889_v46 }
 0x1b4   :  { %v7893_v33 = vpop.permute.xlu1 %794  ;;  %820 = vrot.lane.b32.xlu0 %v7731_v18, %s7167_s21 }
 0x1b5   :  { %15077 = vst [vmem:[#allocation69_spill] sm:$0xff] %v7893_v33 }
 0x1b6   :  { %v7897_v36 = vpop.permute.xlu0 %816  ;;  %822 = vrot.lane.b32.xlu1 %v7737_v15, %s7167_s21 }
 0x1b7   :  { %15078 = vst [vmem:[#allocation70_spill] sm:$0xff] %v7897_v36 }
 0x1b8   :  { %v7901_v40 = vpop.permute.xlu1 %818  ;;  %832 = vrot.lane.b32.xlu0 %v7775_v20, %s7167_s21 }
 0x1b9   :  { %15079 = vst [vmem:[#allocation71_spill] sm:$0xff] %v7901_v40 }
 0x1ba   :  { %v7905_v2 = vpop.permute.xlu0 %990  ;;  %834 = vrot.lane.b32.xlu1 %v7781_v17, %s7167_s21 }
 0x1bb   :  { %15080 = vst [vmem:[#allocation72_spill] sm:$0xff] %v7905_v2 }
 0x1bc   :  { %v7909_v46 = vpop.permute.xlu1 %992  ;;  %1188 = vrot.lane.b32.xlu0 %v7586_v54, %s7169_s23 }
 0x1bd   :  { %15081 = vst [vmem:[#allocation73_spill] sm:$0xff] %v7909_v46 }
 0x1be   :  { %v7913_v33 = vpop.permute.xlu0 %1014  ;;  %1190 = vrot.lane.b32.xlu1 %v7593_v58, %s7169_s23 }
 0x1bf   :  { %15082 = vst [vmem:[#allocation74_spill] sm:$0xff] %v7913_v33 }
 0x1c0   :  { %v7917_v36 = vpop.permute.xlu1 %1016  ;;  %1200 = vrot.lane.b32.xlu0 %v7649_v52, %s7169_s23 }
 0x1c1   :  { %15083 = vst [vmem:[#allocation75_spill] sm:$0xff] %v7917_v36  ;;  %v6895_v36 = vld [vmem:[%s14415_s3 + $0x110] sm:$0xff] }
 0x1c2   :  { %v7921_v40 = vpop.permute.xlu0 %407  ;;  %1202 = vrot.lane.b32.xlu1 %v7656_v6, %s7169_s23 }
 0x1c3   :  { %15084 = vst [vmem:[#allocation76_spill] sm:$0xff] %v7921_v40  ;;  %v8141_v40 = vmul.f32 %v7415_v1, %v7505_v31 }
 0x1c4   :  { %v7925_v2 = vpop.permute.xlu1 %409  ;;  %1212 = vrot.lane.b32.xlu0 %v7599_v60, %s7169_s23 }
 0x1c5   :  { %15085 = vst [vmem:[#allocation77_spill] sm:$0xff] %v7925_v2 }
 0x1c6   :  { %v7929_v46 = vpop.permute.xlu0 %431  ;;  %1214 = vrot.lane.b32.xlu1 %v7603_v61, %s7169_s23 }
 0x1c7   :  { %15086 = vst [vmem:[#allocation78_spill] sm:$0xff] %v7929_v46 }
 0x1c8   :  { %v7933_v33 = vpop.permute.xlu1 %433  ;;  %1224 = vrot.lane.b32.xlu0 %v7663_v10, %s7169_s23 }
 0x1c9   :  { %15087 = vst [vmem:[#allocation79_spill] sm:$0xff] %v7933_v33 }
 0x1ca   :  { %v7940_v19 = vpop.permute.xlu0 %606  ;;  %1226 = vrot.lane.b32.xlu1 %v7669_v7, %s7169_s23 }
 0x1cb   :  { %15088 = vst [vmem:[#allocation80_spill] sm:$0xff] %v7940_v19 }
 0x1cc   :  { %v7947_v46 = vpop.permute.xlu1 %608  ;;  %1326 = vperm.xlu0 %7117, %v6895_v36  }
 0x1cd   :  { %15089 = vst [vmem:[#allocation81_spill] sm:$0xff] %v7947_v46 }
 0x1ce   :  { %v7949_v33 = vpop.permute.xlu0 %630  ;;  %1331 = vperm.xlu1 %7118, %v6896_v24  }
 0x1cf   :  { %15090 = vst [vmem:[#allocation82_spill] sm:$0xff] %v7949_v33 }
 0x1d0   :  { %v7951_v2 = vpop.permute.xlu1 %632  ;;  %1580 = vrot.lane.b32.xlu0 %v7401_v57, %s14690_s15 }
 0x1d1   :  { %15091 = vst [vmem:[#allocation83_spill] sm:$0xff] %v7951_v2 }
 0x1d2   :  { %v7955_v19 = vpop.permute.xlu0 %804  ;;  %1582 = vrot.lane.b32.xlu1 %v7409_v63, %s14690_s15 }
 0x1d3   :  { %15092 = vst [vmem:[#allocation84_spill] sm:$0xff] %v7955_v19 }
 0x1d4   :  { %v7959_v48 = vpop.permute.xlu1 %806  ;;  %1592 = vrot.lane.b32.xlu0 %v7505_v31, %s14690_s15 }
 0x1d5   :  { %15093 = vst [vmem:[#allocation85_spill] sm:$0xff] %v7959_v48 }
 0x1d6   :  { %v7963_v36 = vpop.permute.xlu0 %828  ;;  %1594 = vrot.lane.b32.xlu1 %v7512_v34, %s14690_s15 }
 0x1d7   :  { %15094 = vst [vmem:[#allocation86_spill] sm:$0xff] %v7963_v36  ;;  %v6905_v36 = vld [vmem:[%s14415_s3 + $0x160] sm:$0xff] }
 0x1d8   :  { %v7967_v24 = vpop.permute.xlu1 %830  ;;  %1604 = vrot.lane.b32.xlu0 %v7407_v62, %s14690_s15 }
 0x1d9   :  { %15095 = vst [vmem:[#allocation87_spill] sm:$0xff] %v7967_v24 }
 0x1da   :  { %v7971_v2 = vpop.permute.xlu0 %1002  ;;  %1606 = vrot.lane.b32.xlu1 %v7419_v4, %s14690_s15 }
 0x1db   :  { %15096 = vst [vmem:[#allocation88_spill] sm:$0xff] %v7971_v2  ;;  %v6906_v2 = vld [vmem:[%s14415_s3 + $0x168] sm:$0xff] }
 0x1dc   :  { %v7975_v19 = vpop.permute.xlu1 %1004  ;;  %1616 = vrot.lane.b32.xlu0 %v7519_v37, %s14690_s15 }
 0x1dd   :  { %15097 = vst [vmem:[#allocation89_spill] sm:$0xff] %v7975_v19 }
 0x1de   :  { %v7982_v48 = vpop.permute.xlu0 %399  ;;  %1618 = vrot.lane.b32.xlu1 %v7523_v38, %s14690_s15 }
 0x1df   :  { %15098 = vst [vmem:[#allocation90_spill] sm:$0xff] %v7982_v48 }
 0x1e0   :  { %1712 = vperm.xlu0 %7117, %v6905_v36   ;;  %v7989_v24 = vpop.permute.xlu1 %401 }
 0x1e1   :  { %15099 = vst [vmem:[#allocation91_spill] sm:$0xff] %v7989_v24 }
 0x1e2   :  { %v7991_v19 = vpop.permute.xlu0 %423  ;;  %1717 = vperm.xlu1 %7118, %v6906_v2  }
 0x1e3   :  { %15100 = vst [vmem:[#allocation92_spill] sm:$0xff] %v7991_v19 }
 0x1e4   :  { %994 = vrot.lane.b32.xlu0 %v7718_v45, %s7168_s22  ;;  %v7995_v33 = vpop.permute.xlu1 %425 }
 0x1e5   :  { %15101 = vst [vmem:[#allocation93_spill] sm:$0xff] %v7995_v33 }
 0x1e6   :  { %996 = vrot.lane.b32.xlu1 %v7725_v0, %s7168_s22  ;;  %v7999_v48 = vpop.permute.xlu0 %598 }
 0x1e7   :  { %15102 = vst [vmem:[#allocation94_spill] sm:$0xff] %v7999_v48 }
 0x1e8   :  { %1006 = vrot.lane.b32.xlu0 %v7761_v29, %s7168_s22  ;;  %v8003_v46 = vpop.permute.xlu1 %600 }
 0x1e9   :  { %15103 = vst [vmem:[#allocation95_spill] sm:$0xff] %v8003_v46 }
 0x1ea   :  { %1008 = vrot.lane.b32.xlu1 %v7768_v16, %s7168_s22  ;;  %v8009_v2 = vpop.permute.xlu0 %622 }
 0x1eb   :  { %15104 = vst [vmem:[#allocation96_spill] sm:$0xff] %v8009_v2 }
 0x1ec   :  { %1018 = vrot.lane.b32.xlu0 %v7731_v18, %s7168_s22  ;;  %v8013_v36 = vpop.permute.xlu1 %624 }
 0x1ed   :  { %15105 = vst [vmem:[#allocation97_spill] sm:$0xff] %v8013_v36 }
 0x1ee   :  { %1020 = vrot.lane.b32.xlu1 %v7737_v15, %s7168_s22  ;;  %v8019_v46 = vpop.permute.xlu0 %411 }
 0x1ef   :  { %15106 = vst [vmem:[#allocation98_spill] sm:$0xff] %v8019_v46 }
 0x1f0   :  { %1030 = vrot.lane.b32.xlu0 %v7775_v20, %s7168_s22  ;;  %v8023_v48 = vpop.permute.xlu1 %413 }
 0x1f1   :  { %15107 = vst [vmem:[#allocation99_spill] sm:$0xff] %v8023_v48 }
 0x1f2   :  { %1032 = vrot.lane.b32.xlu1 %v7781_v17, %s7168_s22  ;;  %v8029_v36 = vpop.permute.xlu0 %435 }
 0x1f3   :  { %15108 = vst [vmem:[#allocation100_spill] sm:$0xff] %v8029_v36  ;;  %v6901_v36 = vld [vmem:[%s14415_s3 + $0x140] sm:$0xff] }
 0x1f4   :  { %1386 = vrot.lane.b32.xlu0 %v7586_v54, %s7170_s28  ;;  %v8033_v2 = vpop.permute.xlu1 %437 }
 0x1f5   :  { %15109 = vst [vmem:[#allocation101_spill] sm:$0xff] %v8033_v2  ;;  %v6902_v2 = vld [vmem:[%s14415_s3 + $0x148] sm:$0xff] }
 0x1f6   :  { %1388 = vrot.lane.b32.xlu1 %v7593_v58, %s7170_s28  ;;  %v8039_v24 = vpop.permute.xlu0 %610 }
 0x1f7   :  { %15110 = vst [vmem:[#allocation102_spill] sm:$0xff] %v8039_v24 }
 0x1f8   :  { %1398 = vrot.lane.b32.xlu0 %v7649_v52, %s7170_s28  ;;  %v8043_v48 = vpop.permute.xlu1 %612 }
 0x1f9   :  { %15111 = vst [vmem:[#allocation103_spill] sm:$0xff] %v8043_v48 }
 0x1fa   :  { %1400 = vrot.lane.b32.xlu1 %v7656_v6, %s7170_s28  ;;  %v8053_v33 = vpop.permute.xlu0 %634 }
 0x1fb   :  { %15112 = vst [vmem:[#allocation104_spill] sm:$0xff] %v8053_v33 }
 0x1fc   :  { %1410 = vrot.lane.b32.xlu0 %v7599_v60, %s7170_s28  ;;  %v8055_v24 = vpop.permute.xlu1 %636 }
 0x1fd   :  { %15113 = vst [vmem:[#allocation105_spill] sm:$0xff] %v8055_v24 }
 0x1fe   :  { %1412 = vrot.lane.b32.xlu1 %v7603_v61, %s7170_s28  ;;  %v8061_v48 = vpop.permute.xlu0 %1026 }
 0x1ff   :  { %15114 = vst [vmem:[#allocation106_spill] sm:$0xff] %v8061_v48 }
 0x200   :  { %1422 = vrot.lane.b32.xlu0 %v7663_v10, %s7170_s28  ;;  %v8065_v19 = vpop.permute.xlu1 %1028 }
 0x201   :  { %15115 = vst [vmem:[#allocation107_spill] sm:$0xff] %v8065_v19  ;;  %v6911_v19 = vld [vmem:[%s14415_s3 + $0x190] sm:$0xff] }
 0x202   :  { %1424 = vrot.lane.b32.xlu1 %v7669_v7, %s7170_s28 }
 0x204   :  { %1524 = vperm.xlu0 %7117, %v6901_v36  }
 0x206   :  { %1529 = vperm.xlu1 %7118, %v6902_v2  }
 0x208   :  { %1778 = vrot.lane.b32.xlu0 %v7401_v57, %s14688_s30 }
 0x20a   :  { %1780 = vrot.lane.b32.xlu1 %v7409_v63, %s14688_s30 }
 0x20c   :  { %1790 = vrot.lane.b32.xlu0 %v7505_v31, %s14688_s30  ;;  %v8163_v31 = vmul.f32 %v7445_v13, %v7523_v38 }
 0x20e   :  { %1792 = vrot.lane.b32.xlu1 %v7512_v34, %s14688_s30 }
 0x20f   :  { %v8069_v2 = vpop.permute.xlu0 %1128 }
 0x210   :  { %15116 = vst [vmem:[#allocation108_spill] sm:$0xff] %v8069_v2  ;;  %1802 = vrot.lane.b32.xlu0 %v7407_v62, %s14688_s30 }
 0x211   :  { %v8073_v36 = vpop.permute.xlu1 %1133 }
 0x212   :  { %15117 = vst [vmem:[#allocation109_spill] sm:$0xff] %v8073_v36  ;;  %1804 = vrot.lane.b32.xlu1 %v7419_v4, %s14688_s30  ;;  %v6912_v36 = vld [vmem:[%s14415_s3 + $0x198] sm:$0xff] }
 0x213   :  { %v8077_v24 = vpop.permute.xlu0 %1382 }
 0x214   :  { %15118 = vst [vmem:[#allocation110_spill] sm:$0xff] %v8077_v24  ;;  %1814 = vrot.lane.b32.xlu0 %v7519_v37, %s14688_s30 }
 0x215   :  { %v8081_v48 = vpop.permute.xlu1 %1384 }
 0x216   :  { %15119 = vst [vmem:[#allocation111_spill] sm:$0xff] %v8081_v48  ;;  %1816 = vrot.lane.b32.xlu1 %v7523_v38, %s14688_s30  ;;  %v8190_v38 = vmul.f32 %v7487_v26, %v7603_v61 }
 0x217   :  { %v8088_v2 = vpop.permute.xlu0 %1394 }
 0x218   :  { %15120 = vst [vmem:[#allocation112_spill] sm:$0xff] %v8088_v2  ;;  %1910 = vperm.xlu0 %7117, %v6911_v19   ;;  %15137 = vst [vmem:[#allocation129_spill] sm:$0xff] %v8190_v38  ;;  %v8213_v38 = vmul.f32 %v7487_v26, %v7669_v7 }
 0x219   :  { %v8093_v33 = vpop.permute.xlu1 %1396 }
 0x21a   :  { %15121 = vst [vmem:[#allocation113_spill] sm:$0xff] %v8093_v33  ;;  %1915 = vperm.xlu1 %7118, %v6912_v36   ;;  %15144 = vst [vmem:[#allocation136_spill] sm:$0xff] %v8213_v38 }
 0x21b   :  { %v8095_v24 = vpop.permute.xlu0 %1406 }
 0x21c   :  { %15122 = vst [vmem:[#allocation114_spill] sm:$0xff] %v8095_v24  ;;  %1192 = vrot.lane.b32.xlu0 %v7718_v45, %s7169_s23 }
 0x21d   :  { %v8099_v48 = vpop.permute.xlu1 %1408 }
 0x21e   :  { %15123 = vst [vmem:[#allocation115_spill] sm:$0xff] %v8099_v48  ;;  %1194 = vrot.lane.b32.xlu1 %v7725_v0, %s7169_s23  ;;  %v439_v48 = vlaneseq }
 0x21f   :  { %v8103_v46 = vpop.permute.xlu0 %1418 }
 0x220   :  { %15124 = vst [vmem:[#allocation116_spill] sm:$0xff] %v8103_v46  ;;  %1204 = vrot.lane.b32.xlu0 %v7761_v29, %s7169_s23  ;;  %v469_v24 = vshrl.u32 %v439_v48, 7 }
 0x221   :  { %v8107_v2 = vpop.permute.xlu1 %1420 }
 0x222   :  { %15125 = vst [vmem:[#allocation117_spill] sm:$0xff] %v8107_v2  ;;  %1206 = vrot.lane.b32.xlu1 %v7768_v16, %s7169_s23  ;;  %v8207_v47 = vsub.s32 0, %v469_v24 }
 0x223   :  { %v8111_v19 = vpop.permute.xlu0 %1514 }
 0x224   :  { %15126 = vst [vmem:[#allocation118_spill] sm:$0xff] %v8111_v19  ;;  %1216 = vrot.lane.b32.xlu0 %v7731_v18, %s7169_s23  ;;  %v8129_v19 = vmul.f32 %v7415_v1, %v7407_v62  ;;  %v8149_v62 = vmul.f32 %v7445_v13, %v7409_v63  ;;  %15142 = vst [vmem:[#allocation134_spill] sm:$0xff] %v8207_v47 }
 0x225   :  { %v8115_v36 = vpop.permute.xlu1 %1519 }
 0x226   :  { %15127 = vst [vmem:[#allocation119_spill] sm:$0xff] %v8115_v36  ;;  %1218 = vrot.lane.b32.xlu1 %v7737_v15, %s7169_s23  ;;  %v8133_v36 = vmul.f32 %v7415_v1, %v7401_v57  ;;  %v8155_v57 = vmul.f32 %v7445_v13, %v7419_v4  ;;  %v8177_v4 = vmul.f32 %v7483_v25, %v7599_v60 }
 0x227   :  { %v8119_v46 = vpop.permute.xlu0 %1900 }
 0x228   :  { %15128 = vst [vmem:[#allocation120_spill] sm:$0xff] %v8119_v46  ;;  %1228 = vrot.lane.b32.xlu0 %v7775_v20, %s7169_s23  ;;  %v8137_v46 = vand.u32 127, %v439_v48  ;;  %v8159_v48 = vmul.f32 %v7445_v13, %v7512_v34  ;;  %15135 = vst [vmem:[#allocation127_spill] sm:$0xff] %v8177_v4  ;;  %v8181_v34 = vmul.f32 %v7483_v25, %v7649_v52  ;;  %v466_v13 = vld [vmem:[%s14416_s1] sm:$0xf] }
 0x229   :  { %v8123_v2 = vpop.permute.xlu1 %1905  ;;  %v8202_v4 = vmul.f32 %v7487_v26, %v7593_v58 }
 0x22a   :  { %15129 = vst [vmem:[#allocation121_spill] sm:$0xff] %v8123_v2  ;;  %1230 = vrot.lane.b32.xlu1 %v7781_v17, %s7169_s23  ;;  %v8145_v2 = vmul.f32 %v7415_v1, %v7519_v37  ;;  %v8167_v1 = vmul.f32 %v7483_v25, %v7586_v54  ;;  %v8171_v37 = vsub.s32 1, %v469_v24  ;;  %15136 = vst [vmem:[#allocation128_spill] sm:$0xff] %v8181_v34  ;;  %vm441_vm2 = vcmp.lt.s32.totalorder %v8137_v46, 17 }
 0x22b   :  { %v8135_v33 = vpop.permute.xlu0 %796  ;;  %15140 = vst [vmem:[#allocation132_spill] sm:$0xff] %v8202_v4  ;;  %v8227_v4 = vmul.f32 %v7545_v43, %v7718_v45  ;;  %vm638_vm3 = vcmp.lt.s32.totalorder %v8137_v46, 16  ;;  %vm836_vm4 = vcmp.lt.s32.totalorder %v8137_v46, 15  ;;  %vm1034_vm5 = vcmp.lt.s32.totalorder %v8137_v46, 1 }
 0x22c   :  { %15130 = vst [vmem:[#allocation122_spill] sm:$0xff] %v8135_v33  ;;  %1584 = vrot.lane.b32.xlu0 %v7586_v54, %s14690_s15  ;;  %15131 = vst [vmem:[#allocation123_spill] sm:$0xff] %v8167_v1  ;;  %v8173_v33 = vsub.s32 2, %v469_v24  ;;  %v8198_v1 = vmul.f32 %v7483_v25, %v7663_v10  ;;  %v8209_v54 = vsub.s32 3, %v469_v24  ;;  %v8219_v25 = vmul.f32 %v7545_v43, %v7731_v18 }
 0x22d   :  { %v8169_v63 = vpop.permute.xlu1 %798  ;;  %15133 = vst [vmem:[#allocation125_spill] sm:$0xff] %v8171_v37  ;;  %15147 = vst [vmem:[#allocation139_spill] sm:$0xff] %v8227_v4  ;;  %v8231_v24 = vmul.f32 %v7545_v43, %v7775_v20  ;;  %v8236_v38 = vrot.slane %v466_v13, %v8171_v37  ;;  %v8264_v4 = vmul.f32 %v7549_v44, %v7768_v16  ;;  %vm1232_vm6 = vcmp.lt.s32.totalorder %v8137_v46, 127 }
 0x22e   :  { %15132 = vst [vmem:[#allocation124_spill] sm:$0xff] %v8169_v63  ;;  %15134 = vst [vmem:[#allocation126_spill] sm:$0xff] %v8173_v33  ;;  %1586 = vrot.lane.b32.xlu1 %v7593_v58, %s14690_s15  ;;  %v8194_v63 = vmul.f32 %v7487_v26, %v7656_v6  ;;  %vm1430_vm7 = vcmp.lt.s32.totalorder %v8137_v46, 113  ;;  %vm1628_vm8 = vcmp.lt.s32.totalorder %v8137_v46, 112  ;;  %vm1826_vm9 = vcmp.lt.s32.totalorder %v8137_v46, 111 }
 0x22f   :  { %15139 = vst [vmem:[#allocation131_spill] sm:$0xff] %v8198_v1  ;;  %v8204_v34 = vpop.permute.xlu0 %808  ;;  %15143 = vst [vmem:[#allocation135_spill] sm:$0xff] %v8209_v54  ;;  %v8239_v1 = vrot.slane %v466_v13, %v8173_v33 }
 0x230   :  { %15138 = vst [vmem:[#allocation130_spill] sm:$0xff] %v8194_v63  ;;  %15141 = vst [vmem:[#allocation133_spill] sm:$0xff] %v8204_v34  ;;  %1596 = vrot.lane.b32.xlu0 %v7649_v52, %s14690_s15  ;;  %v8223_v34 = vmul.f32 %v7545_v43, %v7761_v29  ;;  %v8250_v43 = vmul.f32 %v7549_v44, %v7725_v0  ;;  %v449_v63 = vsel %vm441_vm2, %v7771_v42, %v7679_v50 }
 0x231   :  { %15145 = vst [vmem:[#allocation137_spill] sm:$0xff] %v8219_v25  ;;  %15148 = vst [vmem:[#allocation140_spill] sm:$0xff] %v8231_v24  ;;  %v8233_v26 = vpop.permute.xlu1 %810  ;;  %v6915_v25 = vld [vmem:[%s14416_s1 + $0x4] sm:$0xf]  ;;  %v454_v24 = vsel %vm441_vm2, %v7665_v32, %v7764_v51 }
 0x232   :  { %15146 = vst [vmem:[#allocation138_spill] sm:$0xff] %v8223_v34  ;;  %15149 = vst [vmem:[#allocation141_spill] sm:$0xff] %v8233_v26  ;;  %v8246_v34 = vmul.f32 %v7549_v44, %v7737_v15  ;;  %1598 = vrot.lane.b32.xlu1 %v7656_v6, %s14690_s15  ;;  %v448_v26 = vsel %vm441_vm2, %v7764_v51, %v7675_v11  ;;  %v455_v51 = vsel %vm441_vm2, %v7671_v30, %v7771_v42 }
 0x233   :  { %15150 = vst [vmem:[#allocation142_spill] sm:$0xff] %v8236_v38  ;;  %15151 = vst [vmem:[#allocation143_spill] sm:$0xff] %v8239_v1  ;;  %v8281_v6 = vrot.slane %v466_v13, %v8207_v47  ;;  %v8297_v42 = vrot.slane %v6915_v25, %v8171_v37  ;;  %v489_v52 = vmul.f32 %v8236_v38, %v454_v24 }
 0x234   :  { %15152 = vst [vmem:[#allocation144_spill] sm:$0xff] %v8246_v34  ;;  %15153 = vst [vmem:[#allocation145_spill] sm:$0xff] %v8250_v43  ;;  %v8268_v43 = vmul.f32 %v7549_v44, %v7781_v17  ;;  %v8270_v34 = vpop.permute.xlu0 %820  ;;  %v6916_v44 = vld [vmem:[%s14416_s1 + $0x8] sm:$0xf]  ;;  %1608 = vrot.lane.b32.xlu0 %v7599_v60, %s14690_s15  ;;  %v490_v58 = vmul.f32 %v8239_v1, %v448_v26  ;;  %v442_v60 = vsel %vm441_vm2, %v7675_v11, %v7777_v5  ;;  %v6917_v17 = vld [vmem:[%s14416_s1 + $0xc] sm:$0xf] }
 0x235   :  { %15154 = vst [vmem:[#allocation146_spill] sm:$0xff] %v8264_v4  ;;  %15156 = vst [vmem:[#allocation148_spill] sm:$0xff] %v8270_v34  ;;  %v8284_v4 = vrot.slane %v466_v13, %v8209_v54  ;;  %v460_v34 = vsel %vm441_vm2, %v7777_v5, %v7665_v32  ;;  %v8300_v13 = vrot.slane %v6915_v25, %v8173_v33 }
 0x236   :  { %15155 = vst [vmem:[#allocation147_spill] sm:$0xff] %v8268_v43  ;;  %15157 = vst [vmem:[#allocation149_spill] sm:$0xff] %v8281_v6  ;;  %v8302_v43 = vpop.permute.xlu1 %822  ;;  %v8311_v32 = vrot.slane %v6915_v25, %v8207_v47  ;;  %1610 = vrot.lane.b32.xlu1 %v7603_v61, %s14690_s15  ;;  %v494_v24 = vmul.f32 %v8239_v1, %v449_v63  ;;  %v8321_v26 = vrot.slane %v6915_v25, %v8209_v54  ;;  %v6907_v1 = vld [vmem:[%s14415_s3 + $0x170] sm:$0xff] }
 0x237   :  { %15158 = vst [vmem:[#allocation150_spill] sm:$0xff] %v8284_v4  ;;  %15159 = vst [vmem:[#allocation151_spill] sm:$0xff] %v8300_v13  ;;  %v8324_v20 = vrot.slane %v6916_v44, %v8171_v37  ;;  %v488_v5 = vmul.f32 %v8281_v6, %v460_v34  ;;  %v8331_v15 = vrot.slane %v6916_v44, %v8173_v33 }
 0x238   :  { %15160 = vst [vmem:[#allocation152_spill] sm:$0xff] %v8302_v43  ;;  %v493_v43 = vmul.f32 %v8236_v38, %v455_v51  ;;  %15161 = vst [vmem:[#allocation153_spill] sm:$0xff] %v8321_v26  ;;  %v8326_v11 = vpop.permute.xlu0 %832  ;;  %v8334_v61 = vrot.slane %v6916_v44, %v8207_v47  ;;  %v8337_v63 = vrot.slane %v6916_v44, %v8209_v54  ;;  %1620 = vrot.lane.b32.xlu0 %v7663_v10, %s14690_s15 }
 0x239   :  { %15162 = vst [vmem:[#allocation154_spill] sm:$0xff] %v8324_v20  ;;  %15163 = vst [vmem:[#allocation155_spill] sm:$0xff] %v8326_v11  ;;  %v491_v25 = vmul.f32 %v8284_v4, %v442_v60  ;;  %v443_v34 = vsel %vm441_vm2, %v7679_v50, %v7783_v39  ;;  %v461_v51 = vsel %vm441_vm2, %v7783_v39, %v7671_v30  ;;  %v6918_v39 = vld [vmem:[%s14416_s1 + $0x10] sm:$0xf] }
 0x23a   :  { %15164 = vst [vmem:[#allocation156_spill] sm:$0xff] %v8331_v15  ;;  %15165 = vst [vmem:[#allocation157_spill] sm:$0xff] %v8334_v61  ;;  %v8351_v11 = vrot.slane %v6917_v17, %v8171_v37  ;;  %v8353_v44 = vpop.permute.xlu1 %834  ;;  %v543_v60 = vmul.f32 %v7441_v12, %v489_v52  ;;  %v544_v38 = vmul.f32 %v7441_v12, %v490_v58  ;;  %1622 = vrot.lane.b32.xlu1 %v7669_v7, %s14690_s15  ;;  %v6908_v7 = vld [vmem:[%s14415_s3 + $0x178] sm:$0xff] }
 0x23b   :  { %15166 = vst [vmem:[#allocation158_spill] sm:$0xff] %v8337_v63  ;;  %15168 = vst [vmem:[#allocation160_spill] sm:$0xff] %v8353_v44  ;;  %v8361_v50 = vrot.slane %v6917_v17, %v8173_v33  ;;  %v8364_v10 = vrot.slane %v6917_v17, %v8207_v47  ;;  %v547_v30 = vmul.f32 %v7467_v22, %v493_v43 }
 0x23c   :  { %15167 = vst [vmem:[#allocation159_spill] sm:$0xff] %v8351_v11  ;;  %v548_v44 = vmul.f32 %v7467_v22, %v494_v24  ;;  %v645_v58 = vsel %vm638_vm3, %v7787_v21, %v7691_v28  ;;  %v651_v52 = vsel %vm638_vm3, %v7683_v53, %v7787_v21  ;;  %v542_v43 = vmul.f32 %v7441_v12, %v488_v5 }
 0x23d   :  { %15169 = vst [vmem:[#allocation161_spill] sm:$0xff] %v8361_v50  ;;  %15170 = vst [vmem:[#allocation162_spill] sm:$0xff] %v8364_v10  ;;  %v8381_v10 = vpop.permute.xlu0 %1188  ;;  %v492_v24 = vmul.f32 %v8281_v6, %v461_v51  ;;  %v495_v50 = vmul.f32 %v8284_v4, %v443_v34  ;;  %v8390_v11 = vrot.slane %v6917_v17, %v8209_v54  ;;  %1722 = vperm.xlu0 %7117, %v6907_v1  }
 0x23e   :  { %15171 = vst [vmem:[#allocation163_spill] sm:$0xff] %v8381_v10  ;;  %v545_v18 = vmul.f32 %v7441_v12, %v491_v25  ;;  %v8394_v21 = vrot.slane %v6918_v39, %v8207_v47  ;;  %v8397_v10 = vrot.slane %v6918_v39, %v8171_v37  ;;  %v8400_v63 = vrot.slane %v6918_v39, %v8173_v33  ;;  %v8402_v5 = vpop.permute.xlu1 %1190 }
 0x23f   :  { %15172 = vst [vmem:[#allocation164_spill] sm:$0xff] %v8390_v11  ;;  %15176 = vst [vmem:[#allocation168_spill] sm:$0xff] %v8402_v5  ;;  %v687_v51 = vmul.f32 %v8297_v42, %v651_v52  ;;  %v688_v34 = vmul.f32 %v8300_v13, %v645_v58  ;;  %v652_v12 = vsel %vm638_vm3, %v7687_v3, %v7791_v14  ;;  %1727 = vperm.xlu1 %7118, %v6908_v7  }
 0x240   :  { %15173 = vst [vmem:[#allocation165_spill] sm:$0xff] %v8394_v21  ;;  %15174 = vst [vmem:[#allocation166_spill] sm:$0xff] %v8397_v10  ;;  %v8411_v17 = vrot.slane %v6918_v39, %v8209_v54  ;;  %v567_v1 = vadd.f32 %v543_v60, %v8141_v40  ;;  %v568_v25 = vadd.f32 %v544_v38, %v8129_v19  ;;  %v15181_v60 = vld [vmem:[#allocation50_spill] sm:$0xff] }
 0x241   :  { %15175 = vst [vmem:[#allocation167_spill] sm:$0xff] %v8400_v63  ;;  %v571_v33 = vadd.f32 %v547_v30, %v8159_v48  ;;  %v572_v5 = vadd.f32 %v548_v44, %v8155_v57  ;;  %v8417_v52 = vpop.permute.xlu0 %1200  ;;  %v566_v58 = vadd.f32 %v542_v43, %v8133_v36  ;;  %v546_v37 = vmul.f32 %v7467_v22, %v492_v24 }
 0x242   :  { %15177 = vst [vmem:[#allocation169_spill] sm:$0xff] %v8411_v17  ;;  %15178 = vst [vmem:[#allocation170_spill] sm:$0xff] %v8417_v52  ;;  %v549_v4 = vmul.f32 %v7467_v22, %v495_v50  ;;  %v646_v7 = vsel %vm638_vm3, %v7791_v14, %v7695_v9  ;;  %1390 = vrot.lane.b32.xlu0 %v7718_v45, %s7170_s28  ;;  %v569_v40 = vadd.f32 %v545_v18, %v8145_v2  ;;  %v8439_v14 = vpop.permute.xlu1 %1202  ;;  %v15182_v50 = vld [vmem:[#allocation3_spill] sm:$0xff] }
 0x243   :  { %v691_v19 = vmul.f32 %v8297_v42, %v652_v12  ;;  %v639_v36 = vsel %vm638_vm3, %v7691_v28, %v7795_v27  ;;  %v657_v22 = vsel %vm638_vm3, %v7795_v27, %v7683_v53  ;;  %15179 = vst [vmem:[#allocation171_spill] sm:$0xff] %v8439_v14  ;;  %v741_v57 = vmul.f32 %v7473_v23, %v687_v51 }
 0x244   :  { %v742_v18 = vmul.f32 %v7473_v23, %v688_v34  ;;  %v640_v2 = vsel %vm638_vm3, %v7695_v9, %v7799_v49  ;;  %v658_v28 = vsel %vm638_vm3, %v7799_v49, %v7687_v3  ;;  %1392 = vrot.lane.b32.xlu1 %v7725_v0, %s7170_s28  ;;  %v692_v53 = vmul.f32 %v8300_v13, %v646_v7 }
 0x245   :  { %v843_v27 = vsel %vm836_vm4, %v7803_v56, %v7708_v35  ;;  %v849_v9 = vsel %vm836_vm4, %v7699_v59, %v7803_v56  ;;  %v850_v3 = vsel %vm836_vm4, %v7703_v55, %v7807_v41  ;;  %v8466_v49 = vpop.permute.xlu0 %1212  ;;  %v686_v48 = vmul.f32 %v8311_v32, %v657_v22 }
 0x246   :  { %15180 = vst [vmem:[#allocation172_spill] sm:$0xff] %v8466_v49  ;;  %v689_v38 = vmul.f32 %v8321_v26, %v639_v36  ;;  %v844_v44 = vsel %vm836_vm4, %v7807_v41, %v7713_v8  ;;  %v855_v56 = vsel %vm836_vm4, %v15181_v60, %v7699_v59  ;;  %1402 = vrot.lane.b32.xlu0 %v7761_v29, %s7170_s28  ;;  %v8487_v41 = vpop.permute.xlu1 %1214 }
 0x247   :  { %v745_v39 = vmul.f32 %v15182_v50, %v691_v19  ;;  %v690_v30 = vmul.f32 %v8311_v32, %v658_v28  ;;  %v693_v43 = vmul.f32 %v8321_v26, %v640_v2  ;;  %v837_v24 = vsel %vm836_vm4, %v7708_v35, %v15181_v60  ;;  %15183 = vst [vmem:[#allocation50_spill] sm:$0xff] %v8487_v41  ;;  %v15185_v28 = vld [vmem:[#allocation158_spill] sm:$0xff] }
 0x248   :  { %v570_v51 = vadd.f32 %v546_v37, %v8149_v62  ;;  %v885_v59 = vmul.f32 %v8324_v20, %v849_v9  ;;  %v886_v34 = vmul.f32 %v8331_v15, %v843_v27  ;;  %v889_v12 = vmul.f32 %v8324_v20, %v850_v3  ;;  %1404 = vrot.lane.b32.xlu1 %v7768_v16, %s7170_s28  ;;  %v15186_v9 = vld [vmem:[#allocation40_spill] sm:$0xff]  ;;  %v15188_v60 = vld [vmem:[#allocation6_spill] sm:$0xff] }
 0x249   :  { %v573_v7 = vadd.f32 %v549_v4, %v8163_v31  ;;  %v746_v19 = vmul.f32 %v15182_v50, %v692_v53  ;;  %v890_v36 = vmul.f32 %v8331_v15, %v844_v44  ;;  %v884_v35 = vmul.f32 %v8334_v61, %v855_v56  ;;  %v8500_v62 = vpop.permute.xlu0 %1224 }
 0x24a   :  { %15184 = vst [vmem:[#allocation3_spill] sm:$0xff] %v8500_v62  ;;  %v765_v37 = vadd.f32 %v741_v57, %v567_v1  ;;  %v740_v22 = vmul.f32 %v7473_v23, %v686_v48  ;;  %v743_v2 = vmul.f32 %v7473_v23, %v689_v38  ;;  %v887_v27 = vmul.f32 %v15185_v28, %v837_v24  ;;  %v8509_v44 = vpop.permute.xlu1 %1226  ;;  %v15189_v57 = vld [vmem:[#allocation7_spill] sm:$0xff]  ;;  %v15216_v62 = vld [vmem:[#allocation45_spill] sm:$0xff] }
 0x24b   :  { %1414 = vrot.lane.b32.xlu0 %v15186_v9, %s7170_s28  ;;  %v766_v31 = vadd.f32 %v742_v18, %v568_v25  ;;  %v769_v4 = vadd.f32 %v745_v39, %v571_v33  ;;  %v744_v53 = vmul.f32 %v15182_v50, %v690_v30  ;;  %v747_v3 = vmul.f32 %v15182_v50, %v693_v43  ;;  %v15190_v23 = vld [vmem:[#allocation51_spill] sm:$0xff]  ;;  %v15191_v25 = vld [vmem:[#allocation42_spill] sm:$0xff] }
 0x24c   :  { %15187 = vst [vmem:[#allocation40_spill] sm:$0xff] %v8509_v44  ;;  %v939_v56 = vmul.f32 %v15188_v60, %v885_v59  ;;  %v940_v1 = vmul.f32 %v15188_v60, %v886_v34  ;;  %v943_v48 = vmul.f32 %v15189_v57, %v889_v12  ;;  %v856_v38 = vsel %vm836_vm4, %v15190_v23, %v7703_v55  ;;  %v15193_v55 = vld [vmem:[#allocation52_spill] sm:$0xff]  ;;  %v15194_v34 = vld [vmem:[#allocation38_spill] sm:$0xff]  ;;  %v15196_v44 = vld [vmem:[#allocation41_spill] sm:$0xff] }
 0x24d   :  { %1416 = vrot.lane.b32.xlu1 %v15191_v25, %s7170_s28  ;;  %v770_v33 = vadd.f32 %v746_v19, %v572_v5  ;;  %v944_v18 = vmul.f32 %v15189_v57, %v890_v36  ;;  %v938_v50 = vmul.f32 %v15188_v60, %v884_v35  ;;  %v838_v39 = vsel %vm836_vm4, %v7713_v8, %v15190_v23  ;;  %v8526_v30 = vpop.permute.xlu0 %1326  ;;  %v15195_v12 = vld [vmem:[#allocation48_spill] sm:$0xff] }
 0x24e   :  { %15192 = vst [vmem:[#allocation6_spill] sm:$0xff] %v8526_v30  ;;  %v764_v43 = vadd.f32 %v740_v22, %v566_v58  ;;  %v767_v24 = vadd.f32 %v743_v2, %v569_v40  ;;  %v941_v59 = vmul.f32 %v15188_v60, %v887_v27  ;;  %v1047_v5 = vsel %vm1034_vm5, %v15194_v34, %v15193_v55  ;;  %v8540_v58 = vpop.permute.xlu1 %1331  ;;  %v15198_v60 = vld [vmem:[#allocation49_spill] sm:$0xff] }
 0x24f   :  { %1426 = vrot.lane.b32.xlu0 %v15195_v12, %s7170_s28  ;;  %v768_v19 = vadd.f32 %v744_v53, %v570_v51  ;;  %v771_v36 = vadd.f32 %v747_v3, %v573_v7  ;;  %v888_v35 = vmul.f32 %v8334_v61, %v856_v38  ;;  %v1041_v8 = vsel %vm1034_vm5, %v15193_v55, %v15196_v44  ;;  %v15199_v7 = vld [vmem:[#allocation159_spill] sm:$0xff]  ;;  %v15200_v3 = vld [vmem:[#allocation53_spill] sm:$0xff] }
 0x250   :  { %15197 = vst [vmem:[#allocation7_spill] sm:$0xff] %v8540_v58  ;;  %v963_v40 = vadd.f32 %v939_v56, %v765_v37  ;;  %v964_v22 = vadd.f32 %v940_v1, %v766_v31  ;;  %v967_v2 = vadd.f32 %v943_v48, %v769_v4  ;;  %v891_v27 = vmul.f32 %v15185_v28, %v838_v39  ;;  %v15201_v38 = vld [vmem:[#allocation39_spill] sm:$0xff]  ;;  %v15203_v37 = vld [vmem:[#allocation161_spill] sm:$0xff]  ;;  %v15205_v1 = vld [vmem:[#allocation54_spill] sm:$0xff] }
 0x251   :  { %1428 = vrot.lane.b32.xlu1 %v15198_v60, %s7170_s28  ;;  %v968_v23 = vadd.f32 %v944_v18, %v770_v33  ;;  %v962_v51 = vadd.f32 %v938_v50, %v764_v43  ;;  %v1083_v53 = vmul.f32 %v15199_v7, %v1047_v5  ;;  %v1048_v30 = vsel %vm1034_vm5, %v15201_v38, %v15200_v3  ;;  %v8550_v55 = vpop.permute.xlu0 %1580  ;;  %v15204_v4 = vld [vmem:[#allocation43_spill] sm:$0xff]  ;;  %v15206_v33 = vld [vmem:[#allocation18_spill] sm:$0xff] }
 0x252   :  { %15202 = vst [vmem:[#allocation51_spill] sm:$0xff] %v8550_v55  ;;  %v965_v58 = vadd.f32 %v941_v59, %v767_v24  ;;  %v1084_v31 = vmul.f32 %v15203_v37, %v1041_v8  ;;  %v1042_v56 = vsel %vm1034_vm5, %v15200_v3, %v15204_v4  ;;  %v1053_v48 = vsel %vm1034_vm5, %v15205_v1, %v15194_v34  ;;  %v15207_v39 = vld [vmem:[#allocation55_spill] sm:$0xff]  ;;  %v8576_v59 = vpop.permute.xlu1 %1582  ;;  %v15210_v8 = vld [vmem:[#allocation56_spill] sm:$0xff]  ;;  %v15220_v55 = vld [vmem:[#allocation58_spill] sm:$0xff] }
 0x253   :  { %1782 = vrot.lane.b32.xlu0 %v15206_v33, %s14688_s30  ;;  %v942_v18 = vmul.f32 %v15189_v57, %v888_v35  ;;  %v1035_v50 = vsel %vm1034_vm5, %v15196_v44, %v15205_v1  ;;  %v1036_v43 = vsel %vm1034_vm5, %v15204_v4, %v15207_v39  ;;  %v1054_v24 = vsel %vm1034_vm5, %v15207_v39, %v15201_v38  ;;  %v15209_v35 = vld [vmem:[#allocation46_spill] sm:$0xff]  ;;  %v15211_v3 = vld [vmem:[#allocation44_spill] sm:$0xff] }
 0x254   :  { %15208 = vst [vmem:[#allocation42_spill] sm:$0xff] %v8576_v59  ;;  %v945_v34 = vmul.f32 %v15189_v57, %v891_v27  ;;  %v1087_v5 = vmul.f32 %v15199_v7, %v1048_v30  ;;  %v1239_v44 = vsel %vm1232_vm6, %v15210_v8, %v15209_v35  ;;  %v1245_v4 = vsel %vm1232_vm6, %v15211_v3, %v15210_v8  ;;  %v15212_v1 = vld [vmem:[#allocation20_spill] sm:$0xff]  ;;  %v15213_v38 = vld [vmem:[#allocation10_spill] sm:$0xff]  ;;  %v15215_v30 = vld [vmem:[#allocation57_spill] sm:$0xff] }
 0x255   :  { %1784 = vrot.lane.b32.xlu1 %v15212_v1, %s14688_s30  ;;  %v1137_v33 = vmul.f32 %v15213_v38, %v1083_v53  ;;  %v1088_v39 = vmul.f32 %v15203_v37, %v1042_v56  ;;  %v15214_v57 = vld [vmem:[#allocation162_spill] sm:$0xff]  ;;  %v1246_v41 = vsel %vm1232_vm6, %v15216_v62, %v15215_v30  ;;  %v8597_v49 = vpop.permute.xlu0 %1592  ;;  %v1085_v14 = vmul.f32 %v8390_v11, %v1035_v50  ;;  %v15218_v1 = vld [vmem:[#allocation47_spill] sm:$0xff]  ;;  %v15219_v56 = vld [vmem:[#allocation32_spill] sm:$0xff] }
 0x256   :  { %v1082_v27 = vmul.f32 %v15214_v57, %v1053_v48  ;;  %15217 = vst [vmem:[#allocation52_spill] sm:$0xff] %v8597_v49  ;;  %v1086_v8 = vmul.f32 %v15214_v57, %v1054_v24  ;;  %v1089_v52 = vmul.f32 %v8390_v11, %v1036_v43  ;;  %v1240_v53 = vsel %vm1232_vm6, %v15215_v30, %v15218_v1  ;;  %v8618_v24 = vpop.permute.xlu1 %1594 }
 0x257   :  { %1794 = vrot.lane.b32.xlu0 %v15219_v56, %s14688_s30  ;;  %v1280_v48 = vmul.f32 %v8394_v21, %v1245_v4  ;;  %v1281_v59 = vmul.f32 %v8397_v10, %v1239_v44  ;;  %v1233_v50 = vsel %vm1232_vm6, %v15209_v35, %v15220_v55  ;;  %v1251_v43 = vsel %vm1232_vm6, %v15220_v55, %v15211_v3  ;;  %v15221_v56 = vld [vmem:[#allocation11_spill] sm:$0xff]  ;;  %v15222_v44 = vld [vmem:[#allocation34_spill] sm:$0xff]  ;;  %v15224_v3 = vld [vmem:[#allocation16_spill] sm:$0xff] }
 0x258   :  { %v966_v30 = vadd.f32 %v942_v18, %v768_v19  ;;  %v1138_v11 = vmul.f32 %v15213_v38, %v1084_v31  ;;  %v1141_v57 = vmul.f32 %v15221_v56, %v1087_v5  ;;  %v1284_v4 = vmul.f32 %v8394_v21, %v1246_v41  ;;  %v15223_v5 = vld [vmem:[#allocation22_spill] sm:$0xff] }
 0x259   :  { %1796 = vrot.lane.b32.xlu1 %v15222_v44, %s14688_s30  ;;  %v969_v49 = vadd.f32 %v945_v34, %v771_v36  ;;  %v1142_v35 = vmul.f32 %v15221_v56, %v1088_v39  ;;  %v1136_v37 = vmul.f32 %v15213_v38, %v1082_v27  ;;  %v1285_v7 = vmul.f32 %v8397_v10, %v1240_v53  ;;  %v8628_v55 = vpop.permute.xlu0 %1604  ;;  %v15226_v10 = vld [vmem:[#allocation59_spill] sm:$0xff] }
 0x25a   :  { %v1139_v19 = vmul.f32 %v15213_v38, %v1085_v14  ;;  %v1140_v31 = vmul.f32 %v15221_v56, %v1086_v8  ;;  %v1282_v18 = vmul.f32 %v8400_v63, %v1233_v50  ;;  %v1283_v41 = vmul.f32 %v8411_v17, %v1251_v43  ;;  %v8639_v53 = vpop.permute.xlu1 %1606  ;;  %v15225_v38 = vld [vmem:[#allocation17_spill] sm:$0xff]  ;;  %v15227_v43 = vld [vmem:[#allocation23_spill] sm:$0xff] }
 0x25b   :  { %1806 = vrot.lane.b32.xlu0 %v15223_v5, %s14688_s30  ;;  %v1161_v36 = vadd.f32 %v1137_v33, %v963_v40  ;;  %v1143_v34 = vmul.f32 %v15221_v56, %v1089_v52  ;;  %v1334_v39 = vmul.f32 %v15224_v3, %v1280_v48  ;;  %v1335_v27 = vmul.f32 %v15224_v3, %v1281_v59  ;;  %v15239_v5 = vld [vmem:[#allocation63_spill] sm:$0xff] }
 0x25c   :  { %v1162_v44 = vadd.f32 %v1138_v11, %v964_v22  ;;  %v1165_v14 = vadd.f32 %v1141_v57, %v967_v2  ;;  %v1338_v8 = vmul.f32 %v15225_v38, %v1284_v4  ;;  %v1234_v50 = vsel %vm1232_vm6, %v15218_v1, %v15226_v10  ;;  %v15234_v4 = vld [vmem:[#allocation62_spill] sm:$0xff] }
 0x25d   :  { %1808 = vrot.lane.b32.xlu1 %v15227_v43, %s14688_s30  ;;  %v8648_v40 = vadd.f32 %v1142_v35, %v968_v23  ;;  %v1160_v52 = vadd.f32 %v1136_v37, %v962_v51  ;;  %v1339_v33 = vmul.f32 %v15225_v38, %v1285_v7  ;;  %v1252_v11 = vsel %vm1232_vm6, %v15226_v10, %v15216_v62  ;;  %v8655_v22 = vpop.permute.xlu0 %1616  ;;  %v6919_v23 = vld [vmem:[%s14416_s1 + $0x14] sm:$0xf]  ;;  %v15229_v51 = vld [vmem:[#allocation36_spill] sm:$0xff] }
 0x25e   :  { %15228 = vst [vmem:[#allocation38_spill] sm:$0xff] %v8655_v22  ;;  %v1163_v2 = vadd.f32 %v1139_v19, %v965_v58  ;;  %v1164_v59 = vadd.f32 %v1140_v31, %v966_v30  ;;  %v1336_v57 = vmul.f32 %v15224_v3, %v1282_v18  ;;  %v1337_v1 = vmul.f32 %v15224_v3, %v1283_v41  ;;  %v8669_v62 = vpop.permute.xlu1 %1618  ;;  %v6913_v58 = vld [vmem:[%s14415_s3 + $0x1a0] sm:$0xff]  ;;  %v15235_v35 = vld [vmem:[#allocation76_spill] sm:$0xff]  ;;  %v15237_v18 = vld [vmem:[#allocation37_spill] sm:$0xff] }
 0x25f   :  { %1818 = vrot.lane.b32.xlu0 %v15229_v51, %s14688_s30  ;;  %v1167_v7 = vadd.f32 %v1143_v34, %v969_v49  ;;  %v8664_v37 = vadd.f32 %v1334_v39, %v1160_v52  ;;  %v8666_v48 = vadd.f32 %v1335_v27, %v1161_v36  ;;  %v1286_v10 = vmul.f32 %v8400_v63, %v1234_v50  ;;  %v15236_v19 = vld [vmem:[#allocation60_spill] sm:$0xff]  ;;  %v15240_v36 = vld [vmem:[#allocation77_spill] sm:$0xff]  ;;  %v15246_v52 = vld [vmem:[#allocation78_spill] sm:$0xff] }
 0x260   :  { %15232 = vst [vmem:[#allocation49_spill] sm:$0xff] %v8669_v62  ;;  %v8674_v30 = vadd.f32 %v1338_v8, %v1164_v59  ;;  %v1287_v56 = vmul.f32 %v8411_v17, %v1252_v11  ;;  %v450_v49 = vsel %vm441_vm2, %v15235_v35, %v15234_v4  ;;  %v456_v31 = vsel %vm441_vm2, %v15236_v19, %v15235_v35  ;;  %v15241_v3 = vld [vmem:[#allocation61_spill] sm:$0xff]  ;;  %v15247_v59 = vld [vmem:[#allocation142_spill] sm:$0xff]  ;;  %v15248_v35 = vld [vmem:[#allocation143_spill] sm:$0xff] }
 0x261   :  { %15230 = vst [vmem:[#allocation48_spill] sm:$0xff] %v8664_v37  ;;  %15231 = vst [vmem:[#allocation41_spill] sm:$0xff] %v8666_v48  ;;  %1820 = vrot.lane.b32.xlu1 %v15237_v18, %s14688_s30  ;;  %v8687_v41 = vadd.f32 %v1339_v33, %v1165_v14  ;;  %v451_v34 = vsel %vm441_vm2, %v15240_v36, %v15239_v5  ;;  %v457_v39 = vsel %vm441_vm2, %v15241_v3, %v15240_v36  ;;  %v8700_v8 = vpop.permute.xlu0 %1712  ;;  %v6914_v14 = vld [vmem:[%s14415_s3 + $0x1a8] sm:$0xff]  ;;  %v15249_v36 = vld [vmem:[#allocation79_spill] sm:$0xff] }
 0x262   :  { %15233 = vst [vmem:[#allocation53_spill] sm:$0xff] %v8674_v30  ;;  %v8698_v27 = vrot.slane %v6919_v23, %v8207_v47  ;;  %15243 = vst [vmem:[#allocation54_spill] sm:$0xff] %v8700_v8  ;;  %v8705_v50 = vadd.f32 %v1336_v57, %v1162_v44  ;;  %v8707_v43 = vadd.f32 %v1337_v1, %v1163_v2  ;;  %v8727_v57 = vpop.permute.xlu1 %1717  ;;  %v15253_v8 = vld [vmem:[#allocation150_spill] sm:$0xff]  ;;  %v15256_v17 = vld [vmem:[#allocation125_spill] sm:$0xff] }
 0x263   :  { %15238 = vst [vmem:[#allocation39_spill] sm:$0xff] %v8687_v41  ;;  %v444_v33 = vsel %vm441_vm2, %v15234_v4, %v15246_v52  ;;  %v462_v11 = vsel %vm441_vm2, %v15246_v52, %v15236_v19  ;;  %1920 = vperm.xlu0 %7117, %v6913_v58   ;;  %v497_v51 = vmul.f32 %v15247_v59, %v456_v31  ;;  %15250 = vst [vmem:[#allocation46_spill] sm:$0xff] %v8727_v57  ;;  %v15251_v19 = vld [vmem:[#allocation80_spill] sm:$0xff]  ;;  %v15270_v48 = vld [vmem:[#allocation127_spill] sm:$0xff] }
 0x264   :  { %15242 = vst [vmem:[#allocation43_spill] sm:$0xff] %v8698_v27  ;;  %15244 = vst [vmem:[#allocation18_spill] sm:$0xff] %v8705_v50  ;;  %v498_v18 = vmul.f32 %v15248_v35, %v450_v49  ;;  %v445_v44 = vsel %vm441_vm2, %v15239_v5, %v15249_v36  ;;  %v463_v2 = vsel %vm441_vm2, %v15249_v36, %v15241_v3  ;;  %v15252_v49 = vld [vmem:[#allocation64_spill] sm:$0xff]  ;;  %v15254_v36 = vld [vmem:[#allocation66_spill] sm:$0xff] }
 0x265   :  { %15245 = vst [vmem:[#allocation55_spill] sm:$0xff] %v8707_v43  ;;  %v1340_v1 = vmul.f32 %v15225_v38, %v1286_v10  ;;  %v501_v58 = vmul.f32 %v15247_v59, %v457_v39  ;;  %v502_v4 = vmul.f32 %v15248_v35, %v451_v34  ;;  %v653_v31 = vsel %vm638_vm3, %v15252_v49, %v15251_v19  ;;  %v8743_v39 = vpop.permute.xlu0 %994  ;;  %v15264_v43 = vld [vmem:[#allocation81_spill] sm:$0xff]  ;;  %v15271_v37 = vld [vmem:[#allocation8_spill] sm:$0xff] }
 0x266   :  { %1925 = vperm.xlu1 %7118, %v6914_v14   ;;  %v1341_v5 = vmul.f32 %v15225_v38, %v1287_v56  ;;  %v496_v52 = vmul.f32 %v8281_v6, %v462_v11  ;;  %v499_v3 = vmul.f32 %v15253_v8, %v444_v33  ;;  %v647_v10 = vsel %vm638_vm3, %v15251_v19, %v15254_v36  ;;  %v15258_v14 = vld [vmem:[#allocation126_spill] sm:$0xff]  ;;  %v15260_v56 = vld [vmem:[#allocation4_spill] sm:$0xff]  ;;  %v15265_v50 = vld [vmem:[#allocation65_spill] sm:$0xff] }
 0x267   :  { %15255 = vst [vmem:[#allocation56_spill] sm:$0xff] %v8743_v39  ;;  %v500_v34 = vmul.f32 %v8281_v6, %v463_v2  ;;  %v503_v57 = vmul.f32 %v15253_v8, %v445_v44  ;;  %v8748_v63 = vrot.slane %v6919_v23, %v15256_v17  ;;  %v8751_v38 = vrot.slane %v6919_v23, %v15258_v14  ;;  %v8761_v2 = vpop.permute.xlu1 %996  ;;  %v15263_v44 = vld [vmem:[#allocation5_spill] sm:$0xff] }
 0x268   :  { %1588 = vrot.lane.b32.xlu0 %v7718_v45, %s14690_s15  ;;  %v551_v33 = vmul.f32 %v15260_v56, %v497_v51  ;;  %v552_v11 = vmul.f32 %v15260_v56, %v498_v18  ;;  %v695_v19 = vmul.f32 %v8297_v42, %v653_v31  ;;  %v8759_v39 = vrot.slane %v6919_v23, %v8209_v54  ;;  %v15266_v31 = vld [vmem:[#allocation67_spill] sm:$0xff] }
 0x269   :  { %15257 = vst [vmem:[#allocation44_spill] sm:$0xff] %v8748_v63  ;;  %15259 = vst [vmem:[#allocation20_spill] sm:$0xff] %v8751_v38  ;;  %v555_v21 = vmul.f32 %v15263_v44, %v501_v58  ;;  %v556_v8 = vmul.f32 %v15263_v44, %v502_v4  ;;  %v696_v6 = vmul.f32 %v8300_v13, %v647_v10  ;;  %v15267_v4 = vld [vmem:[#allocation82_spill] sm:$0xff] }
 0x26a   :  { %15261 = vst [vmem:[#allocation10_spill] sm:$0xff] %v8759_v39  ;;  %15262 = vst [vmem:[#allocation57_spill] sm:$0xff] %v8761_v2  ;;  %v654_v51 = vsel %vm638_vm3, %v15265_v50, %v15264_v43  ;;  %1590 = vrot.lane.b32.xlu1 %v7725_v0, %s14690_s15  ;;  %v550_v18 = vmul.f32 %v15260_v56, %v496_v52  ;;  %v553_v23 = vmul.f32 %v15260_v56, %v499_v3  ;;  %v8782_v2 = vpop.permute.xlu0 %1006 }
 0x26b   :  { %v648_v58 = vsel %vm638_vm3, %v15264_v43, %v15266_v31  ;;  %v659_v10 = vsel %vm638_vm3, %v15267_v4, %v15252_v49  ;;  %15268 = vst [vmem:[#allocation45_spill] sm:$0xff] %v8782_v2  ;;  %v8785_v41 = vadd.f32 %v1340_v1, %v8648_v40  ;;  %v8787_v62 = vadd.f32 %v1341_v5, %v1167_v7  ;;  %v15269_v43 = vld [vmem:[#allocation128_spill] sm:$0xff]  ;;  %v8797_v22 = vpop.permute.xlu1 %1008 }
 0x26c   :  { %v554_v52 = vmul.f32 %v15263_v44, %v500_v34  ;;  %v557_v3 = vmul.f32 %v15263_v44, %v503_v57  ;;  %1600 = vrot.lane.b32.xlu0 %v7761_v29, %s14690_s15  ;;  %v575_v56 = vadd.f32 %v551_v33, %v15269_v43  ;;  %v576_v30 = vadd.f32 %v552_v11, %v15270_v48  ;;  %v15273_v48 = vld [vmem:[#allocation130_spill] sm:$0xff]  ;;  %v15274_v34 = vld [vmem:[#allocation129_spill] sm:$0xff]  ;;  %v15275_v11 = vld [vmem:[#allocation123_spill] sm:$0xff] }
 0x26d   :  { %v749_v49 = vmul.f32 %v15271_v37, %v695_v19  ;;  %v699_v2 = vmul.f32 %v8297_v42, %v654_v51  ;;  %15272 = vst [vmem:[#allocation47_spill] sm:$0xff] %v8797_v22  ;;  %v750_v40 = vmul.f32 %v15271_v37, %v696_v6  ;;  %v700_v7 = vmul.f32 %v8300_v13, %v648_v58  ;;  %v15276_v44 = vld [vmem:[#allocation131_spill] sm:$0xff]  ;;  %v15278_v58 = vld [vmem:[#allocation132_spill] sm:$0xff] }
 0x26e   :  { %v641_v57 = vsel %vm638_vm3, %v15254_v36, %v15267_v4  ;;  %v694_v1 = vmul.f32 %v8311_v32, %v659_v10  ;;  %1602 = vrot.lane.b32.xlu1 %v7768_v16, %s14690_s15  ;;  %v579_v5 = vadd.f32 %v555_v21, %v15273_v48  ;;  %v580_v33 = vadd.f32 %v556_v8, %v15274_v34  ;;  %v8812_v51 = vpop.permute.xlu0 %1018  ;;  %v15279_v22 = vld [vmem:[#allocation136_spill] sm:$0xff]  ;;  %v15280_v36 = vld [vmem:[#allocation83_spill] sm:$0xff] }
 0x26f   :  { %v574_v19 = vadd.f32 %v550_v18, %v15275_v11  ;;  %v577_v6 = vadd.f32 %v553_v23, %v15276_v44  ;;  %15277 = vst [vmem:[#allocation32_spill] sm:$0xff] %v8812_v51  ;;  %v578_v43 = vadd.f32 %v554_v52, %v15278_v58  ;;  %v581_v13 = vadd.f32 %v557_v3, %v15279_v22  ;;  %v15281_v18 = vld [vmem:[#allocation9_spill] sm:$0xff]  ;;  %v15282_v52 = vld [vmem:[#allocation84_spill] sm:$0xff]  ;;  %v8832_v48 = vpop.permute.xlu1 %1020  ;;  %v15285_v11 = vld [vmem:[#allocation70_spill] sm:$0xff] }
 0x270   :  { %v642_v4 = vsel %vm638_vm3, %v15266_v31, %v15280_v36  ;;  %v660_v21 = vsel %vm638_vm3, %v15280_v36, %v15265_v50  ;;  %1612 = vrot.lane.b32.xlu0 %v15186_v9, %s14690_s15  ;;  %v773_v8 = vadd.f32 %v749_v49, %v575_v56  ;;  %v753_v23 = vmul.f32 %v15281_v18, %v699_v2  ;;  %v15283_v22 = vld [vmem:[#allocation68_spill] sm:$0xff]  ;;  %v15287_v44 = vld [vmem:[#allocation85_spill] sm:$0xff]  ;;  %v15290_v36 = vld [vmem:[#allocation86_spill] sm:$0xff] }
 0x271   :  { %v697_v10 = vmul.f32 %v8321_v26, %v641_v57  ;;  %v851_v3 = vsel %vm836_vm4, %v15283_v22, %v15282_v52  ;;  %15284 = vst [vmem:[#allocation58_spill] sm:$0xff] %v8832_v48  ;;  %v774_v31 = vadd.f32 %v750_v40, %v576_v30  ;;  %v754_v34 = vmul.f32 %v15281_v18, %v700_v7  ;;  %v15286_v57 = vld [vmem:[#allocation71_spill] sm:$0xff]  ;;  %v15288_v40 = vld [vmem:[#allocation69_spill] sm:$0xff] }
 0x272   :  { %v748_v50 = vmul.f32 %v15271_v37, %v694_v1  ;;  %v845_v56 = vsel %vm836_vm4, %v15282_v52, %v15285_v11  ;;  %1614 = vrot.lane.b32.xlu1 %v15191_v25, %s14690_s15  ;;  %v698_v2 = vmul.f32 %v8311_v32, %v660_v21  ;;  %v701_v49 = vmul.f32 %v8321_v26, %v642_v4  ;;  %v8852_v1 = vpop.permute.xlu0 %1030  ;;  %v15291_v52 = vld [vmem:[#allocation87_spill] sm:$0xff]  ;;  %v15294_v26 = vld [vmem:[#allocation88_spill] sm:$0xff] }
 0x273   :  { %v846_v30 = vsel %vm836_vm4, %v15287_v44, %v15286_v57  ;;  %v852_v7 = vsel %vm836_vm4, %v15288_v40, %v15287_v44  ;;  %15289 = vst [vmem:[#allocation11_spill] sm:$0xff] %v8852_v1  ;;  %v893_v58 = vmul.f32 %v8324_v20, %v851_v3  ;;  %v839_v21 = vsel %vm836_vm4, %v15285_v11, %v15290_v36  ;;  %v8875_v51 = vpop.permute.xlu1 %1032 }
 0x274   :  { %v857_v4 = vsel %vm836_vm4, %v15290_v36, %v15283_v22  ;;  %v858_v48 = vsel %vm836_vm4, %v15291_v52, %v15288_v40  ;;  %1624 = vrot.lane.b32.xlu0 %v15195_v12, %s14690_s15  ;;  %v777_v44 = vadd.f32 %v753_v23, %v579_v5  ;;  %v751_v3 = vmul.f32 %v15271_v37, %v697_v10  ;;  %v15293_v40 = vld [vmem:[#allocation74_spill] sm:$0xff]  ;;  %v15295_v37 = vld [vmem:[#allocation72_spill] sm:$0xff] }
 0x275   :  { %v894_v1 = vmul.f32 %v8331_v15, %v845_v56  ;;  %v840_v11 = vsel %vm836_vm4, %v15286_v57, %v15291_v52  ;;  %15292 = vst [vmem:[#allocation34_spill] sm:$0xff] %v8875_v51  ;;  %v897_v22 = vmul.f32 %v8324_v20, %v852_v7  ;;  %v898_v36 = vmul.f32 %v8331_v15, %v846_v30  ;;  %v15297_v15 = vld [vmem:[#allocation14_spill] sm:$0xff] }
 0x276   :  { %v1043_v5 = vsel %vm1034_vm5, %v15294_v26, %v15293_v40  ;;  %v1049_v23 = vsel %vm1034_vm5, %v15295_v37, %v15294_v26  ;;  %1626 = vrot.lane.b32.xlu1 %v15198_v60, %s14690_s15  ;;  %v778_v10 = vadd.f32 %v754_v34, %v580_v33  ;;  %v892_v56 = vmul.f32 %v8334_v61, %v857_v4  ;;  %v8893_v7 = vpop.permute.xlu0 %1386  ;;  %v15298_v4 = vld [vmem:[#allocation159_spill] sm:$0xff] }
 0x277   :  { %v895_v57 = vmul.f32 %v15185_v28, %v839_v21  ;;  %v896_v30 = vmul.f32 %v8334_v61, %v858_v48  ;;  %15296 = vst [vmem:[#allocation22_spill] sm:$0xff] %v8893_v7  ;;  %v752_v52 = vmul.f32 %v15281_v18, %v698_v2  ;;  %v755_v51 = vmul.f32 %v15281_v18, %v701_v49  ;;  %v15299_v21 = vld [vmem:[#allocation161_spill] sm:$0xff]  ;;  %v8903_v48 = vpop.permute.xlu1 %1388  ;;  %v15301_v2 = vld [vmem:[#allocation15_spill] sm:$0xff] }
 0x278   :  { %v947_v26 = vmul.f32 %v15297_v15, %v893_v58  ;;  %v899_v20 = vmul.f32 %v15185_v28, %v840_v11  ;;  %1786 = vrot.lane.b32.xlu0 %v7718_v45, %s14688_s30  ;;  %v772_v33 = vadd.f32 %v748_v50, %v574_v19  ;;  %v775_v34 = vadd.f32 %v751_v3, %v577_v6  ;;  %v15302_v49 = vld [vmem:[#allocation89_spill] sm:$0xff]  ;;  %v15304_v50 = vld [vmem:[#allocation75_spill] sm:$0xff] }
 0x279   :  { %v1091_v37 = vmul.f32 %v15298_v4, %v1049_v23  ;;  %v1092_v40 = vmul.f32 %v15299_v21, %v1043_v5  ;;  %15300 = vst [vmem:[#allocation16_spill] sm:$0xff] %v8903_v48  ;;  %v948_v7 = vmul.f32 %v15297_v15, %v894_v1  ;;  %v951_v61 = vmul.f32 %v15301_v2, %v897_v22  ;;  %v15303_v58 = vld [vmem:[#allocation73_spill] sm:$0xff]  ;;  %v15308_v48 = vld [vmem:[#allocation90_spill] sm:$0xff] }
 0x27a   :  { %v952_v18 = vmul.f32 %v15301_v2, %v898_v36  ;;  %v1050_v11 = vsel %vm1034_vm5, %v15303_v58, %v15302_v49  ;;  %1788 = vrot.lane.b32.xlu1 %v7725_v0, %s14688_s30  ;;  %v946_v45 = vmul.f32 %v15297_v15, %v892_v56  ;;  %v949_v19 = vmul.f32 %v15297_v15, %v895_v57  ;;  %v8921_v3 = vpop.permute.xlu0 %1398  ;;  %v15306_v0 = vld [vmem:[#allocation24_spill] sm:$0xff]  ;;  %v15351_v28 = vld [vmem:[#allocation41_spill] sm:$0xff] }
 0x27b   :  { %v950_v6 = vmul.f32 %v15301_v2, %v896_v30  ;;  %v1044_v1 = vsel %vm1034_vm5, %v15302_v49, %v15304_v50  ;;  %15305 = vst [vmem:[#allocation17_spill] sm:$0xff] %v8921_v3  ;;  %v776_v22 = vadd.f32 %v752_v52, %v578_v43  ;;  %v779_v36 = vadd.f32 %v755_v51, %v581_v13  ;;  %v15307_v30 = vld [vmem:[#allocation98_spill] sm:$0xff]  ;;  %v8936_v51 = vpop.permute.xlu1 %1400  ;;  %v15334_v3 = vld [vmem:[#allocation116_spill] sm:$0xff] }
 0x27c   :  { %v971_v5 = vadd.f32 %v947_v26, %v773_v8  ;;  %v953_v23 = vmul.f32 %v15301_v2, %v899_v20  ;;  %1798 = vrot.lane.b32.xlu0 %v7761_v29, %s14688_s30  ;;  %v1145_v56 = vmul.f32 %v15306_v0, %v1091_v37  ;;  %v1146_v15 = vmul.f32 %v15306_v0, %v1092_v40  ;;  %v6920_v13 = vld [vmem:[%s14416_s1 + $0x18] sm:$0xf]  ;;  %v15313_v26 = vld [vmem:[#allocation92_spill] sm:$0xff] }
 0x27d   :  { %v1095_v57 = vmul.f32 %v15298_v4, %v1050_v11  ;;  %v458_v49 = vsel %vm441_vm2, %v15308_v48, %v15307_v30  ;;  %15309 = vst [vmem:[#allocation59_spill] sm:$0xff] %v8936_v51  ;;  %v972_v20 = vadd.f32 %v948_v7, %v774_v31  ;;  %v8938_v43 = vadd.f32 %v951_v61, %v777_v44  ;;  %v15321_v11 = vld [vmem:[#allocation110_spill] sm:$0xff] }
 0x27e   :  { %v8940_v29 = vadd.f32 %v952_v18, %v778_v10  ;;  %v1096_v8 = vmul.f32 %v15299_v21, %v1044_v1  ;;  %1800 = vrot.lane.b32.xlu1 %v7768_v16, %s14688_s30  ;;  %v8945_v40 = vadd.f32 %v946_v45, %v772_v33  ;;  %v8947_v37 = vadd.f32 %v949_v19, %v775_v34  ;;  %v8955_v61 = vpop.permute.xlu0 %1410  ;;  %v15319_v34 = vld [vmem:[#allocation25_spill] sm:$0xff]  ;;  %v15320_v18 = vld [vmem:[#allocation112_spill] sm:$0xff] }
 0x27f   :  { %v8949_v52 = vadd.f32 %v950_v6, %v776_v22  ;;  %v452_v31 = vsel %vm441_vm2, %v15307_v30, %v15313_v26  ;;  %15314 = vst [vmem:[#allocation76_spill] sm:$0xff] %v8955_v61  ;;  %v8957_v44 = vadd.f32 %v953_v23, %v779_v36  ;;  %v505_v10 = vmul.f32 %v15247_v59, %v458_v49  ;;  %v8977_v19 = vpop.permute.xlu1 %1412  ;;  %v15324_v22 = vld [vmem:[#allocation111_spill] sm:$0xff] }
 0x280   :  { %15310 = vst [vmem:[#allocation23_spill] sm:$0xff] %v8945_v40  ;;  %15311 = vst [vmem:[#allocation36_spill] sm:$0xff] %v8947_v37  ;;  %v8962_v16 = vrot.slane %v6920_v13, %v8207_v47  ;;  %1810 = vrot.lane.b32.xlu0 %v15186_v9, %s14688_s30  ;;  %v8966_v7 = vadd.f32 %v1145_v56, %v971_v5  ;;  %v8968_v33 = vadd.f32 %v1146_v15, %v972_v20  ;;  %v15323_v9 = vld [vmem:[#allocation113_spill] sm:$0xff]  ;;  %v15325_v5 = vld [vmem:[#allocation114_spill] sm:$0xff] }
 0x281   :  { %15312 = vst [vmem:[#allocation62_spill] sm:$0xff] %v8949_v52  ;;  %15315 = vst [vmem:[#allocation60_spill] sm:$0xff] %v8957_v44  ;;  %v8971_v2 = vmul.f32 %v15319_v34, %v1095_v57  ;;  %v1443_v45 = vsel %vm1430_vm7, %v15321_v11, %v15320_v18  ;;  %v8980_v6 = vmul.f32 %v15319_v34, %v1096_v8  ;;  %v15326_v56 = vld [vmem:[#allocation93_spill] sm:$0xff]  ;;  %v15327_v15 = vld [vmem:[#allocation99_spill] sm:$0xff] }
 0x282   :  { %15316 = vst [vmem:[#allocation37_spill] sm:$0xff] %v8962_v16  ;;  %15317 = vst [vmem:[#allocation63_spill] sm:$0xff] %v8966_v7  ;;  %v506_v1 = vmul.f32 %v15248_v35, %v452_v31  ;;  %v1444_v36 = vsel %vm1430_vm7, %v15324_v22, %v15323_v9  ;;  %v1437_v23 = vsel %vm1430_vm7, %v15320_v18, %v15325_v5  ;;  %1812 = vrot.lane.b32.xlu1 %v15191_v25, %s14688_s30  ;;  %v15328_v30 = vld [vmem:[#allocation91_spill] sm:$0xff]  ;;  %v9008_v18 = vpop.permute.xlu0 %1422  ;;  %v15332_v25 = vld [vmem:[#allocation12_spill] sm:$0xff] }
 0x283   :  { %15318 = vst [vmem:[#allocation77_spill] sm:$0xff] %v8968_v33  ;;  %15322 = vst [vmem:[#allocation61_spill] sm:$0xff] %v8977_v19  ;;  %v453_v57 = vsel %vm441_vm2, %v15327_v15, %v15326_v56  ;;  %v459_v49 = vsel %vm441_vm2, %v15328_v30, %v15327_v15  ;;  %v15329_v20 = vld [vmem:[#allocation115_spill] sm:$0xff]  ;;  %v9006_v31 = vrot.slane %v6920_v13, %v15256_v17  ;;  %v9035_v33 = vpop.permute.xlu1 %1424  ;;  %v15359_v40 = vld [vmem:[#allocation121_spill] sm:$0xff] }
 0x284   :  { %v1438_v8 = vsel %vm1430_vm7, %v15323_v9, %v15329_v20  ;;  %15331 = vst [vmem:[#allocation142_spill] sm:$0xff] %v9008_v18  ;;  %v9011_v19 = vmul.f32 %v15332_v25, %v505_v10  ;;  %v1478_v61 = vmul.f32 %v8698_v27, %v1443_v45  ;;  %v9015_v51 = vrot.slane %v6920_v13, %v15258_v14  ;;  %v6921_v9 = vld [vmem:[%s14416_s1 + $0x1c] sm:$0xf]  ;;  %v15357_v37 = vld [vmem:[#allocation35_spill] sm:$0xff] }
 0x285   :  { %15330 = vst [vmem:[#allocation78_spill] sm:$0xff] %v9006_v31  ;;  %v9018_v15 = vrot.slane %v6920_v13, %v8209_v54  ;;  %1822 = vrot.lane.b32.xlu0 %v15195_v12, %s14688_s30  ;;  %v1482_v18 = vmul.f32 %v8698_v27, %v1444_v36  ;;  %v1479_v10 = vmul.f32 %v8748_v63, %v1437_v23  ;;  %15335 = vst [vmem:[#allocation79_spill] sm:$0xff] %v9035_v33 }
 0x286   :  { %15333 = vst [vmem:[#allocation143_spill] sm:$0xff] %v9015_v51  ;;  %v1431_v45 = vsel %vm1430_vm7, %v15325_v5, %v15334_v3  ;;  %v1449_v13 = vsel %vm1430_vm7, %v15334_v3, %v15321_v11  ;;  %v9038_v12 = vmul.f32 %v15332_v25, %v506_v1  ;;  %v9041_v21 = vmul.f32 %v15247_v59, %v459_v49  ;;  %v15336_v5 = vld [vmem:[#allocation117_spill] sm:$0xff]  ;;  %v9053_v11 = vpop.permute.xlu0 %1524 }
 0x287   :  { %v9044_v36 = vmul.f32 %v15248_v35, %v453_v57  ;;  %v1483_v23 = vmul.f32 %v8748_v63, %v1438_v8  ;;  %1824 = vrot.lane.b32.xlu1 %v15198_v60, %s14688_s30  ;;  %v1432_v3 = vsel %vm1430_vm7, %v15329_v20, %v15336_v5  ;;  %15337 = vst [vmem:[#allocation80_spill] sm:$0xff] %v9053_v11  ;;  %v15341_v20 = vld [vmem:[#allocation26_spill] sm:$0xff]  ;;  %v15342_v11 = vld [vmem:[#allocation27_spill] sm:$0xff]  ;;  %s15539_s30 = smov 112  }
 0x288   :  { %v9057_v59 = vrot.slane %v6921_v9, %v8207_v47  ;;  %v9060_v35 = vrot.slane %v6921_v9, %v15256_v17  ;;  %v1480_v1 = vmul.f32 %v8751_v38, %v1431_v45  ;;  %v1481_v57 = vmul.f32 %v8759_v39, %v1449_v13  ;;  %v15343_v17 = vld [vmem:[#allocation52_spill] sm:$0xff]  ;;  %v15344_v63 = vld [vmem:[#allocation51_spill] sm:$0xff]  ;;  %v9078_v13 = vpop.permute.xlu1 %1529 }
 0x289   :  { %v1450_v60 = vsel %vm1430_vm7, %v15336_v5, %v15324_v22  ;;  %v9069_v49 = vrot.slane %v6921_v9, %v15258_v14  ;;  %v1532_v8 = vmul.f32 %v15341_v20, %v1478_v61  ;;  %v1536_v47 = vmul.f32 %v15342_v11, %v1482_v18  ;;  %15345 = vst [vmem:[#allocation5_spill] sm:$0xff] %v9078_v13  ;;  %v15346_v5 = vld [vmem:[#allocation42_spill] sm:$0xff] }
 0x28a   :  { %15338 = vst [vmem:[#allocation64_spill] sm:$0xff] %v9057_v59  ;;  %15339 = vst [vmem:[#allocation66_spill] sm:$0xff] %v9060_v35  ;;  %v1533_v33 = vmul.f32 %v15341_v20, %v1479_v10  ;;  %v1641_v45 = vsel %vm1628_vm8, %v15344_v63, %v15343_v17  ;;  %v1537_v27 = vmul.f32 %v15342_v11, %v1483_v23 }
 0x28b   :  { %15340 = vst [vmem:[#allocation4_spill] sm:$0xff] %v9069_v49  ;;  %v1484_v22 = vmul.f32 %v8751_v38, %v1432_v3  ;;  %v1642_v61 = vsel %vm1628_vm8, %v15346_v5, %v8618_v24  ;;  %v9087_v18 = vrot.slane %v6921_v9, %v8209_v54  ;;  %v1485_v10 = vmul.f32 %v8759_v39, %v1450_v60  ;;  %v15348_v3 = vld [vmem:[#allocation38_spill] sm:$0xff]  ;;  %v1779_v38 = vpop.permute.xlu0 %1778  ;;  %v15349_v39 = vld [vmem:[#allocation48_spill] sm:$0xff] }
 0x28c   :  { %v1635_v14 = vsel %vm1628_vm8, %v15343_v17, %v8628_v55  ;;  %v1636_v23 = vsel %vm1628_vm8, %v8618_v24, %v8639_v53  ;;  %v1629_v13 = vsel %vm1628_vm8, %v8628_v55, %v15348_v3  ;;  %v1534_v9 = vmul.f32 %v15341_v20, %v1480_v1  ;;  %v15350_v24 = vld [vmem:[#allocation53_spill] sm:$0xff]  ;;  %v1781_v52 = vpop.permute.xlu1 %1780 }
 0x28d   :  { %15347 = vst [vmem:[#allocation81_spill] sm:$0xff] %v9087_v18  ;;  %v1535_v60 = vmul.f32 %v15341_v20, %v1481_v57  ;;  %v1676_v54 = vmul.f32 %v8962_v16, %v1641_v45  ;;  %v1647_v17 = vsel %vm1628_vm8, %v15348_v3, %v15344_v63  ;;  %v1556_v7 = vadd.f32 %v1532_v8, %v15349_v39  ;;  %v15352_v45 = vld [vmem:[#allocation49_spill] sm:$0xff]  ;;  %v15353_v3 = vld [vmem:[#allocation39_spill] sm:$0xff] }
 0x28e   :  { %v1560_v4 = vadd.f32 %v1536_v47, %v15350_v24  ;;  %v1557_v44 = vadd.f32 %v1533_v33, %v15351_v28  ;;  %v1680_v55 = vmul.f32 %v8962_v16, %v1642_v61  ;;  %v1677_v1 = vmul.f32 %v9006_v31, %v1635_v14  ;;  %v15354_v61 = vld [vmem:[#allocation18_spill] sm:$0xff]  ;;  %v15355_v24 = vld [vmem:[#allocation55_spill] sm:$0xff] }
 0x28f   :  { %v1681_v57 = vmul.f32 %v9006_v31, %v1636_v23  ;;  %v1678_v20 = vmul.f32 %v9015_v51, %v1629_v13  ;;  %v1630_v63 = vsel %vm1628_vm8, %v8639_v53, %v15352_v45  ;;  %v1561_v39 = vadd.f32 %v1537_v27, %v15353_v3  ;;  %v1791_v8 = vpop.permute.xlu0 %1790  ;;  %v15356_v31 = vld [vmem:[#allocation33_spill] sm:$0xff] }
 0x290   :  { %v1538_v47 = vmul.f32 %v15342_v11, %v1484_v22  ;;  %v1539_v28 = vmul.f32 %v15342_v11, %v1485_v10  ;;  %v1679_v33 = vmul.f32 %v9018_v15, %v1647_v17  ;;  %v1558_v14 = vadd.f32 %v1534_v9, %v15354_v61  ;;  %v1793_v10 = vpop.permute.xlu1 %1792 }
 0x291   :  { %v1559_v23 = vadd.f32 %v1535_v60, %v15355_v24  ;;  %v1730_v13 = vmul.f32 %v15356_v31, %v1676_v54  ;;  %v1839_v16 = vsel %vm1826_vm9, %v1779_v38, %v1791_v8  ;;  %v1734_v53 = vmul.f32 %v15357_v37, %v1680_v55 }
 0x292   :  { %v1648_v27 = vsel %vm1628_vm8, %v15352_v45, %v15346_v5  ;;  %v1682_v11 = vmul.f32 %v9015_v51, %v1630_v63  ;;  %v1874_v22 = vmul.f32 %v9057_v59, %v1839_v16  ;;  %v1731_v9 = vmul.f32 %v15356_v31, %v1677_v1  ;;  %v15358_v1 = vld [vmem:[#allocation120_spill] sm:$0xff] }
 0x293   :  { %v1735_v60 = vmul.f32 %v15357_v37, %v1681_v57  ;;  %v1732_v54 = vmul.f32 %v15356_v31, %v1678_v20  ;;  %v1840_v17 = vsel %vm1826_vm9, %v1781_v52, %v1793_v10  ;;  %v1562_v55 = vadd.f32 %v1538_v47, %v8785_v41  ;;  %v1803_v63 = vpop.permute.xlu0 %1802 }
 0x294   :  { %v1563_v3 = vadd.f32 %v1539_v28, %v8787_v62  ;;  %v1733_v5 = vmul.f32 %v15356_v31, %v1679_v33  ;;  %v1878_v45 = vmul.f32 %v9057_v59, %v1840_v17  ;;  %v1754_v16 = vadd.f32 %v1730_v13, %v1556_v7  ;;  %v1805_v47 = vpop.permute.xlu1 %1804 }
 0x295   :  { %v1683_v61 = vmul.f32 %v9018_v15, %v1648_v27  ;;  %v1928_v24 = vmul.f32 %v15358_v1, %v1874_v22  ;;  %v1833_v57 = vsel %vm1826_vm9, %v1791_v8, %v1803_v63  ;;  %v1758_v20 = vadd.f32 %v1734_v53, %v1560_v4 }
 0x296   :  { %v1736_v51 = vmul.f32 %v15357_v37, %v1682_v11  ;;  %v1932_v41 = vmul.f32 %v15359_v40, %v1878_v45  ;;  %v1875_v62 = vmul.f32 %v9060_v35, %v1833_v57  ;;  %v1755_v31 = vadd.f32 %v1731_v9, %v1557_v44 }
 0x297   :  { %v1759_v28 = vadd.f32 %v1735_v60, %v1561_v39  ;;  %v1756_v33 = vadd.f32 %v1732_v54, %v1558_v14  ;;  %v1834_v7 = vsel %vm1826_vm9, %v1793_v10, %v1805_v47  ;;  %v1757_v13 = vadd.f32 %v1733_v5, %v1559_v23  ;;  %v1815_v4 = vpop.permute.xlu0 %1814 }
 0x298   :  { %v1956_v27 = vadd.f32 %v1932_v41, %v1758_v20  ;;  %v1929_v22 = vmul.f32 %v15358_v1, %v1875_v62  ;;  %v1879_v8 = vmul.f32 %v9060_v35, %v1834_v7  ;;  %v1737_v53 = vmul.f32 %v15357_v37, %v1683_v61  ;;  %v1817_v9 = vpop.permute.xlu1 %1816 }
 0x299   :  { %v1952_v11 = vadd.f32 %v1928_v24, %v1754_v16  ;;  %v1827_v17 = vsel %vm1826_vm9, %v1803_v63, %v1815_v4  ;;  %v1845_v44 = vsel %vm1826_vm9, %v1815_v4, %v1779_v38  ;;  %v1760_v39 = vadd.f32 %v1736_v51, %v1562_v55 }
 0x29a   :  { %v1933_v14 = vmul.f32 %v15359_v40, %v1879_v8  ;;  %v1876_v23 = vmul.f32 %v9069_v49, %v1827_v17  ;;  %v1877_v10 = vmul.f32 %v9087_v18, %v1845_v44  ;;  %v1980_v60 = vmax.f32 %v1956_v27, 0.0 }
 0x29b   :  { %v1828_v54 = vsel %vm1826_vm9, %v1805_v47, %v1817_v9  ;;  %v1846_v37 = vsel %vm1826_vm9, %v1817_v9, %v1781_v52  ;;  %v1953_v5 = vadd.f32 %v1929_v22, %v1755_v31  ;;  %v9172_v63 = vpop.permute.xlu0 %1910  ;;  %v1761_v16 = vadd.f32 %v1737_v53, %v1563_v3  ;;  %v15362_v31 = vld [vmem:[#allocation100_spill] sm:$0xff]  ;;  %v15366_v9 = vld [vmem:[#allocation102_spill] sm:$0xff] }
 0x29c   :  { %v1930_v45 = vmul.f32 %v15358_v1, %v1876_v23  ;;  %v1931_v38 = vmul.f32 %v15358_v1, %v1877_v10  ;;  %v1880_v51 = vmul.f32 %v9069_v49, %v1828_v54  ;;  %v1881_v55 = vmul.f32 %v9087_v18, %v1846_v37  ;;  %15360 = vst [vmem:[#allocation65_spill] sm:$0xff] %v9172_v63  ;;  %v9176_v62 = vpop.permute.xlu1 %1915  ;;  %v15365_v10 = vld [vmem:[#allocation96_spill] sm:$0xff] }
 0x29d   :  { %v1976_v61 = vmax.f32 %v1952_v11, 0.0  ;;  %v1957_v24 = vadd.f32 %v1933_v14, %v1759_v28  ;;  %v1977_v57 = vmax.f32 %v1953_v5, 0.0  ;;  %15361 = vst [vmem:[#allocation67_spill] sm:$0xff] %v9176_v62  ;;  %v446_v1 = vsel %vm441_vm2, %v15313_v26, %v15362_v31  ;;  %v15364_v26 = vld [vmem:[#allocation101_spill] sm:$0xff] }
 0x29e   :  { %v1954_v20 = vadd.f32 %v1930_v45, %v1756_v33  ;;  %v1934_v41 = vmul.f32 %v15359_v40, %v1880_v51  ;;  %v1935_v52 = vmul.f32 %v15359_v40, %v1881_v55  ;;  %v1955_v47 = vadd.f32 %v1931_v38, %v1757_v13  ;;  %v15363_v13 = vld [vmem:[#allocation13_spill] sm:$0xff] }
 0x29f   :  { %v464_v3 = vsel %vm441_vm2, %v15362_v31, %v15308_v48  ;;  %v1981_v28 = vmax.f32 %v1957_v24, 0.0  ;;  %v2004_v7 = vmin.f32 %v1980_v60, 6.0  ;;  %v9186_v22 = vpop.permute.xlu0 %1192  ;;  %v563_v4 = vmul.f32 %v15363_v13, %v9041_v21  ;;  %v15367_v60 = vld [vmem:[#allocation94_spill] sm:$0xff] }
 0x2a0   :  { %v1978_v33 = vmax.f32 %v1954_v20, 0.0  ;;  %v1958_v27 = vadd.f32 %v1934_v41, %v1760_v39  ;;  %v1959_v40 = vadd.f32 %v1935_v52, %v1761_v16  ;;  %v1979_v8 = vmax.f32 %v1955_v47, 0.0  ;;  %v9198_v14 = vpop.permute.xlu1 %1194  ;;  %v15368_v16 = vld [vmem:[#allocation149_spill] sm:$0xff]  ;;  %v15369_v24 = vld [vmem:[#allocation150_spill] sm:$0xff]  ;;  %v15370_v52 = vld [vmem:[#allocation103_spill] sm:$0xff] }
 0x2a1   :  { %v2001_v53 = vmin.f32 %v1977_v57, 6.0  ;;  %v2005_v11 = vmin.f32 %v1981_v28, 6.0  ;;  %v2000_v17 = vmin.f32 %v1976_v61, 6.0  ;;  %v447_v44 = vsel %vm441_vm2, %v15326_v56, %v15364_v26  ;;  %v15371_v47 = vld [vmem:[#allocation95_spill] sm:$0xff] }
 0x2a2   :  { %v465_v48 = vsel %vm441_vm2, %v15364_v26, %v15328_v30  ;;  %v1982_v39 = vmax.f32 %v1958_v27, 0.0  ;;  %v1983_v23 = vmax.f32 %v1959_v40, 0.0  ;;  %v649_v21 = vsel %vm638_vm3, %v15366_v9, %v15365_v10  ;;  %v15372_v27 = vld [vmem:[#allocation151_spill] sm:$0xff]  ;;  %v15375_v26 = vld [vmem:[#allocation146_spill] sm:$0xff] }
 0x2a3   :  { %v655_v54 = vsel %vm638_vm3, %v15367_v60, %v15366_v9  ;;  %v2026_v56 = vpack.c.bf16 %v2005_v11, %v2001_v53  ;;  %v2025_v37 = vpack.c.bf16 %v2004_v7, %v2000_v17  ;;  %v9208_v5 = vpop.permute.xlu0 %1204  ;;  %v2003_v45 = vmin.f32 %v1979_v8, 6.0  ;;  %v15373_v8 = vld [vmem:[#allocation138_spill] sm:$0xff]  ;;  %v15374_v11 = vld [vmem:[#allocation137_spill] sm:$0xff] }
 0x2a4   :  { %v2007_v30 = vmin.f32 %v1983_v23, 6.0  ;;  %v2002_v38 = vmin.f32 %v1978_v33, 6.0  ;;  %v2006_v51 = vmin.f32 %v1982_v39, 6.0  ;;  %v564_v55 = vmul.f32 %v15363_v13, %v9044_v36  ;;  %v9220_v28 = vpop.permute.xlu1 %1206 }
 0x2a5   :  { %v504_v61 = vmul.f32 %v15368_v16, %v464_v3  ;;  %v507_v57 = vmul.f32 %v15369_v24, %v446_v1  ;;  %v508_v20 = vmul.f32 %v15368_v16, %v465_v48  ;;  %2041 = vmatprep.subr.bf16.mxu0 %v2026_v56  ;;  %v511_v41 = vmul.f32 %v15369_v24, %v447_v44  ;;  %v15376_v48 = vld [vmem:[#allocation97_spill] sm:$0xff]  ;;  %v15384_v16 = vld [vmem:[#allocation72_spill] sm:$0xff] }
 0x2a6   :  { %v656_v31 = vsel %vm638_vm3, %v15371_v47, %v15370_v52  ;;  %2042 = vmatpush1.bf16.msra.mxu0 %v2025_v37  ;;  %v2028_v7 = vpack.c.bf16 %v2007_v30, %v2003_v45  ;;  %v2027_v33 = vpack.c.bf16 %v2006_v51, %v2002_v38  ;;  %v9224_v36 = vadd.f32 %v8971_v2, %v8938_v43  ;;  %v15381_v30 = vld [vmem:[#allocation105_spill] sm:$0xff]  ;;  %v15382_v38 = vld [vmem:[#allocation106_spill] sm:$0xff] }
 0x2a7   :  { %v9228_v1 = vadd.f32 %v8980_v6, %v8940_v29  ;;  %v703_v3 = vmul.f32 %v8297_v42, %v655_v54  ;;  %v704_v40 = vmul.f32 %v15372_v27, %v649_v21  ;;  %v583_v53 = vadd.f32 %v9011_v19, %v15373_v8  ;;  %v9241_v2 = vpop.permute.xlu0 %1216  ;;  %v15377_v29 = vld [vmem:[#allocation144_spill] sm:$0xff]  ;;  %v15383_v51 = vld [vmem:[#allocation74_spill] sm:$0xff]  ;;  %v15391_v8 = vld [vmem:[#allocation145_spill] sm:$0xff] }
 0x2a8   :  { %v584_v17 = vadd.f32 %v9038_v12, %v15374_v11  ;;  %v587_v44 = vadd.f32 %v563_v4, %v15375_v26  ;;  %v650_v43 = vsel %vm638_vm3, %v15370_v52, %v15376_v48  ;;  %2082 = vmatprep.subr.bf16.mxu1 %v2028_v7  ;;  %v588_v6 = vadd.f32 %v564_v55, %v15377_v29  ;;  %v15378_v19 = vld [vmem:[#allocation104_spill] sm:$0xff]  ;;  %v9257_v56 = vpop.permute.xlu1 %1218 }
 0x2a9   :  { %v558_v39 = vmul.f32 %v15332_v25, %v504_v61  ;;  %v707_v23 = vmul.f32 %v8297_v42, %v656_v31  ;;  %v661_v12 = vsel %vm638_vm3, %v15378_v19, %v15367_v60  ;;  %2083 = vmatpush1.bf16.msra.mxu1 %v2027_v33  ;;  %v561_v4 = vmul.f32 %v15332_v25, %v507_v57  ;;  %v15380_v42 = vld [vmem:[#allocation19_spill] sm:$0xff]  ;;  %v15386_v57 = vld [vmem:[#allocation21_spill] sm:$0xff] }
 0x2aa   :  { %v562_v9 = vmul.f32 %v15363_v13, %v508_v20  ;;  %v565_v21 = vmul.f32 %v15363_v13, %v511_v41  ;;  %v643_v54 = vsel %vm638_vm3, %v15365_v10, %v15378_v19  ;;  %15379 = vst [vmem:[#allocation82_spill] sm:$0xff] %v9257_v56  ;;  %v757_v37 = vmul.f32 %v15380_v42, %v703_v3  ;;  %v15387_v41 = vld [vmem:[#allocation153_spill] sm:$0xff]  ;;  %v15389_v33 = vld [vmem:[#allocation139_spill] sm:$0xff]  ;;  %v15462_v56 = vld [vmem:[#allocation20_spill] sm:$0xff] }
 0x2ab   :  { %v758_v45 = vmul.f32 %v15380_v42, %v704_v40  ;;  %v708_v60 = vmul.f32 %v15372_v27, %v650_v43  ;;  %v662_v25 = vsel %vm638_vm3, %v15381_v30, %v15371_v47  ;;  %v702_v13 = vmul.f32 %v8311_v32, %v661_v12  ;;  %v9279_v24 = vpop.permute.xlu0 %1228  ;;  %v15388_v47 = vld [vmem:[#allocation107_spill] sm:$0xff]  ;;  %v15390_v27 = vld [vmem:[#allocation140_spill] sm:$0xff] }
 0x2ac   :  { %v644_v10 = vsel %vm638_vm3, %v15376_v48, %v15381_v30  ;;  %v1037_v55 = vsel %vm1034_vm5, %v15383_v51, %v15382_v38  ;;  %v1055_v61 = vsel %vm1034_vm5, %v15382_v38, %v15384_v16  ;;  %15385 = vst [vmem:[#allocation128_spill] sm:$0xff] %v9279_v24  ;;  %v761_v20 = vmul.f32 %v15386_v57, %v707_v23  ;;  %v9295_v48 = vpop.permute.xlu1 %1230  ;;  %v15393_v43 = vld [vmem:[#allocation147_spill] sm:$0xff]  ;;  %v15395_v12 = vld [vmem:[#allocation164_spill] sm:$0xff]  ;;  %v15396_v51 = vld [vmem:[#allocation133_spill] sm:$0xff] }
 0x2ad   :  { %v705_v52 = vmul.f32 %v15387_v41, %v643_v54  ;;  %v1038_v31 = vsel %vm1034_vm5, %v15304_v50, %v15388_v47  ;;  %v1056_v7 = vsel %vm1034_vm5, %v15388_v47, %v15303_v58  ;;  %v582_v3 = vadd.f32 %v558_v39, %v15389_v33  ;;  %15392 = vst [vmem:[#allocation127_spill] sm:$0xff] %v9295_v48  ;;  %v15394_v50 = vld [vmem:[#allocation162_spill] sm:$0xff] }
 0x2ae   :  { %v585_v40 = vadd.f32 %v561_v4, %v15390_v27  ;;  %v586_v11 = vadd.f32 %v562_v9, %v15391_v8  ;;  %v706_v26 = vmul.f32 %v8311_v32, %v662_v25  ;;  %v589_v29 = vadd.f32 %v565_v21, %v15393_v43  ;;  %v15397_v16 = vld [vmem:[#allocation122_spill] sm:$0xff]  ;;  %v15403_v43 = vld [vmem:[#allocation156_spill] sm:$0xff] }
 0x2af   :  { %v709_v23 = vmul.f32 %v15387_v41, %v644_v10  ;;  %v1090_v19 = vmul.f32 %v15394_v50, %v1055_v61  ;;  %v1093_v54 = vmul.f32 %v15395_v12, %v1037_v55  ;;  %v762_v58 = vmul.f32 %v15386_v57, %v708_v60  ;;  %v9305_v30 = vpop.permute.xlu0 %1584  ;;  %v15398_v55 = vld [vmem:[#allocation141_spill] sm:$0xff]  ;;  %v15400_v41 = vld [vmem:[#allocation148_spill] sm:$0xff]  ;;  %v15402_v8 = vld [vmem:[#allocation154_spill] sm:$0xff] }
 0x2b0   :  { %v756_v39 = vmul.f32 %v15380_v42, %v702_v13  ;;  %v1094_v4 = vmul.f32 %v15394_v50, %v1056_v7  ;;  %v1097_v9 = vmul.f32 %v15395_v12, %v1038_v31  ;;  %v781_v32 = vadd.f32 %v757_v37, %v583_v53  ;;  %v15399_v13 = vld [vmem:[#allocation124_spill] sm:$0xff]  ;;  %v15420_v48 = vld [vmem:[#allocation50_spill] sm:$0xff] }
 0x2b1   :  { %v782_v25 = vadd.f32 %v758_v45, %v584_v17  ;;  %v785_v38 = vadd.f32 %v761_v20, %v587_v44  ;;  %v759_v21 = vmul.f32 %v15380_v42, %v705_v52  ;;  %v760_v10 = vmul.f32 %v15386_v57, %v706_v26  ;;  %v9321_v17 = vpop.permute.xlu1 %1586  ;;  %v15401_v45 = vld [vmem:[#allocation152_spill] sm:$0xff] }
 0x2b2   :  { %v853_v60 = vsel %vm836_vm4, %v15397_v16, %v15396_v51  ;;  %v854_v61 = vsel %vm836_vm4, %v15399_v13, %v15398_v55  ;;  %v847_v53 = vsel %vm836_vm4, %v15396_v51, %v15400_v41  ;;  %v763_v44 = vmul.f32 %v15386_v57, %v709_v23 }
 0x2b3   :  { %v1144_v42 = vmul.f32 %v15306_v0, %v1090_v19  ;;  %v1147_v37 = vmul.f32 %v15306_v0, %v1093_v54  ;;  %v848_v20 = vsel %vm836_vm4, %v15398_v55, %v15401_v45  ;;  %v786_v52 = vadd.f32 %v762_v58, %v588_v6  ;;  %v9332_v33 = vpop.permute.xlu0 %1596  ;;  %v15404_v19 = vld [vmem:[#allocation155_spill] sm:$0xff] }
 0x2b4   :  { %v780_v47 = vadd.f32 %v756_v39, %v582_v3  ;;  %v1148_v31 = vmul.f32 %v15319_v34, %v1094_v4  ;;  %v1151_v7 = vmul.f32 %v15319_v34, %v1097_v9  ;;  %v783_v27 = vadd.f32 %v759_v21, %v585_v40  ;;  %v15405_v3 = vld [vmem:[#allocation160_spill] sm:$0xff]  ;;  %v15406_v4 = vld [vmem:[#allocation23_spill] sm:$0xff] }
 0x2b5   :  { %v901_v57 = vmul.f32 %v15402_v8, %v853_v60  ;;  %v905_v26 = vmul.f32 %v15402_v8, %v854_v61  ;;  %v902_v0 = vmul.f32 %v15403_v43, %v847_v53  ;;  %v906_v23 = vmul.f32 %v15403_v43, %v848_v20  ;;  %v9350_v54 = vpop.permute.xlu1 %1598  ;;  %v15407_v21 = vld [vmem:[#allocation36_spill] sm:$0xff]  ;;  %v15408_v60 = vld [vmem:[#allocation62_spill] sm:$0xff]  ;;  %v15411_v53 = vld [vmem:[#allocation163_spill] sm:$0xff] }
 0x2b6   :  { %v841_v6 = vsel %vm836_vm4, %v15400_v41, %v15404_v19  ;;  %v859_v34 = vsel %vm836_vm4, %v15404_v19, %v15397_v16  ;;  %v860_v40 = vsel %vm836_vm4, %v15405_v3, %v15399_v13  ;;  %v784_v58 = vadd.f32 %v760_v10, %v586_v11  ;;  %v15409_v61 = vld [vmem:[#allocation60_spill] sm:$0xff]  ;;  %v15410_v13 = vld [vmem:[#allocation170_spill] sm:$0xff]  ;;  %v15412_v10 = vld [vmem:[#allocation157_spill] sm:$0xff] }
 0x2b7   :  { %v787_v39 = vadd.f32 %v763_v44, %v589_v29  ;;  %v1168_v9 = vadd.f32 %v1144_v42, %v15406_v4  ;;  %v9354_v51 = vadd.f32 %v1147_v37, %v15407_v21  ;;  %v1172_v55 = vadd.f32 %v1148_v31, %v15408_v60  ;;  %v9368_v29 = vpop.permute.xlu0 %1608  ;;  %v15413_v42 = vld [vmem:[#allocation158_spill] sm:$0xff]  ;;  %v15414_v31 = vld [vmem:[#allocation171_spill] sm:$0xff]  ;;  %v15416_v43 = vld [vmem:[#allocation28_spill] sm:$0xff] }
 0x2b8   :  { %v9358_v41 = vadd.f32 %v1151_v7, %v15409_v61  ;;  %v842_v16 = vsel %vm836_vm4, %v15401_v45, %v15405_v3  ;;  %v1247_v11 = vsel %vm1232_vm6, %v15411_v53, %v15410_v13  ;;  %v900_v44 = vmul.f32 %v15412_v10, %v859_v34  ;;  %v15415_v7 = vld [vmem:[#allocation168_spill] sm:$0xff]  ;;  %v15417_v19 = vld [vmem:[#allocation29_spill] sm:$0xff] }
 0x2b9   :  { %v903_v37 = vmul.f32 %v15413_v42, %v841_v6  ;;  %v904_v20 = vmul.f32 %v15412_v10, %v860_v40  ;;  %v1248_v8 = vsel %vm1232_vm6, %v15415_v7, %v15414_v31  ;;  %v955_v45 = vmul.f32 %v15416_v43, %v901_v57  ;;  %v9381_v60 = vpop.permute.xlu1 %1610  ;;  %v15418_v6 = vld [vmem:[#allocation165_spill] sm:$0xff]  ;;  %v15419_v40 = vld [vmem:[#allocation172_spill] sm:$0xff] }
 0x2ba   :  { %v959_v3 = vmul.f32 %v15417_v19, %v905_v26  ;;  %v956_v4 = vmul.f32 %v15416_v43, %v902_v0  ;;  %v960_v21 = vmul.f32 %v15417_v19, %v906_v23  ;;  %v907_v34 = vmul.f32 %v15413_v42, %v842_v16  ;;  %v15421_v0 = vld [vmem:[#allocation3_spill] sm:$0xff] }
 0x2bb   :  { %v1288_v61 = vmul.f32 %v15418_v6, %v1247_v11  ;;  %v1241_v10 = vsel %vm1232_vm6, %v15410_v13, %v15419_v40  ;;  %v1242_v57 = vsel %vm1232_vm6, %v15414_v31, %v15420_v48  ;;  %v1292_v26 = vmul.f32 %v15418_v6, %v1248_v8  ;;  %v15422_v11 = vld [vmem:[#allocation40_spill] sm:$0xff]  ;;  %v9406_v42 = vpop.permute.xlu0 %1620 }
 0x2bc   :  { %v1235_v23 = vsel %vm1232_vm6, %v15419_v40, %v15421_v0  ;;  %v1253_v16 = vsel %vm1232_vm6, %v15421_v0, %v15411_v53  ;;  %v1236_v13 = vsel %vm1232_vm6, %v15420_v48, %v15422_v11  ;;  %v954_v31 = vmul.f32 %v15416_v43, %v900_v44  ;;  %v15423_v0 = vld [vmem:[#allocation166_spill] sm:$0xff] }
 0x2bd   :  { %v957_v8 = vmul.f32 %v15416_v43, %v903_v37  ;;  %v958_v24 = vmul.f32 %v15417_v19, %v904_v20  ;;  %v1254_v40 = vsel %vm1232_vm6, %v15422_v11, %v15415_v7  ;;  %v9415_v18 = vadd.f32 %v955_v45, %v781_v32  ;;  %v9421_v35 = vpop.permute.xlu1 %1622  ;;  %v15424_v37 = vld [vmem:[#allocation167_spill] sm:$0xff]  ;;  %v15425_v20 = vld [vmem:[#allocation169_spill] sm:$0xff]  ;;  %v15426_v32 = vld [vmem:[#allocation30_spill] sm:$0xff] }
 0x2be   :  { %v9417_v53 = vadd.f32 %v959_v3, %v785_v38  ;;  %v1289_v49 = vmul.f32 %v15423_v0, %v1241_v10  ;;  %v1293_v48 = vmul.f32 %v15423_v0, %v1242_v57  ;;  %v9423_v44 = vadd.f32 %v956_v4, %v782_v25  ;;  %v15427_v38 = vld [vmem:[#allocation31_spill] sm:$0xff]  ;;  %v15463_v0 = vld [vmem:[#allocation10_spill] sm:$0xff] }
 0x2bf   :  { %v1290_v43 = vmul.f32 %v15424_v37, %v1235_v23  ;;  %v1291_v62 = vmul.f32 %v15425_v20, %v1253_v16  ;;  %v1294_v63 = vmul.f32 %v15424_v37, %v1236_v13  ;;  %v961_v7 = vmul.f32 %v15417_v19, %v907_v34  ;;  %v9432_v11 = vpop.permute.xlu0 %1722  ;;  %v15430_v34 = vld [vmem:[#allocation45_spill] sm:$0xff]  ;;  %v15432_v13 = vld [vmem:[#allocation47_spill] sm:$0xff] }
 0x2c0   :  { %v1342_v45 = vmul.f32 %v15426_v32, %v1288_v61  ;;  %v1346_v3 = vmul.f32 %v15427_v38, %v1292_v26  ;;  %v1295_v10 = vmul.f32 %v15425_v20, %v1254_v40  ;;  %15428 = vst [vmem:[#allocation8_spill] sm:$0xff] %v9432_v11  ;;  %v9434_v57 = vadd.f32 %v960_v21, %v786_v52  ;;  %v15431_v61 = vld [vmem:[#allocation56_spill] sm:$0xff]  ;;  %v15433_v40 = vld [vmem:[#allocation57_spill] sm:$0xff]  ;;  %v15454_v20 = vld [vmem:[#allocation43_spill] sm:$0xff] }
 0x2c1   :  { %v9436_v25 = vadd.f32 %v954_v31, %v780_v47  ;;  %v9438_v4 = vadd.f32 %v957_v8, %v783_v27  ;;  %v9440_v23 = vadd.f32 %v958_v24, %v784_v58  ;;  %v1343_v16 = vmul.f32 %v15426_v32, %v1289_v49  ;;  %v9452_v47 = vpop.permute.xlu1 %1727  ;;  %v15435_v58 = vld [vmem:[#allocation32_spill] sm:$0xff]  ;;  %v15455_v37 = vld [vmem:[#allocation61_spill] sm:$0xff] }
 0x2c2   :  { %v1347_v19 = vmul.f32 %v15427_v38, %v1293_v48  ;;  %v1051_v26 = vsel %vm1034_vm5, %v15431_v61, %v15430_v34  ;;  %v1052_v52 = vsel %vm1034_vm5, %v15433_v40, %v15432_v13  ;;  %15434 = vst [vmem:[#allocation129_spill] sm:$0xff] %v9452_v47  ;;  %v1344_v27 = vmul.f32 %v15426_v32, %v1290_v43  ;;  %v15438_v47 = vld [vmem:[#allocation159_spill] sm:$0xff] }
 0x2c3   :  { %15429 = vst [vmem:[#allocation130_spill] sm:$0xff] %v9440_v23  ;;  %v1345_v24 = vmul.f32 %v15426_v32, %v1291_v62  ;;  %v1348_v49 = vmul.f32 %v15427_v38, %v1294_v63  ;;  %v1045_v21 = vsel %vm1034_vm5, %v15430_v34, %v15435_v58  ;;  %v9461_v31 = vadd.f32 %v961_v7, %v787_v39  ;;  %v9466_v23 = vpop.permute.xlu0 %1390  ;;  %v15439_v32 = vld [vmem:[#allocation58_spill] sm:$0xff]  ;;  %v15440_v34 = vld [vmem:[#allocation11_spill] sm:$0xff] }
 0x2c4   :  { %v1366_v8 = vadd.f32 %v1342_v45, %v1168_v9  ;;  %v9463_v48 = vadd.f32 %v1346_v3, %v1172_v55  ;;  %v1349_v11 = vmul.f32 %v15427_v38, %v1295_v10  ;;  %15437 = vst [vmem:[#allocation131_spill] sm:$0xff] %v9466_v23  ;;  %v1099_v43 = vmul.f32 %v15438_v47, %v1051_v26  ;;  %v15441_v9 = vld [vmem:[#allocation63_spill] sm:$0xff]  ;;  %v15442_v45 = vld [vmem:[#allocation161_spill] sm:$0xff] }
 0x2c5   :  { %15436 = vst [vmem:[#allocation123_spill] sm:$0xff] %v9461_v31  ;;  %v1103_v62 = vmul.f32 %v15438_v47, %v1052_v52  ;;  %v1046_v63 = vsel %vm1034_vm5, %v15432_v13, %v15439_v32  ;;  %v1057_v39 = vsel %vm1034_vm5, %v15440_v34, %v15431_v61  ;;  %v1367_v55 = vadd.f32 %v1343_v16, %v15441_v9  ;;  %v9487_v10 = vpop.permute.xlu1 %1392  ;;  %v15444_v26 = vld [vmem:[#allocation77_spill] sm:$0xff]  ;;  %v15449_v9 = vld [vmem:[#allocation76_spill] sm:$0xff] }
 0x2c6   :  { %v9480_v7 = vadd.f32 %v1347_v19, %v9224_v36  ;;  %v1100_v38 = vmul.f32 %v15442_v45, %v1045_v21  ;;  %v1039_v3 = vsel %vm1034_vm5, %v15435_v58, %v15440_v34  ;;  %15443 = vst [vmem:[#allocation132_spill] sm:$0xff] %v9487_v10  ;;  %v9490_v13 = vadd.f32 %v1344_v27, %v15444_v26  ;;  %v15445_v36 = vld [vmem:[#allocation17_spill] sm:$0xff]  ;;  %v15446_v19 = vld [vmem:[#allocation22_spill] sm:$0xff]  ;;  %v15447_v21 = vld [vmem:[#allocation59_spill] sm:$0xff] }
 0x2c7   :  { %v9493_v52 = vadd.f32 %v1345_v24, %v9354_v51  ;;  %v9496_v16 = vadd.f32 %v1348_v49, %v9228_v1  ;;  %v1445_v61 = vsel %vm1430_vm7, %v15446_v19, %v15445_v36  ;;  %v1104_v47 = vmul.f32 %v15442_v45, %v1046_v63  ;;  %v15448_v34 = vld [vmem:[#allocation16_spill] sm:$0xff]  ;;  %v9512_v51 = vpop.permute.xlu0 %1402  ;;  %v15452_v63 = vld [vmem:[#allocation109_spill] sm:$0xff]  ;;  %v15453_v10 = vld [vmem:[#allocation34_spill] sm:$0xff] }
 0x2c8   :  { %v1098_v58 = vmul.f32 %v15394_v50, %v1057_v39  ;;  %v1446_v27 = vsel %vm1430_vm7, %v15448_v34, %v15447_v21  ;;  %v1439_v1 = vsel %vm1430_vm7, %v15445_v36, %v15449_v9  ;;  %15450 = vst [vmem:[#allocation136_spill] sm:$0xff] %v9512_v51  ;;  %v9515_v24 = vadd.f32 %v1349_v11, %v9358_v41  ;;  %v15451_v49 = vld [vmem:[#allocation108_spill] sm:$0xff]  ;;  %v15458_v51 = vld [vmem:[#allocation142_spill] sm:$0xff] }
 0x2c9   :  { %v1153_v26 = vmul.f32 %v15451_v49, %v1099_v43  ;;  %v1157_v45 = vmul.f32 %v15452_v63, %v1103_v62  ;;  %v1101_v39 = vmul.f32 %v15395_v12, %v1039_v3  ;;  %v1154_v31 = vmul.f32 %v15451_v49, %v1100_v38  ;;  %v9530_v11 = vpop.permute.xlu1 %1404  ;;  %v15457_v62 = vld [vmem:[#allocation44_spill] sm:$0xff] }
 0x2ca   :  { %v1058_v23 = vsel %vm1034_vm5, %v15453_v10, %v15433_v40  ;;  %v1486_v36 = vmul.f32 %v15454_v20, %v1445_v61  ;;  %v1440_v41 = vsel %vm1430_vm7, %v15447_v21, %v15455_v37  ;;  %15456 = vst [vmem:[#allocation83_spill] sm:$0xff] %v9530_v11  ;;  %v1490_v43 = vmul.f32 %v15454_v20, %v1446_v27 }
 0x2cb   :  { %v1487_v3 = vmul.f32 %v15457_v62, %v1439_v1  ;;  %v1433_v38 = vsel %vm1430_vm7, %v15449_v9, %v15458_v51  ;;  %v1451_v40 = vsel %vm1430_vm7, %v15458_v51, %v15446_v19  ;;  %v1158_v61 = vmul.f32 %v15452_v63, %v1104_v47  ;;  %v15459_v1 = vld [vmem:[#allocation79_spill] sm:$0xff]  ;;  %v9552_v9 = vpop.permute.xlu0 %1414 }
 0x2cc   :  { %v1152_v21 = vmul.f32 %v15451_v49, %v1098_v58  ;;  %v1040_v27 = vsel %vm1034_vm5, %v15439_v32, %v15453_v10  ;;  %v1434_v20 = vsel %vm1430_vm7, %v15455_v37, %v15459_v1  ;;  %15460 = vst [vmem:[#allocation9_spill] sm:$0xff] %v9552_v9  ;;  %v1155_v11 = vmul.f32 %v15451_v49, %v1101_v39  ;;  %v15461_v10 = vld [vmem:[#allocation118_spill] sm:$0xff] }
 0x2cd   :  { %v1102_v19 = vmul.f32 %v15394_v50, %v1058_v23  ;;  %v1491_v47 = vmul.f32 %v15457_v62, %v1440_v41  ;;  %v1452_v58 = vsel %vm1430_vm7, %v15459_v1, %v15448_v34  ;;  %v9562_v32 = vadd.f32 %v1153_v26, %v9415_v18  ;;  %v9567_v59 = vpop.permute.xlu1 %1416  ;;  %v15464_v23 = vld [vmem:[#allocation119_spill] sm:$0xff] }
 0x2ce   :  { %v1540_v51 = vmul.f32 %v15461_v10, %v1486_v36  ;;  %v1488_v37 = vmul.f32 %v15462_v56, %v1433_v38  ;;  %v1489_v9 = vmul.f32 %v15463_v0, %v1451_v40  ;;  %v9570_v50 = vadd.f32 %v1157_v45, %v9417_v53 }
 0x2cf   :  { %v1544_v49 = vmul.f32 %v15464_v23, %v1490_v43  ;;  %v1541_v39 = vmul.f32 %v15461_v10, %v1487_v3  ;;  %v1492_v34 = vmul.f32 %v15462_v56, %v1434_v20  ;;  %v9576_v18 = vadd.f32 %v1154_v31, %v9423_v44  ;;  %v9585_v38 = vpop.permute.xlu0 %1426 }
 0x2d0   :  { %v9579_v26 = vadd.f32 %v1158_v61, %v9434_v57  ;;  %v9582_v36 = vmul.f32 %v15395_v12, %v1040_v27  ;;  %v1493_v41 = vmul.f32 %v15463_v0, %v1452_v58  ;;  %v9588_v53 = vadd.f32 %v1152_v21, %v9436_v25  ;;  %v15475_v0 = vld [vmem:[#allocation66_spill] sm:$0xff] }
 0x2d1   :  { %v9591_v45 = vadd.f32 %v1155_v11, %v9438_v4  ;;  %v9594_v20 = vmul.f32 %v15452_v63, %v1102_v19  ;;  %v1545_v44 = vmul.f32 %v15464_v23, %v1491_v47  ;;  %v1564_v57 = vadd.f32 %v1540_v51, %v1366_v8  ;;  %v9603_v25 = vpop.permute.xlu1 %1428 }
 0x2d2   :  { %v1542_v31 = vmul.f32 %v15461_v10, %v1488_v37  ;;  %v1543_v12 = vmul.f32 %v15461_v10, %v1489_v9  ;;  %v1643_v43 = vsel %vm1628_vm8, %v9305_v30, %v9332_v33  ;;  %v1568_v4 = vadd.f32 %v1544_v49, %v9463_v48  ;;  %v15465_v9 = vld [vmem:[#allocation37_spill] sm:$0xff]  ;;  %v15466_v10 = vld [vmem:[#allocation78_spill] sm:$0xff] }
 0x2d3   :  { %v1565_v11 = vadd.f32 %v1541_v39, %v1367_v55  ;;  %v1546_v3 = vmul.f32 %v15464_v23, %v1492_v34  ;;  %v1644_v8 = vsel %vm1628_vm8, %v9321_v17, %v9350_v54  ;;  %v1547_v40 = vmul.f32 %v15464_v23, %v1493_v41  ;;  %v1783_v21 = vpop.permute.xlu0 %1782  ;;  %v15467_v23 = vld [vmem:[#allocation143_spill] sm:$0xff] }
 0x2d4   :  { %v1637_v61 = vsel %vm1628_vm8, %v9332_v33, %v9368_v29  ;;  %v1638_v48 = vsel %vm1628_vm8, %v9350_v54, %v9381_v60  ;;  %v1631_v55 = vsel %vm1628_vm8, %v9368_v29, %v9406_v42  ;;  %v1569_v27 = vadd.f32 %v1545_v44, %v9480_v7 }
 0x2d5   :  { %v1249_v1 = vsel %vm1232_vm6, %v9186_v22, %v9208_v5  ;;  %v1684_v33 = vmul.f32 %v15465_v9, %v1643_v43  ;;  %v1649_v54 = vsel %vm1628_vm8, %v9406_v42, %v9305_v30  ;;  %v1566_v19 = vadd.f32 %v1542_v31, %v9490_v13  ;;  %v1785_v58 = vpop.permute.xlu1 %1784  ;;  %v15468_v31 = vld [vmem:[#allocation54_spill] sm:$0xff] }
 0x2d6   :  { %v1567_v47 = vadd.f32 %v1543_v12, %v9493_v52  ;;  %v1250_v29 = vsel %vm1232_vm6, %v9198_v14, %v9220_v28  ;;  %v1688_v7 = vmul.f32 %v15465_v9, %v1644_v8  ;;  %v1685_v51 = vmul.f32 %v15466_v10, %v1637_v61 }
 0x2d7   :  { %v1689_v37 = vmul.f32 %v15466_v10, %v1638_v48  ;;  %v1686_v49 = vmul.f32 %v15467_v23, %v1631_v55  ;;  %v1632_v30 = vsel %vm1628_vm8, %v9381_v60, %v9421_v35  ;;  %v1570_v42 = vadd.f32 %v1546_v3, %v9496_v16  ;;  %v1795_v34 = vpop.permute.xlu0 %1794  ;;  %v15470_v3 = vld [vmem:[#allocation64_spill] sm:$0xff]  ;;  %v15474_v10 = vld [vmem:[#allocation67_spill] sm:$0xff] }
 0x2d8   :  { %v1571_v13 = vadd.f32 %v1547_v40, %v9515_v24  ;;  %v9651_v52 = vmul.f32 %v15418_v6, %v1249_v1  ;;  %v1687_v39 = vmul.f32 %v9018_v15, %v1649_v54  ;;  %v9655_v41 = vmul.f32 %v15418_v6, %v1250_v29  ;;  %v15469_v24 = vld [vmem:[#allocation46_spill] sm:$0xff] }
 0x2d9   :  { %v1243_v44 = vsel %vm1232_vm6, %v9208_v5, %v9241_v2  ;;  %v1738_v60 = vmul.f32 %v15468_v31, %v1684_v33  ;;  %v1841_v16 = vsel %vm1826_vm9, %v1783_v21, %v1795_v34  ;;  %v1742_v12 = vmul.f32 %v15469_v24, %v1688_v7  ;;  %v1797_v40 = vpop.permute.xlu1 %1796  ;;  %v15471_v1 = vld [vmem:[#allocation166_spill] sm:$0xff] }
 0x2da   :  { %v1650_v43 = vsel %vm1628_vm8, %v9421_v35, %v9321_v17  ;;  %v1690_v6 = vmul.f32 %v15467_v23, %v1632_v30  ;;  %v1882_v8 = vmul.f32 %v15470_v3, %v1841_v16  ;;  %v1739_v61 = vmul.f32 %v15468_v31, %v1685_v51  ;;  %v15472_v54 = vld [vmem:[#allocation82_spill] sm:$0xff] }
 0x2db   :  { %v1743_v5 = vmul.f32 %v15469_v24, %v1689_v37  ;;  %v1740_v48 = vmul.f32 %v15468_v31, %v1686_v49  ;;  %v1842_v55 = vsel %vm1826_vm9, %v1785_v58, %v1797_v40  ;;  %v9677_v33 = vmul.f32 %v15471_v1, %v1243_v44  ;;  %v1807_v7 = vpop.permute.xlu0 %1806  ;;  %v15473_v49 = vld [vmem:[#allocation65_spill] sm:$0xff] }
 0x2dc   :  { %v1244_v35 = vsel %vm1232_vm6, %v9220_v28, %v15472_v54  ;;  %v1741_v17 = vmul.f32 %v15468_v31, %v1687_v39  ;;  %v1886_v29 = vmul.f32 %v15470_v3, %v1842_v55  ;;  %v1762_v51 = vadd.f32 %v1738_v60, %v1564_v57 }
 0x2dd   :  { %v1691_v37 = vmul.f32 %v9018_v15, %v1650_v43  ;;  %v1936_v30 = vmul.f32 %v15473_v49, %v1882_v8  ;;  %v1835_v16 = vsel %vm1826_vm9, %v1795_v34, %v1807_v7  ;;  %v1766_v44 = vadd.f32 %v1742_v12, %v1568_v4  ;;  %v1809_v56 = vpop.permute.xlu1 %1808 }
 0x2de   :  { %v1744_v23 = vmul.f32 %v15469_v24, %v1690_v6  ;;  %v1940_v9 = vmul.f32 %v15474_v10, %v1886_v29  ;;  %v1883_v28 = vmul.f32 %v15475_v0, %v1835_v16  ;;  %v1763_v39 = vadd.f32 %v1739_v61, %v1565_v11 }
 0x2df   :  { %v1767_v31 = vadd.f32 %v1743_v5, %v1569_v27  ;;  %v1764_v55 = vadd.f32 %v1740_v48, %v1566_v19  ;;  %v1836_v57 = vsel %vm1826_vm9, %v1797_v40, %v1809_v56  ;;  %v1765_v60 = vadd.f32 %v1741_v17, %v1567_v47  ;;  %v1819_v4 = vpop.permute.xlu0 %1818  ;;  %v15476_v40 = vld [vmem:[#allocation4_spill] sm:$0xff] }
 0x2e0   :  { %v1964_v43 = vadd.f32 %v1940_v9, %v1766_v44  ;;  %v1937_v8 = vmul.f32 %v15473_v49, %v1883_v28  ;;  %v1887_v34 = vmul.f32 %v15475_v0, %v1836_v57  ;;  %v1745_v12 = vmul.f32 %v15469_v24, %v1691_v37  ;;  %v15477_v9 = vld [vmem:[#allocation81_spill] sm:$0xff] }
 0x2e1   :  { %v1960_v6 = vadd.f32 %v1936_v30, %v1762_v51  ;;  %v1829_v29 = vsel %vm1826_vm9, %v1807_v7, %v1819_v4  ;;  %v1847_v11 = vsel %vm1826_vm9, %v1819_v4, %v1783_v21  ;;  %v1768_v27 = vadd.f32 %v1744_v23, %v1570_v42  ;;  %v1821_v5 = vpop.permute.xlu1 %1820 }
 0x2e2   :  { %v1941_v19 = vmul.f32 %v15474_v10, %v1887_v34  ;;  %v1884_v47 = vmul.f32 %v15476_v40, %v1829_v29  ;;  %v1885_v61 = vmul.f32 %v15477_v9, %v1847_v11  ;;  %v1988_v48 = vmax.f32 %v1964_v43, 0.0 }
 0x2e3   :  { %v1830_v17 = vsel %vm1826_vm9, %v1809_v56, %v1821_v5  ;;  %v1848_v24 = vsel %vm1826_vm9, %v1821_v5, %v1785_v58  ;;  %v1961_v51 = vadd.f32 %v1937_v8, %v1763_v39  ;;  %v9712_v37 = vpop.permute.xlu0 %1920  ;;  %v1769_v30 = vadd.f32 %v1745_v12, %v1571_v13  ;;  %v15478_v8 = vld [vmem:[#allocation128_spill] sm:$0xff] }
 0x2e4   :  { %v1938_v7 = vmul.f32 %v15473_v49, %v1884_v47  ;;  %v1939_v21 = vmul.f32 %v15473_v49, %v1885_v61  ;;  %v1888_v23 = vmul.f32 %v15476_v40, %v1830_v17  ;;  %v1889_v42 = vmul.f32 %v15477_v9, %v1848_v24  ;;  %v15479_v47 = vld [vmem:[#allocation167_spill] sm:$0xff]  ;;  %v15481_v17 = vld [vmem:[#allocation169_spill] sm:$0xff] }
 0x2e5   :  { %v1984_v16 = vmax.f32 %v1960_v6, 0.0  ;;  %v1965_v44 = vadd.f32 %v1941_v19, %v1767_v31  ;;  %v1985_v28 = vmax.f32 %v1961_v51, 0.0  ;;  %v9716_v39 = vpop.permute.xlu1 %1925  ;;  %v1237_v49 = vsel %vm1232_vm6, %v9241_v2, %v15478_v8  ;;  %v15480_v61 = vld [vmem:[#allocation127_spill] sm:$0xff] }
 0x2e6   :  { %v1962_v57 = vadd.f32 %v1938_v7, %v1764_v55  ;;  %v1942_v56 = vmul.f32 %v15474_v10, %v1888_v23  ;;  %v1943_v58 = vmul.f32 %v15474_v10, %v1889_v42  ;;  %v1963_v43 = vadd.f32 %v1939_v21, %v1765_v60 }
 0x2e7   :  { %v1255_v13 = vsel %vm1232_vm6, %v15478_v8, %v9186_v22  ;;  %v1989_v31 = vmax.f32 %v1965_v44, 0.0  ;;  %v2012_v34 = vmin.f32 %v1988_v48, 6.0  ;;  %v9726_v12 = vpop.permute.xlu0 %1588  ;;  %v1301_v60 = vmul.f32 %v15471_v1, %v1244_v35  ;;  %v15486_v8 = vld [vmem:[#allocation131_spill] sm:$0xff] }
 0x2e8   :  { %v1986_v55 = vmax.f32 %v1962_v57, 0.0  ;;  %v1966_v4 = vadd.f32 %v1942_v56, %v1768_v27  ;;  %v1967_v10 = vadd.f32 %v1943_v58, %v1769_v30  ;;  %v1987_v6 = vmax.f32 %v1963_v43, 0.0  ;;  %v15485_v43 = vld [vmem:[#allocation136_spill] sm:$0xff] }
 0x2e9   :  { %v2009_v29 = vmin.f32 %v1985_v28, 6.0  ;;  %v2013_v11 = vmin.f32 %v1989_v31, 6.0  ;;  %v2008_v19 = vmin.f32 %v1984_v16, 6.0  ;;  %v1298_v2 = vmul.f32 %v15479_v47, %v1237_v49  ;;  %v9734_v48 = vpop.permute.xlu1 %1590  ;;  %v15482_v16 = vld [vmem:[#allocation130_spill] sm:$0xff]  ;;  %v15487_v31 = vld [vmem:[#allocation83_spill] sm:$0xff] }
 0x2ea   :  { %v1238_v22 = vsel %vm1232_vm6, %v15472_v54, %v15480_v61  ;;  %v1990_v5 = vmax.f32 %v1966_v4, 0.0  ;;  %v1991_v27 = vmax.f32 %v1967_v10, 0.0  ;;  %v1299_v24 = vmul.f32 %v15481_v17, %v1255_v13  ;;  %v15483_v28 = vld [vmem:[#allocation6_spill] sm:$0xff] }
 0x2eb   :  { %v1256_v1 = vsel %vm1232_vm6, %v15480_v61, %v9198_v14  ;;  %v2030_v35 = vpack.c.bf16 %v2013_v11, %v2009_v29  ;;  %v2029_v51 = vpack.c.bf16 %v2012_v34, %v2008_v19  ;;  %v1601_v7 = vpop.permute.xlu0 %1600  ;;  %v2011_v21 = vmin.f32 %v1987_v6, 6.0  ;;  %v15484_v14 = vld [vmem:[#allocation7_spill] sm:$0xff]  ;;  %v15488_v34 = vld [vmem:[#allocation132_spill] sm:$0xff] }
 0x2ec   :  { %v2015_v23 = vmin.f32 %v1991_v27, 6.0  ;;  %v2010_v42 = vmin.f32 %v1986_v55, 6.0  ;;  %v2014_v30 = vmin.f32 %v1990_v5, 6.0  ;;  %v1159_v54 = vmul.f32 %v15452_v63, %v9582_v36  ;;  %v15490_v19 = vld [vmem:[#allocation123_spill] sm:$0xff] }
 0x2ed   :  { %v1180_v44 = vadd.f32 %v9594_v20, %v15482_v16  ;;  %v1350_v57 = vmul.f32 %v15483_v28, %v9651_v52  ;;  %v1302_v56 = vmul.f32 %v15479_v47, %v1238_v22  ;;  %2043 = vmatprep.subr.bf16.mxu0 %v2030_v35  ;;  %v1354_v58 = vmul.f32 %v15484_v14, %v9655_v41  ;;  %v1603_v13 = vpop.permute.xlu1 %1602  ;;  %v15489_v41 = vld [vmem:[#allocation9_spill] sm:$0xff]  ;;  %v15491_v5 = vld [vmem:[#allocation43_spill] sm:$0xff] }
 0x2ee   :  { %v1447_v49 = vsel %vm1430_vm7, %v15486_v8, %v15485_v43  ;;  %2044 = vmatpush1.bf16.msra.mxu0 %v2029_v51  ;;  %v2032_v63 = vpack.c.bf16 %v2015_v23, %v2011_v21  ;;  %v2031_v36 = vpack.c.bf16 %v2014_v30, %v2010_v42  ;;  %v1351_v20 = vmul.f32 %v15483_v28, %v9677_v33 }
 0x2ef   :  { %v1303_v52 = vmul.f32 %v15481_v17, %v1256_v1  ;;  %v1448_v55 = vsel %vm1430_vm7, %v15488_v34, %v15487_v31  ;;  %v1441_v4 = vsel %vm1430_vm7, %v15485_v43, %v15489_v41  ;;  %v1355_v10 = vmul.f32 %v15484_v14, %v1301_v60  ;;  %v1613_v11 = vpop.permute.xlu0 %1612 }
 0x2f0   :  { %v1352_v6 = vmul.f32 %v15483_v28, %v1298_v2  ;;  %v1353_v29 = vmul.f32 %v15483_v28, %v1299_v24  ;;  %v1442_v33 = vsel %vm1430_vm7, %v15487_v31, %v9567_v59  ;;  %2084 = vmatprep.subr.bf16.mxu1 %v2032_v63  ;;  %v1183_v47 = vadd.f32 %v1159_v54, %v15490_v19  ;;  %v15493_v28 = vld [vmem:[#allocation10_spill] sm:$0xff] }
 0x2f1   :  { %v1374_v61 = vadd.f32 %v1350_v57, %v9588_v53  ;;  %v1356_v22 = vmul.f32 %v15484_v14, %v1302_v56  ;;  %v1494_v27 = vmul.f32 %v15491_v5, %v1447_v49  ;;  %2085 = vmatpush1.bf16.msra.mxu1 %v2031_v36  ;;  %v1498_v60 = vmul.f32 %v15491_v5, %v1448_v55  ;;  %v1615_v53 = vpop.permute.xlu1 %1614  ;;  %v15496_v55 = vld [vmem:[#allocation37_spill] sm:$0xff] }
 0x2f2   :  { %v1495_v2 = vmul.f32 %v15457_v62, %v1441_v4  ;;  %v1435_v17 = vsel %vm1430_vm7, %v15489_v41, %v9585_v38  ;;  %v1453_v24 = vsel %vm1430_vm7, %v9585_v38, %v15486_v8  ;;  %v1378_v1 = vadd.f32 %v1354_v58, %v1180_v44  ;;  %v15492_v44 = vld [vmem:[#allocation20_spill] sm:$0xff] }
 0x2f3   :  { %v1375_v35 = vadd.f32 %v1351_v20, %v9562_v32  ;;  %v1357_v51 = vmul.f32 %v15484_v14, %v1303_v52  ;;  %v1499_v21 = vmul.f32 %v15457_v62, %v1442_v33  ;;  %v1379_v23 = vadd.f32 %v1355_v10, %v9570_v50  ;;  %v1625_v38 = vpop.permute.xlu0 %1624  ;;  %v15494_v50 = vld [vmem:[#allocation80_spill] sm:$0xff]  ;;  %v15497_v33 = vld [vmem:[#allocation78_spill] sm:$0xff] }
 0x2f4   :  { %v1376_v42 = vadd.f32 %v1352_v6, %v9576_v18  ;;  %v1377_v30 = vadd.f32 %v1353_v29, %v9591_v45  ;;  %v1436_v54 = vsel %vm1430_vm7, %v9567_v59, %v9603_v25  ;;  %v1380_v16 = vadd.f32 %v1356_v22, %v9579_v26  ;;  %v15495_v45 = vld [vmem:[#allocation5_spill] sm:$0xff] }
 0x2f5   :  { %v1496_v32 = vmul.f32 %v15492_v44, %v1435_v17  ;;  %v1497_v57 = vmul.f32 %v15493_v28, %v1453_v24  ;;  %v1454_v62 = vsel %vm1430_vm7, %v9603_v25, %v15488_v34  ;;  %v1548_v18 = vmul.f32 %v15494_v50, %v1494_v27  ;;  %v1627_v26 = vpop.permute.xlu1 %1626 }
 0x2f6   :  { %v1552_v56 = vmul.f32 %v15495_v45, %v1498_v60  ;;  %v1549_v14 = vmul.f32 %v15494_v50, %v1495_v2  ;;  %v1645_v59 = vsel %vm1628_vm8, %v9726_v12, %v1601_v7  ;;  %v1381_v58 = vadd.f32 %v1357_v51, %v1183_v47  ;;  %v15498_v47 = vld [vmem:[#allocation143_spill] sm:$0xff] }
 0x2f7   :  { %v1553_v43 = vmul.f32 %v15495_v45, %v1499_v21  ;;  %v1500_v8 = vmul.f32 %v15492_v44, %v1436_v54  ;;  %v1646_v25 = vsel %vm1628_vm8, %v9734_v48, %v1603_v13  ;;  %v1501_v49 = vmul.f32 %v15493_v28, %v1454_v62  ;;  %v1787_v52 = vpop.permute.xlu0 %1786  ;;  %v15500_v21 = vld [vmem:[#allocation129_spill] sm:$0xff] }
 0x2f8   :  { %v1639_v63 = vsel %vm1628_vm8, %v1601_v7, %v1613_v11  ;;  %v1640_v36 = vsel %vm1628_vm8, %v1603_v13, %v1615_v53  ;;  %v1633_v20 = vsel %vm1628_vm8, %v1613_v11, %v1625_v38  ;;  %v1550_v31 = vmul.f32 %v15494_v50, %v1496_v32 }
 0x2f9   :  { %v1551_v34 = vmul.f32 %v15494_v50, %v1497_v57  ;;  %v1692_v41 = vmul.f32 %v15496_v55, %v1645_v59  ;;  %v1651_v4 = vsel %vm1628_vm8, %v1625_v38, %v9726_v12  ;;  %v1572_v10 = vadd.f32 %v1548_v18, %v1374_v61  ;;  %v1789_v13 = vpop.permute.xlu1 %1788 }
 0x2fa   :  { %v1576_v6 = vadd.f32 %v1552_v56, %v1378_v1  ;;  %v1573_v7 = vadd.f32 %v1549_v14, %v1375_v35  ;;  %v1696_v29 = vmul.f32 %v15496_v55, %v1646_v25  ;;  %v1693_v19 = vmul.f32 %v15497_v33, %v1639_v63  ;;  %v15499_v1 = vld [vmem:[#allocation8_spill] sm:$0xff] }
 0x2fb   :  { %v1697_v11 = vmul.f32 %v15497_v33, %v1640_v36  ;;  %v1694_v22 = vmul.f32 %v15498_v47, %v1633_v20  ;;  %v1634_v5 = vsel %vm1628_vm8, %v1615_v53, %v1627_v26  ;;  %v1577_v27 = vadd.f32 %v1553_v43, %v1379_v23  ;;  %v1799_v2 = vpop.permute.xlu0 %1798 }
 0x2fc   :  { %v1554_v60 = vmul.f32 %v15495_v45, %v1500_v8  ;;  %v1555_v12 = vmul.f32 %v15495_v45, %v1501_v49  ;;  %v1695_v61 = vmul.f32 %v9018_v15, %v1651_v4  ;;  %v1574_v17 = vadd.f32 %v1550_v31, %v1376_v42 }
 0x2fd   :  { %v1575_v24 = vadd.f32 %v1551_v34, %v1377_v30  ;;  %v1746_v35 = vmul.f32 %v15499_v1, %v1692_v41  ;;  %v1843_v51 = vsel %vm1826_vm9, %v1787_v52, %v1799_v2  ;;  %v1750_v54 = vmul.f32 %v15500_v21, %v1696_v29  ;;  %v1801_v44 = vpop.permute.xlu1 %1800 }
 0x2fe   :  { %v1652_v53 = vsel %vm1628_vm8, %v1627_v26, %v9734_v48  ;;  %v1698_v23 = vmul.f32 %v15498_v47, %v1634_v5  ;;  %v1890_v38 = vmul.f32 %v15470_v3, %v1843_v51  ;;  %v1747_v32 = vmul.f32 %v15499_v1, %v1693_v19 }
 0x2ff   :  { %v1751_v42 = vmul.f32 %v15500_v21, %v1697_v11  ;;  %v1748_v30 = vmul.f32 %v15499_v1, %v1694_v22  ;;  %v1844_v28 = vsel %vm1826_vm9, %v1789_v13, %v1801_v44  ;;  %v1578_v57 = vadd.f32 %v1554_v60, %v1380_v16  ;;  %v1811_v18 = vpop.permute.xlu0 %1810 }
 0x300   :  { %v1579_v62 = vadd.f32 %v1555_v12, %v1381_v58  ;;  %v1749_v50 = vmul.f32 %v15499_v1, %v1695_v61  ;;  %v1894_v48 = vmul.f32 %v15470_v3, %v1844_v28  ;;  %v1770_v45 = vadd.f32 %v1746_v35, %v1572_v10 }
 0x301   :  { %v1699_v56 = vmul.f32 %v9018_v15, %v1652_v53  ;;  %v1944_v14 = vmul.f32 %v9712_v37, %v1890_v38  ;;  %v1837_v59 = vsel %vm1826_vm9, %v1799_v2, %v1811_v18  ;;  %v1774_v26 = vadd.f32 %v1750_v54, %v1576_v6  ;;  %v1813_v58 = vpop.permute.xlu1 %1812 }
 0x302   :  { %v1752_v43 = vmul.f32 %v15500_v21, %v1698_v23  ;;  %v1948_v8 = vmul.f32 %v9716_v39, %v1894_v48  ;;  %v1891_v16 = vmul.f32 %v15475_v0, %v1837_v59  ;;  %v1771_v25 = vadd.f32 %v1747_v32, %v1573_v7 }
 0x303   :  { %v1775_v49 = vadd.f32 %v1751_v42, %v1577_v27  ;;  %v1772_v3 = vadd.f32 %v1748_v30, %v1574_v17  ;;  %v1838_v63 = vsel %vm1826_vm9, %v1801_v44, %v1813_v58  ;;  %v1773_v15 = vadd.f32 %v1749_v50, %v1575_v24  ;;  %v1823_v34 = vpop.permute.xlu0 %1822 }
 0x304   :  { %v1972_v36 = vadd.f32 %v1948_v8, %v1774_v26  ;;  %v1945_v20 = vmul.f32 %v9712_v37, %v1891_v16  ;;  %v1895_v31 = vmul.f32 %v15475_v0, %v1838_v63  ;;  %v1753_v55 = vmul.f32 %v15500_v21, %v1699_v56 }
 0x305   :  { %v1968_v41 = vadd.f32 %v1944_v14, %v1770_v45  ;;  %v1831_v4 = vsel %vm1826_vm9, %v1811_v18, %v1823_v34  ;;  %v1849_v10 = vsel %vm1826_vm9, %v1823_v34, %v1787_v52  ;;  %v1776_v6 = vadd.f32 %v1752_v43, %v1578_v57  ;;  %v1825_v19 = vpop.permute.xlu1 %1824 }
 0x306   :  { %v1949_v7 = vmul.f32 %v9716_v39, %v1895_v31  ;;  %v1892_v29 = vmul.f32 %v15476_v40, %v1831_v4  ;;  %v1893_v33 = vmul.f32 %v15477_v9, %v1849_v10  ;;  %v1996_v11 = vmax.f32 %v1972_v36, 0.0 }
 0x307   :  { %v1832_v0 = vsel %vm1826_vm9, %v1813_v58, %v1825_v19  ;;  %v1850_v47 = vsel %vm1826_vm9, %v1825_v19, %v1789_v13  ;;  %v1969_v22 = vadd.f32 %v1945_v20, %v1771_v25  ;;  %v1777_v12 = vadd.f32 %v1753_v55, %v1579_v62 }
 0x308   :  { %v1946_v5 = vmul.f32 %v9712_v37, %v1892_v29  ;;  %v1947_v52 = vmul.f32 %v9712_v37, %v1893_v33  ;;  %v1896_v27 = vmul.f32 %v15476_v40, %v1832_v0  ;;  %v1897_v60 = vmul.f32 %v15477_v9, %v1850_v47  ;;  %v2138_v47 = vld [vmem:[%s14419_s6] sm:$0x1] }
 0x309   :  { %v1992_v61 = vmax.f32 %v1968_v41, 0.0  ;;  %v1973_v2 = vadd.f32 %v1949_v7, %v1775_v49  ;;  %v1993_v17 = vmax.f32 %v1969_v22, 0.0  ;;  %v2020_v21 = vmin.f32 %v1996_v11, 6.0 }
 0x30a   :  { %v1970_v24 = vadd.f32 %v1946_v5, %v1772_v3  ;;  %v1950_v1 = vmul.f32 %v9716_v39, %v1896_v27  ;;  %v1951_v35 = vmul.f32 %v9716_v39, %v1897_v60  ;;  %v1971_v51 = vadd.f32 %v1947_v52, %v1773_v15  ;;  %v2024_v39 = vld [vmem:[%s14417_s4] sm:$0xf] }
 0x30b   :  { %v1997_v13 = vmax.f32 %v1973_v2, 0.0  ;;  %v2017_v38 = vmin.f32 %v1993_v17, 6.0  ;;  %v2016_v44 = vmin.f32 %v1992_v61, 6.0  ;;  %v15501_v45 = vmov 0   ;;  %v2128_v3 = vld [vmem:[%s14418_s5] sm:$0xff]  ;;  %v15502_v2 = vld [vmem:[#allocation134_spill] sm:$0xff] }
 0x30c   :  { %v1994_v54 = vmax.f32 %v1970_v24, 0.0  ;;  %v1974_v53 = vadd.f32 %v1950_v1, %v1776_v6  ;;  %v1975_v23 = vadd.f32 %v1951_v35, %v1777_v12  ;;  %v1995_v37 = vmax.f32 %v1971_v51, 0.0  ;;  %v2141_v12 = vld [vmem:[%s14420_s7] sm:$0xff] }
 0x30d   :  { %v2021_v40 = vmin.f32 %v1997_v13, 6.0  ;;  %v2033_v30 = vpack.c.bf16 %v2020_v21, %v2016_v44 }
 0x30e   :  { %v1998_v9 = vmax.f32 %v1974_v53, 0.0  ;;  %v1999_v32 = vmax.f32 %v1975_v23, 0.0  ;;  %v2019_v28 = vmin.f32 %v1995_v37, 6.0  ;;  %v2018_v62 = vmin.f32 %v1994_v54, 6.0  ;;  %v2150_v54 = vld [vmem:[%s14421_s8] sm:$0xff] }
 0x30f   :  { %v2034_v42 = vpack.c.bf16 %v2021_v40, %v2017_v38 }
 0x310   :  { %v2023_v57 = vmin.f32 %v1999_v32, 6.0  ;;  %v2022_v50 = vmin.f32 %v1998_v9, 6.0 }
 0x311   :  { %2045 = vmatprep.subr.bf16.mxu0 %v2034_v42 }
 0x312   :  { %2046 = vmatpush1.bf16.msra.mxu0 %v2033_v30  ;;  %v2036_v48 = vpack.c.bf16 %v2023_v57, %v2019_v28  ;;  %v2035_v18 = vpack.c.bf16 %v2022_v50, %v2018_v62  ;;  %v6969_v57 = vld [vmem:[%s14415_s3 + $0x270] sm:$0xff]  ;;  %v6970_v50 = vld [vmem:[%s14415_s3 + $0x278] sm:$0xff] }
 0x314   :  { %2086 = vmatprep.subr.bf16.mxu1 %v2036_v48  ;;  %v6946_v48 = vld [vmem:[%s14415_s3 + $0x1b8] sm:$0xff] }
 0x315   :  { %6922 = vmatmul.mubr.msk.bf16.vlgmr.msra.gmra.mrb[12].mxu0 %vm2037_vm10, %v2024_v39  ;;  %2087 = vmatpush1.bf16.msra.mxu1 %v2035_v18  ;;  %v6951_v18 = vld [vmem:[%s14415_s3 + $0x1e0] sm:$0xff] }
 0x316   :  { %2258 = vmatprep.mubr.bf16.mxu0 %v15501_v45 }
 0x318   :  { %6923 = vmatmul.mubr.msk.bf16.vlgmr.msra.gmra.mrb[12].mxu1 %vm2037_vm10, %v2024_v39  ;;  %v6945_v39 = vld [vmem:[%s14415_s3 + $0x1b0] sm:$0xff] }
 0x319   :  { %2299 = vmatprep.mubr.bf16.mxu1 %v15501_v45 }
 0x3e8   :  { %v9888_v56 = vpop.f32.mrb[12].mxu0 }
 0x3e9   :  { %v9890_v14 = vpop.f32.mrb[13].mxu0 }
 0x3ea   :  { %v2123_v59 = vadd.f32 %v9890_v14, %v9888_v56  ;;  %v2079_v26 = vpop.f32.mrb[14].mxu0 }
 0x3eb   :  { %v2080_v43 = vpop.f32.mrb[15].mxu0  ;;  %v9894_v8 = vpop.f32.mrb[12].mxu1  ;;  %v6971_v26 = vld [vmem:[%s14415_s3 + $0x280] sm:$0xff] }
 0x3ec   :  { %2124 = vadd.xlane.f32.xlu0 %v2123_v59  ;;  %v9896_v16 = vpop.f32.mrb[13].mxu1  ;;  %v6952_v59 = vld [vmem:[%s14415_s3 + $0x1e8] sm:$0xff] }
 0x3ed   :  { %v2163_v58 = vadd.f32 %v9896_v16, %v9894_v8  ;;  %v2120_v25 = vpop.f32.mrb[14].mxu1  ;;  %v6972_v43 = vld [vmem:[%s14415_s3 + $0x288] sm:$0xff] }
 0x3ee   :  { %v2121_v49 = vpop.f32.mrb[15].mxu1  ;;  %v6948_v25 = vld [vmem:[%s14415_s3 + $0x1c8] sm:$0xff] }
 0x3ef   :  { %2164 = vadd.xlane.f32.xlu1 %v2163_v58  ;;  %v6947_v58 = vld [vmem:[%s14415_s3 + $0x1c0] sm:$0xff]  ;;  %v6957_v49 = vld [vmem:[%s14415_s3 + $0x210] sm:$0xff] }
 0x479   :  { %v2125_v63 = vpop.xlane.xlu0 %2124 }
 0x47a   :  { %v2127_v15 = vmul.f32 0.00390625, %v2125_v63  ;;  %v6953_v63 = vld [vmem:[%s14415_s3 + $0x1f0] sm:$0xff] }
 0x47c   :  { %v2129_v36 = vmul.f32 %v2128_v3, %v2127_v15  ;;  %v2165_v20 = vpop.xlane.xlu1 %2164  ;;  %v6954_v15 = vld [vmem:[%s14415_s3 + $0x1f8] sm:$0xff] }
 0x47d   :  { %v2166_v31 = vmul.f32 0.00390625, %v2165_v20  ;;  %v6964_v20 = vld [vmem:[%s14415_s3 + $0x248] sm:$0xff] }
 0x47e   :  { %v2131_v34 = vsel %vm2130_vm11, %v2129_v36, 0.0  ;;  %v6963_v36 = vld [vmem:[%s14415_s3 + $0x240] sm:$0xff] }
 0x47f   :  { %v2132_v55 = vrot.slane %v2131_v34, 4  ;;  %v2167_v41 = vmul.f32 %v2166_v31, %v2128_v3  ;;  %v6958_v3 = vld [vmem:[%s14415_s3 + $0x218] sm:$0xff]  ;;  %v6973_v31 = vld [vmem:[%s14415_s3 + $0x290] sm:$0xff] }
 0x481   :  { %v2133_v4 = vadd.f32 %v2132_v55, %v2131_v34  ;;  %v2168_v10 = vsel %vm2130_vm11, %v2167_v41, 0.0  ;;  %v6974_v34 = vld [vmem:[%s14415_s3 + $0x298] sm:$0xff]  ;;  %v6949_v55 = vld [vmem:[%s14415_s3 + $0x1d0] sm:$0xff] }
 0x482   :  { %v2169_v6 = vrot.slane %v2168_v10, 4  ;;  %v6950_v41 = vld [vmem:[%s14415_s3 + $0x1d8] sm:$0xff] }
 0x483   :  { %v2134_v7 = vrot.slane %v2133_v4, 2 }
 0x484   :  { %v2170_v29 = vadd.f32 %v2169_v6, %v2168_v10  ;;  %v6960_v10 = vld [vmem:[%s14415_s3 + $0x228] sm:$0xff]  ;;  %v6975_v6 = vld [vmem:[%s14415_s3 + $0x2a0] sm:$0xff] }
 0x485   :  { %v2135_v33 = vadd.f32 %v2134_v7, %v2133_v4  ;;  %v6959_v4 = vld [vmem:[%s14415_s3 + $0x220] sm:$0xff]  ;;  %v6976_v7 = vld [vmem:[%s14415_s3 + $0x2a8] sm:$0xff] }
 0x486   :  { %v2171_v19 = vrot.slane %v2170_v29, 2 }
 0x487   :  { %v2136_v11 = vrot.slane %v2135_v33, 1 }
 0x488   :  { %v2172_v0 = vadd.f32 %v2171_v19, %v2170_v29  ;;  %v6955_v29 = vld [vmem:[%s14415_s3 + $0x200] sm:$0xff]  ;;  %v6965_v19 = vld [vmem:[%s14415_s3 + $0x250] sm:$0xff] }
 0x489   :  { %v2137_v22 = vadd.f32 %v2136_v11, %v2135_v33  ;;  %v6956_v33 = vld [vmem:[%s14415_s3 + $0x208] sm:$0xff]  ;;  %v6966_v11 = vld [vmem:[%s14415_s3 + $0x258] sm:$0xff] }
 0x48a   :  { %v2173_v5 = vrot.slane %v2172_v0, 1 }
 0x48b   :  { %v2139_v52 = vadd.f32 %v2138_v47, %v2137_v22  ;;  %v6961_v22 = vld [vmem:[%s14415_s3 + $0x230] sm:$0xff] }
 0x48c   :  { %v2174_v27 = vadd.f32 %v2173_v5, %v2172_v0  ;;  %v6981_v0 = vld [vmem:[%s14415_s3 + $0x2d0] sm:$0xff]  ;;  %v6962_v5 = vld [vmem:[%s14415_s3 + $0x238] sm:$0xff] }
 0x48d   :  { %v2140_v60 = vmax.f32 %v2139_v52, 0.0  ;;  %v6977_v52 = vld [vmem:[%s14415_s3 + $0x2b0] sm:$0xff] }
 0x48e   :  { %v2175_v61 = vadd.f32 %v2174_v27, %v2138_v47  ;;  %v6982_v47 = vld [vmem:[%s14415_s3 + $0x2d8] sm:$0xff] }
 0x48f   :  { %v2145_v17 = vrot.slane %v2140_v60, %v15502_v2  ;;  %v6978_v27 = vld [vmem:[%s14415_s3 + $0x2b8] sm:$0xff]  ;;  %v6987_v60 = vld [vmem:[%s14415_s3 + $0x300] sm:$0xff] }
 0x490   :  { %v2176_v24 = vmax.f32 %v2175_v61, 0.0  ;;  %v6967_v61 = vld [vmem:[%s14415_s3 + $0x260] sm:$0xff] }
 0x491   :  { %v2146_v1 = vmul.f32 %v2145_v17, %v2141_v12  ;;  %v6968_v17 = vld [vmem:[%s14415_s3 + $0x268] sm:$0xff] }
 0x492   :  { %v2180_v35 = vrot.slane %v2176_v24, %v15502_v2  ;;  %v6983_v24 = vld [vmem:[%s14415_s3 + $0x2e0] sm:$0xff] }
 0x493   :  { %v2147_v51 = vsel %vm2130_vm11, %v2146_v1, 0.0  ;;  %v6984_v1 = vld [vmem:[%s14415_s3 + $0x2e8] sm:$0xff] }
 0x494   :  { %2148 = vadd.xlane.f32.xlu0 %v2147_v51  ;;  %v2181_v13 = vmul.f32 %v2180_v35, %v2141_v12  ;;  %v6988_v12 = vld [vmem:[%s14415_s3 + $0x308] sm:$0xff]  ;;  %v6993_v35 = vld [vmem:[%s14415_s3 + $0x330] sm:$0xff]  ;;  %v6994_v51 = vld [vmem:[%s14415_s3 + $0x338] sm:$0xff] }
 0x496   :  { %v2182_v21 = vsel %vm2130_vm11, %v2181_v13, 0.0  ;;  %v6979_v13 = vld [vmem:[%s14415_s3 + $0x2c0] sm:$0xff] }
 0x498   :  { %2183 = vadd.xlane.f32.xlu0 %v2182_v21  ;;  %v6980_v21 = vld [vmem:[%s14415_s3 + $0x2c8] sm:$0xff] }
 0x521   :  { %v2149_v53 = vpop.xlane.xlu0 %2148 }
 0x522   :  { %v2151_v23 = vadd.f32 %v2150_v54, %v2149_v53  ;;  %v6990_v53 = vld [vmem:[%s14415_s3 + $0x318] sm:$0xff] }
 0x524   :  { %v6924_v37 = vmul.f32 -1.442695, %v2151_v23  ;;  %v6985_v23 = vld [vmem:[%s14415_s3 + $0x2f0] sm:$0xff] }
 0x525   :  { %v2184_v38 = vpop.xlane.xlu0 %2183 }
 0x526   :  { %7128 = vpow2.f32 %v6924_v37  ;;  %v2185_v40 = vadd.f32 %v2184_v38, %v2150_v54  ;;  %v6989_v54 = vld [vmem:[%s14415_s3 + $0x310] sm:$0xff]  ;;  %v6986_v37 = vld [vmem:[%s14415_s3 + $0x2f8] sm:$0xff]  ;;  %v6995_v38 = vld [vmem:[%s14415_s3 + $0x340] sm:$0xff] }
 0x528   :  { %v6925_v44 = vmul.f32 -1.442695, %v2185_v40  ;;  %v6996_v40 = vld [vmem:[%s14415_s3 + $0x348] sm:$0xff] }
 0x52a   :  { %7130 = vpow2.f32 %v6925_v44  ;;  %v6991_v44 = vld [vmem:[%s14415_s3 + $0x320] sm:$0xff] }
 0x530   :  { %v7129_v9 = vpop.eup %7128 }
 0x531   :  { %v2155_v32 = vadd.f32 1.0, %v7129_v9  ;;  %v6992_v9 = vld [vmem:[%s14415_s3 + $0x328] sm:$0xff] }
 0x533   :  { %7132 = vrcp.f32 %v2155_v32  ;;  %v6997_v32 = vld [vmem:[%s14415_s3 + $0x350] sm:$0xff] }
 0x534   :  { %v7131_v42 = vpop.eup %7130 }
 0x535   :  { %v2189_v30 = vadd.f32 1.0, %v7131_v42  ;;  %v6998_v42 = vld [vmem:[%s14415_s3 + $0x358] sm:$0xff] }
 0x537   :  { %7134 = vrcp.f32 %v2189_v30 }
 0x53d   :  { %v7133_v28 = vpop.eup %7132 }
 0x53e   :  { %2160 = vperm.xlu1 %7118, %v7133_v28  }
 0x541   :  { %v7135_v62 = vpop.eup %7134 }
 0x542   :  { %2598 = vperm.xlu1 %7118, %v6969_v57   ;;  %2194 = vperm.xlu0 %7117, %v7135_v62   ;;  %v7152_v62 = vld [vmem:[%s14413_s0] sm:$0xff] }
 0x546   :  { %2603 = vperm.xlu1 %7118, %v6970_v50   ;;  %2770 = vperm.xlu0 %7117, %v6945_v39   ;;  %v7153_v39 = vld [vmem:[%s14413_s0 + $0x8] sm:$0xff] }
 0x54a   :  { %2775 = vperm.xlu1 %7118, %v6946_v48   ;;  %2966 = vperm.xlu0 %7117, %v6951_v18  }
 0x54e   :  { %2971 = vperm.xlu1 %7118, %v6952_v59   ;;  %2608 = vperm.xlu0 %7117, %v6971_v26  }
 0x552   :  { %2613 = vperm.xlu1 %7118, %v6972_v43   ;;  %2780 = vperm.xlu0 %7117, %v6947_v58  }
 0x556   :  { %2785 = vperm.xlu1 %7118, %v6948_v25   ;;  %3162 = vperm.xlu0 %7117, %v6957_v49   ;;  %v7155_v25 = vld [vmem:[%s14413_s0 + $0x18] sm:$0xff] }
 0x55a   :  { %3167 = vperm.xlu1 %7118, %v6958_v3   ;;  %2976 = vperm.xlu0 %7117, %v6953_v63  }
 0x55e   :  { %2981 = vperm.xlu1 %7118, %v6954_v15   ;;  %3358 = vperm.xlu0 %7117, %v6963_v36  }
 0x562   :  { %3363 = vperm.xlu1 %7118, %v6964_v20   ;;  %2618 = vperm.xlu0 %7117, %v6973_v31  }
 0x566   :  { %2623 = vperm.xlu1 %7118, %v6974_v34   ;;  %2790 = vperm.xlu0 %7117, %v6949_v55  }
 0x56a   :  { %2795 = vperm.xlu1 %7118, %v6950_v41   ;;  %3172 = vperm.xlu0 %7117, %v6959_v4  }
 0x56e   :  { %3177 = vperm.xlu1 %7118, %v6960_v10   ;;  %3554 = vperm.xlu0 %7117, %v6975_v6  }
 0x572   :  { %3559 = vperm.xlu1 %7118, %v6976_v7   ;;  %2986 = vperm.xlu0 %7117, %v6955_v29  }
 0x576   :  { %2991 = vperm.xlu1 %7118, %v6956_v33   ;;  %3368 = vperm.xlu0 %7117, %v6965_v19   ;;  %v7122_v19 = vld [vmem:[%s14414_s2 + $0x18] sm:$0xff]  }
 0x57a   :  { %3373 = vperm.xlu1 %7118, %v6966_v11   ;;  %3750 = vperm.xlu0 %7117, %v6981_v0  }
 0x57e   :  { %3755 = vperm.xlu1 %7118, %v6982_v47   ;;  %3182 = vperm.xlu0 %7117, %v6961_v22  }
 0x582   :  { %3187 = vperm.xlu1 %7118, %v6962_v5   ;;  %3564 = vperm.xlu0 %7117, %v6977_v52   ;;  %v7123_v5 = vld [vmem:[%s14414_s2 + $0x20] sm:$0xff]   ;;  %v7124_v52 = vld [vmem:[%s14414_s2 + $0x28] sm:$0xff]  }
 0x586   :  { %3569 = vperm.xlu1 %7118, %v6978_v27   ;;  %3946 = vperm.xlu0 %7117, %v6987_v60  }
 0x58a   :  { %3951 = vperm.xlu1 %7118, %v6988_v12   ;;  %3378 = vperm.xlu0 %7117, %v6967_v61  }
 0x58e   :  { %3383 = vperm.xlu1 %7118, %v6968_v17   ;;  %3760 = vperm.xlu0 %7117, %v6983_v24  }
 0x592   :  { %3765 = vperm.xlu1 %7118, %v6984_v1   ;;  %4142 = vperm.xlu0 %7117, %v6993_v35  }
 0x596   :  { %4147 = vperm.xlu1 %7118, %v6994_v51   ;;  %3574 = vperm.xlu0 %7117, %v6979_v13  }
 0x59a   :  { %3579 = vperm.xlu1 %7118, %v6980_v21   ;;  %3956 = vperm.xlu0 %7117, %v6989_v54  }
 0x59e   :  { %3961 = vperm.xlu1 %7118, %v6990_v53   ;;  %3770 = vperm.xlu0 %7117, %v6985_v23  }
 0x5a2   :  { %3775 = vperm.xlu1 %7118, %v6986_v37   ;;  %4152 = vperm.xlu0 %7117, %v6995_v38  }
 0x5a6   :  { %4157 = vperm.xlu1 %7118, %v6996_v40   ;;  %3966 = vperm.xlu0 %7117, %v6991_v44  }
 0x5aa   :  { %3971 = vperm.xlu1 %7118, %v6992_v9   ;;  %4162 = vperm.xlu0 %7117, %v6997_v32  }
 0x5ae   :  { %4167 = vperm.xlu1 %7118, %v6998_v42  }
 0x5bd   :  { %v2161_v30 = vpop.permute.xlu1 %2160 }
 0x5be   :  { %v2197_v28 = vmul.f32 %v2161_v30, %v9888_v56  ;;  %v2198_v57 = vmul.f32 %v2161_v30, %v9890_v14  ;;  %v7154_v14 = vld [vmem:[%s14413_s0 + $0x10] sm:$0xff] }
 0x5c0   :  { %v2201_v50 = vadd.f32 %v7152_v62, %v2197_v28  ;;  %v2202_v48 = vadd.f32 %v7153_v39, %v2198_v57 }
 0x5c1   :  { %v2195_v18 = vpop.permute.xlu0 %2194  ;;  %v10150_v27 = vpop.permute.xlu1 %2598 }
 0x5c2   :  { %v2199_v59 = vmul.f32 %v2195_v18, %v9894_v8  ;;  %v2200_v26 = vmul.f32 %v2195_v18, %v9896_v16  ;;  %v10090_v43 = vpack.c.bf16 %v2202_v48, %v7153_v39  ;;  %v10092_v56 = vpack.c.bf16 %v2201_v50, %v7152_v62  ;;  %v2209_v8 = vld [vmem:[%s14422_s9] sm:$0xf] }
 0x5c4   :  { %15503 = vst [vmem:[#allocation84_spill] sm:$0xff] %v10090_v43  ;;  %15504 = vst [vmem:[#allocation68_spill] sm:$0xff] %v10092_v56  ;;  %v2203_v58 = vadd.f32 %v7154_v14, %v2199_v59  ;;  %v2204_v49 = vadd.f32 %v7155_v25, %v2200_v26  ;;  %2226 = vmatprep.subr.bf16.mxu0 %v10090_v43 }
 0x5c5   :  { %2227 = vmatpush1.bf16.msra.mxu0 %v10092_v56  ;;  %v10152_v60 = vpop.permute.xlu1 %2603  ;;  %v10154_v12 = vpop.permute.xlu0 %2770 }
 0x5c6   :  { %v10105_v16 = vpack.c.bf16 %v2204_v49, %v7155_v25  ;;  %v10107_v3 = vpack.c.bf16 %v2203_v58, %v7154_v14 }
 0x5c8   :  { %15505 = vst [vmem:[#allocation70_spill] sm:$0xff] %v10105_v16  ;;  %15506 = vst [vmem:[#allocation71_spill] sm:$0xff] %v10107_v3  ;;  %6926 = vmatmul.mubr.msk.bf16.vlgmr.msra.gmra.mrb[16].mxu0 %vm2222_vm12, %v2209_v8  ;;  %2267 = vmatprep.subr.bf16.mxu1 %v10105_v16 }
 0x5c9   :  { %2268 = vmatpush1.bf16.msra.mxu1 %v10107_v3  ;;  %2391 = vmatprep.mubr.bf16.mxu0 %v15501_v45  ;;  %v10156_v61 = vpop.permute.xlu1 %2775  ;;  %v10158_v17 = vpop.permute.xlu0 %2966 }
 0x5cc   :  { %6927 = vmatmul.mubr.msk.bf16.vlgmr.msra.gmra.mrb[16].mxu1 %vm2222_vm12, %v2209_v8 }
 0x5cd   :  { %2454 = vmatprep.mubr.bf16.mxu1 %v15501_v45  ;;  %v10160_v24 = vpop.permute.xlu1 %2971  ;;  %v10162_v1 = vpop.permute.xlu0 %2608 }
 0x5ce   :  { %15507 = vst [vmem:[#allocation85_spill] sm:$0xff] %v10162_v1 }
 0x5d1   :  { %v10164_v35 = vpop.permute.xlu1 %2613  ;;  %v10166_v51 = vpop.permute.xlu0 %2780 }
 0x5d2   :  { %15508 = vst [vmem:[#allocation69_spill] sm:$0xff] %v10164_v35  ;;  %15509 = vst [vmem:[#allocation86_spill] sm:$0xff] %v10166_v51 }
 0x5d5   :  { %v10168_v13 = vpop.permute.xlu1 %2785  ;;  %v10170_v21 = vpop.permute.xlu0 %3162 }
 0x5d6   :  { %15510 = vst [vmem:[#allocation87_spill] sm:$0xff] %v10168_v13 }
 0x5d9   :  { %v10172_v54 = vpop.permute.xlu1 %3167  ;;  %v10174_v53 = vpop.permute.xlu0 %2976 }
 0x5da   :  { %15511 = vst [vmem:[#allocation88_spill] sm:$0xff] %v10174_v53 }
 0x5dd   :  { %v10176_v23 = vpop.permute.xlu1 %2981  ;;  %v10178_v38 = vpop.permute.xlu0 %3358 }
 0x5de   :  { %15512 = vst [vmem:[#allocation14_spill] sm:$0xff] %v10176_v23  ;;  %15513 = vst [vmem:[#allocation15_spill] sm:$0xff] %v10178_v38 }
 0x5e1   :  { %v10182_v32 = vpop.permute.xlu1 %3363  ;;  %v10194_v18 = vpop.permute.xlu0 %2618 }
 0x5e2   :  { %15514 = vst [vmem:[#allocation89_spill] sm:$0xff] %v10182_v32  ;;  %15515 = vst [vmem:[#allocation73_spill] sm:$0xff] %v10194_v18 }
 0x5e5   :  { %v10204_v25 = vpop.permute.xlu1 %2623 }
 0x5e6   :  { %15516 = vst [vmem:[#allocation75_spill] sm:$0xff] %v10204_v25 }
 0x69b   :  { %v2260_v63 = vpop.f32.mrb[16].mxu0 }
 0x69c   :  { %v2308_v15 = vmax.f32 %v2260_v63, 0.0  ;;  %v2262_v36 = vpop.f32.mrb[17].mxu0 }
 0x69d   :  { %v2309_v20 = vmax.f32 %v2262_v36, 0.0  ;;  %v2264_v31 = vpop.f32.mrb[18].mxu0 }
 0x69e   :  { %v2319_v34 = vpack.c.bf16 %v2308_v15, %v2308_v15  ;;  %6832 = vst [vmem:[%s14423_s12] sm:$0xff] %v2308_v15  ;;  %v2265_v55 = vpop.f32.mrb[19].mxu0 }
 0x69f   :  { %v2320_v41 = vpack.c.bf16 %v2309_v20, %v2309_v20  ;;  %6833 = vst [vmem:[%s14423_s12 + $0x8] sm:$0xff] %v2309_v20  ;;  %v2301_v4 = vpop.f32.mrb[16].mxu1  ;;  %v10220_v20 = vpop.permute.xlu0 %2790 }
 0x6a0   :  { %v2310_v10 = vmax.f32 %v2301_v4, 0.0  ;;  %v2303_v6 = vpop.f32.mrb[17].mxu1  ;;  %v2348_v7 = vsel %vm88_vm0, %v2319_v34, 0  ;;  %15517 = vst [vmem:[#allocation24_spill] sm:$0xff] %v10220_v20  ;;  %v10228_v55 = vpop.permute.xlu1 %2795 }
 0x6a1   :  { %v2311_v29 = vmax.f32 %v2303_v6, 0.0  ;;  %v2305_v33 = vpop.f32.mrb[18].mxu1  ;;  %6937 = vmatprep.subr.msk.bf16.mxu0 %vm88_vm0, %v2320_v41  ;;  %15518 = vst [vmem:[#allocation98_spill] sm:$0xff] %v10228_v55 }
 0x6a2   :  { %v2321_v11 = vpack.c.bf16 %v2310_v10, %v2310_v10  ;;  %6834 = vst [vmem:[%s14423_s12 + $0x10] sm:$0xff] %v2310_v10  ;;  %v2306_v0 = vpop.f32.mrb[19].mxu1  ;;  %2360 = vmatpush1.bf16.msra.mxu0 %v2348_v7 }
 0x6a3   :  { %v2322_v47 = vpack.c.bf16 %v2311_v29, %v2311_v29  ;;  %6835 = vst [vmem:[%s14423_s12 + $0x18] sm:$0xff] %v2311_v29  ;;  %v10242_v7 = vpop.permute.xlu0 %3172 }
 0x6a4   :  { %v2354_v22 = vsel %vm88_vm0, %v2321_v11, 0  ;;  %15522 = vst [vmem:[#allocation112_spill] sm:$0xff] %v10242_v7 }
 0x6a5   :  { %6938 = vmatmul.mubr.msk.bf16.vlgmr.msra.gmra.mrb[20].mxu0 %vm78_vm1, %v7122_v19  ;;  %6941 = vmatprep.subr.msk.bf16.mxu1 %vm88_vm0, %v2322_v47 }
 0x6a6   :  { %2423 = vmatpush1.bf16.msra.mxu1 %v2354_v22  ;;  %2401 = vmatprep.mubr.bf16.mxu0 %v15501_v45 }
 0x6a7   :  { %v10262_v22 = vpop.permute.xlu0 %3554 }
 0x6a8   :  { %15529 = vst [vmem:[#allocation91_spill] sm:$0xff] %v10262_v22  ;;  %v7003_v22 = vld [vmem:[%s14416_s1 + $0x14] sm:$0xf] }
 0x6a9   :  { %6942 = vmatmul.mubr.msk.bf16.vlgmr.msra.gmra.mrb[20].mxu1 %vm78_vm1, %v7122_v19  ;;  %v10250_v19 = vpop.permute.xlu1 %3177 }
 0x6aa   :  { %2464 = vmatprep.mubr.bf16.mxu1 %v15501_v45  ;;  %15525 = vst [vmem:[#allocation111_spill] sm:$0xff] %v10250_v19 }
 0x6ad   :  { %6939 = vmatmul.mubr.msk.bf16.gmra.mrb[24].mxu0 %vm78_vm1, %v7123_v5 }
 0x6ae   :  { %2411 = vmatprep.mubr.bf16.mxu0 %v15501_v45 }
 0x6b1   :  { %6943 = vmatmul.mubr.msk.bf16.gmra.mrb[24].mxu1 %vm78_vm1, %v7123_v5  ;;  %v10266_v5 = vpop.permute.xlu1 %3559 }
 0x6b2   :  { %2474 = vmatprep.mubr.bf16.mxu1 %v15501_v45  ;;  %15530 = vst [vmem:[#allocation115_spill] sm:$0xff] %v10266_v5 }
 0x6b5   :  { %6940 = vmatmul.mubr.msk.bf16.gmra.mrb[28].mxu0 %vm78_vm1, %v7124_v52 }
 0x6b6   :  { %4315 = vmatprep.mubr.bf16.mxu0 %v15501_v45 }
 0x6b9   :  { %6944 = vmatmul.mubr.msk.bf16.gmra.mrb[28].mxu1 %vm78_vm1, %v7124_v52  ;;  %v10272_v52 = vpop.permute.xlu0 %2986 }
 0x6ba   :  { %4356 = vmatprep.mubr.bf16.mxu1 %v15501_v45  ;;  %15531 = vst [vmem:[#allocation12_spill] sm:$0xff] %v10272_v52 }
 0x778   :  { %v2393_v37 = vpop.f32.mrb[20].mxu0 }
 0x779   :  { %v2485_v40 = vmax.f32 %v2393_v37, 0.0  ;;  %v10180_v44 = vpop.f32.mrb[21].mxu0  ;;  %v10276_v37 = vpop.permute.xlu1 %2991 }
 0x77a   :  { %v2397_v9 = vpop.f32.mrb[22].mxu0  ;;  %15532 = vst [vmem:[#allocation116_spill] sm:$0xff] %v10276_v37  ;;  %v2486_v56 = vmax.f32 %v10180_v44, 0.0 }
 0x77b   :  { %v10184_v42 = vmin.f32 %v2485_v40, 6.0  ;;  %v2489_v30 = vmax.f32 %v2397_v9, 0.0  ;;  %v10186_v28 = vpop.f32.mrb[23].mxu0  ;;  %v10282_v40 = vpop.permute.xlu0 %3368 }
 0x77c   :  { %v2456_v57 = vpop.f32.mrb[20].mxu1  ;;  %15533 = vst [vmem:[#allocation117_spill] sm:$0xff] %v10282_v40  ;;  %v2490_v43 = vmax.f32 %v10186_v28, 0.0 }
 0x77d   :  { %v10188_v62 = vmin.f32 %v2489_v30, 6.0  ;;  %v2487_v50 = vmax.f32 %v2456_v57, 0.0  ;;  %v10190_v39 = vpop.f32.mrb[21].mxu1  ;;  %2650 = vrot.lane.b32.xlu0 %v10184_v42, %s7165_s19  ;;  %v10286_v9 = vpop.permute.xlu1 %3373 }
 0x77e   :  { %v2460_v48 = vpop.f32.mrb[22].mxu1  ;;  %15534 = vst [vmem:[#allocation26_spill] sm:$0xff] %v10286_v9  ;;  %v2488_v37 = vmax.f32 %v10190_v39, 0.0  ;;  %v10343_v44 = vmin.f32 %v2490_v43, 6.0 }
 0x77f   :  { %v10196_v59 = vmin.f32 %v2487_v50, 6.0  ;;  %v2491_v26 = vmax.f32 %v2460_v48, 0.0  ;;  %v10198_v14 = vpop.f32.mrb[23].mxu1  ;;  %2652 = vrot.lane.b32.xlu1 %v10188_v62, %s7165_s19  ;;  %v10292_v30 = vpop.permute.xlu0 %3750 }
 0x780   :  { %v10202_v58 = vpop.f32.mrb[24].mxu0  ;;  %15535 = vst [vmem:[#allocation27_spill] sm:$0xff] %v10292_v30  ;;  %v2492_v55 = vmax.f32 %v10198_v14, 0.0  ;;  %v10348_v28 = vmin.f32 %v2488_v37, 6.0 }
 0x781   :  { %v10206_v49 = vmin.f32 %v2491_v26, 6.0  ;;  %2674 = vrot.lane.b32.xlu0 %v10196_v59, %s7165_s19  ;;  %v10210_v8 = vpop.f32.mrb[25].mxu0  ;;  %v10296_v57 = vpop.permute.xlu1 %3755 }
 0x782   :  { %v10212_v63 = vpop.f32.mrb[26].mxu0  ;;  %15536 = vst [vmem:[#allocation52_spill] sm:$0xff] %v10296_v57  ;;  %v10354_v39 = vmin.f32 %v2492_v55, 6.0  ;;  %v15583_v57 = vld [vmem:[#allocation126_spill] sm:$0xff] }
 0x783   :  { %2676 = vrot.lane.b32.xlu1 %v10206_v49, %s7165_s19  ;;  %v10216_v15 = vpop.f32.mrb[27].mxu0  ;;  %v10302_v50 = vpop.permute.xlu0 %3182 }
 0x784   :  { %v10218_v36 = vpop.f32.mrb[24].mxu1  ;;  %15537 = vst [vmem:[#allocation51_spill] sm:$0xff] %v10302_v50  ;;  %v10336_v50 = vmin.f32 %v2486_v56, 6.0 }
 0x785   :  { %v10222_v31 = vpop.f32.mrb[25].mxu1  ;;  %2846 = vrot.lane.b32.xlu0 %v10184_v42, %s7166_s20  ;;  %v10306_v48 = vpop.permute.xlu1 %3187 }
 0x786   :  { %v10226_v34 = vpop.f32.mrb[26].mxu1  ;;  %15538 = vst [vmem:[#allocation42_spill] sm:$0xff] %v10306_v48 }
 0x787   :  { %v10230_v41 = vpop.f32.mrb[27].mxu1  ;;  %2848 = vrot.lane.b32.xlu1 %v10188_v62, %s7166_s20  ;;  %v10312_v26 = vpop.permute.xlu0 %3564  ;;  %v2499_v40 = vmax.f32 %v10226_v34, 0.0 }
 0x788   :  { %v10234_v4 = vpop.f32.mrb[28].mxu0  ;;  %15540 = vst [vmem:[#allocation38_spill] sm:$0xff] %v10312_v26  ;;  %v2495_v26 = vmax.f32 %v10218_v36, 0.0 }
 0x789   :  { %15519 = vst [vmem:[#allocation90_spill] sm:$0xff] %v10234_v4  ;;  %2870 = vrot.lane.b32.xlu0 %v10196_v59, %s7166_s20  ;;  %v10238_v10 = vpop.f32.mrb[29].mxu0  ;;  %v10316_v3 = vpop.permute.xlu1 %3569  ;;  %v10478_v36 = vmin.f32 %v2499_v40, 6.0  ;;  %v2494_v4 = vmax.f32 %v10210_v8, 0.0  ;;  %v2722_v8 = vld [vmem:[%s14416_s1] sm:$0xf] }
 0x78a   :  { %15520 = vst [vmem:[#allocation92_spill] sm:$0xff] %v10238_v10  ;;  %v10240_v6 = vpop.f32.mrb[30].mxu0  ;;  %15541 = vst [vmem:[#allocation48_spill] sm:$0xff] %v10316_v3  ;;  %v10621_v30 = vrot.slane %v2722_v8, %v15583_v57 }
 0x78b   :  { %15521 = vst [vmem:[#allocation25_spill] sm:$0xff] %v10240_v6  ;;  %2872 = vrot.lane.b32.xlu1 %v10206_v49, %s7166_s20  ;;  %v10246_v29 = vpop.f32.mrb[31].mxu0  ;;  %v10322_v45 = vpop.permute.xlu0 %3946 }
 0x78c   :  { %15523 = vst [vmem:[#allocation110_spill] sm:$0xff] %v10246_v29  ;;  %v10248_v33 = vpop.f32.mrb[28].mxu1  ;;  %15542 = vst [vmem:[#allocation53_spill] sm:$0xff] %v10322_v45  ;;  %v2500_v45 = vmax.f32 %v10230_v41, 0.0  ;;  %v10581_v41 = vmul.f32 %v10152_v60, %v10343_v44 }
 0x78d   :  { %15524 = vst [vmem:[#allocation113_spill] sm:$0xff] %v10248_v33  ;;  %v10252_v11 = vpop.f32.mrb[29].mxu1  ;;  %3042 = vrot.lane.b32.xlu0 %v10184_v42, %s7167_s21  ;;  %v10326_v16 = vpop.permute.xlu1 %3951  ;;  %15584 = vst [vmem:[#allocation162_spill] sm:$0xff] %v10621_v30 }
 0x78e   :  { %15526 = vst [vmem:[#allocation114_spill] sm:$0xff] %v10252_v11  ;;  %v10256_v0 = vpop.f32.mrb[30].mxu1  ;;  %15544 = vst [vmem:[#allocation41_spill] sm:$0xff] %v10326_v16  ;;  %v2496_v16 = vmax.f32 %v10222_v31, 0.0  ;;  %v10577_v31 = vmul.f32 %v10150_v27, %v10196_v59 }
 0x78f   :  { %15527 = vst [vmem:[#allocation93_spill] sm:$0xff] %v10256_v0  ;;  %v10258_v47 = vpop.f32.mrb[31].mxu1  ;;  %3044 = vrot.lane.b32.xlu1 %v10188_v62, %s7167_s21  ;;  %v10334_v48 = vpop.permute.xlu0 %3378 }
 0x790   :  { %15528 = vst [vmem:[#allocation99_spill] sm:$0xff] %v10258_v47  ;;  %15545 = vst [vmem:[#allocation49_spill] sm:$0xff] %v10334_v48 }
 0x791   :  { %3066 = vrot.lane.b32.xlu0 %v10196_v59, %s7167_s21  ;;  %v10341_v52 = vpop.permute.xlu1 %3383 }
 0x792   :  { %15546 = vst [vmem:[#allocation39_spill] sm:$0xff] %v10341_v52 }
 0x793   :  { %3068 = vrot.lane.b32.xlu1 %v10206_v49, %s7167_s21  ;;  %v10352_v56 = vpop.permute.xlu0 %3760 }
 0x794   :  { %15547 = vst [vmem:[#allocation18_spill] sm:$0xff] %v10352_v56 }
 0x795   :  { %3238 = vrot.lane.b32.xlu0 %v10184_v42, %s7168_s22  ;;  %v10358_v52 = vpop.permute.xlu1 %3765 }
 0x796   :  { %15548 = vst [vmem:[#allocation55_spill] sm:$0xff] %v10358_v52  ;;  %v2497_v52 = vmax.f32 %v10212_v63, 0.0  ;;  %v10472_v63 = vmin.f32 %v2495_v26, 6.0 }
 0x797   :  { %3240 = vrot.lane.b32.xlu1 %v10188_v62, %s7168_s22  ;;  %v10364_v43 = vpop.permute.xlu0 %4142 }
 0x798   :  { %15549 = vst [vmem:[#allocation33_spill] sm:$0xff] %v10364_v43 }
 0x799   :  { %3262 = vrot.lane.b32.xlu0 %v10196_v59, %s7168_s22  ;;  %v10368_v14 = vpop.permute.xlu1 %4147 }
 0x79a   :  { %15550 = vst [vmem:[#allocation35_spill] sm:$0xff] %v10368_v14  ;;  %v2498_v14 = vmax.f32 %v10216_v15, 0.0  ;;  %v10569_v15 = vmul.f32 %v10150_v27, %v10336_v50 }
 0x79b   :  { %3264 = vrot.lane.b32.xlu1 %v10206_v49, %s7168_s22  ;;  %v10374_v55 = vpop.permute.xlu0 %3574 }
 0x79c   :  { %15551 = vst [vmem:[#allocation120_spill] sm:$0xff] %v10374_v55 }
 0x79d   :  { %3434 = vrot.lane.b32.xlu0 %v10184_v42, %s7169_s23  ;;  %v10378_v37 = vpop.permute.xlu1 %3579 }
 0x79e   :  { %15552 = vst [vmem:[#allocation121_spill] sm:$0xff] %v10378_v37 }
 0x79f   :  { %3436 = vrot.lane.b32.xlu1 %v10188_v62, %s7169_s23  ;;  %v10384_v48 = vpop.permute.xlu0 %3956 }
 0x7a0   :  { %15553 = vst [vmem:[#allocation100_spill] sm:$0xff] %v10384_v48 }
 0x7a1   :  { %3458 = vrot.lane.b32.xlu0 %v10196_v59, %s7169_s23  ;;  %v10388_v20 = vpop.permute.xlu1 %3961 }
 0x7a2   :  { %15554 = vst [vmem:[#allocation13_spill] sm:$0xff] %v10388_v20 }
 0x7a3   :  { %3460 = vrot.lane.b32.xlu1 %v10206_v49, %s7169_s23  ;;  %v10394_v37 = vpop.permute.xlu0 %3770 }
 0x7a4   :  { %15555 = vst [vmem:[#allocation101_spill] sm:$0xff] %v10394_v37 }
 0x7a5   :  { %3630 = vrot.lane.b32.xlu0 %v10184_v42, %s7170_s28  ;;  %v10398_v55 = vpop.permute.xlu1 %3775 }
 0x7a6   :  { %15556 = vst [vmem:[#allocation96_spill] sm:$0xff] %v10398_v55 }
 0x7a7   :  { %3632 = vrot.lane.b32.xlu1 %v10188_v62, %s7170_s28  ;;  %v10404_v25 = vpop.permute.xlu0 %4152 }
 0x7a8   :  { %15557 = vst [vmem:[#allocation102_spill] sm:$0xff] %v10404_v25 }
 0x7a9   :  { %3654 = vrot.lane.b32.xlu0 %v10196_v59, %s7170_s28  ;;  %v10408_v18 = vpop.permute.xlu1 %4157 }
 0x7aa   :  { %15558 = vst [vmem:[#allocation94_spill] sm:$0xff] %v10408_v18 }
 0x7ab   :  { %3656 = vrot.lane.b32.xlu1 %v10206_v49, %s7170_s28  ;;  %v10414_v55 = vpop.permute.xlu0 %3966 }
 0x7ac   :  { %15559 = vst [vmem:[#allocation149_spill] sm:$0xff] %v10414_v55 }
 0x7ad   :  { %3826 = vrot.lane.b32.xlu0 %v10184_v42, %s15539_s30  ;;  %v10418_v37 = vpop.permute.xlu1 %3971 }
 0x7ae   :  { %15560 = vst [vmem:[#allocation150_spill] sm:$0xff] %v10418_v37 }
 0x7af   :  { %3828 = vrot.lane.b32.xlu1 %v10188_v62, %s15539_s30  ;;  %v10424_v18 = vpop.permute.xlu0 %4162 }
 0x7b0   :  { %15561 = vst [vmem:[#allocation103_spill] sm:$0xff] %v10424_v18  ;;  %v2493_v18 = vmax.f32 %v10202_v58, 0.0  ;;  %v10465_v58 = vmin.f32 %v2497_v52, 6.0 }
 0x7b1   :  { %3850 = vrot.lane.b32.xlu0 %v10196_v59, %s15539_s30  ;;  %v10428_v25 = vpop.permute.xlu1 %4167 }
 0x7b2   :  { %15562 = vst [vmem:[#allocation95_spill] sm:$0xff] %v10428_v25  ;;  %v10458_v3 = vmin.f32 %v2493_v18, 6.0 }
 0x7b3   :  { %3852 = vrot.lane.b32.xlu1 %v10206_v49, %s15539_s30 }
 0x7b5   :  { %4022 = vrot.lane.b32.xlu0 %v10184_v42, %s15543_s27 }
 0x7b7   :  { %4024 = vrot.lane.b32.xlu1 %v10188_v62, %s15543_s27 }
 0x7b9   :  { %4046 = vrot.lane.b32.xlu0 %v10196_v59, %s15543_s27  ;;  %v10596_v59 = vmin.f32 %v2498_v14, 6.0  ;;  %v15581_v14 = vld [vmem:[#allocation125_spill] sm:$0xff] }
 0x7bb   :  { %4048 = vrot.lane.b32.xlu1 %v10206_v49, %s15543_s27 }
 0x7bd   :  { %2662 = vrot.lane.b32.xlu0 %v10336_v50, %s7165_s19 }
 0x7bf   :  { %2664 = vrot.lane.b32.xlu1 %v10343_v44, %s7165_s19 }
 0x7c1   :  { %2686 = vrot.lane.b32.xlu0 %v10348_v28, %s7165_s19 }
 0x7c3   :  { %2688 = vrot.lane.b32.xlu1 %v10354_v39, %s7165_s19 }
 0x7c5   :  { %2858 = vrot.lane.b32.xlu0 %v10336_v50, %s7166_s20 }
 0x7c7   :  { %2860 = vrot.lane.b32.xlu1 %v10343_v44, %s7166_s20 }
 0x7c9   :  { %2882 = vrot.lane.b32.xlu0 %v10348_v28, %s7166_s20 }
 0x7cb   :  { %2884 = vrot.lane.b32.xlu1 %v10354_v39, %s7166_s20 }
 0x7cd   :  { %3054 = vrot.lane.b32.xlu0 %v10336_v50, %s7167_s21 }
 0x7cf   :  { %3056 = vrot.lane.b32.xlu1 %v10343_v44, %s7167_s21 }
 0x7d1   :  { %3078 = vrot.lane.b32.xlu0 %v10348_v28, %s7167_s21 }
 0x7d3   :  { %3080 = vrot.lane.b32.xlu1 %v10354_v39, %s7167_s21 }
 0x7d5   :  { %3250 = vrot.lane.b32.xlu0 %v10336_v50, %s7168_s22 }
 0x7d7   :  { %3252 = vrot.lane.b32.xlu1 %v10343_v44, %s7168_s22 }
 0x7d9   :  { %3274 = vrot.lane.b32.xlu0 %v10348_v28, %s7168_s22 }
 0x7db   :  { %3276 = vrot.lane.b32.xlu1 %v10354_v39, %s7168_s22 }
 0x7dd   :  { %3446 = vrot.lane.b32.xlu0 %v10336_v50, %s7169_s23 }
 0x7df   :  { %3448 = vrot.lane.b32.xlu1 %v10343_v44, %s7169_s23 }
 0x7e1   :  { %3470 = vrot.lane.b32.xlu0 %v10348_v28, %s7169_s23 }
 0x7e3   :  { %3472 = vrot.lane.b32.xlu1 %v10354_v39, %s7169_s23 }
 0x7e5   :  { %3642 = vrot.lane.b32.xlu0 %v10336_v50, %s7170_s28 }
 0x7e7   :  { %3644 = vrot.lane.b32.xlu1 %v10343_v44, %s7170_s28 }
 0x7e9   :  { %3666 = vrot.lane.b32.xlu0 %v10348_v28, %s7170_s28 }
 0x7eb   :  { %3668 = vrot.lane.b32.xlu1 %v10354_v39, %s7170_s28 }
 0x7ed   :  { %3838 = vrot.lane.b32.xlu0 %v10336_v50, %s15539_s30 }
 0x7ef   :  { %v10432_v55 = vpop.permute.xlu0 %2650  ;;  %3840 = vrot.lane.b32.xlu1 %v10343_v44, %s15539_s30 }
 0x7f1   :  { %3862 = vrot.lane.b32.xlu0 %v10348_v28, %s15539_s30  ;;  %v10438_v37 = vpop.permute.xlu1 %2652 }
 0x7f3   :  { %v10440_v20 = vpop.permute.xlu0 %2674  ;;  %3864 = vrot.lane.b32.xlu1 %v10354_v39, %s15539_s30 }
 0x7f5   :  { %4034 = vrot.lane.b32.xlu0 %v10336_v50, %s15543_s27  ;;  %v10446_v25 = vpop.permute.xlu1 %2676  ;;  %v10589_v50 = vmul.f32 %v10152_v60, %v10188_v62  ;;  %v10608_v62 = vmul.f32 %v10152_v60, %v10354_v39 }
 0x7f7   :  { %v10449_v48 = vpop.permute.xlu0 %2846  ;;  %4036 = vrot.lane.b32.xlu1 %v10343_v44, %s15543_s27  ;;  %v10613_v44 = vmin.f32 %v2496_v16, 6.0  ;;  %v10631_v16 = vrot.slane %v2722_v8, %v15502_v2 }
 0x7f9   :  { %4058 = vrot.lane.b32.xlu0 %v10348_v28, %s15543_s27  ;;  %v10456_v56 = vpop.permute.xlu1 %2848 }
 0x7fb   :  { %v10461_v9 = vpop.permute.xlu0 %2870  ;;  %4060 = vrot.lane.b32.xlu1 %v10354_v39, %s15543_s27 }
 0x7fd   :  { %v10468_v19 = vpop.permute.xlu1 %2872  ;;  %2654 = vrot.lane.b32.xlu0 %v10458_v3, %s7165_s19 }
 0x7ff   :  { %v10474_v18 = vpop.permute.xlu0 %3042  ;;  %2656 = vrot.lane.b32.xlu1 %v10465_v58, %s7165_s19 }
 0x801   :  { %v10480_v7 = vpop.permute.xlu1 %3044  ;;  %2678 = vrot.lane.b32.xlu0 %v10472_v63, %s7165_s19 }
 0x803   :  { %v10484_v34 = vpop.permute.xlu0 %3066  ;;  %2680 = vrot.lane.b32.xlu1 %v10478_v36, %s7165_s19 }
 0x805   :  { %v10488_v52 = vpop.permute.xlu1 %3068  ;;  %2850 = vrot.lane.b32.xlu0 %v10458_v3, %s7166_s20 }
 0x807   :  { %v10492_v26 = vpop.permute.xlu0 %3238  ;;  %2852 = vrot.lane.b32.xlu1 %v10465_v58, %s7166_s20 }
 0x808   :  { %15563 = vst [vmem:[#allocation151_spill] sm:$0xff] %v10492_v26 }
 0x809   :  { %v10496_v40 = vpop.permute.xlu1 %3240  ;;  %2874 = vrot.lane.b32.xlu0 %v10472_v63, %s7166_s20 }
 0x80a   :  { %15564 = vst [vmem:[#allocation138_spill] sm:$0xff] %v10496_v40 }
 0x80b   :  { %v10500_v23 = vpop.permute.xlu0 %3262  ;;  %2876 = vrot.lane.b32.xlu1 %v10478_v36, %s7166_s20 }
 0x80c   :  { %15565 = vst [vmem:[#allocation137_spill] sm:$0xff] %v10500_v23 }
 0x80d   :  { %v10504_v53 = vpop.permute.xlu1 %3264  ;;  %3046 = vrot.lane.b32.xlu0 %v10458_v3, %s7167_s21 }
 0x80e   :  { %15566 = vst [vmem:[#allocation146_spill] sm:$0xff] %v10504_v53 }
 0x80f   :  { %v10508_v13 = vpop.permute.xlu0 %3434  ;;  %3048 = vrot.lane.b32.xlu1 %v10465_v58, %s7167_s21 }
 0x810   :  { %15567 = vst [vmem:[#allocation97_spill] sm:$0xff] %v10508_v13 }
 0x811   :  { %v10512_v51 = vpop.permute.xlu1 %3436  ;;  %3070 = vrot.lane.b32.xlu0 %v10472_v63, %s7167_s21 }
 0x812   :  { %15568 = vst [vmem:[#allocation144_spill] sm:$0xff] %v10512_v51 }
 0x813   :  { %v10516_v47 = vpop.permute.xlu0 %3458  ;;  %3072 = vrot.lane.b32.xlu1 %v10478_v36, %s7167_s21 }
 0x814   :  { %15569 = vst [vmem:[#allocation104_spill] sm:$0xff] %v10516_v47 }
 0x815   :  { %v10520_v11 = vpop.permute.xlu1 %3460  ;;  %3242 = vrot.lane.b32.xlu0 %v10458_v3, %s7168_s22 }
 0x816   :  { %15570 = vst [vmem:[#allocation19_spill] sm:$0xff] %v10520_v11 }
 0x817   :  { %v10524_v29 = vpop.permute.xlu0 %3630  ;;  %3244 = vrot.lane.b32.xlu1 %v10465_v58, %s7168_s22 }
 0x818   :  { %15571 = vst [vmem:[#allocation105_spill] sm:$0xff] %v10524_v29  ;;  %v7002_v29 = vld [vmem:[%s14416_s1 + $0x10] sm:$0xf] }
 0x819   :  { %v10528_v35 = vpop.permute.xlu1 %3632  ;;  %3266 = vrot.lane.b32.xlu0 %v10472_v63, %s7168_s22  ;;  %v10683_v38 = vrot.slane %v7002_v29, %v15502_v2  ;;  %v10686_v40 = vrot.slane %v7002_v29, %v15581_v14 }
 0x81a   :  { %15572 = vst [vmem:[#allocation106_spill] sm:$0xff] %v10528_v35 }
 0x81b   :  { %v10532_v1 = vpop.permute.xlu0 %3654  ;;  %3268 = vrot.lane.b32.xlu1 %v10478_v36, %s7168_s22  ;;  %15593 = vst [vmem:[#allocation154_spill] sm:$0xff] %v10683_v38  ;;  %15594 = vst [vmem:[#allocation156_spill] sm:$0xff] %v10686_v40  ;;  %v10703_v38 = vrot.slane %v7003_v22, %v15581_v14 }
 0x81c   :  { %15573 = vst [vmem:[#allocation74_spill] sm:$0xff] %v10532_v1 }
 0x81d   :  { %v10536_v10 = vpop.permute.xlu1 %3656  ;;  %3438 = vrot.lane.b32.xlu0 %v10458_v3, %s7169_s23  ;;  %15598 = vst [vmem:[#allocation36_spill] sm:$0xff] %v10703_v38 }
 0x81e   :  { %15574 = vst [vmem:[#allocation72_spill] sm:$0xff] %v10536_v10 }
 0x81f   :  { %v10540_v0 = vpop.permute.xlu0 %3826  ;;  %3440 = vrot.lane.b32.xlu1 %v10465_v58, %s7169_s23 }
 0x820   :  { %15575 = vst [vmem:[#allocation21_spill] sm:$0xff] %v10540_v0  ;;  %v10594_v0 = vmin.f32 %v2494_v4, 6.0  ;;  %v7000_v4 = vld [vmem:[%s14416_s1 + $0x8] sm:$0xf] }
 0x821   :  { %v10544_v33 = vpop.permute.xlu1 %3828  ;;  %3462 = vrot.lane.b32.xlu0 %v10472_v63, %s7169_s23  ;;  %v10652_v5 = vrot.slane %v7000_v4, %v15581_v14  ;;  %v10665_v11 = vrot.slane %v7000_v4, %v15502_v2 }
 0x822   :  { %15576 = vst [vmem:[#allocation153_spill] sm:$0xff] %v10544_v33 }
 0x823   :  { %v10548_v6 = vpop.permute.xlu0 %3850  ;;  %3464 = vrot.lane.b32.xlu1 %v10478_v36, %s7169_s23 }
 0x824   :  { %15577 = vst [vmem:[#allocation107_spill] sm:$0xff] %v10548_v6 }
 0x825   :  { %v10554_v43 = vpop.permute.xlu1 %3852  ;;  %3634 = vrot.lane.b32.xlu0 %v10458_v3, %s7170_s28 }
 0x826   :  { %15578 = vst [vmem:[#allocation139_spill] sm:$0xff] %v10554_v43  ;;  %v10573_v43 = vmul.f32 %v10150_v27, %v10184_v42  ;;  %v6999_v42 = vld [vmem:[%s14416_s1 + $0x4] sm:$0xf] }
 0x827   :  { %v10560_v33 = vpop.permute.xlu0 %4022  ;;  %3636 = vrot.lane.b32.xlu1 %v10465_v58, %s7170_s28  ;;  %v10637_v35 = vrot.slane %v6999_v42, %v15581_v14  ;;  %v10640_v10 = vrot.slane %v6999_v42, %v15583_v57 }
 0x828   :  { %15579 = vst [vmem:[#allocation140_spill] sm:$0xff] %v10560_v33  ;;  %v10585_v33 = vmul.f32 %v10150_v27, %v10348_v28  ;;  %v10604_v27 = vmul.f32 %v10152_v60, %v10206_v49  ;;  %v10615_v28 = vmin.f32 %v2500_v45, 6.0  ;;  %v7001_v49 = vld [vmem:[%s14416_s1 + $0xc] sm:$0xf]  ;;  %v15586_v45 = vld [vmem:[#allocation135_spill] sm:$0xff] }
 0x829   :  { %v10598_v6 = vpop.permute.xlu1 %4024  ;;  %3658 = vrot.lane.b32.xlu0 %v10472_v63, %s7170_s28  ;;  %v10634_v39 = vrot.slane %v2722_v8, %v15586_v45  ;;  %v10649_v1 = vrot.slane %v6999_v42, %v15586_v45  ;;  %v10671_v13 = vrot.slane %v7001_v49, %v15581_v14  ;;  %v10674_v47 = vrot.slane %v7001_v49, %v15583_v57 }
 0x82a   :  { %15580 = vst [vmem:[#allocation145_spill] sm:$0xff] %v10598_v6  ;;  %v10618_v6 = vrot.slane %v2722_v8, %v15581_v14  ;;  %v10655_v8 = vrot.slane %v7000_v4, %v15583_v57  ;;  %v10677_v32 = vrot.slane %v7001_v49, %v15502_v2 }
 0x82b   :  { %v10626_v60 = vpop.permute.xlu0 %4046  ;;  %3660 = vrot.lane.b32.xlu1 %v10478_v36, %s7170_s28  ;;  %15589 = vst [vmem:[#allocation141_spill] sm:$0xff] %v10671_v13  ;;  %15590 = vst [vmem:[#allocation124_spill] sm:$0xff] %v10674_v47  ;;  %v10694_v47 = vrot.slane %v7002_v29, %v15583_v57  ;;  %v10712_v13 = vrot.slane %v7003_v22, %v15583_v57 }
 0x82c   :  { %15582 = vst [vmem:[#allocation147_spill] sm:$0xff] %v10618_v6  ;;  %15585 = vst [vmem:[#allocation164_spill] sm:$0xff] %v10626_v60  ;;  %v10646_v60 = vrot.slane %v6999_v42, %v15502_v2  ;;  %v10668_v42 = vrot.slane %v7000_v4, %v15586_v45  ;;  %v7004_v4 = vld [vmem:[%s14416_s1 + $0x18] sm:$0xf] }
 0x82d   :  { %v10660_v51 = vpop.permute.xlu1 %4048  ;;  %3830 = vrot.lane.b32.xlu0 %v10458_v3, %s15539_s30  ;;  %15591 = vst [vmem:[#allocation148_spill] sm:$0xff] %v10677_v32  ;;  %15595 = vst [vmem:[#allocation155_spill] sm:$0xff] %v10694_v47  ;;  %v10722_v38 = vrot.slane %v7004_v4, %v15502_v2  ;;  %v10725_v26 = vrot.slane %v7004_v4, %v15581_v14 }
 0x82e   :  { %15587 = vst [vmem:[#allocation133_spill] sm:$0xff] %v10660_v51  ;;  %15588 = vst [vmem:[#allocation122_spill] sm:$0xff] %v10668_v42  ;;  %v10680_v51 = vrot.slane %v7001_v49, %v15586_v45  ;;  %v10697_v49 = vrot.slane %v7002_v29, %v15586_v45  ;;  %v10715_v29 = vrot.slane %v7003_v22, %v15586_v45 }
 0x82f   :  { %v2663_v53 = vpop.permute.xlu0 %2662  ;;  %3832 = vrot.lane.b32.xlu1 %v10465_v58, %s15539_s30  ;;  %15599 = vst [vmem:[#allocation62_spill] sm:$0xff] %v10712_v13  ;;  %15601 = vst [vmem:[#allocation170_spill] sm:$0xff] %v10722_v38  ;;  %v10740_v38 = vrot.slane %v7004_v4, %v15586_v45 }
 0x830   :  { %15592 = vst [vmem:[#allocation152_spill] sm:$0xff] %v10680_v51  ;;  %15596 = vst [vmem:[#allocation160_spill] sm:$0xff] %v10697_v49  ;;  %v10700_v51 = vrot.slane %v7003_v22, %v15502_v2  ;;  %v2704_v40 = vsel %vm441_vm2, %v2663_v53, %v10440_v20  ;;  %v2710_v32 = vsel %vm441_vm2, %v10432_v55, %v2663_v53  ;;  %v7005_v53 = vld [vmem:[%s14416_s1 + $0x1c] sm:$0xf] }
 0x831   :  { %15600 = vst [vmem:[#allocation60_spill] sm:$0xff] %v10715_v29  ;;  %v2745_v49 = vmul.f32 %v10618_v6, %v2710_v32  ;;  %v2665_v47 = vpop.permute.xlu1 %2664  ;;  %3854 = vrot.lane.b32.xlu0 %v10472_v63, %s15539_s30  ;;  %15602 = vst [vmem:[#allocation163_spill] sm:$0xff] %v10725_v26 }
 0x832   :  { %15597 = vst [vmem:[#allocation23_spill] sm:$0xff] %v10700_v51  ;;  %v2746_v51 = vmul.f32 %v10621_v30, %v2704_v40  ;;  %v2705_v32 = vsel %vm441_vm2, %v2665_v47, %v10446_v25  ;;  %v2711_v22 = vsel %vm441_vm2, %v10438_v37, %v2665_v47  ;;  %v10737_v40 = vrot.slane %v7004_v4, %v15583_v57 }
 0x833   :  { %15604 = vst [vmem:[#allocation158_spill] sm:$0xff] %v10740_v38  ;;  %v2799_v26 = vmul.f32 %v10154_v12, %v2745_v49  ;;  %v2749_v13 = vmul.f32 %v10618_v6, %v2711_v22  ;;  %v2750_v23 = vmul.f32 %v10621_v30, %v2705_v32  ;;  %v2687_v42 = vpop.permute.xlu0 %2686  ;;  %3856 = vrot.lane.b32.xlu1 %v10478_v36, %s15539_s30 }
 0x834   :  { %15603 = vst [vmem:[#allocation157_spill] sm:$0xff] %v10737_v40  ;;  %v2800_v29 = vmul.f32 %v10154_v12, %v2746_v51  ;;  %v2698_v47 = vsel %vm441_vm2, %v10440_v20, %v2687_v42  ;;  %v2716_v4 = vsel %vm441_vm2, %v2687_v42, %v10432_v55  ;;  %v10755_v49 = vrot.slane %v7005_v53, %v15502_v2 }
 0x835   :  { %v10758_v51 = vrot.slane %v7005_v53, %v15581_v14  ;;  %v2803_v32 = vmul.f32 %v10156_v61, %v2749_v13  ;;  %v2804_v22 = vmul.f32 %v10156_v61, %v2750_v23  ;;  %v2689_v30 = vpop.permute.xlu1 %2688  ;;  %4026 = vrot.lane.b32.xlu0 %v10458_v3, %s15543_s27  ;;  %v10765_v20 = vrot.slane %v7005_v53, %v15583_v57 }
 0x836   :  { %15605 = vst [vmem:[#allocation171_spill] sm:$0xff] %v10755_v49  ;;  %v10768_v6 = vrot.slane %v7005_v53, %v15586_v45  ;;  %v2744_v55 = vmul.f32 %v10631_v16, %v2716_v4  ;;  %v2747_v42 = vmul.f32 %v10634_v39, %v2698_v47  ;;  %v2699_v13 = vsel %vm441_vm2, %v10446_v25, %v2689_v30 }
 0x837   :  { %15606 = vst [vmem:[#allocation168_spill] sm:$0xff] %v10758_v51  ;;  %15607 = vst [vmem:[#allocation28_spill] sm:$0xff] %v10765_v20  ;;  %v2717_v23 = vsel %vm441_vm2, %v2689_v30, %v10438_v37  ;;  %v2823_v14 = vadd.f32 %v2799_v26, %v10569_v15  ;;  %v2824_v57 = vadd.f32 %v2800_v29, %v10577_v31  ;;  %v2859_v45 = vpop.permute.xlu0 %2858  ;;  %4028 = vrot.lane.b32.xlu1 %v10465_v58, %s15543_s27 }
 0x838   :  { %15608 = vst [vmem:[#allocation29_spill] sm:$0xff] %v10768_v6  ;;  %v2748_v2 = vmul.f32 %v10631_v16, %v2717_v23  ;;  %v2751_v53 = vmul.f32 %v10634_v39, %v2699_v13  ;;  %v2798_v47 = vmul.f32 %v10154_v12, %v2744_v55  ;;  %v2801_v25 = vmul.f32 %v10154_v12, %v2747_v42 }
 0x839   :  { %v2900_v30 = vsel %vm638_vm3, %v2859_v45, %v10461_v9  ;;  %v2906_v37 = vsel %vm638_vm3, %v10449_v48, %v2859_v45  ;;  %v2861_v4 = vpop.permute.xlu1 %2860  ;;  %4050 = vrot.lane.b32.xlu0 %v10472_v63, %s15543_s27  ;;  %v2827_v12 = vadd.f32 %v2803_v32, %v10581_v41  ;;  %v2828_v55 = vadd.f32 %v2804_v22, %v10604_v27 }
 0x83a   :  { %v2802_v26 = vmul.f32 %v10156_v61, %v2748_v2  ;;  %v2805_v15 = vmul.f32 %v10156_v61, %v2751_v53  ;;  %v2941_v31 = vmul.f32 %v10637_v35, %v2906_v37  ;;  %v2942_v29 = vmul.f32 %v10640_v10, %v2900_v30 }
 0x83b   :  { %v2901_v45 = vsel %vm638_vm3, %v2861_v4, %v10468_v19  ;;  %v2907_v2 = vsel %vm638_vm3, %v10456_v56, %v2861_v4  ;;  %v2822_v61 = vadd.f32 %v2798_v47, %v10573_v43  ;;  %v2825_v42 = vadd.f32 %v2801_v25, %v10585_v33  ;;  %v2883_v53 = vpop.permute.xlu0 %2882  ;;  %4052 = vrot.lane.b32.xlu1 %v10478_v36, %s15543_s27 }
 0x83c   :  { %v2995_v13 = vmul.f32 %v10158_v17, %v2941_v31  ;;  %v2996_v23 = vmul.f32 %v10158_v17, %v2942_v29  ;;  %v2945_v41 = vmul.f32 %v10637_v35, %v2907_v2  ;;  %v2946_v27 = vmul.f32 %v10640_v10, %v2901_v45 }
 0x83d   :  { %v2894_v32 = vsel %vm638_vm3, %v10461_v9, %v2883_v53  ;;  %v2912_v33 = vsel %vm638_vm3, %v2883_v53, %v10449_v48  ;;  %v2826_v43 = vadd.f32 %v2802_v26, %v10589_v50  ;;  %v2829_v22 = vadd.f32 %v2805_v15, %v10608_v62  ;;  %v2885_v30 = vpop.permute.xlu1 %2884  ;;  %2666 = vrot.lane.b32.xlu0 %v10594_v0, %s7165_s19 }
 0x83e   :  { %v2940_v47 = vmul.f32 %v10646_v60, %v2912_v33  ;;  %v2943_v25 = vmul.f32 %v10649_v1, %v2894_v32  ;;  %v2999_v37 = vmul.f32 %v10160_v24, %v2945_v41  ;;  %v3000_v9 = vmul.f32 %v10160_v24, %v2946_v27 }
 0x83f   :  { %v2895_v48 = vsel %vm638_vm3, %v10468_v19, %v2885_v30  ;;  %v2913_v50 = vsel %vm638_vm3, %v2885_v30, %v10456_v56  ;;  %v3055_v29 = vpop.permute.xlu0 %3054  ;;  %2668 = vrot.lane.b32.xlu1 %v10596_v59, %s7165_s19  ;;  %v3019_v4 = vadd.f32 %v2995_v13, %v2823_v14  ;;  %v3020_v45 = vadd.f32 %v2996_v23, %v2824_v57 }
 0x840   :  { %v2994_v62 = vmul.f32 %v10158_v17, %v2940_v47  ;;  %v2997_v26 = vmul.f32 %v10158_v17, %v2943_v25  ;;  %v2944_v15 = vmul.f32 %v10646_v60, %v2913_v50  ;;  %v2947_v31 = vmul.f32 %v10649_v1, %v2895_v48  ;;  %v15609_v48 = vld [vmem:[#allocation122_spill] sm:$0xff] }
 0x841   :  { %v3096_v19 = vsel %vm836_vm4, %v3055_v29, %v10484_v34  ;;  %v3102_v56 = vsel %vm836_vm4, %v10474_v18, %v3055_v29  ;;  %v3023_v2 = vadd.f32 %v2999_v37, %v2827_v12  ;;  %v3024_v17 = vadd.f32 %v3000_v9, %v2828_v55  ;;  %v3057_v27 = vpop.permute.xlu1 %3056  ;;  %2690 = vrot.lane.b32.xlu0 %v10613_v44, %s7165_s19 }
 0x842   :  { %v2998_v53 = vmul.f32 %v10160_v24, %v2944_v15  ;;  %v3001_v41 = vmul.f32 %v10160_v24, %v2947_v31  ;;  %v3137_v57 = vmul.f32 %v10652_v5, %v3102_v56  ;;  %v3138_v14 = vmul.f32 %v10655_v8, %v3096_v19 }
 0x843   :  { %v3097_v13 = vsel %vm836_vm4, %v3057_v27, %v10488_v52  ;;  %v3103_v12 = vsel %vm836_vm4, %v10480_v7, %v3057_v27  ;;  %v3018_v55 = vadd.f32 %v2994_v62, %v2822_v61  ;;  %v3021_v23 = vadd.f32 %v2997_v26, %v2825_v42  ;;  %v3079_v33 = vpop.permute.xlu0 %3078  ;;  %2692 = vrot.lane.b32.xlu1 %v10615_v28, %s7165_s19 }
 0x844   :  { %v3141_v24 = vmul.f32 %v10652_v5, %v3103_v12  ;;  %v3142_v32 = vmul.f32 %v10655_v8, %v3097_v13  ;;  %v3191_v47 = vmul.f32 %v10170_v21, %v3137_v57  ;;  %v3192_v25 = vmul.f32 %v10170_v21, %v3138_v14  ;;  %v15612_v57 = vld [vmem:[#allocation141_spill] sm:$0xff]  ;;  %v15613_v14 = vld [vmem:[#allocation124_spill] sm:$0xff] }
 0x845   :  { %v3090_v30 = vsel %vm836_vm4, %v10484_v34, %v3079_v33  ;;  %v3108_v61 = vsel %vm836_vm4, %v3079_v33, %v10474_v18  ;;  %v3081_v62 = vpop.permute.xlu1 %3080  ;;  %2862 = vrot.lane.b32.xlu0 %v10594_v0, %s7166_s20  ;;  %v3022_v26 = vadd.f32 %v2998_v53, %v2826_v43  ;;  %v3025_v15 = vadd.f32 %v3001_v41, %v2829_v22  ;;  %v15610_v53 = vld [vmem:[#allocation137_spill] sm:$0xff]  ;;  %v15611_v41 = vld [vmem:[#allocation151_spill] sm:$0xff]  ;;  %v15614_v33 = vld [vmem:[#allocation146_spill] sm:$0xff] }
 0x846   :  { %v3195_v42 = vmul.f32 %v10172_v54, %v3141_v24  ;;  %v3196_v37 = vmul.f32 %v10172_v54, %v3142_v32  ;;  %v3136_v9 = vmul.f32 %v10665_v11, %v3108_v61  ;;  %v3139_v50 = vmul.f32 %v15609_v48, %v3090_v30 }
 0x847   :  { %v3091_v34 = vsel %vm836_vm4, %v10488_v52, %v3081_v62  ;;  %v3109_v18 = vsel %vm836_vm4, %v3081_v62, %v10480_v7  ;;  %v3215_v31 = vadd.f32 %v3191_v47, %v3019_v4  ;;  %v3216_v29 = vadd.f32 %v3192_v25, %v3020_v45  ;;  %v3251_v27 = vpop.permute.xlu0 %3250  ;;  %2864 = vrot.lane.b32.xlu1 %v10596_v59, %s7166_s20  ;;  %v15615_v25 = vld [vmem:[#allocation138_spill] sm:$0xff] }
 0x848   :  { %v3190_v19 = vmul.f32 %v10170_v21, %v3136_v9  ;;  %v3193_v56 = vmul.f32 %v10170_v21, %v3139_v50  ;;  %v3140_v43 = vmul.f32 %v10665_v11, %v3109_v18  ;;  %v3143_v22 = vmul.f32 %v15609_v48, %v3091_v34 }
 0x849   :  { %v3292_v52 = vsel %vm1034_vm5, %v3251_v27, %v15610_v53  ;;  %v3298_v7 = vsel %vm1034_vm5, %v15611_v41, %v3251_v27  ;;  %v3219_v4 = vadd.f32 %v3195_v42, %v3023_v2  ;;  %v3220_v45 = vadd.f32 %v3196_v37, %v3024_v17  ;;  %v3253_v12 = vpop.permute.xlu1 %3252  ;;  %2886 = vrot.lane.b32.xlu0 %v10613_v44, %s7166_s20  ;;  %v15616_v17 = vld [vmem:[#allocation15_spill] sm:$0xff] }
 0x84a   :  { %v3333_v21 = vmul.f32 %v15612_v57, %v3298_v7  ;;  %v3334_v13 = vmul.f32 %v15613_v14, %v3292_v52  ;;  %v3194_v24 = vmul.f32 %v10172_v54, %v3140_v43  ;;  %v3197_v32 = vmul.f32 %v10172_v54, %v3143_v22  ;;  %v15617_v43 = vld [vmem:[#allocation89_spill] sm:$0xff] }
 0x84b   :  { %v3293_v47 = vsel %vm1034_vm5, %v3253_v12, %v15614_v33  ;;  %v3299_v2 = vsel %vm1034_vm5, %v15615_v25, %v3253_v12  ;;  %v3275_v9 = vpop.permute.xlu0 %3274  ;;  %2888 = vrot.lane.b32.xlu1 %v10615_v28, %s7166_s20  ;;  %v3214_v54 = vadd.f32 %v3190_v19, %v3018_v55  ;;  %v3217_v50 = vadd.f32 %v3193_v56, %v3021_v23  ;;  %v15618_v55 = vld [vmem:[#allocation148_spill] sm:$0xff] }
 0x84c   :  { %v3387_v30 = vmul.f32 %v15616_v17, %v3333_v21  ;;  %v3388_v61 = vmul.f32 %v15616_v17, %v3334_v13  ;;  %v3337_v42 = vmul.f32 %v15612_v57, %v3299_v2  ;;  %v3338_v37 = vmul.f32 %v15613_v14, %v3293_v47  ;;  %v15619_v19 = vld [vmem:[#allocation152_spill] sm:$0xff]  ;;  %v15621_v2 = vld [vmem:[#allocation97_spill] sm:$0xff] }
 0x84d   :  { %v3286_v62 = vsel %vm1034_vm5, %v15610_v53, %v3275_v9  ;;  %v3304_v34 = vsel %vm1034_vm5, %v3275_v9, %v15611_v41  ;;  %v3218_v18 = vadd.f32 %v3194_v24, %v3022_v26  ;;  %v3221_v27 = vadd.f32 %v3197_v32, %v3025_v15  ;;  %v3277_v7 = vpop.permute.xlu1 %3276  ;;  %3058 = vrot.lane.b32.xlu0 %v10594_v0, %s7167_s21  ;;  %v15620_v47 = vld [vmem:[#allocation104_spill] sm:$0xff] }
 0x84e   :  { %v3391_v22 = vmul.f32 %v15617_v43, %v3337_v42  ;;  %v3392_v52 = vmul.f32 %v15617_v43, %v3338_v37  ;;  %v3332_v23 = vmul.f32 %v15618_v55, %v3304_v34  ;;  %v3335_v56 = vmul.f32 %v15619_v19, %v3286_v62  ;;  %v15623_v42 = vld [vmem:[#allocation156_spill] sm:$0xff]  ;;  %v15624_v34 = vld [vmem:[#allocation19_spill] sm:$0xff] }
 0x84f   :  { %v3287_v53 = vsel %vm1034_vm5, %v15614_v33, %v3277_v7  ;;  %v3305_v26 = vsel %vm1034_vm5, %v3277_v7, %v15615_v25  ;;  %v3411_v15 = vadd.f32 %v3387_v30, %v3215_v31  ;;  %v3412_v41 = vadd.f32 %v3388_v61, %v3216_v29  ;;  %v3447_v12 = vpop.permute.xlu0 %3446  ;;  %3060 = vrot.lane.b32.xlu1 %v10596_v59, %s7167_s21  ;;  %v15622_v30 = vld [vmem:[#allocation154_spill] sm:$0xff] }
 0x850   :  { %v3336_v21 = vmul.f32 %v15618_v55, %v3305_v26  ;;  %v3339_v13 = vmul.f32 %v15619_v19, %v3287_v53  ;;  %v3386_v24 = vmul.f32 %v15616_v17, %v3332_v23  ;;  %v3389_v32 = vmul.f32 %v15616_v17, %v3335_v56  ;;  %v15625_v23 = vld [vmem:[#allocation144_spill] sm:$0xff]  ;;  %v15626_v26 = vld [vmem:[#allocation91_spill] sm:$0xff] }
 0x851   :  { %v3488_v33 = vsel %vm1232_vm6, %v3447_v12, %v15620_v47  ;;  %v3494_v31 = vsel %vm1232_vm6, %v15621_v2, %v3447_v12  ;;  %v3449_v9 = vpop.permute.xlu1 %3448  ;;  %3082 = vrot.lane.b32.xlu0 %v10613_v44, %s7167_s21  ;;  %v3415_v17 = vadd.f32 %v3391_v22, %v3219_v4  ;;  %v3416_v62 = vadd.f32 %v3392_v52, %v3220_v45 }
 0x852   :  { %v3390_v29 = vmul.f32 %v15617_v43, %v3336_v21  ;;  %v3393_v25 = vmul.f32 %v15617_v43, %v3339_v13  ;;  %v3528_v61 = vmul.f32 %v15622_v30, %v3494_v31  ;;  %v3529_v37 = vmul.f32 %v15623_v42, %v3488_v33  ;;  %v15628_v33 = vld [vmem:[#allocation160_spill] sm:$0xff] }
 0x853   :  { %v3489_v7 = vsel %vm1232_vm6, %v3449_v9, %v15624_v34  ;;  %v3495_v56 = vsel %vm1232_vm6, %v15625_v23, %v3449_v9  ;;  %v3410_v53 = vadd.f32 %v3386_v24, %v3214_v54  ;;  %v3413_v43 = vadd.f32 %v3389_v32, %v3217_v50  ;;  %v3471_v12 = vpop.permute.xlu0 %3470  ;;  %3084 = vrot.lane.b32.xlu1 %v10615_v28, %s7167_s21  ;;  %v15627_v24 = vld [vmem:[#allocation155_spill] sm:$0xff] }
 0x854   :  { %v3582_v21 = vmul.f32 %v15626_v26, %v3528_v61  ;;  %v3583_v13 = vmul.f32 %v15626_v26, %v3529_v37  ;;  %v3532_v4 = vmul.f32 %v15622_v30, %v3495_v56  ;;  %v3533_v45 = vmul.f32 %v15623_v42, %v3489_v7  ;;  %v15629_v37 = vld [vmem:[#allocation115_spill] sm:$0xff] }
 0x855   :  { %v3482_v22 = vsel %vm1232_vm6, %v15620_v47, %v3471_v12  ;;  %v3500_v54 = vsel %vm1232_vm6, %v3471_v12, %v15621_v2  ;;  %v3414_v50 = vadd.f32 %v3390_v29, %v3218_v18  ;;  %v3417_v52 = vadd.f32 %v3393_v25, %v3221_v27  ;;  %v3473_v61 = vpop.permute.xlu1 %3472  ;;  %3254 = vrot.lane.b32.xlu0 %v10594_v0, %s7168_s22 }
 0x856   :  { %v3530_v32 = vmul.f32 %v15627_v24, %v3482_v22  ;;  %v3531_v31 = vmul.f32 %v15628_v33, %v3500_v54  ;;  %v3586_v9 = vmul.f32 %v15629_v37, %v3532_v4  ;;  %v3587_v7 = vmul.f32 %v15629_v37, %v3533_v45  ;;  %v15630_v45 = vld [vmem:[#allocation74_spill] sm:$0xff]  ;;  %v15631_v22 = vld [vmem:[#allocation105_spill] sm:$0xff] }
 0x857   :  { %v3483_v47 = vsel %vm1232_vm6, %v15624_v34, %v3473_v61  ;;  %v3501_v18 = vsel %vm1232_vm6, %v3473_v61, %v15625_v23  ;;  %v3643_v56 = vpop.permute.xlu0 %3642  ;;  %3256 = vrot.lane.b32.xlu1 %v10596_v59, %s7168_s22  ;;  %v3606_v12 = vadd.f32 %v3582_v21, %v3410_v53  ;;  %v3607_v4 = vadd.f32 %v3583_v13, %v3411_v15  ;;  %v15632_v53 = vld [vmem:[#allocation23_spill] sm:$0xff]  ;;  %v15633_v21 = vld [vmem:[#allocation36_spill] sm:$0xff] }
 0x858   :  { %v3584_v27 = vmul.f32 %v15626_v26, %v3530_v32  ;;  %v3585_v2 = vmul.f32 %v15626_v26, %v3531_v31  ;;  %v3534_v29 = vmul.f32 %v15627_v24, %v3483_v47  ;;  %v3535_v25 = vmul.f32 %v15628_v33, %v3501_v18  ;;  %v15634_v47 = vld [vmem:[#allocation72_spill] sm:$0xff]  ;;  %v15635_v33 = vld [vmem:[#allocation106_spill] sm:$0xff]  ;;  %v15680_v24 = vld [vmem:[#allocation147_spill] sm:$0xff] }
 0x859   :  { %v3684_v34 = vsel %vm1430_vm7, %v3643_v56, %v15630_v45  ;;  %v3690_v23 = vsel %vm1430_vm7, %v15631_v22, %v3643_v56  ;;  %v3610_v54 = vadd.f32 %v3586_v9, %v3414_v50  ;;  %v3611_v26 = vadd.f32 %v3587_v7, %v3415_v17  ;;  %v3645_v61 = vpop.permute.xlu1 %3644  ;;  %3278 = vrot.lane.b32.xlu0 %v10613_v44, %s7168_s22 }
 0x85a   :  { %v3588_v32 = vmul.f32 %v15629_v37, %v3534_v29  ;;  %v3589_v31 = vmul.f32 %v15629_v37, %v3535_v25  ;;  %v3724_v15 = vmul.f32 %v15632_v53, %v3690_v23  ;;  %v3725_v13 = vmul.f32 %v15633_v21, %v3684_v34  ;;  %v15636_v25 = vld [vmem:[#allocation27_spill] sm:$0xff] }
 0x85b   :  { %v3685_v18 = vsel %vm1430_vm7, %v3645_v61, %v15634_v47  ;;  %v3691_v17 = vsel %vm1430_vm7, %v15635_v33, %v3645_v61  ;;  %v3608_v50 = vadd.f32 %v3584_v27, %v3412_v41  ;;  %v3609_v9 = vadd.f32 %v3585_v2, %v3413_v43  ;;  %v3667_v29 = vpop.permute.xlu0 %3666  ;;  %3280 = vrot.lane.b32.xlu1 %v10615_v28, %s7168_s22  ;;  %v15637_v43 = vld [vmem:[#allocation52_spill] sm:$0xff]  ;;  %v15638_v61 = vld [vmem:[#allocation62_spill] sm:$0xff] }
 0x85c   :  { %v3728_v37 = vmul.f32 %v15632_v53, %v3691_v17  ;;  %v3729_v7 = vmul.f32 %v15633_v21, %v3685_v18  ;;  %v3778_v56 = vmul.f32 %v15636_v25, %v3724_v15  ;;  %v3779_v34 = vmul.f32 %v15636_v25, %v3725_v13  ;;  %v15639_v17 = vld [vmem:[#allocation60_spill] sm:$0xff] }
 0x85d   :  { %v3678_v23 = vsel %vm1430_vm7, %v15630_v45, %v3667_v29  ;;  %v3696_v41 = vsel %vm1430_vm7, %v3667_v29, %v15631_v22  ;;  %v3669_v53 = vpop.permute.xlu1 %3668  ;;  %3450 = vrot.lane.b32.xlu0 %v10594_v0, %s7169_s23  ;;  %v3612_v15 = vadd.f32 %v3588_v32, %v3416_v62  ;;  %v3613_v13 = vadd.f32 %v3589_v31, %v3417_v52  ;;  %v15640_v32 = vld [vmem:[#allocation107_spill] sm:$0xff] }
 0x85e   :  { %v3782_v27 = vmul.f32 %v15637_v43, %v3728_v37  ;;  %v3783_v2 = vmul.f32 %v15637_v43, %v3729_v7  ;;  %v3726_v18 = vmul.f32 %v15638_v61, %v3678_v23  ;;  %v3727_v21 = vmul.f32 %v15639_v17, %v3696_v41 }
 0x85f   :  { %v3679_v45 = vsel %vm1430_vm7, %v15634_v47, %v3669_v53  ;;  %v3697_v22 = vsel %vm1430_vm7, %v3669_v53, %v15635_v33  ;;  %v3802_v37 = vadd.f32 %v3778_v56, %v3606_v12  ;;  %v3803_v7 = vadd.f32 %v3779_v34, %v3607_v4  ;;  %v3839_v41 = vpop.permute.xlu0 %3838  ;;  %3452 = vrot.lane.b32.xlu1 %v10596_v59, %s7169_s23  ;;  %v15641_v47 = vld [vmem:[#allocation21_spill] sm:$0xff]  ;;  %v15642_v53 = vld [vmem:[#allocation170_spill] sm:$0xff] }
 0x860   :  { %v3780_v29 = vmul.f32 %v15636_v25, %v3726_v18  ;;  %v3781_v23 = vmul.f32 %v15636_v25, %v3727_v21  ;;  %v3730_v62 = vmul.f32 %v15638_v61, %v3679_v45  ;;  %v3731_v52 = vmul.f32 %v15639_v17, %v3697_v22  ;;  %v15643_v25 = vld [vmem:[#allocation163_spill] sm:$0xff]  ;;  %v15645_v61 = vld [vmem:[#allocation153_spill] sm:$0xff] }
 0x861   :  { %v3880_v31 = vsel %vm1628_vm8, %v3839_v41, %v15640_v32  ;;  %v3886_v33 = vsel %vm1628_vm8, %v15641_v47, %v3839_v41  ;;  %v3806_v12 = vadd.f32 %v3782_v27, %v3610_v54  ;;  %v3807_v4 = vadd.f32 %v3783_v2, %v3611_v26  ;;  %v3841_v34 = vpop.permute.xlu1 %3840  ;;  %3474 = vrot.lane.b32.xlu0 %v10613_v44, %s7169_s23  ;;  %v15644_v22 = vld [vmem:[#allocation139_spill] sm:$0xff]  ;;  %v15646_v26 = vld [vmem:[#allocation53_spill] sm:$0xff] }
 0x862   :  { %v3920_v21 = vmul.f32 %v15642_v53, %v3886_v33  ;;  %v3921_v56 = vmul.f32 %v15643_v25, %v3880_v31  ;;  %v3784_v18 = vmul.f32 %v15637_v43, %v3730_v62  ;;  %v3785_v45 = vmul.f32 %v15637_v43, %v3731_v52 }
 0x863   :  { %v3881_v17 = vsel %vm1628_vm8, %v3841_v34, %v15644_v22  ;;  %v3887_v54 = vsel %vm1628_vm8, %v15645_v61, %v3841_v34  ;;  %v3863_v33 = vpop.permute.xlu0 %3862  ;;  %3476 = vrot.lane.b32.xlu1 %v10615_v28, %s7169_s23  ;;  %v3804_v43 = vadd.f32 %v3780_v29, %v3608_v50  ;;  %v3805_v62 = vadd.f32 %v3781_v23, %v3609_v9 }
 0x864   :  { %v3974_v27 = vmul.f32 %v15646_v26, %v3920_v21  ;;  %v3975_v2 = vmul.f32 %v15646_v26, %v3921_v56  ;;  %v3924_v41 = vmul.f32 %v15642_v53, %v3887_v54  ;;  %v3925_v31 = vmul.f32 %v15643_v25, %v3881_v17  ;;  %v15647_v54 = vld [vmem:[#allocation41_spill] sm:$0xff] }
 0x865   :  { %v3874_v52 = vsel %vm1628_vm8, %v15640_v32, %v3863_v33  ;;  %v3892_v21 = vsel %vm1628_vm8, %v3863_v33, %v15641_v47  ;;  %v3808_v34 = vadd.f32 %v3784_v18, %v3612_v15  ;;  %v11062_v56 = vadd.f32 %v3785_v45, %v3613_v13  ;;  %v3865_v25 = vpop.permute.xlu1 %3864  ;;  %3646 = vrot.lane.b32.xlu0 %v10594_v0, %s7170_s28  ;;  %v15649_v33 = vld [vmem:[#allocation140_spill] sm:$0xff] }
 0x866   :  { %v3978_v53 = vmul.f32 %v15647_v54, %v3924_v41  ;;  %v3979_v17 = vmul.f32 %v15647_v54, %v3925_v31  ;;  %v3922_v50 = vmul.f32 %v10737_v40, %v3874_v52  ;;  %v3923_v9 = vmul.f32 %v10740_v38, %v3892_v21  ;;  %v15648_v31 = vld [vmem:[#allocation164_spill] sm:$0xff]  ;;  %v15650_v21 = vld [vmem:[#allocation133_spill] sm:$0xff] }
 0x867   :  { %v3875_v29 = vsel %vm1628_vm8, %v15644_v22, %v3865_v25  ;;  %v3893_v15 = vsel %vm1628_vm8, %v3865_v25, %v15645_v61  ;;  %v3998_v13 = vadd.f32 %v3974_v27, %v3802_v37  ;;  %v3999_v23 = vadd.f32 %v3975_v2, %v3803_v7  ;;  %v4035_v18 = vpop.permute.xlu0 %4034  ;;  %3648 = vrot.lane.b32.xlu1 %v10596_v59, %s7170_s28 }
 0x868   :  { %v3926_v32 = vmul.f32 %v10737_v40, %v3875_v29  ;;  %v3927_v47 = vmul.f32 %v10740_v38, %v3893_v15  ;;  %v3976_v45 = vmul.f32 %v15646_v26, %v3922_v50  ;;  %v3977_v41 = vmul.f32 %v15646_v26, %v3923_v9  ;;  %v15651_v9 = vld [vmem:[#allocation145_spill] sm:$0xff]  ;;  %v15674_v38 = vld [vmem:[#allocation92_spill] sm:$0xff] }
 0x869   :  { %v4076_v22 = vsel %vm1826_vm9, %v4035_v18, %v15648_v31  ;;  %v4082_v61 = vsel %vm1826_vm9, %v15649_v33, %v4035_v18  ;;  %v4002_v37 = vadd.f32 %v3978_v53, %v3806_v12  ;;  %v4003_v7 = vadd.f32 %v3979_v17, %v3807_v4  ;;  %v4037_v2 = vpop.permute.xlu1 %4036  ;;  %3670 = vrot.lane.b32.xlu0 %v10613_v44, %s7170_s28  ;;  %v15652_v17 = vld [vmem:[#allocation33_spill] sm:$0xff] }
 0x86a   :  { %v4116_v25 = vmul.f32 %v10755_v49, %v4082_v61  ;;  %v4117_v27 = vmul.f32 %v10758_v51, %v4076_v22  ;;  %v3980_v26 = vmul.f32 %v15647_v54, %v3926_v32  ;;  %v3981_v52 = vmul.f32 %v15647_v54, %v3927_v47  ;;  %v15675_v40 = vld [vmem:[#allocation85_spill] sm:$0xff] }
 0x86b   :  { %v4077_v50 = vsel %vm1826_vm9, %v4037_v2, %v15650_v21  ;;  %v4083_v12 = vsel %vm1826_vm9, %v15651_v9, %v4037_v2  ;;  %v4000_v4 = vadd.f32 %v3976_v45, %v3804_v43  ;;  %v4001_v53 = vadd.f32 %v3977_v41, %v3805_v62  ;;  %v4059_v18 = vpop.permute.xlu0 %4058  ;;  %3672 = vrot.lane.b32.xlu1 %v10615_v28, %s7170_s28 }
 0x86c   :  { %v4170_v29 = vmul.f32 %v15652_v17, %v4116_v25  ;;  %v4171_v15 = vmul.f32 %v15652_v17, %v4117_v27  ;;  %v4120_v54 = vmul.f32 %v10755_v49, %v4083_v12  ;;  %v4121_v32 = vmul.f32 %v10758_v51, %v4077_v50  ;;  %v15653_v25 = vld [vmem:[#allocation35_spill] sm:$0xff] }
 0x86d   :  { %v4070_v47 = vsel %vm1826_vm9, %v15648_v31, %v4059_v18  ;;  %v4088_v43 = vsel %vm1826_vm9, %v4059_v18, %v15649_v33  ;;  %v4061_v22 = vpop.permute.xlu1 %4060  ;;  %3842 = vrot.lane.b32.xlu0 %v10594_v0, %s15539_s30 }
 0x86e   :  { %v4194_v62 = vadd.f32 %v4170_v29, %v3998_v13  ;;  %v4118_v45 = vmul.f32 %v10765_v20, %v4070_v47  ;;  %v4119_v41 = vmul.f32 %v10768_v6, %v4088_v43  ;;  %v4195_v61 = vadd.f32 %v4171_v15, %v3999_v23 }
 0x86f   :  { %v4174_v27 = vmul.f32 %v15653_v25, %v4120_v54  ;;  %v4175_v2 = vmul.f32 %v15653_v25, %v4121_v32  ;;  %v4071_v31 = vsel %vm1826_vm9, %v15650_v21, %v4061_v22  ;;  %v4089_v13 = vsel %vm1826_vm9, %v4061_v22, %v15651_v9  ;;  %v11127_v23 = vpop.permute.xlu0 %2654  ;;  %3844 = vrot.lane.b32.xlu1 %v10596_v59, %s15539_s30 }
 0x870   :  { %v4218_v33 = vmax.f32 %v4194_v62, 0.0  ;;  %v4172_v50 = vmul.f32 %v15652_v17, %v4118_v45  ;;  %v4173_v12 = vmul.f32 %v15652_v17, %v4119_v41  ;;  %v4122_v29 = vmul.f32 %v10765_v20, %v4071_v31 }
 0x871   :  { %v4198_v15 = vadd.f32 %v4174_v27, %v4002_v37  ;;  %v4123_v18 = vmul.f32 %v10768_v6, %v4089_v13  ;;  %v4199_v21 = vadd.f32 %v4175_v2, %v4003_v7  ;;  %v4219_v54 = vmax.f32 %v4195_v61, 0.0  ;;  %3866 = vrot.lane.b32.xlu0 %v10613_v44, %s15539_s30  ;;  %v11135_v17 = vpop.permute.xlu1 %2656 }
 0x872   :  { %v4004_v32 = vadd.f32 %v3980_v26, %v3808_v34  ;;  %v4196_v47 = vadd.f32 %v4172_v50, %v4000_v4  ;;  %v4176_v9 = vmul.f32 %v15653_v25, %v4122_v29  ;;  %v4197_v43 = vadd.f32 %v4173_v12, %v4001_v53  ;;  %v15654_v50 = vld [vmem:[#allocation90_spill] sm:$0xff] }
 0x873   :  { %v4005_v62 = vadd.f32 %v3981_v52, %v11062_v56  ;;  %v4222_v45 = vmax.f32 %v4198_v15, 0.0  ;;  %v4177_v41 = vmul.f32 %v15653_v25, %v4123_v18  ;;  %v4223_v37 = vmax.f32 %v4199_v21, 0.0  ;;  %v11139_v7 = vpop.permute.xlu0 %2678  ;;  %3868 = vrot.lane.b32.xlu1 %v10615_v28, %s15539_s30 }
 0x874   :  { %v4220_v22 = vmax.f32 %v4196_v47, 0.0  ;;  %v4200_v27 = vadd.f32 %v4176_v9, %v4004_v32  ;;  %v4243_v34 = vmin.f32 %v4219_v54, 6.0  ;;  %v4242_v26 = vmin.f32 %v4218_v33, 6.0  ;;  %v15655_v54 = vld [vmem:[#allocation25_spill] sm:$0xff] }
 0x875   :  { %v4247_v4 = vmin.f32 %v4223_v37, 6.0  ;;  %v4246_v61 = vmin.f32 %v4222_v45, 6.0  ;;  %v4201_v2 = vadd.f32 %v4177_v41, %v4005_v62  ;;  %v4221_v31 = vmax.f32 %v4197_v43, 0.0  ;;  %4038 = vrot.lane.b32.xlu0 %v10594_v0, %s15543_s27  ;;  %v11145_v56 = vpop.permute.xlu1 %2680  ;;  %v15656_v45 = vld [vmem:[#allocation113_spill] sm:$0xff] }
 0x876   :  { %v4224_v53 = vmax.f32 %v4200_v27, 0.0  ;;  %v2501_v12 = vmax.f32 %v15654_v50, 0.0  ;;  %v4244_v33 = vmin.f32 %v4220_v22, 6.0  ;;  %v2505_v32 = vmax.f32 %v15655_v54, 0.0  ;;  %v15657_v27 = vld [vmem:[#allocation93_spill] sm:$0xff] }
 0x877   :  { %v4269_v52 = vpack.c.bf16 %v4247_v4, %v4243_v34  ;;  %v4268_v25 = vpack.c.bf16 %v4246_v61, %v4242_v26  ;;  %v4225_v13 = vmax.f32 %v4201_v2, 0.0  ;;  %v11148_v29 = vpop.permute.xlu0 %2850  ;;  %4040 = vrot.lane.b32.xlu1 %v10596_v59, %s15543_s27  ;;  %v4245_v18 = vmin.f32 %v4221_v31, 6.0 }
 0x878   :  { %v4248_v15 = vmin.f32 %v4224_v53, 6.0  ;;  %v11157_v62 = vmin.f32 %v2501_v12, 6.0  ;;  %v2503_v41 = vmax.f32 %v15656_v45, 0.0  ;;  %v11164_v22 = vmin.f32 %v2505_v32, 6.0 }
 0x879   :  { %4283 = vmatprep.subr.bf16.mxu0 %v4269_v52  ;;  %v4249_v21 = vmin.f32 %v4225_v13, 6.0  ;;  %4062 = vrot.lane.b32.xlu0 %v10613_v44, %s15543_s27  ;;  %v11155_v47 = vpop.permute.xlu1 %2852  ;;  %v2507_v34 = vmax.f32 %v15657_v27, 0.0 }
 0x87a   :  { %4284 = vmatpush1.bf16.msra.mxu0 %v4268_v25  ;;  %v4270_v9 = vpack.c.bf16 %v4248_v15, %v4244_v33  ;;  %v11171_v4 = vmin.f32 %v2503_v41, 6.0 }
 0x87b   :  { %v4271_v43 = vpack.c.bf16 %v4249_v21, %v4245_v18  ;;  %v11160_v37 = vpop.permute.xlu0 %2874  ;;  %4064 = vrot.lane.b32.xlu1 %v10615_v28, %s15543_s27  ;;  %v11177_v2 = vmin.f32 %v2507_v34, 6.0 }
 0x87d   :  { %4324 = vmatprep.subr.bf16.mxu1 %v4271_v43  ;;  %v11167_v26 = vpop.permute.xlu1 %2876  ;;  %2658 = vrot.lane.b32.xlu0 %v11157_v62, %s7165_s19 }
 0x87e   :  { %4325 = vmatpush1.bf16.msra.mxu1 %v4270_v9 }
 0x87f   :  { %v11173_v61 = vpop.permute.xlu0 %3046  ;;  %2660 = vrot.lane.b32.xlu1 %v11164_v22, %s7165_s19 }
 0x881   :  { %v11179_v31 = vpop.permute.xlu1 %3048  ;;  %2682 = vrot.lane.b32.xlu0 %v11171_v4, %s7165_s19 }
 0x883   :  { %v11183_v53 = vpop.permute.xlu0 %3070  ;;  %2684 = vrot.lane.b32.xlu1 %v11177_v2, %s7165_s19 }
 0x885   :  { %v11187_v52 = vpop.permute.xlu1 %3072  ;;  %2854 = vrot.lane.b32.xlu0 %v11157_v62, %s7166_s20 }
 0x887   :  { %v11191_v25 = vpop.permute.xlu0 %3242  ;;  %2856 = vrot.lane.b32.xlu1 %v11164_v22, %s7166_s20 }
 0x889   :  { %v11195_v13 = vpop.permute.xlu1 %3244  ;;  %2878 = vrot.lane.b32.xlu0 %v11171_v4, %s7166_s20 }
 0x88b   :  { %v11199_v50 = vpop.permute.xlu0 %3266  ;;  %2880 = vrot.lane.b32.xlu1 %v11177_v2, %s7166_s20 }
 0x88d   :  { %v11203_v12 = vpop.permute.xlu1 %3268  ;;  %3050 = vrot.lane.b32.xlu0 %v11157_v62, %s7167_s21 }
 0x88f   :  { %v11207_v33 = vpop.permute.xlu0 %3438  ;;  %3052 = vrot.lane.b32.xlu1 %v11164_v22, %s7167_s21 }
 0x890   :  { %15658 = vst [vmem:[#allocation165_spill] sm:$0xff] %v11207_v33 }
 0x891   :  { %v11211_v15 = vpop.permute.xlu1 %3440  ;;  %3074 = vrot.lane.b32.xlu0 %v11171_v4, %s7167_s21 }
 0x892   :  { %15659 = vst [vmem:[#allocation172_spill] sm:$0xff] %v11211_v15  ;;  %v15681_v15 = vld [vmem:[#allocation162_spill] sm:$0xff] }
 0x893   :  { %v11215_v18 = vpop.permute.xlu0 %3462  ;;  %3076 = vrot.lane.b32.xlu1 %v11177_v2, %s7167_s21 }
 0x894   :  { %15660 = vst [vmem:[#allocation50_spill] sm:$0xff] %v11215_v18 }
 0x895   :  { %v11219_v21 = vpop.permute.xlu1 %3464  ;;  %3246 = vrot.lane.b32.xlu0 %v11157_v62, %s7168_s22 }
 0x896   :  { %15661 = vst [vmem:[#allocation3_spill] sm:$0xff] %v11219_v21 }
 0x897   :  { %v11223_v54 = vpop.permute.xlu0 %3634  ;;  %3248 = vrot.lane.b32.xlu1 %v11164_v22, %s7168_s22 }
 0x898   :  { %15662 = vst [vmem:[#allocation40_spill] sm:$0xff] %v11223_v54 }
 0x899   :  { %v11227_v32 = vpop.permute.xlu1 %3636  ;;  %3270 = vrot.lane.b32.xlu0 %v11171_v4, %s7168_s22 }
 0x89a   :  { %15663 = vst [vmem:[#allocation30_spill] sm:$0xff] %v11227_v32 }
 0x89b   :  { %v11231_v9 = vpop.permute.xlu0 %3658  ;;  %3272 = vrot.lane.b32.xlu1 %v11177_v2, %s7168_s22 }
 0x89c   :  { %15664 = vst [vmem:[#allocation31_spill] sm:$0xff] %v11231_v9 }
 0x89d   :  { %v11235_v43 = vpop.permute.xlu1 %3660  ;;  %3442 = vrot.lane.b32.xlu0 %v11157_v62, %s7169_s23 }
 0x89e   :  { %15665 = vst [vmem:[#allocation45_spill] sm:$0xff] %v11235_v43  ;;  %v15678_v43 = vld [vmem:[#allocation114_spill] sm:$0xff] }
 0x89f   :  { %v11239_v45 = vpop.permute.xlu0 %3830  ;;  %3444 = vrot.lane.b32.xlu1 %v11164_v22, %s7169_s23  ;;  %v2504_v54 = vmax.f32 %v15678_v43, 0.0  ;;  %v15682_v43 = vld [vmem:[#allocation86_spill] sm:$0xff] }
 0x8a0   :  { %15666 = vst [vmem:[#allocation56_spill] sm:$0xff] %v11239_v45 }
 0x8a1   :  { %v11243_v41 = vpop.permute.xlu1 %3832  ;;  %3466 = vrot.lane.b32.xlu0 %v11171_v4, %s7169_s23 }
 0x8a2   :  { %15667 = vst [vmem:[#allocation47_spill] sm:$0xff] %v11243_v41  ;;  %v2634_v41 = vmul.f32 %v15675_v40, %v10458_v3 }
 0x8a3   :  { %v11247_v27 = vpop.permute.xlu0 %3854  ;;  %3468 = vrot.lane.b32.xlu1 %v11177_v2, %s7169_s23 }
 0x8a4   :  { %15668 = vst [vmem:[#allocation57_spill] sm:$0xff] %v11247_v27 }
 0x8a5   :  { %v11251_v34 = vpop.permute.xlu1 %3856  ;;  %3638 = vrot.lane.b32.xlu0 %v11157_v62, %s7170_s28 }
 0x8a6   :  { %15669 = vst [vmem:[#allocation32_spill] sm:$0xff] %v11251_v34 }
 0x8a7   :  { %v11255_v6 = vpop.permute.xlu0 %4026  ;;  %3640 = vrot.lane.b32.xlu1 %v11164_v22, %s7170_s28 }
 0x8a8   :  { %15670 = vst [vmem:[#allocation159_spill] sm:$0xff] %v11255_v6  ;;  %v2502_v6 = vmax.f32 %v15674_v38, 0.0  ;;  %v15677_v38 = vld [vmem:[#allocation110_spill] sm:$0xff] }
 0x8a9   :  { %v11259_v20 = vpop.permute.xlu1 %4028  ;;  %3662 = vrot.lane.b32.xlu0 %v11171_v4, %s7170_s28  ;;  %v2506_v32 = vmax.f32 %v15677_v38, 0.0 }
 0x8aa   :  { %15671 = vst [vmem:[#allocation58_spill] sm:$0xff] %v11259_v20  ;;  %v2636_v20 = vmul.f32 %v15675_v40, %v10472_v63  ;;  %v2637_v63 = vmul.f32 %v15675_v40, %v10613_v44  ;;  %v11301_v42 = vmin.f32 %v2502_v6, 6.0 }
 0x8ab   :  { %v11263_v51 = vpop.permute.xlu0 %4050  ;;  %3664 = vrot.lane.b32.xlu1 %v11177_v2, %s7170_s28 }
 0x8ac   :  { %15672 = vst [vmem:[#allocation11_spill] sm:$0xff] %v11263_v51  ;;  %v2635_v51 = vmul.f32 %v15675_v40, %v10594_v0 }
 0x8ad   :  { %v11267_v49 = vpop.permute.xlu1 %4052  ;;  %3834 = vrot.lane.b32.xlu0 %v11157_v62, %s15539_s30 }
 0x8ae   :  { %15673 = vst [vmem:[#allocation63_spill] sm:$0xff] %v11267_v49  ;;  %v15676_v49 = vld [vmem:[#allocation69_spill] sm:$0xff] }
 0x8af   :  { %v2667_v34 = vpop.permute.xlu0 %2666  ;;  %3836 = vrot.lane.b32.xlu1 %v11164_v22, %s15539_s30  ;;  %v2639_v45 = vmul.f32 %v15676_v49, %v10596_v59  ;;  %v11284_v27 = vmul.f32 %v15676_v49, %v10465_v58  ;;  %v15679_v59 = vld [vmem:[#allocation99_spill] sm:$0xff] }
 0x8b0   :  { %v2706_v3 = vsel %vm441_vm2, %v2667_v34, %v11139_v7  ;;  %v2712_v0 = vsel %vm441_vm2, %v11127_v23, %v2667_v34  ;;  %v2508_v9 = vmax.f32 %v15679_v59, 0.0  ;;  %v2640_v34 = vmul.f32 %v15676_v49, %v10478_v36 }
 0x8b1   :  { %v2753_v58 = vmul.f32 %v15680_v24, %v2712_v0  ;;  %v2754_v21 = vmul.f32 %v15681_v15, %v2706_v3  ;;  %v2669_v38 = vpop.permute.xlu1 %2668  ;;  %3858 = vrot.lane.b32.xlu0 %v11171_v4, %s15539_s30  ;;  %v11317_v36 = vmin.f32 %v2506_v32, 6.0 }
 0x8b2   :  { %v2707_v44 = vsel %vm441_vm2, %v2669_v38, %v11145_v56  ;;  %v2713_v40 = vsel %vm441_vm2, %v11135_v17, %v2669_v38  ;;  %v11327_v38 = vmin.f32 %v2504_v54, 6.0 }
 0x8b3   :  { %v2807_v0 = vmul.f32 %v15682_v43, %v2753_v58  ;;  %v2808_v3 = vmul.f32 %v15682_v43, %v2754_v21  ;;  %v2757_v59 = vmul.f32 %v15680_v24, %v2713_v40  ;;  %v2758_v6 = vmul.f32 %v15681_v15, %v2707_v44  ;;  %v2691_v30 = vpop.permute.xlu0 %2690  ;;  %3860 = vrot.lane.b32.xlu1 %v11177_v2, %s15539_s30  ;;  %v15683_v40 = vld [vmem:[#allocation87_spill] sm:$0xff] }
 0x8b4   :  { %v2700_v33 = vsel %vm441_vm2, %v11139_v7, %v2691_v30  ;;  %v2718_v58 = vsel %vm441_vm2, %v2691_v30, %v11127_v23  ;;  %v2641_v21 = vmul.f32 %v15676_v49, %v10615_v28  ;;  %v11329_v44 = vmin.f32 %v2508_v9, 6.0 }
 0x8b5   :  { %v2811_v15 = vmul.f32 %v15683_v40, %v2757_v59  ;;  %v2812_v32 = vmul.f32 %v15683_v40, %v2758_v6  ;;  %v2693_v24 = vpop.permute.xlu1 %2692  ;;  %4030 = vrot.lane.b32.xlu0 %v11157_v62, %s15543_s27  ;;  %v2752_v7 = vmul.f32 %v10631_v16, %v2718_v58  ;;  %v2755_v18 = vmul.f32 %v10634_v39, %v2700_v33 }
 0x8b6   :  { %v2701_v28 = vsel %vm441_vm2, %v11145_v56, %v2693_v24  ;;  %v2719_v49 = vsel %vm441_vm2, %v2693_v24, %v11135_v17  ;;  %v2831_v30 = vadd.f32 %v2807_v0, %v2635_v51  ;;  %v2832_v23 = vadd.f32 %v2808_v3, %v2636_v20 }
 0x8b7   :  { %v2756_v54 = vmul.f32 %v10631_v16, %v2719_v49  ;;  %v2759_v9 = vmul.f32 %v10634_v39, %v2701_v28  ;;  %v2863_v59 = vpop.permute.xlu0 %2862  ;;  %4032 = vrot.lane.b32.xlu1 %v11164_v22, %s15543_s27  ;;  %v2806_v33 = vmul.f32 %v15682_v43, %v2752_v7  ;;  %v2809_v6 = vmul.f32 %v15682_v43, %v2755_v18  ;;  %v15684_v49 = vld [vmem:[#allocation88_spill] sm:$0xff] }
 0x8b8   :  { %v2902_v56 = vsel %vm638_vm3, %v2863_v59, %v11160_v37  ;;  %v2908_v51 = vsel %vm638_vm3, %v11148_v29, %v2863_v59  ;;  %v2835_v18 = vadd.f32 %v2811_v15, %v2639_v45  ;;  %v2836_v43 = vadd.f32 %v2812_v32, %v2640_v34 }
 0x8b9   :  { %v2810_v20 = vmul.f32 %v15683_v40, %v2756_v54  ;;  %v2813_v24 = vmul.f32 %v15683_v40, %v2759_v9  ;;  %v2949_v17 = vmul.f32 %v10637_v35, %v2908_v51  ;;  %v2950_v0 = vmul.f32 %v10640_v10, %v2902_v56  ;;  %v2865_v3 = vpop.permute.xlu1 %2864  ;;  %4054 = vrot.lane.b32.xlu0 %v11171_v4, %s15543_s27  ;;  %v15685_v51 = vld [vmem:[#allocation14_spill] sm:$0xff] }
 0x8ba   :  { %v2903_v58 = vsel %vm638_vm3, %v2865_v3, %v11167_v26  ;;  %v2909_v7 = vsel %vm638_vm3, %v11155_v47, %v2865_v3  ;;  %v2830_v28 = vadd.f32 %v2806_v33, %v2634_v41  ;;  %v2833_v40 = vadd.f32 %v2809_v6, %v2637_v63 }
 0x8bb   :  { %v3003_v54 = vmul.f32 %v15684_v49, %v2949_v17  ;;  %v3004_v9 = vmul.f32 %v15684_v49, %v2950_v0  ;;  %v2887_v59 = vpop.permute.xlu0 %2886  ;;  %4056 = vrot.lane.b32.xlu1 %v11177_v2, %s15543_s27  ;;  %v2953_v15 = vmul.f32 %v10637_v35, %v2909_v7  ;;  %v2954_v45 = vmul.f32 %v10640_v10, %v2903_v58 }
 0x8bc   :  { %v2896_v34 = vsel %vm638_vm3, %v11160_v37, %v2887_v59  ;;  %v2914_v41 = vsel %vm638_vm3, %v2887_v59, %v11148_v29  ;;  %v2834_v63 = vadd.f32 %v2810_v20, %v11284_v27  ;;  %v2837_v32 = vadd.f32 %v2813_v24, %v2641_v21 }
 0x8bd   :  { %v2948_v33 = vmul.f32 %v10646_v60, %v2914_v41  ;;  %v2951_v6 = vmul.f32 %v10649_v1, %v2896_v34  ;;  %v2889_v56 = vpop.permute.xlu1 %2888  ;;  %2670 = vrot.lane.b32.xlu0 %v11301_v42, %s7165_s19  ;;  %v3007_v17 = vmul.f32 %v15685_v51, %v2953_v15  ;;  %v3008_v0 = vmul.f32 %v15685_v51, %v2954_v45 }
 0x8be   :  { %v2897_v37 = vsel %vm638_vm3, %v11167_v26, %v2889_v56  ;;  %v2915_v29 = vsel %vm638_vm3, %v2889_v56, %v11155_v47  ;;  %v3027_v58 = vadd.f32 %v3003_v54, %v2831_v30  ;;  %v3028_v7 = vadd.f32 %v3004_v9, %v2832_v23  ;;  %v15686_v56 = vld [vmem:[#allocation112_spill] sm:$0xff] }
 0x8bf   :  { %v3002_v27 = vmul.f32 %v15684_v49, %v2948_v33  ;;  %v3005_v21 = vmul.f32 %v15684_v49, %v2951_v6  ;;  %v2952_v20 = vmul.f32 %v10646_v60, %v2915_v29  ;;  %v2955_v24 = vmul.f32 %v10649_v1, %v2897_v37  ;;  %v3059_v3 = vpop.permute.xlu0 %3058  ;;  %2672 = vrot.lane.b32.xlu1 %v11317_v36, %s7165_s19 }
 0x8c0   :  { %v3098_v26 = vsel %vm836_vm4, %v3059_v3, %v11183_v53  ;;  %v3104_v47 = vsel %vm836_vm4, %v11173_v61, %v3059_v3  ;;  %v3031_v59 = vadd.f32 %v3007_v17, %v2835_v18  ;;  %v3032_v49 = vadd.f32 %v3008_v0, %v2836_v43 }
 0x8c1   :  { %v3006_v15 = vmul.f32 %v15685_v51, %v2952_v20  ;;  %v3009_v45 = vmul.f32 %v15685_v51, %v2955_v24  ;;  %v3061_v34 = vpop.permute.xlu1 %3060  ;;  %2694 = vrot.lane.b32.xlu0 %v11327_v38, %s7165_s19  ;;  %v3145_v30 = vmul.f32 %v10652_v5, %v3104_v47  ;;  %v3146_v23 = vmul.f32 %v10655_v8, %v3098_v26 }
 0x8c2   :  { %v3099_v54 = vsel %vm836_vm4, %v3061_v34, %v11187_v52  ;;  %v3105_v18 = vsel %vm836_vm4, %v11179_v31, %v3061_v34  ;;  %v3026_v43 = vadd.f32 %v3002_v27, %v2830_v28  ;;  %v3029_v9 = vadd.f32 %v3005_v21, %v2833_v40  ;;  %v15687_v40 = vld [vmem:[#allocation111_spill] sm:$0xff] }
 0x8c3   :  { %v3149_v41 = vmul.f32 %v10652_v5, %v3105_v18  ;;  %v3150_v33 = vmul.f32 %v10655_v8, %v3099_v54  ;;  %v3083_v6 = vpop.permute.xlu0 %3082  ;;  %2696 = vrot.lane.b32.xlu1 %v11329_v44, %s7165_s19  ;;  %v3199_v51 = vmul.f32 %v15686_v56, %v3145_v30  ;;  %v3200_v17 = vmul.f32 %v15686_v56, %v3146_v23 }
 0x8c4   :  { %v3092_v0 = vsel %vm836_vm4, %v11183_v53, %v3083_v6  ;;  %v3110_v28 = vsel %vm836_vm4, %v3083_v6, %v11173_v61  ;;  %v3030_v24 = vadd.f32 %v3006_v15, %v2834_v63  ;;  %v3033_v3 = vadd.f32 %v3009_v45, %v2837_v32 }
 0x8c5   :  { %v3203_v37 = vmul.f32 %v15687_v40, %v3149_v41  ;;  %v3204_v29 = vmul.f32 %v15687_v40, %v3150_v33  ;;  %v3144_v27 = vmul.f32 %v10665_v11, %v3110_v28  ;;  %v3147_v21 = vmul.f32 %v15609_v48, %v3092_v0  ;;  %v3085_v20 = vpop.permute.xlu1 %3084  ;;  %2866 = vrot.lane.b32.xlu0 %v11301_v42, %s7166_s20 }
 0x8c6   :  { %v3093_v53 = vsel %vm836_vm4, %v11187_v52, %v3085_v20  ;;  %v3111_v61 = vsel %vm836_vm4, %v3085_v20, %v11179_v31  ;;  %v3223_v26 = vadd.f32 %v3199_v51, %v3027_v58  ;;  %v3224_v47 = vadd.f32 %v3200_v17, %v3028_v7  ;;  %v15689_v20 = vld [vmem:[#allocation26_spill] sm:$0xff] }
 0x8c7   :  { %v3198_v34 = vmul.f32 %v15686_v56, %v3144_v27  ;;  %v3201_v30 = vmul.f32 %v15686_v56, %v3147_v21  ;;  %v3255_v23 = vpop.permute.xlu0 %3254  ;;  %2868 = vrot.lane.b32.xlu1 %v11317_v36, %s7166_s20  ;;  %v3148_v63 = vmul.f32 %v10665_v11, %v3111_v61  ;;  %v3151_v32 = vmul.f32 %v15609_v48, %v3093_v53 }
 0x8c8   :  { %v3294_v52 = vsel %vm1034_vm5, %v3255_v23, %v11199_v50  ;;  %v3300_v31 = vsel %vm1034_vm5, %v11191_v25, %v3255_v23  ;;  %v3227_v58 = vadd.f32 %v3203_v37, %v3031_v59  ;;  %v3228_v7 = vadd.f32 %v3204_v29, %v3032_v49  ;;  %v15688_v49 = vld [vmem:[#allocation117_spill] sm:$0xff] }
 0x8c9   :  { %v3341_v15 = vmul.f32 %v15612_v57, %v3300_v31  ;;  %v3342_v45 = vmul.f32 %v15613_v14, %v3294_v52  ;;  %v3257_v54 = vpop.permute.xlu1 %3256  ;;  %2890 = vrot.lane.b32.xlu0 %v11327_v38, %s7166_s20  ;;  %v3202_v18 = vmul.f32 %v15687_v40, %v3148_v63  ;;  %v3205_v41 = vmul.f32 %v15687_v40, %v3151_v32  ;;  %v15690_v31 = vld [vmem:[#allocation50_spill] sm:$0xff] }
 0x8ca   :  { %v3295_v33 = vsel %vm1034_vm5, %v3257_v54, %v11203_v12  ;;  %v3301_v59 = vsel %vm1034_vm5, %v11195_v13, %v3257_v54  ;;  %v3222_v28 = vadd.f32 %v3198_v34, %v3026_v43  ;;  %v3225_v40 = vadd.f32 %v3201_v30, %v3029_v9 }
 0x8cb   :  { %v3395_v6 = vmul.f32 %v15688_v49, %v3341_v15  ;;  %v3396_v56 = vmul.f32 %v15688_v49, %v3342_v45  ;;  %v3345_v51 = vmul.f32 %v15612_v57, %v3301_v59  ;;  %v3346_v17 = vmul.f32 %v15613_v14, %v3295_v33  ;;  %v3279_v0 = vpop.permute.xlu0 %3278  ;;  %2892 = vrot.lane.b32.xlu1 %v11329_v44, %s7166_s20  ;;  %v15691_v15 = vld [vmem:[#allocation165_spill] sm:$0xff]  ;;  %v15692_v45 = vld [vmem:[#allocation154_spill] sm:$0xff] }
 0x8cc   :  { %v3288_v37 = vsel %vm1034_vm5, %v11199_v50, %v3279_v0  ;;  %v3306_v29 = vsel %vm1034_vm5, %v3279_v0, %v11191_v25  ;;  %v3226_v27 = vadd.f32 %v3202_v18, %v3030_v24  ;;  %v3229_v21 = vadd.f32 %v3205_v41, %v3033_v3  ;;  %v15693_v18 = vld [vmem:[#allocation156_spill] sm:$0xff] }
 0x8cd   :  { %v3399_v53 = vmul.f32 %v15689_v20, %v3345_v51  ;;  %v3400_v61 = vmul.f32 %v15689_v20, %v3346_v17  ;;  %v3281_v23 = vpop.permute.xlu1 %3280  ;;  %3062 = vrot.lane.b32.xlu0 %v11301_v42, %s7167_s21  ;;  %v3340_v43 = vmul.f32 %v15618_v55, %v3306_v29  ;;  %v3343_v9 = vmul.f32 %v15619_v19, %v3288_v37  ;;  %v15695_v51 = vld [vmem:[#allocation172_spill] sm:$0xff]  ;;  %v15696_v29 = vld [vmem:[#allocation38_spill] sm:$0xff] }
 0x8ce   :  { %v3289_v50 = vsel %vm1034_vm5, %v11203_v12, %v3281_v23  ;;  %v3307_v25 = vsel %vm1034_vm5, %v3281_v23, %v11195_v13  ;;  %v3419_v24 = vadd.f32 %v3395_v6, %v3223_v26  ;;  %v3420_v3 = vadd.f32 %v3396_v56, %v3224_v47  ;;  %v15694_v6 = vld [vmem:[#allocation3_spill] sm:$0xff] }
 0x8cf   :  { %v3344_v34 = vmul.f32 %v15618_v55, %v3307_v25  ;;  %v3347_v30 = vmul.f32 %v15619_v19, %v3289_v50  ;;  %v3451_v63 = vpop.permute.xlu0 %3450  ;;  %3064 = vrot.lane.b32.xlu1 %v11317_v36, %s7167_s21  ;;  %v3394_v32 = vmul.f32 %v15688_v49, %v3340_v43  ;;  %v3397_v52 = vmul.f32 %v15688_v49, %v3343_v9  ;;  %v15697_v9 = vld [vmem:[#allocation155_spill] sm:$0xff]  ;;  %v15698_v25 = vld [vmem:[#allocation160_spill] sm:$0xff] }
 0x8d0   :  { %v3490_v12 = vsel %vm1232_vm6, %v3451_v63, %v15690_v31  ;;  %v3496_v13 = vsel %vm1232_vm6, %v15691_v15, %v3451_v63  ;;  %v3423_v59 = vadd.f32 %v3399_v53, %v3227_v58  ;;  %v3424_v49 = vadd.f32 %v3400_v61, %v3228_v7  ;;  %v15699_v63 = vld [vmem:[#allocation48_spill] sm:$0xff] }
 0x8d1   :  { %v3398_v26 = vmul.f32 %v15689_v20, %v3344_v34  ;;  %v3401_v47 = vmul.f32 %v15689_v20, %v3347_v30  ;;  %v3536_v54 = vmul.f32 %v15692_v45, %v3496_v13  ;;  %v3537_v41 = vmul.f32 %v15693_v18, %v3490_v12  ;;  %v3453_v33 = vpop.permute.xlu1 %3452  ;;  %3086 = vrot.lane.b32.xlu0 %v11327_v38, %s7167_s21 }
 0x8d2   :  { %v3491_v56 = vsel %vm1232_vm6, %v3453_v33, %v15694_v6  ;;  %v3497_v17 = vsel %vm1232_vm6, %v15695_v51, %v3453_v33  ;;  %v3418_v0 = vadd.f32 %v3394_v32, %v3222_v28  ;;  %v3421_v37 = vadd.f32 %v3397_v52, %v3225_v40 }
 0x8d3   :  { %v3590_v20 = vmul.f32 %v15696_v29, %v3536_v54  ;;  %v3591_v23 = vmul.f32 %v15696_v29, %v3537_v41  ;;  %v3475_v43 = vpop.permute.xlu0 %3474  ;;  %3088 = vrot.lane.b32.xlu1 %v11329_v44, %s7167_s21  ;;  %v3540_v58 = vmul.f32 %v15692_v45, %v3497_v17  ;;  %v3541_v7 = vmul.f32 %v15693_v18, %v3491_v56  ;;  %v15700_v41 = vld [vmem:[#allocation31_spill] sm:$0xff] }
 0x8d4   :  { %v3484_v53 = vsel %vm1232_vm6, %v15690_v31, %v3475_v43  ;;  %v3502_v28 = vsel %vm1232_vm6, %v3475_v43, %v15691_v15  ;;  %v3422_v40 = vadd.f32 %v3398_v26, %v3226_v27  ;;  %v3425_v61 = vadd.f32 %v3401_v47, %v3229_v21 }
 0x8d5   :  { %v3538_v50 = vmul.f32 %v15697_v9, %v3484_v53  ;;  %v3539_v34 = vmul.f32 %v15698_v25, %v3502_v28  ;;  %v3477_v30 = vpop.permute.xlu1 %3476  ;;  %3258 = vrot.lane.b32.xlu0 %v11301_v42, %s7168_s22  ;;  %v3594_v32 = vmul.f32 %v15699_v63, %v3540_v58  ;;  %v3595_v52 = vmul.f32 %v15699_v63, %v3541_v7  ;;  %v15704_v7 = vld [vmem:[#allocation45_spill] sm:$0xff]  ;;  %v15705_v28 = vld [vmem:[#allocation30_spill] sm:$0xff] }
 0x8d6   :  { %v3485_v31 = vsel %vm1232_vm6, %v15694_v6, %v3477_v30  ;;  %v3503_v27 = vsel %vm1232_vm6, %v3477_v30, %v15695_v51  ;;  %v3614_v47 = vadd.f32 %v3590_v20, %v3418_v0  ;;  %v3615_v54 = vadd.f32 %v3591_v23, %v3419_v24  ;;  %v15701_v6 = vld [vmem:[#allocation40_spill] sm:$0xff]  ;;  %v15702_v0 = vld [vmem:[#allocation23_spill] sm:$0xff] }
 0x8d7   :  { %v3592_v21 = vmul.f32 %v15696_v29, %v3538_v50  ;;  %v3593_v12 = vmul.f32 %v15696_v29, %v3539_v34  ;;  %v3542_v15 = vmul.f32 %v15697_v9, %v3485_v31  ;;  %v3543_v13 = vmul.f32 %v15698_v25, %v3503_v27  ;;  %v3647_v26 = vpop.permute.xlu0 %3646  ;;  %3260 = vrot.lane.b32.xlu1 %v11317_v36, %s7168_s22  ;;  %v15703_v20 = vld [vmem:[#allocation36_spill] sm:$0xff] }
 0x8d8   :  { %v3686_v33 = vsel %vm1430_vm7, %v3647_v26, %v15700_v41  ;;  %v3692_v56 = vsel %vm1430_vm7, %v15701_v6, %v3647_v26  ;;  %v3618_v51 = vadd.f32 %v3594_v32, %v3422_v40  ;;  %v3619_v17 = vadd.f32 %v3595_v52, %v3423_v59  ;;  %v15706_v32 = vld [vmem:[#allocation18_spill] sm:$0xff]  ;;  %v15709_v26 = vld [vmem:[#allocation60_spill] sm:$0xff] }
 0x8d9   :  { %v3596_v29 = vmul.f32 %v15699_v63, %v3542_v15  ;;  %v3597_v43 = vmul.f32 %v15699_v63, %v3543_v13  ;;  %v3649_v58 = vpop.permute.xlu1 %3648  ;;  %3282 = vrot.lane.b32.xlu0 %v11327_v38, %s7168_s22  ;;  %v3732_v24 = vmul.f32 %v15702_v0, %v3692_v56  ;;  %v3733_v23 = vmul.f32 %v15703_v20, %v3686_v33  ;;  %v15708_v15 = vld [vmem:[#allocation62_spill] sm:$0xff] }
 0x8da   :  { %v3687_v53 = vsel %vm1430_vm7, %v3649_v58, %v15704_v7  ;;  %v3693_v59 = vsel %vm1430_vm7, %v15705_v28, %v3649_v58  ;;  %v3616_v40 = vadd.f32 %v3592_v21, %v3420_v3  ;;  %v3617_v50 = vadd.f32 %v3593_v12, %v3421_v37  ;;  %v15707_v37 = vld [vmem:[#allocation55_spill] sm:$0xff] }
 0x8db   :  { %v3736_v34 = vmul.f32 %v15702_v0, %v3693_v59  ;;  %v3737_v30 = vmul.f32 %v15703_v20, %v3687_v53  ;;  %v3671_v63 = vpop.permute.xlu0 %3670  ;;  %3284 = vrot.lane.b32.xlu1 %v11329_v44, %s7168_s22  ;;  %v3786_v52 = vmul.f32 %v15706_v32, %v3732_v24  ;;  %v3787_v31 = vmul.f32 %v15706_v32, %v3733_v23 }
 0x8dc   :  { %v3680_v27 = vsel %vm1430_vm7, %v15700_v41, %v3671_v63  ;;  %v3698_v3 = vsel %vm1430_vm7, %v3671_v63, %v15701_v6  ;;  %v3620_v58 = vadd.f32 %v3596_v29, %v3424_v49  ;;  %v3621_v24 = vadd.f32 %v3597_v43, %v3425_v61  ;;  %v15710_v29 = vld [vmem:[#allocation57_spill] sm:$0xff]  ;;  %v15712_v63 = vld [vmem:[#allocation170_spill] sm:$0xff] }
 0x8dd   :  { %v3790_v21 = vmul.f32 %v15707_v37, %v3736_v34  ;;  %v3791_v12 = vmul.f32 %v15707_v37, %v3737_v30  ;;  %v3734_v13 = vmul.f32 %v15708_v15, %v3680_v27  ;;  %v3735_v33 = vmul.f32 %v15709_v26, %v3698_v3  ;;  %v3673_v56 = vpop.permute.xlu1 %3672  ;;  %3454 = vrot.lane.b32.xlu0 %v11301_v42, %s7169_s23 }
 0x8de   :  { %v3681_v41 = vsel %vm1430_vm7, %v15704_v7, %v3673_v56  ;;  %v3699_v6 = vsel %vm1430_vm7, %v3673_v56, %v15705_v28  ;;  %v3810_v23 = vadd.f32 %v3786_v52, %v3614_v47  ;;  %v3811_v53 = vadd.f32 %v3787_v31, %v3615_v54  ;;  %v15711_v7 = vld [vmem:[#allocation56_spill] sm:$0xff]  ;;  %v15713_v52 = vld [vmem:[#allocation163_spill] sm:$0xff] }
 0x8df   :  { %v3788_v59 = vmul.f32 %v15706_v32, %v3734_v13  ;;  %v3789_v34 = vmul.f32 %v15706_v32, %v3735_v33  ;;  %v3843_v30 = vpop.permute.xlu0 %3842  ;;  %3456 = vrot.lane.b32.xlu1 %v11317_v36, %s7169_s23  ;;  %v3738_v49 = vmul.f32 %v15708_v15, %v3681_v41  ;;  %v3739_v61 = vmul.f32 %v15709_v26, %v3699_v6  ;;  %v15714_v33 = vld [vmem:[#allocation32_spill] sm:$0xff]  ;;  %v15715_v41 = vld [vmem:[#allocation47_spill] sm:$0xff]  ;;  %v15744_v15 = vld [vmem:[#allocation162_spill] sm:$0xff] }
 0x8e0   :  { %v3882_v43 = vsel %vm1628_vm8, %v3843_v30, %v15710_v29  ;;  %v3888_v47 = vsel %vm1628_vm8, %v15711_v7, %v3843_v30  ;;  %v3814_v54 = vadd.f32 %v3790_v21, %v3618_v51  ;;  %v3815_v28 = vadd.f32 %v3791_v12, %v3619_v17  ;;  %v15716_v17 = vld [vmem:[#allocation100_spill] sm:$0xff] }
 0x8e1   :  { %v3928_v32 = vmul.f32 %v15712_v63, %v3888_v47  ;;  %v3929_v31 = vmul.f32 %v15713_v52, %v3882_v43  ;;  %v3845_v27 = vpop.permute.xlu1 %3844  ;;  %3478 = vrot.lane.b32.xlu0 %v11327_v38, %s7169_s23  ;;  %v3792_v3 = vmul.f32 %v15707_v37, %v3738_v49  ;;  %v3793_v13 = vmul.f32 %v15707_v37, %v3739_v61 }
 0x8e2   :  { %v3883_v56 = vsel %vm1628_vm8, %v3845_v27, %v15714_v33  ;;  %v3889_v51 = vsel %vm1628_vm8, %v15715_v41, %v3845_v27  ;;  %v3812_v37 = vadd.f32 %v3788_v59, %v3616_v40  ;;  %v3813_v49 = vadd.f32 %v3789_v34, %v3617_v50  ;;  %v15717_v27 = vld [vmem:[#allocation13_spill] sm:$0xff]  ;;  %v15719_v59 = vld [vmem:[#allocation158_spill] sm:$0xff] }
 0x8e3   :  { %v3982_v21 = vmul.f32 %v15716_v17, %v3928_v32  ;;  %v3983_v12 = vmul.f32 %v15716_v17, %v3929_v31  ;;  %v3932_v6 = vmul.f32 %v15712_v63, %v3889_v51  ;;  %v3933_v30 = vmul.f32 %v15713_v52, %v3883_v56  ;;  %v3867_v43 = vpop.permute.xlu0 %3866  ;;  %3480 = vrot.lane.b32.xlu1 %v11329_v44, %s7169_s23  ;;  %v15718_v40 = vld [vmem:[#allocation157_spill] sm:$0xff] }
 0x8e4   :  { %v3876_v61 = vsel %vm1628_vm8, %v15710_v29, %v3867_v43  ;;  %v3894_v47 = vsel %vm1628_vm8, %v3867_v43, %v15711_v7  ;;  %v3816_v32 = vadd.f32 %v3792_v3, %v3620_v58  ;;  %v11620_v31 = vadd.f32 %v3793_v13, %v3621_v24 }
 0x8e5   :  { %v3986_v51 = vmul.f32 %v15717_v27, %v3932_v6  ;;  %v3987_v56 = vmul.f32 %v15717_v27, %v3933_v30  ;;  %v3869_v52 = vpop.permute.xlu1 %3868  ;;  %3650 = vrot.lane.b32.xlu0 %v11301_v42, %s7170_s28  ;;  %v3930_v50 = vmul.f32 %v15718_v40, %v3876_v61  ;;  %v3931_v34 = vmul.f32 %v15719_v59, %v3894_v47  ;;  %v15720_v61 = vld [vmem:[#allocation11_spill] sm:$0xff] }
 0x8e6   :  { %v3877_v29 = vsel %vm1628_vm8, %v15714_v33, %v3869_v52  ;;  %v3895_v58 = vsel %vm1628_vm8, %v3869_v52, %v15715_v41  ;;  %v4006_v24 = vadd.f32 %v3982_v21, %v3810_v23  ;;  %v4007_v7 = vadd.f32 %v3983_v12, %v3811_v53  ;;  %v15721_v47 = vld [vmem:[#allocation159_spill] sm:$0xff]  ;;  %v15723_v12 = vld [vmem:[#allocation168_spill] sm:$0xff] }
 0x8e7   :  { %v3934_v3 = vmul.f32 %v15718_v40, %v3877_v29  ;;  %v3935_v13 = vmul.f32 %v15719_v59, %v3895_v58  ;;  %v4039_v6 = vpop.permute.xlu0 %4038  ;;  %3652 = vrot.lane.b32.xlu1 %v11317_v36, %s7170_s28  ;;  %v3984_v30 = vmul.f32 %v15716_v17, %v3930_v50  ;;  %v3985_v43 = vmul.f32 %v15716_v17, %v3931_v34  ;;  %v15722_v41 = vld [vmem:[#allocation171_spill] sm:$0xff]  ;;  %v15725_v40 = vld [vmem:[#allocation58_spill] sm:$0xff] }
 0x8e8   :  { %v4078_v33 = vsel %vm1826_vm9, %v4039_v6, %v15720_v61  ;;  %v4084_v23 = vsel %vm1826_vm9, %v15721_v47, %v4039_v6  ;;  %v4010_v53 = vadd.f32 %v3986_v51, %v3814_v54  ;;  %v4011_v52 = vadd.f32 %v3987_v56, %v3815_v28  ;;  %v15724_v34 = vld [vmem:[#allocation63_spill] sm:$0xff]  ;;  %v15726_v56 = vld [vmem:[#allocation102_spill] sm:$0xff] }
 0x8e9   :  { %v4124_v21 = vmul.f32 %v15722_v41, %v4084_v23  ;;  %v4125_v29 = vmul.f32 %v15723_v12, %v4078_v33  ;;  %v4041_v58 = vpop.permute.xlu1 %4040  ;;  %3674 = vrot.lane.b32.xlu0 %v11327_v38, %s7170_s28  ;;  %v3988_v17 = vmul.f32 %v15717_v27, %v3934_v3  ;;  %v3989_v50 = vmul.f32 %v15717_v27, %v3935_v13 }
 0x8ea   :  { %v4079_v59 = vsel %vm1826_vm9, %v4041_v58, %v15724_v34  ;;  %v4085_v54 = vsel %vm1826_vm9, %v15725_v40, %v4041_v58  ;;  %v4008_v28 = vadd.f32 %v3984_v30, %v3812_v37  ;;  %v4009_v51 = vadd.f32 %v3985_v43, %v3813_v49  ;;  %v15727_v30 = vld [vmem:[#allocation28_spill] sm:$0xff] }
 0x8eb   :  { %v4178_v6 = vmul.f32 %v15726_v56, %v4124_v21  ;;  %v4179_v33 = vmul.f32 %v15726_v56, %v4125_v29  ;;  %v4063_v23 = vpop.permute.xlu0 %4062  ;;  %3676 = vrot.lane.b32.xlu1 %v11329_v44, %s7170_s28  ;;  %v4128_v27 = vmul.f32 %v15722_v41, %v4085_v54  ;;  %v4129_v3 = vmul.f32 %v15723_v12, %v4079_v59  ;;  %v15728_v21 = vld [vmem:[#allocation29_spill] sm:$0xff]  ;;  %v15729_v41 = vld [vmem:[#allocation94_spill] sm:$0xff] }
 0x8ec   :  { %v4072_v13 = vsel %vm1826_vm9, %v15720_v61, %v4063_v23  ;;  %v4090_v37 = vsel %vm1826_vm9, %v4063_v23, %v15721_v47 }
 0x8ed   :  { %v4202_v49 = vadd.f32 %v4178_v6, %v4006_v24  ;;  %v4126_v43 = vmul.f32 %v15727_v30, %v4072_v13  ;;  %v4127_v29 = vmul.f32 %v15728_v21, %v4090_v37  ;;  %v4065_v58 = vpop.permute.xlu1 %4064  ;;  %3846 = vrot.lane.b32.xlu0 %v11301_v42, %s15539_s30  ;;  %v4203_v54 = vadd.f32 %v4179_v33, %v4007_v7 }
 0x8ee   :  { %v4182_v59 = vmul.f32 %v15729_v41, %v4128_v27  ;;  %v4183_v12 = vmul.f32 %v15729_v41, %v4129_v3  ;;  %v4073_v61 = vsel %vm1826_vm9, %v15724_v34, %v4065_v58  ;;  %v4091_v24 = vsel %vm1826_vm9, %v4065_v58, %v15725_v40 }
 0x8ef   :  { %v4226_v47 = vmax.f32 %v4202_v49, 0.0  ;;  %v4180_v6 = vmul.f32 %v15726_v56, %v4126_v43  ;;  %v4181_v23 = vmul.f32 %v15726_v56, %v4127_v29  ;;  %v4130_v13 = vmul.f32 %v15727_v30, %v4073_v61  ;;  %v11685_v7 = vpop.permute.xlu0 %2658  ;;  %3848 = vrot.lane.b32.xlu1 %v11317_v36, %s15539_s30 }
 0x8f0   :  { %v4206_v33 = vadd.f32 %v4182_v59, %v4010_v53  ;;  %v4131_v27 = vmul.f32 %v15728_v21, %v4091_v24  ;;  %v4207_v34 = vadd.f32 %v4183_v12, %v4011_v52  ;;  %v4227_v3 = vmax.f32 %v4203_v54, 0.0 }
 0x8f1   :  { %v4012_v37 = vadd.f32 %v3988_v17, %v3816_v32  ;;  %v4204_v63 = vadd.f32 %v4180_v6, %v4008_v28  ;;  %v4184_v40 = vmul.f32 %v15729_v41, %v4130_v13  ;;  %3870 = vrot.lane.b32.xlu0 %v11327_v38, %s15539_s30  ;;  %v11693_v56 = vpop.permute.xlu1 %2660  ;;  %v4205_v49 = vadd.f32 %v4181_v23, %v4009_v51 }
 0x8f2   :  { %v4013_v43 = vadd.f32 %v3989_v50, %v11620_v31  ;;  %v4230_v29 = vmax.f32 %v4206_v33, 0.0  ;;  %v4185_v58 = vmul.f32 %v15729_v41, %v4131_v27  ;;  %v4231_v53 = vmax.f32 %v4207_v34, 0.0 }
 0x8f3   :  { %v4228_v59 = vmax.f32 %v4204_v63, 0.0  ;;  %v4208_v61 = vadd.f32 %v4184_v40, %v4012_v37  ;;  %v11697_v52 = vpop.permute.xlu0 %2682  ;;  %3872 = vrot.lane.b32.xlu1 %v11329_v44, %s15539_s30  ;;  %v4251_v32 = vmin.f32 %v4227_v3, 6.0  ;;  %v4250_v12 = vmin.f32 %v4226_v47, 6.0 }
 0x8f4   :  { %v4255_v17 = vmin.f32 %v4231_v53, 6.0  ;;  %v4254_v28 = vmin.f32 %v4230_v29, 6.0  ;;  %v4209_v54 = vadd.f32 %v4185_v58, %v4013_v43  ;;  %v4229_v24 = vmax.f32 %v4205_v49, 0.0 }
 0x8f5   :  { %v4232_v51 = vmax.f32 %v4208_v61, 0.0  ;;  %4042 = vrot.lane.b32.xlu0 %v11301_v42, %s15543_s27  ;;  %v11703_v31 = vpop.permute.xlu1 %2684  ;;  %v4252_v23 = vmin.f32 %v4228_v59, 6.0 }
 0x8f6   :  { %v4273_v41 = vpack.c.bf16 %v4255_v17, %v4251_v32  ;;  %v4272_v63 = vpack.c.bf16 %v4254_v28, %v4250_v12  ;;  %v4233_v50 = vmax.f32 %v4209_v54, 0.0  ;;  %v4253_v13 = vmin.f32 %v4229_v24, 6.0 }
 0x8f7   :  { %v11705_v6 = vpop.permute.xlu0 %2854  ;;  %4044 = vrot.lane.b32.xlu1 %v11317_v36, %s15543_s27  ;;  %v4256_v47 = vmin.f32 %v4232_v51, 6.0 }
 0x8f8   :  { %4285 = vmatprep.subr.bf16.mxu0 %v4273_v41  ;;  %v4257_v33 = vmin.f32 %v4233_v50, 6.0 }
 0x8f9   :  { %4286 = vmatpush1.bf16.msra.mxu0 %v4272_v63  ;;  %4066 = vrot.lane.b32.xlu0 %v11327_v38, %s15543_s27  ;;  %v11711_v27 = vpop.permute.xlu1 %2856  ;;  %v4274_v34 = vpack.c.bf16 %v4256_v47, %v4252_v23 }
 0x8fa   :  { %v4275_v3 = vpack.c.bf16 %v4257_v33, %v4253_v13 }
 0x8fb   :  { %v11713_v37 = vpop.permute.xlu0 %2878  ;;  %4068 = vrot.lane.b32.xlu1 %v11329_v44, %s15543_s27 }
 0x8fc   :  { %4326 = vmatprep.subr.bf16.mxu1 %v4275_v3 }
 0x8fd   :  { %4327 = vmatpush1.bf16.msra.mxu1 %v4274_v34  ;;  %v11717_v40 = vpop.permute.xlu1 %2880 }
 0x8ff   :  { %v11719_v49 = vpop.permute.xlu0 %3050 }
 0x901   :  { %v11721_v43 = vpop.permute.xlu1 %3052 }
 0x903   :  { %v11723_v29 = vpop.permute.xlu0 %3074 }
 0x905   :  { %v11725_v58 = vpop.permute.xlu1 %3076 }
 0x907   :  { %v11727_v53 = vpop.permute.xlu0 %3246 }
 0x909   :  { %v11729_v59 = vpop.permute.xlu1 %3248 }
 0x90b   :  { %v11731_v61 = vpop.permute.xlu0 %3270 }
 0x90d   :  { %v11733_v32 = vpop.permute.xlu1 %3272 }
 0x90f   :  { %v11735_v12 = vpop.permute.xlu0 %3442 }
 0x911   :  { %v11737_v17 = vpop.permute.xlu1 %3444 }
 0x913   :  { %v11739_v28 = vpop.permute.xlu0 %3466 }
 0x915   :  { %v11741_v54 = vpop.permute.xlu1 %3468 }
 0x917   :  { %v11743_v24 = vpop.permute.xlu0 %3638 }
 0x918   :  { %15730 = vst [vmem:[#allocation161_spill] sm:$0xff] %v11743_v24 }
 0x919   :  { %v11745_v51 = vpop.permute.xlu1 %3640 }
 0x91a   :  { %15731 = vst [vmem:[#allocation77_spill] sm:$0xff] %v11745_v51 }
 0x91b   :  { %v11747_v41 = vpop.permute.xlu0 %3662 }
 0x91c   :  { %15732 = vst [vmem:[#allocation17_spill] sm:$0xff] %v11747_v41 }
 0x91d   :  { %v11749_v63 = vpop.permute.xlu1 %3664 }
 0x91e   :  { %15733 = vst [vmem:[#allocation22_spill] sm:$0xff] %v11749_v63 }
 0x91f   :  { %v11751_v50 = vpop.permute.xlu0 %3834 }
 0x920   :  { %15734 = vst [vmem:[#allocation59_spill] sm:$0xff] %v11751_v50  ;;  %v15742_v50 = vld [vmem:[#allocation73_spill] sm:$0xff] }
 0x921   :  { %v11753_v23 = vpop.permute.xlu1 %3836  ;;  %v2644_v41 = vmul.f32 %v15742_v50, %v11171_v4  ;;  %v2645_v25 = vmul.f32 %v15742_v50, %v11327_v38 }
 0x922   :  { %15735 = vst [vmem:[#allocation16_spill] sm:$0xff] %v11753_v23 }
 0x923   :  { %v11755_v47 = vpop.permute.xlu0 %3858 }
 0x924   :  { %15736 = vst [vmem:[#allocation76_spill] sm:$0xff] %v11755_v47  ;;  %v15743_v47 = vld [vmem:[#allocation147_spill] sm:$0xff] }
 0x925   :  { %v11757_v13 = vpop.permute.xlu1 %3860 }
 0x926   :  { %15737 = vst [vmem:[#allocation108_spill] sm:$0xff] %v11757_v13  ;;  %v2643_v13 = vmul.f32 %v15742_v50, %v11301_v42 }
 0x927   :  { %v11759_v33 = vpop.permute.xlu0 %4030 }
 0x928   :  { %15738 = vst [vmem:[#allocation109_spill] sm:$0xff] %v11759_v33 }
 0x929   :  { %v11761_v34 = vpop.permute.xlu1 %4032 }
 0x92a   :  { %15739 = vst [vmem:[#allocation34_spill] sm:$0xff] %v11761_v34 }
 0x92b   :  { %v11763_v3 = vpop.permute.xlu0 %4054 }
 0x92c   :  { %15740 = vst [vmem:[#allocation61_spill] sm:$0xff] %v11763_v3  ;;  %v15745_v3 = vld [vmem:[#allocation75_spill] sm:$0xff] }
 0x92d   :  { %v11765_v21 = vpop.permute.xlu1 %4056  ;;  %v2647_v63 = vmul.f32 %v15745_v3, %v11317_v36  ;;  %v2646_v42 = vmul.f32 %v15745_v3, %v11164_v22  ;;  %v2649_v4 = vmul.f32 %v15745_v3, %v11329_v44 }
 0x92e   :  { %15741 = vst [vmem:[#allocation44_spill] sm:$0xff] %v11765_v21  ;;  %v2642_v21 = vmul.f32 %v15742_v50, %v11157_v62 }
 0x92f   :  { %v2671_v30 = vpop.permute.xlu0 %2670 }
 0x930   :  { %v2708_v26 = vsel %vm441_vm2, %v2671_v30, %v11697_v52  ;;  %v2714_v23 = vsel %vm441_vm2, %v11685_v7, %v2671_v30 }
 0x931   :  { %v2761_v33 = vmul.f32 %v15743_v47, %v2714_v23  ;;  %v2762_v34 = vmul.f32 %v15744_v15, %v2708_v26  ;;  %v2673_v51 = vpop.permute.xlu1 %2672  ;;  %v15746_v23 = vld [vmem:[#allocation24_spill] sm:$0xff] }
 0x932   :  { %v2709_v20 = vsel %vm441_vm2, %v2673_v51, %v11703_v31  ;;  %v2715_v30 = vsel %vm441_vm2, %v11693_v56, %v2673_v51 }
 0x933   :  { %v2815_v26 = vmul.f32 %v15746_v23, %v2761_v33  ;;  %v2816_v0 = vmul.f32 %v15746_v23, %v2762_v34  ;;  %v2765_v62 = vmul.f32 %v15743_v47, %v2715_v30  ;;  %v2766_v24 = vmul.f32 %v15744_v15, %v2709_v20  ;;  %v2695_v36 = vpop.permute.xlu0 %2694  ;;  %v15747_v33 = vld [vmem:[#allocation98_spill] sm:$0xff] }
 0x934   :  { %v2702_v51 = vsel %vm441_vm2, %v11697_v52, %v2695_v36  ;;  %v2720_v22 = vsel %vm441_vm2, %v2695_v36, %v11685_v7  ;;  %v2648_v47 = vmul.f32 %v15745_v3, %v11177_v2 }
 0x935   :  { %v2819_v20 = vmul.f32 %v15747_v33, %v2765_v62  ;;  %v2820_v15 = vmul.f32 %v15747_v33, %v2766_v24  ;;  %v2697_v34 = vpop.permute.xlu1 %2696  ;;  %v2760_v38 = vmul.f32 %v10631_v16, %v2720_v22  ;;  %v2763_v50 = vmul.f32 %v10634_v39, %v2702_v51 }
 0x936   :  { %v2703_v52 = vsel %vm441_vm2, %v11703_v31, %v2697_v34  ;;  %v2721_v2 = vsel %vm441_vm2, %v2697_v34, %v11693_v56  ;;  %v2839_v7 = vadd.f32 %v2815_v26, %v2643_v13  ;;  %v2840_v30 = vadd.f32 %v2816_v0, %v2644_v41 }
 0x937   :  { %v2764_v24 = vmul.f32 %v10631_v16, %v2721_v2  ;;  %v2767_v62 = vmul.f32 %v10634_v39, %v2703_v52  ;;  %v2867_v44 = vpop.permute.xlu0 %2866  ;;  %v2814_v3 = vmul.f32 %v15746_v23, %v2760_v38  ;;  %v2817_v36 = vmul.f32 %v15746_v23, %v2763_v50  ;;  %v15748_v50 = vld [vmem:[#allocation12_spill] sm:$0xff] }
 0x938   :  { %v2904_v51 = vsel %vm638_vm3, %v2867_v44, %v11713_v37  ;;  %v2910_v31 = vsel %vm638_vm3, %v11705_v6, %v2867_v44  ;;  %v2843_v13 = vadd.f32 %v2819_v20, %v2647_v63  ;;  %v2844_v26 = vadd.f32 %v2820_v15, %v2648_v47 }
 0x939   :  { %v2818_v56 = vmul.f32 %v15747_v33, %v2764_v24  ;;  %v2821_v0 = vmul.f32 %v15747_v33, %v2767_v62  ;;  %v2957_v16 = vmul.f32 %v10637_v35, %v2910_v31  ;;  %v2958_v39 = vmul.f32 %v10640_v10, %v2904_v51  ;;  %v2869_v41 = vpop.permute.xlu1 %2868 }
 0x93a   :  { %v2905_v23 = vsel %vm638_vm3, %v2869_v41, %v11717_v40  ;;  %v2911_v22 = vsel %vm638_vm3, %v11711_v27, %v2869_v41  ;;  %v2838_v34 = vadd.f32 %v2814_v3, %v2642_v21  ;;  %v2841_v38 = vadd.f32 %v2817_v36, %v2645_v25  ;;  %v15749_v3 = vld [vmem:[#allocation116_spill] sm:$0xff] }
 0x93b   :  { %v3011_v52 = vmul.f32 %v15748_v50, %v2957_v16  ;;  %v3012_v33 = vmul.f32 %v15748_v50, %v2958_v39  ;;  %v2891_v2 = vpop.permute.xlu0 %2890  ;;  %v2961_v24 = vmul.f32 %v10637_v35, %v2911_v22  ;;  %v2962_v63 = vmul.f32 %v10640_v10, %v2905_v23 }
 0x93c   :  { %v2898_v47 = vsel %vm638_vm3, %v11713_v37, %v2891_v2  ;;  %v2916_v20 = vsel %vm638_vm3, %v2891_v2, %v11705_v6  ;;  %v2842_v15 = vadd.f32 %v2818_v56, %v2646_v42  ;;  %v2845_v21 = vadd.f32 %v2821_v0, %v2649_v4  ;;  %v15750_v2 = vld [vmem:[#allocation51_spill] sm:$0xff] }
 0x93d   :  { %v2956_v25 = vmul.f32 %v10646_v60, %v2916_v20  ;;  %v2959_v62 = vmul.f32 %v10649_v1, %v2898_v47  ;;  %v2893_v44 = vpop.permute.xlu1 %2892  ;;  %v3015_v36 = vmul.f32 %v15749_v3, %v2961_v24  ;;  %v3016_v35 = vmul.f32 %v15749_v3, %v2962_v63 }
 0x93e   :  { %v2899_v10 = vsel %vm638_vm3, %v11717_v40, %v2893_v44  ;;  %v2917_v37 = vsel %vm638_vm3, %v2893_v44, %v11711_v27  ;;  %v3035_v56 = vadd.f32 %v3011_v52, %v2839_v7  ;;  %v3036_v0 = vadd.f32 %v3012_v33, %v2840_v30 }
 0x93f   :  { %v3010_v6 = vmul.f32 %v15748_v50, %v2956_v25  ;;  %v3013_v42 = vmul.f32 %v15748_v50, %v2959_v62  ;;  %v2960_v4 = vmul.f32 %v10646_v60, %v2917_v37  ;;  %v2963_v51 = vmul.f32 %v10649_v1, %v2899_v10  ;;  %v3063_v31 = vpop.permute.xlu0 %3062  ;;  %v15751_v25 = vld [vmem:[#allocation42_spill] sm:$0xff] }
 0x940   :  { %v3100_v16 = vsel %vm836_vm4, %v3063_v31, %v11723_v29  ;;  %v3106_v40 = vsel %vm836_vm4, %v11719_v49, %v3063_v31  ;;  %v3039_v27 = vadd.f32 %v3015_v36, %v2843_v13  ;;  %v3040_v39 = vadd.f32 %v3016_v35, %v2844_v26 }
 0x941   :  { %v3014_v41 = vmul.f32 %v15749_v3, %v2960_v4  ;;  %v3017_v23 = vmul.f32 %v15749_v3, %v2963_v51  ;;  %v3065_v60 = vpop.permute.xlu1 %3064  ;;  %v3153_v1 = vmul.f32 %v10652_v5, %v3106_v40  ;;  %v3154_v7 = vmul.f32 %v10655_v8, %v3100_v16  ;;  %v15752_v40 = vld [vmem:[#allocation49_spill] sm:$0xff] }
 0x942   :  { %v3101_v30 = vsel %vm836_vm4, %v3065_v60, %v11725_v58  ;;  %v3107_v22 = vsel %vm836_vm4, %v11721_v43, %v3065_v60  ;;  %v3034_v50 = vadd.f32 %v3010_v6, %v2838_v34  ;;  %v3037_v13 = vadd.f32 %v3013_v42, %v2841_v38 }
 0x943   :  { %v3157_v26 = vmul.f32 %v10652_v5, %v3107_v22  ;;  %v3158_v52 = vmul.f32 %v10655_v8, %v3101_v30  ;;  %v3087_v33 = vpop.permute.xlu0 %3086  ;;  %v3207_v24 = vmul.f32 %v15750_v2, %v3153_v1  ;;  %v3208_v63 = vmul.f32 %v15750_v2, %v3154_v7 }
 0x944   :  { %v3094_v47 = vsel %vm836_vm4, %v11723_v29, %v3087_v33  ;;  %v3112_v20 = vsel %vm836_vm4, %v3087_v33, %v11719_v49  ;;  %v3038_v44 = vadd.f32 %v3014_v41, %v2842_v15  ;;  %v3041_v3 = vadd.f32 %v3017_v23, %v2845_v21  ;;  %v15753_v33 = vld [vmem:[#allocation39_spill] sm:$0xff] }
 0x945   :  { %v3211_v34 = vmul.f32 %v15751_v25, %v3157_v26  ;;  %v3212_v38 = vmul.f32 %v15751_v25, %v3158_v52  ;;  %v3152_v5 = vmul.f32 %v10665_v11, %v3112_v20  ;;  %v3155_v8 = vmul.f32 %v15609_v48, %v3094_v47  ;;  %v3089_v62 = vpop.permute.xlu1 %3088 }
 0x946   :  { %v3095_v36 = vsel %vm836_vm4, %v11725_v58, %v3089_v62  ;;  %v3113_v29 = vsel %vm836_vm4, %v3089_v62, %v11721_v43  ;;  %v3231_v49 = vadd.f32 %v3207_v24, %v3035_v56  ;;  %v3232_v35 = vadd.f32 %v3208_v63, %v3036_v0 }
 0x947   :  { %v3206_v10 = vmul.f32 %v15750_v2, %v3152_v5  ;;  %v3209_v37 = vmul.f32 %v15750_v2, %v3155_v8  ;;  %v3259_v6 = vpop.permute.xlu0 %3258  ;;  %v3156_v42 = vmul.f32 %v10665_v11, %v3113_v29  ;;  %v3159_v15 = vmul.f32 %v15609_v48, %v3095_v36 }
 0x948   :  { %v3296_v21 = vsel %vm1034_vm5, %v3259_v6, %v11731_v61  ;;  %v3302_v58 = vsel %vm1034_vm5, %v11727_v53, %v3259_v6  ;;  %v3235_v43 = vadd.f32 %v3211_v34, %v3039_v27  ;;  %v3236_v4 = vadd.f32 %v3212_v38, %v3040_v39 }
 0x949   :  { %v3349_v51 = vmul.f32 %v15612_v57, %v3302_v58  ;;  %v3350_v31 = vmul.f32 %v15613_v14, %v3296_v21  ;;  %v3261_v56 = vpop.permute.xlu1 %3260  ;;  %v3210_v0 = vmul.f32 %v15751_v25, %v3156_v42  ;;  %v3213_v11 = vmul.f32 %v15751_v25, %v3159_v15 }
 0x94a   :  { %v3297_v48 = vsel %vm1034_vm5, %v3261_v56, %v11733_v32  ;;  %v3303_v16 = vsel %vm1034_vm5, %v11729_v59, %v3261_v56  ;;  %v3230_v1 = vadd.f32 %v3206_v10, %v3034_v50  ;;  %v3233_v7 = vadd.f32 %v3209_v37, %v3037_v13  ;;  %v15754_v10 = vld [vmem:[#allocation120_spill] sm:$0xff] }
 0x94b   :  { %v3403_v27 = vmul.f32 %v15752_v40, %v3349_v51  ;;  %v3404_v39 = vmul.f32 %v15752_v40, %v3350_v31  ;;  %v3353_v41 = vmul.f32 %v15612_v57, %v3303_v16  ;;  %v3354_v23 = vmul.f32 %v15613_v14, %v3297_v48  ;;  %v3283_v60 = vpop.permute.xlu0 %3282  ;;  %v15755_v56 = vld [vmem:[#allocation160_spill] sm:$0xff]  ;;  %v15756_v48 = vld [vmem:[#allocation121_spill] sm:$0xff] }
 0x94c   :  { %v3290_v30 = vsel %vm1034_vm5, %v11731_v61, %v3283_v60  ;;  %v3308_v22 = vsel %vm1034_vm5, %v3283_v60, %v11727_v53  ;;  %v3234_v26 = vadd.f32 %v3210_v0, %v3038_v44  ;;  %v3237_v52 = vadd.f32 %v3213_v11, %v3041_v3 }
 0x94d   :  { %v3407_v2 = vmul.f32 %v15753_v33, %v3353_v41  ;;  %v3408_v24 = vmul.f32 %v15753_v33, %v3354_v23  ;;  %v3285_v57 = vpop.permute.xlu1 %3284  ;;  %v3348_v14 = vmul.f32 %v15618_v55, %v3308_v22  ;;  %v3351_v50 = vmul.f32 %v15619_v19, %v3290_v30 }
 0x94e   :  { %v3291_v13 = vsel %vm1034_vm5, %v11733_v32, %v3285_v57  ;;  %v3309_v61 = vsel %vm1034_vm5, %v3285_v57, %v11729_v59  ;;  %v3427_v53 = vadd.f32 %v3403_v27, %v3231_v49  ;;  %v3428_v63 = vadd.f32 %v3404_v39, %v3232_v35 }
 0x94f   :  { %v3352_v47 = vmul.f32 %v15618_v55, %v3309_v61  ;;  %v3355_v20 = vmul.f32 %v15619_v19, %v3291_v13  ;;  %v3455_v25 = vpop.permute.xlu0 %3454  ;;  %v3402_v34 = vmul.f32 %v15752_v40, %v3348_v14  ;;  %v3405_v38 = vmul.f32 %v15752_v40, %v3351_v50  ;;  %v15761_v14 = vld [vmem:[#allocation22_spill] sm:$0xff]  ;;  %v15762_v13 = vld [vmem:[#allocation77_spill] sm:$0xff] }
 0x950   :  { %v3492_v5 = vsel %vm1232_vm6, %v3455_v25, %v11739_v28  ;;  %v3498_v32 = vsel %vm1232_vm6, %v11735_v12, %v3455_v25  ;;  %v3431_v44 = vadd.f32 %v3407_v2, %v3235_v43  ;;  %v3432_v3 = vadd.f32 %v3408_v24, %v3236_v4  ;;  %v15760_v24 = vld [vmem:[#allocation36_spill] sm:$0xff] }
 0x951   :  { %v3406_v59 = vmul.f32 %v15753_v33, %v3352_v47  ;;  %v3409_v8 = vmul.f32 %v15753_v33, %v3355_v20  ;;  %v3544_v55 = vmul.f32 %v15692_v45, %v3498_v32  ;;  %v3545_v19 = vmul.f32 %v15693_v18, %v3492_v5  ;;  %v3457_v62 = vpop.permute.xlu1 %3456  ;;  %v15759_v33 = vld [vmem:[#allocation23_spill] sm:$0xff] }
 0x952   :  { %v3493_v36 = vsel %vm1232_vm6, %v3457_v62, %v11741_v54  ;;  %v3499_v29 = vsel %vm1232_vm6, %v11737_v17, %v3457_v62  ;;  %v3426_v49 = vadd.f32 %v3402_v34, %v3230_v1  ;;  %v3429_v35 = vadd.f32 %v3405_v38, %v3233_v7  ;;  %v15757_v1 = vld [vmem:[#allocation17_spill] sm:$0xff]  ;;  %v15765_v62 = vld [vmem:[#allocation62_spill] sm:$0xff] }
 0x953   :  { %v3598_v37 = vmul.f32 %v15754_v10, %v3544_v55  ;;  %v3599_v6 = vmul.f32 %v15754_v10, %v3545_v19  ;;  %v3479_v42 = vpop.permute.xlu0 %3478  ;;  %v3548_v15 = vmul.f32 %v15692_v45, %v3499_v29  ;;  %v3549_v21 = vmul.f32 %v15693_v18, %v3493_v36  ;;  %v15763_v38 = vld [vmem:[#allocation101_spill] sm:$0xff]  ;;  %v15764_v55 = vld [vmem:[#allocation96_spill] sm:$0xff] }
 0x954   :  { %v3486_v58 = vsel %vm1232_vm6, %v11739_v28, %v3479_v42  ;;  %v3504_v43 = vsel %vm1232_vm6, %v3479_v42, %v11735_v12  ;;  %v3430_v4 = vadd.f32 %v3406_v59, %v3234_v26  ;;  %v3433_v51 = vadd.f32 %v3409_v8, %v3237_v52  ;;  %v15766_v36 = vld [vmem:[#allocation60_spill] sm:$0xff] }
 0x955   :  { %v3546_v31 = vmul.f32 %v15697_v9, %v3486_v58  ;;  %v3547_v0 = vmul.f32 %v15755_v56, %v3504_v43  ;;  %v3481_v11 = vpop.permute.xlu1 %3480  ;;  %v3602_v16 = vmul.f32 %v15756_v48, %v3548_v15  ;;  %v3603_v45 = vmul.f32 %v15756_v48, %v3549_v21 }
 0x956   :  { %v3487_v18 = vsel %vm1232_vm6, %v11741_v54, %v3481_v11  ;;  %v3505_v28 = vsel %vm1232_vm6, %v3481_v11, %v11737_v17  ;;  %v3622_v23 = vadd.f32 %v3598_v37, %v3426_v49  ;;  %v3623_v60 = vadd.f32 %v3599_v6, %v3427_v53  ;;  %v15758_v54 = vld [vmem:[#allocation161_spill] sm:$0xff] }
 0x957   :  { %v3600_v12 = vmul.f32 %v15754_v10, %v3546_v31  ;;  %v3601_v40 = vmul.f32 %v15754_v10, %v3547_v0  ;;  %v3550_v27 = vmul.f32 %v15697_v9, %v3487_v18  ;;  %v3551_v39 = vmul.f32 %v15755_v56, %v3505_v28  ;;  %v3651_v41 = vpop.permute.xlu0 %3650  ;;  %v15768_v56 = vld [vmem:[#allocation59_spill] sm:$0xff] }
 0x958   :  { %v3688_v7 = vsel %vm1430_vm7, %v3651_v41, %v15757_v1  ;;  %v3694_v30 = vsel %vm1430_vm7, %v15758_v54, %v3651_v41  ;;  %v3626_v17 = vadd.f32 %v3602_v16, %v3430_v4  ;;  %v3627_v22 = vadd.f32 %v3603_v45, %v3431_v44  ;;  %v15769_v16 = vld [vmem:[#allocation170_spill] sm:$0xff]  ;;  %v15770_v18 = vld [vmem:[#allocation163_spill] sm:$0xff] }
 0x959   :  { %v3604_v26 = vmul.f32 %v15756_v48, %v3550_v27  ;;  %v3605_v52 = vmul.f32 %v15756_v48, %v3551_v39  ;;  %v3653_v9 = vpop.permute.xlu1 %3652  ;;  %v3740_v2 = vmul.f32 %v15759_v33, %v3694_v30  ;;  %v3741_v57 = vmul.f32 %v15760_v24, %v3688_v7  ;;  %v15771_v39 = vld [vmem:[#allocation108_spill] sm:$0xff] }
 0x95a   :  { %v3689_v50 = vsel %vm1430_vm7, %v3653_v9, %v15761_v14  ;;  %v3695_v61 = vsel %vm1430_vm7, %v15762_v13, %v3653_v9  ;;  %v3624_v53 = vadd.f32 %v3600_v12, %v3428_v63  ;;  %v3625_v47 = vadd.f32 %v3601_v40, %v3429_v35 }
 0x95b   :  { %v3744_v20 = vmul.f32 %v15759_v33, %v3695_v61  ;;  %v3745_v25 = vmul.f32 %v15760_v24, %v3689_v50  ;;  %v3675_v34 = vpop.permute.xlu0 %3674  ;;  %v3794_v5 = vmul.f32 %v15763_v38, %v3740_v2  ;;  %v3795_v32 = vmul.f32 %v15763_v38, %v3741_v57  ;;  %v15774_v57 = vld [vmem:[#allocation150_spill] sm:$0xff]  ;;  %v15775_v61 = vld [vmem:[#allocation157_spill] sm:$0xff] }
 0x95c   :  { %v3682_v59 = vsel %vm1430_vm7, %v15757_v1, %v3675_v34  ;;  %v3700_v8 = vsel %vm1430_vm7, %v3675_v34, %v15758_v54  ;;  %v3628_v35 = vadd.f32 %v3604_v26, %v3432_v3  ;;  %v3629_v10 = vadd.f32 %v3605_v52, %v3433_v51  ;;  %v15767_v51 = vld [vmem:[#allocation76_spill] sm:$0xff]  ;;  %v15773_v1 = vld [vmem:[#allocation149_spill] sm:$0xff] }
 0x95d   :  { %v3798_v63 = vmul.f32 %v15764_v55, %v3744_v20  ;;  %v3799_v19 = vmul.f32 %v15764_v55, %v3745_v25  ;;  %v3742_v44 = vmul.f32 %v15765_v62, %v3682_v59  ;;  %v3743_v29 = vmul.f32 %v15766_v36, %v3700_v8  ;;  %v3677_v49 = vpop.permute.xlu1 %3676  ;;  %v15776_v25 = vld [vmem:[#allocation158_spill] sm:$0xff] }
 0x95e   :  { %v3683_v37 = vsel %vm1430_vm7, %v15761_v14, %v3677_v49  ;;  %v3701_v6 = vsel %vm1430_vm7, %v3677_v49, %v15762_v13  ;;  %v3818_v42 = vadd.f32 %v3794_v5, %v3622_v23  ;;  %v3819_v15 = vadd.f32 %v3795_v32, %v3623_v60  ;;  %v15772_v23 = vld [vmem:[#allocation16_spill] sm:$0xff] }
 0x95f   :  { %v3796_v21 = vmul.f32 %v15763_v38, %v3742_v44  ;;  %v3797_v58 = vmul.f32 %v15763_v38, %v3743_v29  ;;  %v3847_v43 = vpop.permute.xlu0 %3846  ;;  %v3746_v4 = vmul.f32 %v15765_v62, %v3683_v37  ;;  %v3747_v3 = vmul.f32 %v15766_v36, %v3701_v6  ;;  %v15778_v44 = vld [vmem:[#allocation109_spill] sm:$0xff]  ;;  %v15780_v37 = vld [vmem:[#allocation168_spill] sm:$0xff] }
 0x960   :  { %v3884_v31 = vsel %vm1628_vm8, %v3847_v43, %v15767_v51  ;;  %v3890_v0 = vsel %vm1628_vm8, %v15768_v56, %v3847_v43  ;;  %v3822_v11 = vadd.f32 %v3798_v63, %v3626_v17  ;;  %v3823_v48 = vadd.f32 %v3799_v19, %v3627_v22  ;;  %v15777_v19 = vld [vmem:[#allocation61_spill] sm:$0xff] }
 0x961   :  { %v3936_v45 = vmul.f32 %v15769_v16, %v3890_v0  ;;  %v3937_v28 = vmul.f32 %v15770_v18, %v3884_v31  ;;  %v3849_v12 = vpop.permute.xlu1 %3848  ;;  %v3800_v40 = vmul.f32 %v15764_v55, %v3746_v4  ;;  %v3801_v27 = vmul.f32 %v15764_v55, %v3747_v3  ;;  %v15782_v4 = vld [vmem:[#allocation34_spill] sm:$0xff] }
 0x962   :  { %v3885_v41 = vsel %vm1628_vm8, %v3849_v12, %v15771_v39  ;;  %v3891_v60 = vsel %vm1628_vm8, %v15772_v23, %v3849_v12  ;;  %v3820_v26 = vadd.f32 %v3796_v21, %v3624_v53  ;;  %v3821_v52 = vadd.f32 %v3797_v58, %v3625_v47  ;;  %v15781_v58 = vld [vmem:[#allocation44_spill] sm:$0xff] }
 0x963   :  { %v3990_v7 = vmul.f32 %v15773_v1, %v3936_v45  ;;  %v3991_v54 = vmul.f32 %v15773_v1, %v3937_v28  ;;  %v3940_v30 = vmul.f32 %v15769_v16, %v3891_v60  ;;  %v3941_v17 = vmul.f32 %v15770_v18, %v3885_v41  ;;  %v3871_v22 = vpop.permute.xlu0 %3870 }
 0x964   :  { %v3878_v9 = vsel %vm1628_vm8, %v15767_v51, %v3871_v22  ;;  %v3896_v33 = vsel %vm1628_vm8, %v3871_v22, %v15768_v56  ;;  %v3824_v2 = vadd.f32 %v3800_v40, %v3628_v35  ;;  %v3825_v24 = vadd.f32 %v3801_v27, %v3629_v10  ;;  %v15779_v35 = vld [vmem:[#allocation171_spill] sm:$0xff]  ;;  %v15784_v40 = vld [vmem:[#allocation28_spill] sm:$0xff] }
 0x965   :  { %v3994_v14 = vmul.f32 %v15774_v57, %v3940_v30  ;;  %v3995_v50 = vmul.f32 %v15774_v57, %v3941_v17  ;;  %v3873_v13 = vpop.permute.xlu1 %3872  ;;  %v3938_v20 = vmul.f32 %v15775_v61, %v3878_v9  ;;  %v3939_v53 = vmul.f32 %v15776_v25, %v3896_v33  ;;  %v15783_v56 = vld [vmem:[#allocation103_spill] sm:$0xff] }
 0x966   :  { %v3879_v47 = vsel %vm1628_vm8, %v15771_v39, %v3873_v13  ;;  %v3897_v34 = vsel %vm1628_vm8, %v3873_v13, %v15772_v23  ;;  %v4014_v38 = vadd.f32 %v3990_v7, %v3818_v42  ;;  %v4015_v5 = vadd.f32 %v3991_v54, %v3819_v15  ;;  %v15785_v39 = vld [vmem:[#allocation29_spill] sm:$0xff] }
 0x967   :  { %v3942_v32 = vmul.f32 %v15775_v61, %v3879_v47  ;;  %v3943_v59 = vmul.f32 %v15776_v25, %v3897_v34  ;;  %v4043_v8 = vpop.permute.xlu0 %4042  ;;  %v3992_v55 = vmul.f32 %v15773_v1, %v3938_v20  ;;  %v3993_v63 = vmul.f32 %v15773_v1, %v3939_v53  ;;  %v15786_v1 = vld [vmem:[#allocation95_spill] sm:$0xff] }
 0x968   :  { %v4080_v62 = vsel %vm1826_vm9, %v4043_v8, %v15777_v19  ;;  %v4086_v36 = vsel %vm1826_vm9, %v15778_v44, %v4043_v8  ;;  %v4018_v29 = vadd.f32 %v3994_v14, %v3822_v11  ;;  %v4019_v49 = vadd.f32 %v3995_v50, %v3823_v48 }
 0x969   :  { %v4132_v10 = vmul.f32 %v15779_v35, %v4086_v36  ;;  %v4133_v6 = vmul.f32 %v15780_v37, %v4080_v62  ;;  %v4045_v42 = vpop.permute.xlu1 %4044  ;;  %v3996_v15 = vmul.f32 %v15774_v57, %v3942_v32  ;;  %v3997_v21 = vmul.f32 %v15774_v57, %v3943_v59 }
 0x96a   :  { %v4081_v43 = vsel %vm1826_vm9, %v4045_v42, %v15781_v58  ;;  %v4087_v3 = vsel %vm1826_vm9, %v15782_v4, %v4045_v42  ;;  %v4016_v51 = vadd.f32 %v3992_v55, %v3820_v26  ;;  %v4017_v31 = vadd.f32 %v3993_v63, %v3821_v52  ;;  %v15787_v42 = vld [vmem:[#allocation84_spill] sm:$0xff] }
 0x96b   :  { %v4186_v0 = vmul.f32 %v15783_v56, %v4132_v10  ;;  %v4187_v11 = vmul.f32 %v15783_v56, %v4133_v6  ;;  %v4067_v48 = vpop.permute.xlu0 %4066  ;;  %v4136_v16 = vmul.f32 %v15779_v35, %v4087_v3  ;;  %v4137_v45 = vmul.f32 %v15780_v37, %v4081_v43  ;;  %v7006_v37 = vld [vmem:[%s14417_s4 + $0x4] sm:$0xf] }
 0x96c   :  { %v4074_v18 = vsel %vm1826_vm9, %v15777_v19, %v4067_v48  ;;  %v4092_v28 = vsel %vm1826_vm9, %v4067_v48, %v15778_v44  ;;  %v4020_v13 = vadd.f32 %v3996_v15, %v3824_v2  ;;  %v4021_v53 = vadd.f32 %v3997_v21, %v3825_v24  ;;  %v15788_v21 = vld [vmem:[#allocation68_spill] sm:$0xff] }
 0x96d   :  { %v4210_v12 = vadd.f32 %v4186_v0, %v4014_v38  ;;  %v4134_v27 = vmul.f32 %v15784_v40, %v4074_v18  ;;  %v4135_v41 = vmul.f32 %v15785_v39, %v4092_v28  ;;  %v4069_v23 = vpop.permute.xlu1 %4068  ;;  %v4211_v60 = vadd.f32 %v4187_v11, %v4015_v5  ;;  %v7009_v28 = vld [vmem:[%s14418_s5 + $0x8] sm:$0xff] }
 0x96e   :  { %v4190_v7 = vmul.f32 %v15786_v1, %v4136_v16  ;;  %v4191_v54 = vmul.f32 %v15786_v1, %v4137_v45  ;;  %v4075_v30 = vsel %vm1826_vm9, %v15781_v58, %v4069_v23  ;;  %v4093_v17 = vsel %vm1826_vm9, %v4069_v23, %v15782_v4  ;;  %v15789_v58 = vld [vmem:[#allocation70_spill] sm:$0xff]  ;;  %v15791_v4 = vld [vmem:[#allocation71_spill] sm:$0xff] }
 0x96f   :  { %v4234_v22 = vmax.f32 %v4210_v12, 0.0  ;;  %v4188_v26 = vmul.f32 %v15783_v56, %v4134_v27  ;;  %v4189_v52 = vmul.f32 %v15783_v56, %v4135_v41  ;;  %v4138_v9 = vmul.f32 %v15784_v40, %v4075_v30 }
 0x970   :  { %v4214_v33 = vadd.f32 %v4190_v7, %v4018_v29  ;;  %v4139_v57 = vmul.f32 %v15785_v39, %v4093_v17  ;;  %v4215_v14 = vadd.f32 %v4191_v54, %v4019_v49  ;;  %v4235_v50 = vmax.f32 %v4211_v60, 0.0 }
 0x971   :  { %v4212_v61 = vadd.f32 %v4188_v26, %v4016_v51  ;;  %v4192_v20 = vmul.f32 %v15786_v1, %v4138_v9  ;;  %v4213_v25 = vadd.f32 %v4189_v52, %v4017_v31  ;;  %v4258_v8 = vmin.f32 %v4234_v22, 6.0 }
 0x972   :  { %v4238_v47 = vmax.f32 %v4214_v33, 0.0  ;;  %v4193_v34 = vmul.f32 %v15786_v1, %v4139_v57  ;;  %v4239_v38 = vmax.f32 %v4215_v14, 0.0  ;;  %v4259_v59 = vmin.f32 %v4235_v50, 6.0  ;;  %v7010_v33 = vld [vmem:[%s14419_s6 + $0x1] sm:$0x1] }
 0x973   :  { %v4236_v5 = vmax.f32 %v4212_v61, 0.0  ;;  %v4216_v32 = vadd.f32 %v4192_v20, %v4020_v13  ;;  %v4237_v62 = vmax.f32 %v4213_v25, 0.0  ;;  %v15790_v43 = vmov 0   ;;  %v7011_v25 = vld [vmem:[%s14420_s7 + $0x8] sm:$0xff] }
 0x974   :  { %v4263_v55 = vmin.f32 %v4239_v38, 6.0  ;;  %v4262_v63 = vmin.f32 %v4238_v47, 6.0  ;;  %v4217_v19 = vadd.f32 %v4193_v34, %v4021_v53  ;;  %v15792_v53 = vld [vmem:[#allocation134_spill] sm:$0xff] }
 0x975   :  { %v4240_v44 = vmax.f32 %v4216_v32, 0.0  ;;  %v4260_v49 = vmin.f32 %v4236_v5, 6.0  ;;  %v4261_v24 = vmin.f32 %v4237_v62, 6.0 }
 0x976   :  { %v4277_v36 = vpack.c.bf16 %v4263_v55, %v4259_v59  ;;  %v4276_v2 = vpack.c.bf16 %v4262_v63, %v4258_v8  ;;  %v4241_v29 = vmax.f32 %v4217_v19, 0.0  ;;  %v7012_v63 = vld [vmem:[%s14421_s8 + $0x8] sm:$0xff] }
 0x977   :  { %v4264_v35 = vmin.f32 %v4240_v44, 6.0 }
 0x978   :  { %4287 = vmatprep.subr.bf16.mxu0 %v4277_v36  ;;  %v4265_v10 = vmin.f32 %v4241_v29, 6.0 }
 0x979   :  { %4288 = vmatpush1.bf16.msra.mxu0 %v4276_v2  ;;  %v4278_v6 = vpack.c.bf16 %v4264_v35, %v4260_v49 }
 0x97a   :  { %4490 = vmatprep.subr.bf16.mxu0 %v15787_v42  ;;  %v4279_v15 = vpack.c.bf16 %v4265_v10, %v4261_v24 }
 0x97c   :  { %7007 = vmatmul.mubr.msk.bf16.vlgmr.msra.gmra.mrb[32].mxu0 %vm2037_vm10, %v7006_v37  ;;  %4328 = vmatprep.subr.bf16.mxu1 %v4279_v15 }
 0x97d   :  { %4329 = vmatpush1.bf16.msra.mxu1 %v4278_v6  ;;  %4491 = vmatpush1.bf16.msra.mxu0 %v15788_v21  ;;  %v7060_v6 = vld [vmem:[%s14415_s3 + $0x420] sm:$0xff] }
 0x97e   :  { %4531 = vmatprep.subr.bf16.mxu1 %v15789_v58  ;;  %4522 = vmatprep.mubr.bf16.mxu0 %v15790_v43 }
 0x980   :  { %7008 = vmatmul.mubr.msk.bf16.vlgmr.msra.gmra.mrb[32].mxu1 %vm2037_vm10, %v7006_v37 }
 0x981   :  { %4532 = vmatpush1.bf16.msra.mxu1 %v15791_v4  ;;  %4563 = vmatprep.mubr.bf16.mxu1 %v15790_v43 }
 0xa4f   :  { %v12114_v3 = vpop.f32.mrb[32].mxu0 }
 0xa50   :  { %v12116_v51 = vpop.f32.mrb[33].mxu0 }
 0xa51   :  { %v4365_v31 = vadd.f32 %v12116_v51, %v12114_v3  ;;  %v4321_v56 = vpop.f32.mrb[34].mxu0 }
 0xa52   :  { %v4322_v0 = vpop.f32.mrb[35].mxu0  ;;  %v7036_v56 = vld [vmem:[%s14415_s3 + $0x360] sm:$0xff] }
 0xa53   :  { %v12120_v11 = vpop.f32.mrb[32].mxu1  ;;  %4366 = vadd.xlane.f32.xlu0 %v4365_v31  ;;  %v7061_v31 = vld [vmem:[%s14415_s3 + $0x428] sm:$0xff] }
 0xa54   :  { %v12122_v48 = vpop.f32.mrb[33].mxu1  ;;  %v7037_v0 = vld [vmem:[%s14415_s3 + $0x368] sm:$0xff] }
 0xa55   :  { %v4407_v16 = vadd.f32 %v12122_v48, %v12120_v11  ;;  %v4362_v45 = vpop.f32.mrb[34].mxu1 }
 0xa56   :  { %v4363_v18 = vpop.f32.mrb[35].mxu1  ;;  %v7043_v45 = vld [vmem:[%s14415_s3 + $0x398] sm:$0xff] }
 0xa57   :  { %4408 = vadd.xlane.f32.xlu1 %v4407_v16  ;;  %v7042_v16 = vld [vmem:[%s14415_s3 + $0x390] sm:$0xff] }
 0xa58   :  { %v7062_v18 = vld [vmem:[%s14415_s3 + $0x430] sm:$0xff] }
 0xae0   :  { %v4367_v12 = vpop.xlane.xlu0 %4366 }
 0xae1   :  { %v4368_v40 = vmul.f32 0.00390625, %v4367_v12  ;;  %v7038_v12 = vld [vmem:[%s14415_s3 + $0x370] sm:$0xff] }
 0xae3   :  { %v4371_v27 = vmul.f32 %v7009_v28, %v4368_v40  ;;  %v7039_v40 = vld [vmem:[%s14415_s3 + $0x378] sm:$0xff] }
 0xae4   :  { %v4409_v39 = vpop.xlane.xlu1 %4408 }
 0xae5   :  { %v4372_v41 = vsel %vm2130_vm11, %v4371_v27, 0.0  ;;  %v4410_v23 = vmul.f32 0.00390625, %v4409_v39  ;;  %v7048_v27 = vld [vmem:[%s14415_s3 + $0x3c0] sm:$0xff]  ;;  %v7049_v39 = vld [vmem:[%s14415_s3 + $0x3c8] sm:$0xff] }
 0xae6   :  { %v4373_v60 = vrot.slane %v4372_v41, 4 }
 0xae7   :  { %v4411_v1 = vmul.f32 %v7009_v28, %v4410_v23  ;;  %v7063_v28 = vld [vmem:[%s14415_s3 + $0x438] sm:$0xff]  ;;  %v7045_v23 = vld [vmem:[%s14415_s3 + $0x3a8] sm:$0xff] }
 0xae8   :  { %v4374_v7 = vadd.f32 %v4373_v60, %v4372_v41  ;;  %v7044_v41 = vld [vmem:[%s14415_s3 + $0x3a0] sm:$0xff]  ;;  %v7054_v60 = vld [vmem:[%s14415_s3 + $0x3f0] sm:$0xff] }
 0xae9   :  { %v4412_v54 = vsel %vm2130_vm11, %v4411_v1, 0.0  ;;  %v7055_v1 = vld [vmem:[%s14415_s3 + $0x3f8] sm:$0xff] }
 0xaea   :  { %v4375_v30 = vrot.slane %v4374_v7, 2  ;;  %v4413_v17 = vrot.slane %v4412_v54, 4 }
 0xaec   :  { %v4376_v22 = vadd.f32 %v4375_v30, %v4374_v7  ;;  %v4414_v26 = vadd.f32 %v4413_v17, %v4412_v54  ;;  %v7064_v7 = vld [vmem:[%s14415_s3 + $0x440] sm:$0xff]  ;;  %v7065_v54 = vld [vmem:[%s14415_s3 + $0x448] sm:$0xff] }
 0xaed   :  { %v7040_v30 = vld [vmem:[%s14415_s3 + $0x380] sm:$0xff]  ;;  %v7041_v17 = vld [vmem:[%s14415_s3 + $0x388] sm:$0xff] }
 0xaee   :  { %v4377_v52 = vrot.slane %v4376_v22, 1  ;;  %v4415_v9 = vrot.slane %v4414_v26, 2 }
 0xaf0   :  { %v4416_v57 = vadd.f32 %v4415_v9, %v4414_v26  ;;  %v4378_v14 = vadd.f32 %v4377_v52, %v4376_v22  ;;  %v7050_v22 = vld [vmem:[%s14415_s3 + $0x3d0] sm:$0xff]  ;;  %v7051_v26 = vld [vmem:[%s14415_s3 + $0x3d8] sm:$0xff] }
 0xaf1   :  { %v7066_v52 = vld [vmem:[%s14415_s3 + $0x450] sm:$0xff]  ;;  %v7067_v9 = vld [vmem:[%s14415_s3 + $0x458] sm:$0xff] }
 0xaf2   :  { %v4417_v50 = vrot.slane %v4416_v57, 1  ;;  %v4381_v13 = vadd.f32 %v7010_v33, %v4378_v14  ;;  %v7056_v14 = vld [vmem:[%s14415_s3 + $0x400] sm:$0xff] }
 0xaf4   :  { %v4382_v61 = vmax.f32 %v4381_v13, 0.0  ;;  %v4418_v20 = vadd.f32 %v4417_v50, %v4416_v57  ;;  %v7047_v57 = vld [vmem:[%s14415_s3 + $0x3b8] sm:$0xff]  ;;  %v7057_v50 = vld [vmem:[%s14415_s3 + $0x408] sm:$0xff]  ;;  %v7072_v13 = vld [vmem:[%s14415_s3 + $0x480] sm:$0xff] }
 0xaf6   :  { %v4388_v47 = vrot.slane %v4382_v61, %v15792_v53  ;;  %v4419_v34 = vadd.f32 %v7010_v33, %v4418_v20  ;;  %v7046_v33 = vld [vmem:[%s14415_s3 + $0x3b0] sm:$0xff]  ;;  %v7073_v61 = vld [vmem:[%s14415_s3 + $0x488] sm:$0xff]  ;;  %v7052_v20 = vld [vmem:[%s14415_s3 + $0x3e0] sm:$0xff] }
 0xaf8   :  { %v4389_v38 = vmul.f32 %v7011_v25, %v4388_v47  ;;  %v4420_v5 = vmax.f32 %v4419_v34, 0.0  ;;  %v7068_v47 = vld [vmem:[%s14415_s3 + $0x460] sm:$0xff]  ;;  %v7069_v34 = vld [vmem:[%s14415_s3 + $0x468] sm:$0xff] }
 0xafa   :  { %v4390_v32 = vsel %vm2130_vm11, %v4389_v38, 0.0  ;;  %v4424_v59 = vrot.slane %v4420_v5, %v15792_v53  ;;  %v7078_v38 = vld [vmem:[%s14415_s3 + $0x4b0] sm:$0xff]  ;;  %v7079_v5 = vld [vmem:[%s14415_s3 + $0x4b8] sm:$0xff] }
 0xafb   :  { %4391 = vadd.xlane.f32.xlu0 %v4390_v32  ;;  %v7058_v32 = vld [vmem:[%s14415_s3 + $0x410] sm:$0xff] }
 0xafc   :  { %v4425_v8 = vmul.f32 %v7011_v25, %v4424_v59  ;;  %v7053_v25 = vld [vmem:[%s14415_s3 + $0x3e8] sm:$0xff]  ;;  %v7059_v59 = vld [vmem:[%s14415_s3 + $0x418] sm:$0xff] }
 0xafe   :  { %v4426_v55 = vsel %vm2130_vm11, %v4425_v8, 0.0  ;;  %v7074_v8 = vld [vmem:[%s14415_s3 + $0x490] sm:$0xff] }
 0xaff   :  { %4427 = vadd.xlane.f32.xlu0 %v4426_v55  ;;  %v7075_v55 = vld [vmem:[%s14415_s3 + $0x498] sm:$0xff] }
 0xb88   :  { %v4392_v19 = vpop.xlane.xlu0 %4391 }
 0xb89   :  { %v4395_v62 = vadd.f32 %v7012_v63, %v4392_v19  ;;  %v7085_v19 = vld [vmem:[%s14415_s3 + $0x4e8] sm:$0xff] }
 0xb8b   :  { %v7013_v44 = vmul.f32 -1.442695, %v4395_v62  ;;  %v7070_v62 = vld [vmem:[%s14415_s3 + $0x470] sm:$0xff] }
 0xb8c   :  { %v4428_v36 = vpop.xlane.xlu0 %4427 }
 0xb8d   :  { %7136 = vpow2.f32 %v7013_v44  ;;  %v4429_v2 = vadd.f32 %v7012_v63, %v4428_v36  ;;  %v7084_v63 = vld [vmem:[%s14415_s3 + $0x4e0] sm:$0xff]  ;;  %v7071_v44 = vld [vmem:[%s14415_s3 + $0x478] sm:$0xff] }
 0xb8e   :  { %v7080_v36 = vld [vmem:[%s14415_s3 + $0x4c0] sm:$0xff] }
 0xb8f   :  { %v7014_v29 = vmul.f32 -1.442695, %v4429_v2  ;;  %v7081_v2 = vld [vmem:[%s14415_s3 + $0x4c8] sm:$0xff] }
 0xb91   :  { %7138 = vpow2.f32 %v7014_v29  ;;  %v7076_v29 = vld [vmem:[%s14415_s3 + $0x4a0] sm:$0xff] }
 0xb97   :  { %v7137_v49 = vpop.eup %7136 }
 0xb98   :  { %v4399_v35 = vadd.f32 1.0, %v7137_v49  ;;  %v7077_v49 = vld [vmem:[%s14415_s3 + $0x4a8] sm:$0xff] }
 0xb9a   :  { %7140 = vrcp.f32 %v4399_v35  ;;  %v7086_v35 = vld [vmem:[%s14415_s3 + $0x4f0] sm:$0xff] }
 0xb9b   :  { %v7139_v24 = vpop.eup %7138 }
 0xb9c   :  { %v4433_v10 = vadd.f32 1.0, %v7139_v24  ;;  %v7087_v24 = vld [vmem:[%s14415_s3 + $0x4f8] sm:$0xff] }
 0xb9e   :  { %7142 = vrcp.f32 %v4433_v10  ;;  %v7082_v10 = vld [vmem:[%s14415_s3 + $0x4d0] sm:$0xff] }
 0xba4   :  { %v7141_v37 = vpop.eup %7140 }
 0xba5   :  { %4404 = vperm.xlu1 %7118, %v7141_v37   ;;  %v7083_v37 = vld [vmem:[%s14415_s3 + $0x4d8] sm:$0xff] }
 0xba8   :  { %v7143_v15 = vpop.eup %7142 }
 0xba9   :  { %4862 = vperm.xlu1 %7118, %v7060_v6   ;;  %4438 = vperm.xlu0 %7117, %v7143_v15   ;;  %v7088_v6 = vld [vmem:[%s14415_s3 + $0x500] sm:$0xff]  ;;  %v7089_v15 = vld [vmem:[%s14415_s3 + $0x508] sm:$0xff] }
 0xbad   :  { %4867 = vperm.xlu1 %7118, %v7061_v31   ;;  %5034 = vperm.xlu0 %7117, %v7036_v56  }
 0xbb1   :  { %5039 = vperm.xlu1 %7118, %v7037_v0   ;;  %5230 = vperm.xlu0 %7117, %v7042_v16   ;;  %v7156_v16 = vld [vmem:[%s14423_s12] sm:$0xff] }
 0xbb5   :  { %5235 = vperm.xlu1 %7118, %v7043_v45   ;;  %4872 = vperm.xlu0 %7117, %v7062_v18   ;;  %v7157_v18 = vld [vmem:[%s14423_s12 + $0x8] sm:$0xff] }
 0xbb9   :  { %4877 = vperm.xlu1 %7118, %v7063_v28   ;;  %5044 = vperm.xlu0 %7117, %v7038_v12  }
 0xbbd   :  { %5049 = vperm.xlu1 %7118, %v7039_v40   ;;  %5426 = vperm.xlu0 %7117, %v7048_v27  }
 0xbc1   :  { %5431 = vperm.xlu1 %7118, %v7049_v39   ;;  %5240 = vperm.xlu0 %7117, %v7044_v41   ;;  %v7158_v39 = vld [vmem:[%s14423_s12 + $0x10] sm:$0xff] }
 0xbc5   :  { %5245 = vperm.xlu1 %7118, %v7045_v23   ;;  %5622 = vperm.xlu0 %7117, %v7054_v60   ;;  %v7159_v23 = vld [vmem:[%s14423_s12 + $0x18] sm:$0xff] }
 0xbc9   :  { %5627 = vperm.xlu1 %7118, %v7055_v1   ;;  %4882 = vperm.xlu0 %7117, %v7064_v7  }
 0xbcd   :  { %4887 = vperm.xlu1 %7118, %v7065_v54   ;;  %5054 = vperm.xlu0 %7117, %v7040_v30  }
 0xbd1   :  { %5059 = vperm.xlu1 %7118, %v7041_v17   ;;  %5436 = vperm.xlu0 %7117, %v7050_v22  }
 0xbd5   :  { %5441 = vperm.xlu1 %7118, %v7051_v26   ;;  %5818 = vperm.xlu0 %7117, %v7066_v52  }
 0xbd9   :  { %5823 = vperm.xlu1 %7118, %v7067_v9   ;;  %5250 = vperm.xlu0 %7117, %v7046_v33  }
 0xbdd   :  { %5255 = vperm.xlu1 %7118, %v7047_v57   ;;  %5632 = vperm.xlu0 %7117, %v7056_v14  }
 0xbe1   :  { %5637 = vperm.xlu1 %7118, %v7057_v50   ;;  %6014 = vperm.xlu0 %7117, %v7072_v13  }
 0xbe5   :  { %6019 = vperm.xlu1 %7118, %v7073_v61   ;;  %5446 = vperm.xlu0 %7117, %v7052_v20  }
 0xbe9   :  { %5451 = vperm.xlu1 %7118, %v7053_v25   ;;  %5828 = vperm.xlu0 %7117, %v7068_v47   ;;  %v7125_v47 = vld [vmem:[%s14414_s2 + $0x30] sm:$0xff]  }
 0xbed   :  { %5833 = vperm.xlu1 %7118, %v7069_v34   ;;  %6210 = vperm.xlu0 %7117, %v7078_v38  }
 0xbf1   :  { %6215 = vperm.xlu1 %7118, %v7079_v5   ;;  %5642 = vperm.xlu0 %7117, %v7058_v32  }
 0xbf5   :  { %5647 = vperm.xlu1 %7118, %v7059_v59   ;;  %6024 = vperm.xlu0 %7117, %v7074_v8   ;;  %v7126_v59 = vld [vmem:[%s14414_s2 + $0x38] sm:$0xff]   ;;  %v7127_v8 = vld [vmem:[%s14414_s2 + $0x40] sm:$0xff]  }
 0xbf9   :  { %6029 = vperm.xlu1 %7118, %v7075_v55   ;;  %6406 = vperm.xlu0 %7117, %v7084_v63  }
 0xbfd   :  { %6411 = vperm.xlu1 %7118, %v7085_v19   ;;  %5838 = vperm.xlu0 %7117, %v7070_v62  }
 0xc01   :  { %5843 = vperm.xlu1 %7118, %v7071_v44   ;;  %6220 = vperm.xlu0 %7117, %v7080_v36  }
 0xc05   :  { %6225 = vperm.xlu1 %7118, %v7081_v2   ;;  %6034 = vperm.xlu0 %7117, %v7076_v29  }
 0xc09   :  { %6039 = vperm.xlu1 %7118, %v7077_v49   ;;  %6416 = vperm.xlu0 %7117, %v7086_v35  }
 0xc0d   :  { %6421 = vperm.xlu1 %7118, %v7087_v24   ;;  %6230 = vperm.xlu0 %7117, %v7082_v10  }
 0xc11   :  { %6235 = vperm.xlu1 %7118, %v7083_v37   ;;  %6426 = vperm.xlu0 %7117, %v7088_v6  }
 0xc15   :  { %6431 = vperm.xlu1 %7118, %v7089_v15  }
 0xc24   :  { %v4405_v31 = vpop.permute.xlu1 %4404 }
 0xc25   :  { %v4441_v56 = vmul.f32 %v4405_v31, %v12114_v3  ;;  %v4442_v0 = vmul.f32 %v4405_v31, %v12116_v51 }
 0xc27   :  { %v12311_v45 = vadd.f32 %v7156_v16, %v4441_v56  ;;  %v12316_v28 = vadd.f32 %v7157_v18, %v4442_v0 }
 0xc28   :  { %v4439_v12 = vpop.permute.xlu0 %4438  ;;  %v12384_v55 = vpop.permute.xlu1 %4862 }
 0xc29   :  { %15793 = vst [vmem:[#allocation142_spill] sm:$0xff] %v12311_v45  ;;  %15794 = vst [vmem:[#allocation79_spill] sm:$0xff] %v12316_v28  ;;  %v4443_v40 = vmul.f32 %v4439_v12, %v12120_v11  ;;  %v4444_v27 = vmul.f32 %v4439_v12, %v12122_v48  ;;  %v4471_v3 = vpack.c.bf16 %v12316_v28, %v12316_v28  ;;  %v4453_v48 = vld [vmem:[%s14424_s10] sm:$0xf] }
 0xc2a   :  { %v4470_v51 = vpack.c.bf16 %v12311_v45, %v12311_v45 }
 0xc2b   :  { %v12327_v41 = vadd.f32 %v7158_v39, %v4443_v40  ;;  %v12332_v60 = vadd.f32 %v7159_v23, %v4444_v27  ;;  %7015 = vmatprep.subr.msk.bf16.mxu0 %vm88_vm0, %v4471_v3 }
 0xc2c   :  { %v4479_v11 = vsel %vm88_vm0, %v4470_v51, 0  ;;  %v12386_v63 = vpop.permute.xlu1 %4867  ;;  %v12388_v19 = vpop.permute.xlu0 %5034 }
 0xc2d   :  { %15795 = vst [vmem:[#allocation118_spill] sm:$0xff] %v12327_v41  ;;  %15796 = vst [vmem:[#allocation119_spill] sm:$0xff] %v12332_v60  ;;  %4493 = vmatpush1.bf16.msra.mxu0 %v4479_v11  ;;  %v4473_v1 = vpack.c.bf16 %v12332_v60, %v12332_v60  ;;  %v4472_v7 = vpack.c.bf16 %v12327_v41, %v12327_v41 }
 0xc2f   :  { %7017 = vmatprep.subr.msk.bf16.mxu1 %vm88_vm0, %v4473_v1  ;;  %v4485_v54 = vsel %vm88_vm0, %v4472_v7, 0 }
 0xc30   :  { %7016 = vmatmul.mubr.msk.bf16.vlgmr.msra.gmra.mrb[36].mxu0 %vm4474_vm13, %v4453_v48  ;;  %4534 = vmatpush1.bf16.msra.mxu1 %v4485_v54  ;;  %v12390_v62 = vpop.permute.xlu1 %5039  ;;  %v12392_v44 = vpop.permute.xlu0 %5230 }
 0xc31   :  { %4655 = vmatprep.mubr.bf16.mxu0 %v15790_v43 }
 0xc33   :  { %7018 = vmatmul.mubr.msk.bf16.vlgmr.msra.gmra.mrb[36].mxu1 %vm4474_vm13, %v4453_v48 }
 0xc34   :  { %4718 = vmatprep.mubr.bf16.mxu1 %v15790_v43  ;;  %v12394_v36 = vpop.permute.xlu1 %5235  ;;  %v12396_v2 = vpop.permute.xlu0 %4872 }
 0xc35   :  { %15797 = vst [vmem:[#allocation54_spill] sm:$0xff] %v12396_v2 }
 0xc38   :  { %v12398_v29 = vpop.permute.xlu1 %4877  ;;  %v12400_v49 = vpop.permute.xlu0 %5044 }
 0xc39   :  { %15798 = vst [vmem:[#allocation46_spill] sm:$0xff] %v12398_v29  ;;  %15799 = vst [vmem:[#allocation64_spill] sm:$0xff] %v12400_v49 }
 0xc3c   :  { %v12402_v35 = vpop.permute.xlu1 %5049  ;;  %v12404_v24 = vpop.permute.xlu0 %5426 }
 0xc3d   :  { %15800 = vst [vmem:[#allocation166_spill] sm:$0xff] %v12402_v35 }
 0xc40   :  { %v12406_v10 = vpop.permute.xlu1 %5431  ;;  %v12408_v37 = vpop.permute.xlu0 %5240 }
 0xc41   :  { %15801 = vst [vmem:[#allocation82_spill] sm:$0xff] %v12408_v37 }
 0xc44   :  { %v12410_v6 = vpop.permute.xlu1 %5245  ;;  %v12412_v31 = vpop.permute.xlu0 %5622 }
 0xc45   :  { %15802 = vst [vmem:[#allocation65_spill] sm:$0xff] %v12410_v6  ;;  %15803 = vst [vmem:[#allocation67_spill] sm:$0xff] %v12412_v31 }
 0xc48   :  { %v12416_v18 = vpop.permute.xlu1 %5627  ;;  %v12428_v48 = vpop.permute.xlu0 %4882 }
 0xc49   :  { %15804 = vst [vmem:[#allocation66_spill] sm:$0xff] %v12416_v18  ;;  %15805 = vst [vmem:[#allocation4_spill] sm:$0xff] %v12428_v48 }
 0xd03   :  { %v4524_v30 = vpop.f32.mrb[36].mxu0 }
 0xd04   :  { %v4572_v17 = vmax.f32 %v4524_v30, 0.0  ;;  %v4526_v22 = vpop.f32.mrb[37].mxu0 }
 0xd05   :  { %v4573_v26 = vmax.f32 %v4526_v22, 0.0  ;;  %v4528_v52 = vpop.f32.mrb[38].mxu0 }
 0xd06   :  { %v4583_v9 = vpack.c.bf16 %v4572_v17, %v4572_v17  ;;  %6836 = vst [vmem:[%s14425_s13] sm:$0xff] %v4572_v17  ;;  %v4529_v33 = vpop.f32.mrb[39].mxu0  ;;  %v4565_v14 = vpop.f32.mrb[36].mxu1 }
 0xd07   :  { %v4584_v57 = vpack.c.bf16 %v4573_v26, %v4573_v26  ;;  %6837 = vst [vmem:[%s14425_s13 + $0x8] sm:$0xff] %v4573_v26  ;;  %v4574_v50 = vmax.f32 %v4565_v14, 0.0  ;;  %v4567_v13 = vpop.f32.mrb[37].mxu1  ;;  %v12438_v17 = vpop.permute.xlu1 %4887 }
 0xd08   :  { %v4612_v61 = vsel %vm88_vm0, %v4583_v9, 0  ;;  %v4575_v20 = vmax.f32 %v4567_v13, 0.0  ;;  %v4569_v25 = vpop.f32.mrb[38].mxu1  ;;  %15806 = vst [vmem:[#allocation81_spill] sm:$0xff] %v12438_v17 }
 0xd09   :  { %7028 = vmatprep.subr.msk.bf16.mxu0 %vm88_vm0, %v4584_v57  ;;  %v4585_v34 = vpack.c.bf16 %v4574_v50, %v4574_v50  ;;  %6838 = vst [vmem:[%s14425_s13 + $0x10] sm:$0xff] %v4574_v50  ;;  %v4570_v38 = vpop.f32.mrb[39].mxu1  ;;  %v12454_v57 = vpop.permute.xlu0 %5054 }
 0xd0a   :  { %4624 = vmatpush1.bf16.msra.mxu0 %v4612_v61  ;;  %v4586_v5 = vpack.c.bf16 %v4575_v20, %v4575_v20  ;;  %6839 = vst [vmem:[%s14425_s13 + $0x18] sm:$0xff] %v4575_v20  ;;  %15807 = vst [vmem:[#allocation128_spill] sm:$0xff] %v12454_v57 }
 0xd0b   :  { %v4618_v32 = vsel %vm88_vm0, %v4585_v34, 0  ;;  %v12462_v13 = vpop.permute.xlu1 %5059 }
 0xd0c   :  { %7032 = vmatprep.subr.msk.bf16.mxu1 %vm88_vm0, %v4586_v5  ;;  %15808 = vst [vmem:[#allocation167_spill] sm:$0xff] %v12462_v13 }
 0xd0d   :  { %7029 = vmatmul.mubr.msk.bf16.vlgmr.msra.gmra.mrb[40].mxu0 %vm78_vm1, %v7125_v47  ;;  %4687 = vmatpush1.bf16.msra.mxu1 %v4618_v32  ;;  %v12476_v34 = vpop.permute.xlu0 %5436 }
 0xd0e   :  { %4665 = vmatprep.mubr.bf16.mxu0 %v15790_v43  ;;  %15812 = vst [vmem:[#allocation6_spill] sm:$0xff] %v12476_v34 }
 0xd0f   :  { %v12484_v32 = vpop.permute.xlu1 %5441 }
 0xd10   :  { %7033 = vmatmul.mubr.msk.bf16.vlgmr.msra.gmra.mrb[40].mxu1 %vm78_vm1, %v7125_v47  ;;  %15815 = vst [vmem:[#allocation131_spill] sm:$0xff] %v12484_v32 }
 0xd11   :  { %4728 = vmatprep.mubr.bf16.mxu1 %v15790_v43 }
 0xd15   :  { %7030 = vmatmul.mubr.msk.bf16.gmra.mrb[44].mxu0 %vm78_vm1, %v7126_v59 }
 0xd16   :  { %4675 = vmatprep.mubr.bf16.mxu0 %v15790_v43 }
 0xd18   :  { %7034 = vmatmul.mubr.msk.bf16.gmra.mrb[44].mxu1 %vm78_vm1, %v7126_v59 }
 0xd19   :  { %4738 = vmatprep.mubr.bf16.mxu1 %v15790_v43 }
 0xd1d   :  { %7031 = vmatmul.mubr.msk.bf16.gmra.mrb[48].mxu0 %vm78_vm1, %v7127_v8 }
 0xd1e   :  { %6579 = vmatprep.mubr.bf16.mxu0 %v15790_v43 }
 0xd20   :  { %7035 = vmatmul.mubr.msk.bf16.gmra.mrb[48].mxu1 %vm78_vm1, %v7127_v8 }
 0xd21   :  { %6620 = vmatprep.mubr.bf16.mxu1 %v15790_v43 }
 0xde0   :  { %v4657_v15 = vpop.f32.mrb[40].mxu0 }
 0xde1   :  { %v4749_v56 = vmax.f32 %v4657_v15, 0.0  ;;  %v12414_v0 = vpop.f32.mrb[41].mxu0 }
 0xde2   :  { %v4661_v16 = vpop.f32.mrb[42].mxu0  ;;  %v4750_v21 = vmax.f32 %v12414_v0, 0.0 }
 0xde3   :  { %v12418_v12 = vmin.f32 %v4749_v56, 6.0  ;;  %v4753_v40 = vmax.f32 %v4661_v16, 0.0  ;;  %v12420_v27 = vpop.f32.mrb[43].mxu0  ;;  %v4720_v3 = vpop.f32.mrb[40].mxu1 }
 0xde4   :  { %v4751_v39 = vmax.f32 %v4720_v3, 0.0  ;;  %v12424_v23 = vpop.f32.mrb[41].mxu1  ;;  %v12496_v56 = vpop.permute.xlu0 %5818  ;;  %v4754_v42 = vmax.f32 %v12420_v27, 0.0 }
 0xde5   :  { %v12422_v51 = vmin.f32 %v4753_v40, 6.0  ;;  %4914 = vrot.lane.b32.xlu0 %v12418_v12, %s7165_s19  ;;  %v4724_v11 = vpop.f32.mrb[42].mxu1  ;;  %15819 = vst [vmem:[#allocation123_spill] sm:$0xff] %v12496_v56  ;;  %v12500_v16 = vpop.permute.xlu1 %5823  ;;  %v7094_v56 = vld [vmem:[%s14416_s1 + $0x14] sm:$0xf] }
 0xde6   :  { %v12430_v1 = vmin.f32 %v4751_v39, 6.0  ;;  %v4755_v7 = vmax.f32 %v4724_v11, 0.0  ;;  %v12432_v54 = vpop.f32.mrb[43].mxu1  ;;  %15820 = vst [vmem:[#allocation43_spill] sm:$0xff] %v12500_v16  ;;  %v12577_v0 = vmin.f32 %v4754_v42, 6.0 }
 0xde7   :  { %4916 = vrot.lane.b32.xlu1 %v12422_v51, %s7165_s19  ;;  %v4756_v13 = vmax.f32 %v12432_v54, 0.0 }
 0xde8   :  { %v12436_v30 = vpop.f32.mrb[44].mxu0  ;;  %v12440_v22 = vmin.f32 %v4755_v7, 6.0  ;;  %v12506_v40 = vpop.permute.xlu0 %5250 }
 0xde9   :  { %4938 = vrot.lane.b32.xlu0 %v12430_v1, %s7165_s19  ;;  %v12444_v26 = vpop.f32.mrb[45].mxu0  ;;  %15821 = vst [vmem:[#allocation20_spill] sm:$0xff] %v12506_v40  ;;  %v12510_v3 = vpop.permute.xlu1 %5255 }
 0xdea   :  { %v12446_v52 = vpop.f32.mrb[46].mxu0  ;;  %15822 = vst [vmem:[#allocation10_spill] sm:$0xff] %v12510_v3  ;;  %v4752_v3 = vmax.f32 %v12424_v23, 0.0  ;;  %v12588_v23 = vmin.f32 %v4756_v13, 6.0 }
 0xdeb   :  { %4940 = vrot.lane.b32.xlu1 %v12440_v22, %s7165_s19  ;;  %v12450_v9 = vpop.f32.mrb[47].mxu0  ;;  %v12452_v33 = vpop.f32.mrb[44].mxu1 }
 0xdec   :  { %v12456_v14 = vpop.f32.mrb[45].mxu1  ;;  %v12516_v39 = vpop.permute.xlu0 %5632  ;;  %v12582_v27 = vmin.f32 %v4752_v3, 6.0 }
 0xded   :  { %5110 = vrot.lane.b32.xlu0 %v12418_v12, %s7166_s20  ;;  %v12460_v50 = vpop.f32.mrb[46].mxu1  ;;  %15823 = vst [vmem:[#allocation80_spill] sm:$0xff] %v12516_v39  ;;  %v12520_v11 = vpop.permute.xlu1 %5637 }
 0xdee   :  { %v12464_v61 = vpop.f32.mrb[47].mxu1  ;;  %15824 = vst [vmem:[#allocation5_spill] sm:$0xff] %v12520_v11  ;;  %v4763_v39 = vmax.f32 %v12460_v50, 0.0 }
 0xdef   :  { %5112 = vrot.lane.b32.xlu1 %v12422_v51, %s7166_s20 }
 0xdf0   :  { %v12468_v20 = vpop.f32.mrb[48].mxu0  ;;  %v12526_v7 = vpop.permute.xlu0 %6014 }
 0xdf1   :  { %15809 = vst [vmem:[#allocation127_spill] sm:$0xff] %v12468_v20  ;;  %5134 = vrot.lane.b32.xlu0 %v12430_v1, %s7166_s20  ;;  %v12472_v25 = vpop.f32.mrb[49].mxu0  ;;  %15825 = vst [vmem:[#allocation37_spill] sm:$0xff] %v12526_v7  ;;  %v12530_v60 = vpop.permute.xlu1 %6019  ;;  %v4758_v20 = vmax.f32 %v12444_v26, 0.0  ;;  %v4986_v26 = vld [vmem:[%s14416_s1] sm:$0xf] }
 0xdf2   :  { %15810 = vst [vmem:[#allocation169_spill] sm:$0xff] %v12472_v25  ;;  %v12474_v47 = vpop.f32.mrb[50].mxu0  ;;  %15826 = vst [vmem:[#allocation78_spill] sm:$0xff] %v12530_v60  ;;  %v15871_v60 = vld [vmem:[#allocation126_spill] sm:$0xff] }
 0xdf3   :  { %15811 = vst [vmem:[#allocation130_spill] sm:$0xff] %v12474_v47  ;;  %5136 = vrot.lane.b32.xlu1 %v12440_v22, %s7166_s20  ;;  %v12480_v38 = vpop.f32.mrb[51].mxu0  ;;  %v12482_v5 = vpop.f32.mrb[48].mxu1  ;;  %v12855_v7 = vrot.slane %v4986_v26, %v15871_v60 }
 0xdf4   :  { %15813 = vst [vmem:[#allocation7_spill] sm:$0xff] %v12480_v38  ;;  %15814 = vst [vmem:[#allocation136_spill] sm:$0xff] %v12482_v5  ;;  %v12486_v59 = vpop.f32.mrb[49].mxu1  ;;  %v12536_v41 = vpop.permute.xlu0 %5446 }
 0xdf5   :  { %15816 = vst [vmem:[#allocation83_spill] sm:$0xff] %v12486_v59  ;;  %5306 = vrot.lane.b32.xlu0 %v12418_v12, %s7167_s21  ;;  %v12490_v8 = vpop.f32.mrb[50].mxu1  ;;  %15827 = vst [vmem:[#allocation143_spill] sm:$0xff] %v12536_v41  ;;  %v12540_v28 = vpop.permute.xlu1 %5451  ;;  %v12570_v41 = vmin.f32 %v4750_v21, 6.0 }
 0xdf6   :  { %15817 = vst [vmem:[#allocation132_spill] sm:$0xff] %v12490_v8  ;;  %v12492_v15 = vpop.f32.mrb[51].mxu1  ;;  %15828 = vst [vmem:[#allocation8_spill] sm:$0xff] %v12540_v28 }
 0xdf7   :  { %15818 = vst [vmem:[#allocation9_spill] sm:$0xff] %v12492_v15  ;;  %5308 = vrot.lane.b32.xlu1 %v12422_v51, %s7167_s21  ;;  %15872 = vst [vmem:[#allocation85_spill] sm:$0xff] %v12855_v7 }
 0xdf8   :  { %v12546_v45 = vpop.permute.xlu0 %5828 }
 0xdf9   :  { %5330 = vrot.lane.b32.xlu0 %v12430_v1, %s7167_s21  ;;  %15829 = vst [vmem:[#allocation129_spill] sm:$0xff] %v12546_v45  ;;  %v12550_v4 = vpop.permute.xlu1 %5833  ;;  %v4759_v45 = vmax.f32 %v12452_v33, 0.0  ;;  %v12712_v33 = vmin.f32 %v4763_v39, 6.0 }
 0xdfa   :  { %15830 = vst [vmem:[#allocation122_spill] sm:$0xff] %v12550_v4 }
 0xdfb   :  { %5332 = vrot.lane.b32.xlu1 %v12440_v22, %s7167_s21 }
 0xdfc   :  { %v12556_v43 = vpop.permute.xlu0 %6210 }
 0xdfd   :  { %5502 = vrot.lane.b32.xlu0 %v12418_v12, %s7168_s22  ;;  %15831 = vst [vmem:[#allocation137_spill] sm:$0xff] %v12556_v43  ;;  %v12560_v58 = vpop.permute.xlu1 %6215  ;;  %v4764_v43 = vmax.f32 %v12464_v61, 0.0  ;;  %v12815_v61 = vmul.f32 %v12386_v63, %v12577_v0 }
 0xdfe   :  { %15832 = vst [vmem:[#allocation151_spill] sm:$0xff] %v12560_v58  ;;  %v4760_v58 = vmax.f32 %v12456_v14, 0.0  ;;  %v12811_v14 = vmul.f32 %v12384_v55, %v12430_v1 }
 0xdff   :  { %5504 = vrot.lane.b32.xlu1 %v12422_v51, %s7168_s22 }
 0xe00   :  { %v12568_v28 = vpop.permute.xlu0 %5642 }
 0xe01   :  { %5526 = vrot.lane.b32.xlu0 %v12430_v1, %s7168_s22  ;;  %15833 = vst [vmem:[#allocation141_spill] sm:$0xff] %v12568_v28  ;;  %v12575_v40 = vpop.permute.xlu1 %5647 }
 0xe02   :  { %15834 = vst [vmem:[#allocation124_spill] sm:$0xff] %v12575_v40 }
 0xe03   :  { %5528 = vrot.lane.b32.xlu1 %v12440_v22, %s7168_s22 }
 0xe04   :  { %v12586_v21 = vpop.permute.xlu0 %6024 }
 0xe05   :  { %5698 = vrot.lane.b32.xlu0 %v12418_v12, %s7169_s23  ;;  %15835 = vst [vmem:[#allocation146_spill] sm:$0xff] %v12586_v21  ;;  %v12592_v40 = vpop.permute.xlu1 %6029 }
 0xe06   :  { %15836 = vst [vmem:[#allocation138_spill] sm:$0xff] %v12592_v40  ;;  %v4761_v40 = vmax.f32 %v12446_v52, 0.0  ;;  %v12706_v52 = vmin.f32 %v4759_v45, 6.0 }
 0xe07   :  { %5700 = vrot.lane.b32.xlu1 %v12422_v51, %s7169_s23 }
 0xe08   :  { %v12598_v42 = vpop.permute.xlu0 %6406 }
 0xe09   :  { %5722 = vrot.lane.b32.xlu0 %v12430_v1, %s7169_s23  ;;  %15837 = vst [vmem:[#allocation15_spill] sm:$0xff] %v12598_v42  ;;  %v12602_v54 = vpop.permute.xlu1 %6411 }
 0xe0a   :  { %15838 = vst [vmem:[#allocation89_spill] sm:$0xff] %v12602_v54  ;;  %v4762_v54 = vmax.f32 %v12450_v9, 0.0  ;;  %v12803_v9 = vmul.f32 %v12384_v55, %v12570_v41 }
 0xe0b   :  { %5724 = vrot.lane.b32.xlu1 %v12440_v22, %s7169_s23 }
 0xe0c   :  { %v12608_v13 = vpop.permute.xlu0 %5838 }
 0xe0d   :  { %5894 = vrot.lane.b32.xlu0 %v12418_v12, %s7170_s28  ;;  %15839 = vst [vmem:[#allocation148_spill] sm:$0xff] %v12608_v13  ;;  %v12612_v3 = vpop.permute.xlu1 %5843 }
 0xe0e   :  { %15840 = vst [vmem:[#allocation152_spill] sm:$0xff] %v12612_v3 }
 0xe0f   :  { %5896 = vrot.lane.b32.xlu1 %v12422_v51, %s7170_s28 }
 0xe10   :  { %v12618_v28 = vpop.permute.xlu0 %6220 }
 0xe11   :  { %5918 = vrot.lane.b32.xlu0 %v12430_v1, %s7170_s28  ;;  %15841 = vst [vmem:[#allocation104_spill] sm:$0xff] %v12618_v28  ;;  %v12622_v57 = vpop.permute.xlu1 %6225 }
 0xe12   :  { %15842 = vst [vmem:[#allocation97_spill] sm:$0xff] %v12622_v57 }
 0xe13   :  { %5920 = vrot.lane.b32.xlu1 %v12440_v22, %s7170_s28 }
 0xe14   :  { %v12628_v3 = vpop.permute.xlu0 %6034 }
 0xe15   :  { %6090 = vrot.lane.b32.xlu0 %v12418_v12, %s15539_s30  ;;  %15843 = vst [vmem:[#allocation19_spill] sm:$0xff] %v12628_v3  ;;  %v12632_v13 = vpop.permute.xlu1 %6039 }
 0xe16   :  { %15844 = vst [vmem:[#allocation144_spill] sm:$0xff] %v12632_v13 }
 0xe17   :  { %6092 = vrot.lane.b32.xlu1 %v12422_v51, %s15539_s30 }
 0xe18   :  { %v12638_v17 = vpop.permute.xlu0 %6416 }
 0xe19   :  { %6114 = vrot.lane.b32.xlu0 %v12430_v1, %s15539_s30  ;;  %15845 = vst [vmem:[#allocation91_spill] sm:$0xff] %v12638_v17  ;;  %v12642_v48 = vpop.permute.xlu1 %6421 }
 0xe1a   :  { %15846 = vst [vmem:[#allocation115_spill] sm:$0xff] %v12642_v48 }
 0xe1b   :  { %6116 = vrot.lane.b32.xlu1 %v12440_v22, %s15539_s30 }
 0xe1c   :  { %v12648_v13 = vpop.permute.xlu0 %6230 }
 0xe1d   :  { %6286 = vrot.lane.b32.xlu0 %v12418_v12, %s15543_s27  ;;  %15847 = vst [vmem:[#allocation74_spill] sm:$0xff] %v12648_v13  ;;  %v12652_v3 = vpop.permute.xlu1 %6235 }
 0xe1e   :  { %15848 = vst [vmem:[#allocation105_spill] sm:$0xff] %v12652_v3 }
 0xe1f   :  { %6288 = vrot.lane.b32.xlu1 %v12422_v51, %s15543_s27 }
 0xe20   :  { %v12658_v48 = vpop.permute.xlu0 %6426 }
 0xe21   :  { %6310 = vrot.lane.b32.xlu0 %v12430_v1, %s15543_s27  ;;  %15849 = vst [vmem:[#allocation72_spill] sm:$0xff] %v12658_v48  ;;  %v12662_v17 = vpop.permute.xlu1 %6431  ;;  %v4757_v48 = vmax.f32 %v12436_v30, 0.0  ;;  %v12699_v30 = vmin.f32 %v4761_v40, 6.0  ;;  %v12830_v1 = vmin.f32 %v4762_v54, 6.0  ;;  %v15869_v54 = vld [vmem:[#allocation125_spill] sm:$0xff] }
 0xe22   :  { %15850 = vst [vmem:[#allocation106_spill] sm:$0xff] %v12662_v17 }
 0xe23   :  { %6312 = vrot.lane.b32.xlu1 %v12440_v22, %s15543_s27  ;;  %v12692_v4 = vmin.f32 %v4757_v48, 6.0 }
 0xe25   :  { %4926 = vrot.lane.b32.xlu0 %v12570_v41, %s7165_s19 }
 0xe27   :  { %4928 = vrot.lane.b32.xlu1 %v12577_v0, %s7165_s19 }
 0xe29   :  { %4950 = vrot.lane.b32.xlu0 %v12582_v27, %s7165_s19 }
 0xe2b   :  { %4952 = vrot.lane.b32.xlu1 %v12588_v23, %s7165_s19 }
 0xe2d   :  { %5122 = vrot.lane.b32.xlu0 %v12570_v41, %s7166_s20 }
 0xe2f   :  { %5124 = vrot.lane.b32.xlu1 %v12577_v0, %s7166_s20 }
 0xe31   :  { %5146 = vrot.lane.b32.xlu0 %v12582_v27, %s7166_s20 }
 0xe33   :  { %5148 = vrot.lane.b32.xlu1 %v12588_v23, %s7166_s20 }
 0xe35   :  { %5318 = vrot.lane.b32.xlu0 %v12570_v41, %s7167_s21 }
 0xe37   :  { %5320 = vrot.lane.b32.xlu1 %v12577_v0, %s7167_s21 }
 0xe39   :  { %5342 = vrot.lane.b32.xlu0 %v12582_v27, %s7167_s21 }
 0xe3b   :  { %5344 = vrot.lane.b32.xlu1 %v12588_v23, %s7167_s21 }
 0xe3d   :  { %5514 = vrot.lane.b32.xlu0 %v12570_v41, %s7168_s22 }
 0xe3f   :  { %5516 = vrot.lane.b32.xlu1 %v12577_v0, %s7168_s22 }
 0xe41   :  { %5538 = vrot.lane.b32.xlu0 %v12582_v27, %s7168_s22 }
 0xe43   :  { %5540 = vrot.lane.b32.xlu1 %v12588_v23, %s7168_s22 }
 0xe45   :  { %5710 = vrot.lane.b32.xlu0 %v12570_v41, %s7169_s23 }
 0xe47   :  { %5712 = vrot.lane.b32.xlu1 %v12577_v0, %s7169_s23 }
 0xe49   :  { %5734 = vrot.lane.b32.xlu0 %v12582_v27, %s7169_s23 }
 0xe4b   :  { %5736 = vrot.lane.b32.xlu1 %v12588_v23, %s7169_s23 }
 0xe4d   :  { %5906 = vrot.lane.b32.xlu0 %v12570_v41, %s7170_s28 }
 0xe4f   :  { %5908 = vrot.lane.b32.xlu1 %v12577_v0, %s7170_s28 }
 0xe51   :  { %5930 = vrot.lane.b32.xlu0 %v12582_v27, %s7170_s28 }
 0xe53   :  { %5932 = vrot.lane.b32.xlu1 %v12588_v23, %s7170_s28 }
 0xe55   :  { %6102 = vrot.lane.b32.xlu0 %v12570_v41, %s15539_s30 }
 0xe57   :  { %v12666_v13 = vpop.permute.xlu0 %4914  ;;  %6104 = vrot.lane.b32.xlu1 %v12577_v0, %s15539_s30 }
 0xe59   :  { %6126 = vrot.lane.b32.xlu0 %v12582_v27, %s15539_s30  ;;  %v12672_v3 = vpop.permute.xlu1 %4916 }
 0xe5b   :  { %v12674_v57 = vpop.permute.xlu0 %4938  ;;  %6128 = vrot.lane.b32.xlu1 %v12588_v23, %s15539_s30 }
 0xe5d   :  { %6298 = vrot.lane.b32.xlu0 %v12570_v41, %s15543_s27  ;;  %v12680_v17 = vpop.permute.xlu1 %4940  ;;  %v12823_v41 = vmul.f32 %v12386_v63, %v12422_v51  ;;  %v12842_v51 = vmul.f32 %v12386_v63, %v12588_v23 }
 0xe5f   :  { %v12683_v28 = vpop.permute.xlu0 %5110  ;;  %6300 = vrot.lane.b32.xlu1 %v12577_v0, %s15543_s27  ;;  %v12847_v0 = vmin.f32 %v4760_v58, 6.0  ;;  %v12865_v58 = vrot.slane %v4986_v26, %v15792_v53 }
 0xe61   :  { %6322 = vrot.lane.b32.xlu0 %v12582_v27, %s15543_s27  ;;  %v12690_v21 = vpop.permute.xlu1 %5112 }
 0xe63   :  { %v12695_v11 = vpop.permute.xlu0 %5134  ;;  %6324 = vrot.lane.b32.xlu1 %v12588_v23, %s15543_s27 }
 0xe65   :  { %v12702_v32 = vpop.permute.xlu1 %5136  ;;  %4918 = vrot.lane.b32.xlu0 %v12692_v4, %s7165_s19 }
 0xe67   :  { %v12708_v48 = vpop.permute.xlu0 %5306  ;;  %4920 = vrot.lane.b32.xlu1 %v12699_v30, %s7165_s19 }
 0xe69   :  { %v12714_v34 = vpop.permute.xlu1 %5308  ;;  %4942 = vrot.lane.b32.xlu0 %v12706_v52, %s7165_s19 }
 0xe6b   :  { %v12718_v50 = vpop.permute.xlu0 %5330  ;;  %4944 = vrot.lane.b32.xlu1 %v12712_v33, %s7165_s19 }
 0xe6d   :  { %v12722_v40 = vpop.permute.xlu1 %5332  ;;  %5114 = vrot.lane.b32.xlu0 %v12692_v4, %s7166_s20 }
 0xe6f   :  { %v12726_v45 = vpop.permute.xlu0 %5502  ;;  %5116 = vrot.lane.b32.xlu1 %v12699_v30, %s7166_s20 }
 0xe70   :  { %15851 = vst [vmem:[#allocation27_spill] sm:$0xff] %v12726_v45 }
 0xe71   :  { %v12730_v39 = vpop.permute.xlu1 %5504  ;;  %5138 = vrot.lane.b32.xlu0 %v12706_v52, %s7166_s20 }
 0xe72   :  { %15852 = vst [vmem:[#allocation52_spill] sm:$0xff] %v12730_v39 }
 0xe73   :  { %v12734_v6 = vpop.permute.xlu0 %5526  ;;  %5140 = vrot.lane.b32.xlu1 %v12712_v33, %s7166_s20 }
 0xe74   :  { %15853 = vst [vmem:[#allocation107_spill] sm:$0xff] %v12734_v6 }
 0xe75   :  { %v12738_v37 = vpop.permute.xlu1 %5528  ;;  %5310 = vrot.lane.b32.xlu0 %v12692_v4, %s7167_s21 }
 0xe76   :  { %15854 = vst [vmem:[#allocation21_spill] sm:$0xff] %v12738_v37 }
 0xe77   :  { %v12742_v35 = vpop.permute.xlu0 %5698  ;;  %5312 = vrot.lane.b32.xlu1 %v12699_v30, %s7167_s21 }
 0xe78   :  { %15855 = vst [vmem:[#allocation139_spill] sm:$0xff] %v12742_v35 }
 0xe79   :  { %v12746_v49 = vpop.permute.xlu1 %5700  ;;  %5334 = vrot.lane.b32.xlu0 %v12706_v52, %s7167_s21 }
 0xe7a   :  { %15856 = vst [vmem:[#allocation153_spill] sm:$0xff] %v12746_v49 }
 0xe7b   :  { %v12750_v15 = vpop.permute.xlu0 %5722  ;;  %5336 = vrot.lane.b32.xlu1 %v12712_v33, %s7167_s21 }
 0xe7c   :  { %15857 = vst [vmem:[#allocation53_spill] sm:$0xff] %v12750_v15 }
 0xe7d   :  { %v12754_v59 = vpop.permute.xlu1 %5724  ;;  %5506 = vrot.lane.b32.xlu0 %v12692_v4, %s7168_s22 }
 0xe7e   :  { %15858 = vst [vmem:[#allocation41_spill] sm:$0xff] %v12754_v59 }
 0xe7f   :  { %v12758_v38 = vpop.permute.xlu0 %5894  ;;  %5508 = vrot.lane.b32.xlu1 %v12699_v30, %s7168_s22 }
 0xe80   :  { %15859 = vst [vmem:[#allocation164_spill] sm:$0xff] %v12758_v38  ;;  %v7093_v38 = vld [vmem:[%s14416_s1 + $0x10] sm:$0xf] }
 0xe81   :  { %v12762_v29 = vpop.permute.xlu1 %5896  ;;  %5530 = vrot.lane.b32.xlu0 %v12706_v52, %s7168_s22  ;;  %v12917_v31 = vrot.slane %v7093_v38, %v15792_v53  ;;  %v12920_v39 = vrot.slane %v7093_v38, %v15869_v54 }
 0xe82   :  { %15860 = vst [vmem:[#allocation140_spill] sm:$0xff] %v12762_v29 }
 0xe83   :  { %v12766_v2 = vpop.permute.xlu0 %5918  ;;  %5532 = vrot.lane.b32.xlu1 %v12712_v33, %s7168_s22  ;;  %15881 = vst [vmem:[#allocation14_spill] sm:$0xff] %v12917_v31  ;;  %15882 = vst [vmem:[#allocation112_spill] sm:$0xff] %v12920_v39  ;;  %v12937_v31 = vrot.slane %v7094_v56, %v15869_v54 }
 0xe84   :  { %15861 = vst [vmem:[#allocation133_spill] sm:$0xff] %v12766_v2 }
 0xe85   :  { %v12770_v25 = vpop.permute.xlu1 %5920  ;;  %5702 = vrot.lane.b32.xlu0 %v12692_v4, %s7169_s23  ;;  %15886 = vst [vmem:[#allocation50_spill] sm:$0xff] %v12937_v31 }
 0xe86   :  { %15862 = vst [vmem:[#allocation145_spill] sm:$0xff] %v12770_v25 }
 0xe87   :  { %v12774_v8 = vpop.permute.xlu0 %6090  ;;  %5704 = vrot.lane.b32.xlu1 %v12699_v30, %s7169_s23 }
 0xe88   :  { %15863 = vst [vmem:[#allocation33_spill] sm:$0xff] %v12774_v8  ;;  %v12828_v8 = vmin.f32 %v4758_v20, 6.0  ;;  %v7091_v20 = vld [vmem:[%s14416_s1 + $0x8] sm:$0xf] }
 0xe89   :  { %v12778_v5 = vpop.permute.xlu1 %6092  ;;  %5726 = vrot.lane.b32.xlu0 %v12706_v52, %s7169_s23  ;;  %v12886_v16 = vrot.slane %v7091_v20, %v15869_v54  ;;  %v12899_v59 = vrot.slane %v7091_v20, %v15792_v53 }
 0xe8a   :  { %15864 = vst [vmem:[#allocation35_spill] sm:$0xff] %v12778_v5 }
 0xe8b   :  { %v12782_v47 = vpop.permute.xlu0 %6114  ;;  %5728 = vrot.lane.b32.xlu1 %v12712_v33, %s7169_s23 }
 0xe8c   :  { %15865 = vst [vmem:[#allocation90_spill] sm:$0xff] %v12782_v47 }
 0xe8d   :  { %v12788_v42 = vpop.permute.xlu1 %6116  ;;  %5898 = vrot.lane.b32.xlu0 %v12692_v4, %s7170_s28 }
 0xe8e   :  { %15866 = vst [vmem:[#allocation25_spill] sm:$0xff] %v12788_v42  ;;  %v12807_v42 = vmul.f32 %v12384_v55, %v12418_v12  ;;  %v7090_v12 = vld [vmem:[%s14416_s1 + $0x4] sm:$0xf] }
 0xe8f   :  { %v12794_v5 = vpop.permute.xlu0 %6286  ;;  %5900 = vrot.lane.b32.xlu1 %v12699_v30, %s7170_s28  ;;  %v12871_v29 = vrot.slane %v7090_v12, %v15869_v54  ;;  %v12874_v25 = vrot.slane %v7090_v12, %v15871_v60 }
 0xe90   :  { %15867 = vst [vmem:[#allocation113_spill] sm:$0xff] %v12794_v5  ;;  %v12819_v5 = vmul.f32 %v12384_v55, %v12582_v27  ;;  %v12838_v55 = vmul.f32 %v12386_v63, %v12440_v22  ;;  %v12849_v27 = vmin.f32 %v4764_v43, 6.0  ;;  %v7092_v22 = vld [vmem:[%s14416_s1 + $0xc] sm:$0xf]  ;;  %v15874_v43 = vld [vmem:[#allocation135_spill] sm:$0xff] }
 0xe91   :  { %v12832_v47 = vpop.permute.xlu1 %6288  ;;  %5922 = vrot.lane.b32.xlu0 %v12706_v52, %s7170_s28  ;;  %v12868_v23 = vrot.slane %v4986_v26, %v15874_v43  ;;  %v12883_v2 = vrot.slane %v7090_v12, %v15874_v43  ;;  %v12905_v35 = vrot.slane %v7092_v22, %v15869_v54  ;;  %v12908_v15 = vrot.slane %v7092_v22, %v15871_v60 }
 0xe92   :  { %15868 = vst [vmem:[#allocation93_spill] sm:$0xff] %v12832_v47  ;;  %v12852_v47 = vrot.slane %v4986_v26, %v15869_v54  ;;  %v12889_v26 = vrot.slane %v7091_v20, %v15871_v60  ;;  %v12911_v18 = vrot.slane %v7092_v22, %v15792_v53 }
 0xe93   :  { %v12860_v63 = vpop.permute.xlu0 %6310  ;;  %5924 = vrot.lane.b32.xlu1 %v12712_v33, %s7170_s28  ;;  %15877 = vst [vmem:[#allocation99_spill] sm:$0xff] %v12905_v35  ;;  %15878 = vst [vmem:[#allocation86_spill] sm:$0xff] %v12908_v15  ;;  %v12928_v15 = vrot.slane %v7093_v38, %v15871_v60  ;;  %v12946_v35 = vrot.slane %v7094_v56, %v15871_v60 }
 0xe94   :  { %15870 = vst [vmem:[#allocation92_spill] sm:$0xff] %v12852_v47  ;;  %15873 = vst [vmem:[#allocation69_spill] sm:$0xff] %v12860_v63  ;;  %v12880_v63 = vrot.slane %v7090_v12, %v15792_v53  ;;  %v12902_v12 = vrot.slane %v7091_v20, %v15874_v43  ;;  %v7095_v20 = vld [vmem:[%s14416_s1 + $0x18] sm:$0xf] }
 0xe95   :  { %v12894_v49 = vpop.permute.xlu1 %6312  ;;  %6094 = vrot.lane.b32.xlu0 %v12692_v4, %s15539_s30  ;;  %15879 = vst [vmem:[#allocation87_spill] sm:$0xff] %v12911_v18  ;;  %15883 = vst [vmem:[#allocation111_spill] sm:$0xff] %v12928_v15  ;;  %v12956_v31 = vrot.slane %v7095_v20, %v15792_v53  ;;  %v12959_v45 = vrot.slane %v7095_v20, %v15869_v54 }
 0xe96   :  { %15875 = vst [vmem:[#allocation110_spill] sm:$0xff] %v12894_v49  ;;  %15876 = vst [vmem:[#allocation114_spill] sm:$0xff] %v12902_v12  ;;  %v12914_v49 = vrot.slane %v7092_v22, %v15874_v43  ;;  %v12931_v22 = vrot.slane %v7093_v38, %v15874_v43  ;;  %v12949_v38 = vrot.slane %v7094_v56, %v15874_v43 }
 0xe97   :  { %v4927_v37 = vpop.permute.xlu0 %4926  ;;  %6096 = vrot.lane.b32.xlu1 %v12699_v30, %s15539_s30  ;;  %15887 = vst [vmem:[#allocation165_spill] sm:$0xff] %v12946_v35  ;;  %15889 = vst [vmem:[#allocation156_spill] sm:$0xff] %v12956_v31  ;;  %v12974_v31 = vrot.slane %v7095_v20, %v15874_v43 }
 0xe98   :  { %15880 = vst [vmem:[#allocation88_spill] sm:$0xff] %v12914_v49  ;;  %15884 = vst [vmem:[#allocation117_spill] sm:$0xff] %v12931_v22  ;;  %v12934_v49 = vrot.slane %v7094_v56, %v15792_v53  ;;  %v4968_v39 = vsel %vm441_vm2, %v4927_v37, %v12674_v57  ;;  %v4974_v18 = vsel %vm441_vm2, %v12666_v13, %v4927_v37  ;;  %v7096_v37 = vld [vmem:[%s14416_s1 + $0x1c] sm:$0xf] }
 0xe99   :  { %15888 = vst [vmem:[#allocation154_spill] sm:$0xff] %v12949_v38  ;;  %v5009_v22 = vmul.f32 %v12852_v47, %v4974_v18  ;;  %v4929_v15 = vpop.permute.xlu1 %4928  ;;  %6118 = vrot.lane.b32.xlu0 %v12706_v52, %s15539_s30  ;;  %15890 = vst [vmem:[#allocation3_spill] sm:$0xff] %v12959_v45 }
 0xe9a   :  { %15885 = vst [vmem:[#allocation26_spill] sm:$0xff] %v12934_v49  ;;  %v5010_v49 = vmul.f32 %v12855_v7, %v4968_v39  ;;  %v4969_v18 = vsel %vm441_vm2, %v4929_v15, %v12680_v17  ;;  %v4975_v56 = vsel %vm441_vm2, %v12672_v3, %v4929_v15  ;;  %v12971_v39 = vrot.slane %v7095_v20, %v15871_v60 }
 0xe9b   :  { %15892 = vst [vmem:[#allocation38_spill] sm:$0xff] %v12974_v31  ;;  %v5063_v45 = vmul.f32 %v12388_v19, %v5009_v22  ;;  %v5013_v35 = vmul.f32 %v12852_v47, %v4975_v56  ;;  %v5014_v6 = vmul.f32 %v12855_v7, %v4969_v18  ;;  %v4951_v12 = vpop.permute.xlu0 %4950  ;;  %6120 = vrot.lane.b32.xlu1 %v12712_v33, %s15539_s30 }
 0xe9c   :  { %15891 = vst [vmem:[#allocation172_spill] sm:$0xff] %v12971_v39  ;;  %v5064_v38 = vmul.f32 %v12388_v19, %v5010_v49  ;;  %v4962_v15 = vsel %vm441_vm2, %v12674_v57, %v4951_v12  ;;  %v4980_v20 = vsel %vm441_vm2, %v4951_v12, %v12666_v13  ;;  %v12989_v22 = vrot.slane %v7096_v37, %v15792_v53 }
 0xe9d   :  { %v12992_v49 = vrot.slane %v7096_v37, %v15869_v54  ;;  %v5067_v18 = vmul.f32 %v12390_v62, %v5013_v35  ;;  %v5068_v56 = vmul.f32 %v12390_v62, %v5014_v6  ;;  %v4953_v7 = vpop.permute.xlu1 %4952  ;;  %6290 = vrot.lane.b32.xlu0 %v12692_v4, %s15543_s27  ;;  %v12999_v57 = vrot.slane %v7096_v37, %v15871_v60 }
 0xe9e   :  { %15893 = vst [vmem:[#allocation155_spill] sm:$0xff] %v12989_v22  ;;  %v13002_v47 = vrot.slane %v7096_v37, %v15874_v43  ;;  %v5008_v13 = vmul.f32 %v12865_v58, %v4980_v20  ;;  %v5011_v12 = vmul.f32 %v12868_v23, %v4962_v15  ;;  %v4963_v35 = vsel %vm441_vm2, %v12680_v17, %v4953_v7 }
 0xe9f   :  { %15894 = vst [vmem:[#allocation48_spill] sm:$0xff] %v12992_v49  ;;  %15895 = vst [vmem:[#allocation31_spill] sm:$0xff] %v12999_v57  ;;  %v4981_v6 = vsel %vm441_vm2, %v4953_v7, %v12672_v3  ;;  %v5087_v54 = vadd.f32 %v5063_v45, %v12803_v9  ;;  %v5088_v60 = vadd.f32 %v5064_v38, %v12811_v14  ;;  %v5123_v37 = vpop.permute.xlu0 %5122  ;;  %6292 = vrot.lane.b32.xlu1 %v12699_v30, %s15543_s27 }
 0xea0   :  { %15896 = vst [vmem:[#allocation40_spill] sm:$0xff] %v13002_v47  ;;  %v5012_v53 = vmul.f32 %v12865_v58, %v4981_v6  ;;  %v5015_v43 = vmul.f32 %v12868_v23, %v4963_v35  ;;  %v5062_v15 = vmul.f32 %v12388_v19, %v5008_v13  ;;  %v5065_v17 = vmul.f32 %v12388_v19, %v5011_v12 }
 0xea1   :  { %v5164_v7 = vsel %vm638_vm3, %v5123_v37, %v12695_v11  ;;  %v5170_v3 = vsel %vm638_vm3, %v12683_v28, %v5123_v37  ;;  %v5125_v20 = vpop.permute.xlu1 %5124  ;;  %6314 = vrot.lane.b32.xlu0 %v12706_v52, %s15543_s27  ;;  %v5091_v19 = vadd.f32 %v5067_v18, %v12815_v61  ;;  %v5092_v13 = vadd.f32 %v5068_v56, %v12838_v55 }
 0xea2   :  { %v5066_v45 = vmul.f32 %v12390_v62, %v5012_v53  ;;  %v5069_v9 = vmul.f32 %v12390_v62, %v5015_v43  ;;  %v5205_v14 = vmul.f32 %v12871_v29, %v5170_v3  ;;  %v5206_v38 = vmul.f32 %v12874_v25, %v5164_v7 }
 0xea3   :  { %v5165_v12 = vsel %vm638_vm3, %v5125_v20, %v12702_v32  ;;  %v5171_v53 = vsel %vm638_vm3, %v12690_v21, %v5125_v20  ;;  %v5086_v62 = vadd.f32 %v5062_v15, %v12807_v42  ;;  %v5089_v35 = vadd.f32 %v5065_v17, %v12819_v5  ;;  %v5147_v37 = vpop.permute.xlu0 %5146  ;;  %6316 = vrot.lane.b32.xlu1 %v12712_v33, %s15543_s27 }
 0xea4   :  { %v5259_v6 = vmul.f32 %v12392_v44, %v5205_v14  ;;  %v5260_v43 = vmul.f32 %v12392_v44, %v5206_v38  ;;  %v5209_v61 = vmul.f32 %v12871_v29, %v5171_v53  ;;  %v5210_v55 = vmul.f32 %v12874_v25, %v5165_v12 }
 0xea5   :  { %v5158_v18 = vsel %vm638_vm3, %v12695_v11, %v5147_v37  ;;  %v5176_v5 = vsel %vm638_vm3, %v5147_v37, %v12683_v28  ;;  %v5090_v42 = vadd.f32 %v5066_v45, %v12823_v41  ;;  %v5093_v56 = vadd.f32 %v5069_v9, %v12842_v51  ;;  %v5149_v7 = vpop.permute.xlu1 %5148  ;;  %4930 = vrot.lane.b32.xlu0 %v12828_v8, %s7165_s19 }
 0xea6   :  { %v5204_v15 = vmul.f32 %v12880_v63, %v5176_v5  ;;  %v5207_v17 = vmul.f32 %v12883_v2, %v5158_v18  ;;  %v5263_v3 = vmul.f32 %v12394_v36, %v5209_v61  ;;  %v5264_v11 = vmul.f32 %v12394_v36, %v5210_v55 }
 0xea7   :  { %v5159_v28 = vsel %vm638_vm3, %v12702_v32, %v5149_v7  ;;  %v5177_v41 = vsel %vm638_vm3, %v5149_v7, %v12690_v21  ;;  %v5319_v38 = vpop.permute.xlu0 %5318  ;;  %4932 = vrot.lane.b32.xlu1 %v12830_v1, %s7165_s19  ;;  %v5283_v20 = vadd.f32 %v5259_v6, %v5087_v54  ;;  %v5284_v12 = vadd.f32 %v5260_v43, %v5088_v60 }
 0xea8   :  { %v5258_v51 = vmul.f32 %v12392_v44, %v5204_v15  ;;  %v5261_v45 = vmul.f32 %v12392_v44, %v5207_v17  ;;  %v5208_v9 = vmul.f32 %v12880_v63, %v5177_v41  ;;  %v5211_v14 = vmul.f32 %v12883_v2, %v5159_v28  ;;  %v15897_v28 = vld [vmem:[#allocation114_spill] sm:$0xff] }
 0xea9   :  { %v5360_v32 = vsel %vm836_vm4, %v5319_v38, %v12718_v50  ;;  %v5366_v21 = vsel %vm836_vm4, %v12708_v48, %v5319_v38  ;;  %v5287_v53 = vadd.f32 %v5263_v3, %v5091_v19  ;;  %v5288_v44 = vadd.f32 %v5264_v11, %v5092_v13  ;;  %v5321_v55 = vpop.permute.xlu1 %5320  ;;  %4954 = vrot.lane.b32.xlu0 %v12847_v0, %s7165_s19 }
 0xeaa   :  { %v5262_v37 = vmul.f32 %v12394_v36, %v5208_v9  ;;  %v5265_v61 = vmul.f32 %v12394_v36, %v5211_v14  ;;  %v5401_v54 = vmul.f32 %v12886_v16, %v5366_v21  ;;  %v5402_v60 = vmul.f32 %v12889_v26, %v5360_v32 }
 0xeab   :  { %v5361_v6 = vsel %vm836_vm4, %v5321_v55, %v12722_v40  ;;  %v5367_v19 = vsel %vm836_vm4, %v12714_v34, %v5321_v55  ;;  %v5282_v13 = vadd.f32 %v5258_v51, %v5086_v62  ;;  %v5285_v43 = vadd.f32 %v5261_v45, %v5089_v35  ;;  %v5343_v5 = vpop.permute.xlu0 %5342  ;;  %4956 = vrot.lane.b32.xlu1 %v12849_v27, %s7165_s19 }
 0xeac   :  { %v5405_v36 = vmul.f32 %v12886_v16, %v5367_v19  ;;  %v5406_v18 = vmul.f32 %v12889_v26, %v5361_v6  ;;  %v5455_v15 = vmul.f32 %v12404_v24, %v5401_v54  ;;  %v5456_v17 = vmul.f32 %v12404_v24, %v5402_v60  ;;  %v15900_v54 = vld [vmem:[#allocation99_spill] sm:$0xff]  ;;  %v15901_v60 = vld [vmem:[#allocation86_spill] sm:$0xff] }
 0xead   :  { %v5354_v7 = vsel %vm836_vm4, %v12718_v50, %v5343_v5  ;;  %v5372_v62 = vsel %vm836_vm4, %v5343_v5, %v12708_v48  ;;  %v5345_v51 = vpop.permute.xlu1 %5344  ;;  %5126 = vrot.lane.b32.xlu0 %v12828_v8, %s7166_s20  ;;  %v5286_v45 = vadd.f32 %v5262_v37, %v5090_v42  ;;  %v5289_v9 = vadd.f32 %v5265_v61, %v5093_v56  ;;  %v15898_v37 = vld [vmem:[#allocation107_spill] sm:$0xff]  ;;  %v15902_v5 = vld [vmem:[#allocation21_spill] sm:$0xff] }
 0xeae   :  { %v5459_v35 = vmul.f32 %v12406_v10, %v5405_v36  ;;  %v5460_v3 = vmul.f32 %v12406_v10, %v5406_v18  ;;  %v5400_v11 = vmul.f32 %v12899_v59, %v5372_v62  ;;  %v5403_v41 = vmul.f32 %v15897_v28, %v5354_v7  ;;  %v15899_v61 = vld [vmem:[#allocation27_spill] sm:$0xff] }
 0xeaf   :  { %v5355_v50 = vsel %vm836_vm4, %v12722_v40, %v5345_v51  ;;  %v5373_v48 = vsel %vm836_vm4, %v5345_v51, %v12714_v34  ;;  %v5479_v14 = vadd.f32 %v5455_v15, %v5283_v20  ;;  %v5480_v38 = vadd.f32 %v5456_v17, %v5284_v12  ;;  %v5515_v55 = vpop.permute.xlu0 %5514  ;;  %5128 = vrot.lane.b32.xlu1 %v12830_v1, %s7166_s20  ;;  %v15903_v17 = vld [vmem:[#allocation52_spill] sm:$0xff] }
 0xeb0   :  { %v5454_v32 = vmul.f32 %v12404_v24, %v5400_v11  ;;  %v5457_v21 = vmul.f32 %v12404_v24, %v5403_v41  ;;  %v5404_v42 = vmul.f32 %v12899_v59, %v5373_v48  ;;  %v5407_v56 = vmul.f32 %v15897_v28, %v5355_v50 }
 0xeb1   :  { %v5556_v40 = vsel %vm1034_vm5, %v5515_v55, %v15898_v37  ;;  %v5562_v34 = vsel %vm1034_vm5, %v15899_v61, %v5515_v55  ;;  %v5483_v20 = vadd.f32 %v5459_v35, %v5287_v53  ;;  %v5484_v12 = vadd.f32 %v5460_v3, %v5288_v44  ;;  %v5517_v19 = vpop.permute.xlu1 %5516  ;;  %5150 = vrot.lane.b32.xlu0 %v12847_v0, %s7166_s20  ;;  %v15904_v44 = vld [vmem:[#allocation67_spill] sm:$0xff] }
 0xeb2   :  { %v5597_v24 = vmul.f32 %v15900_v54, %v5562_v34  ;;  %v5598_v6 = vmul.f32 %v15901_v60, %v5556_v40  ;;  %v5458_v36 = vmul.f32 %v12406_v10, %v5404_v42  ;;  %v5461_v18 = vmul.f32 %v12406_v10, %v5407_v56  ;;  %v15905_v42 = vld [vmem:[#allocation66_spill] sm:$0xff] }
 0xeb3   :  { %v5557_v15 = vsel %vm1034_vm5, %v5517_v19, %v15902_v5  ;;  %v5563_v53 = vsel %vm1034_vm5, %v15903_v17, %v5517_v19  ;;  %v5539_v11 = vpop.permute.xlu0 %5538  ;;  %5152 = vrot.lane.b32.xlu1 %v12849_v27, %s7166_s20  ;;  %v5478_v10 = vadd.f32 %v5454_v32, %v5282_v13  ;;  %v5481_v41 = vadd.f32 %v5457_v21, %v5285_v43  ;;  %v15906_v13 = vld [vmem:[#allocation87_spill] sm:$0xff]  ;;  %v15907_v32 = vld [vmem:[#allocation88_spill] sm:$0xff] }
 0xeb4   :  { %v5651_v7 = vmul.f32 %v15904_v44, %v5597_v24  ;;  %v5652_v62 = vmul.f32 %v15904_v44, %v5598_v6  ;;  %v5601_v35 = vmul.f32 %v15900_v54, %v5563_v53  ;;  %v5602_v3 = vmul.f32 %v15901_v60, %v5557_v15  ;;  %v15908_v15 = vld [vmem:[#allocation53_spill] sm:$0xff]  ;;  %v15909_v53 = vld [vmem:[#allocation139_spill] sm:$0xff] }
 0xeb5   :  { %v5550_v51 = vsel %vm1034_vm5, %v15898_v37, %v5539_v11  ;;  %v5568_v50 = vsel %vm1034_vm5, %v5539_v11, %v15899_v61  ;;  %v5482_v48 = vadd.f32 %v5458_v36, %v5286_v45  ;;  %v5485_v55 = vadd.f32 %v5461_v18, %v5289_v9  ;;  %v5541_v34 = vpop.permute.xlu1 %5540  ;;  %5322 = vrot.lane.b32.xlu0 %v12828_v8, %s7167_s21 }
 0xeb6   :  { %v5655_v56 = vmul.f32 %v15905_v42, %v5601_v35  ;;  %v5656_v40 = vmul.f32 %v15905_v42, %v5602_v3  ;;  %v5596_v43 = vmul.f32 %v15906_v13, %v5568_v50  ;;  %v5599_v21 = vmul.f32 %v15907_v32, %v5550_v51  ;;  %v15911_v35 = vld [vmem:[#allocation112_spill] sm:$0xff]  ;;  %v15912_v50 = vld [vmem:[#allocation41_spill] sm:$0xff] }
 0xeb7   :  { %v5551_v37 = vsel %vm1034_vm5, %v15902_v5, %v5541_v34  ;;  %v5569_v45 = vsel %vm1034_vm5, %v5541_v34, %v15903_v17  ;;  %v5675_v9 = vadd.f32 %v5651_v7, %v5479_v14  ;;  %v5676_v61 = vadd.f32 %v5652_v62, %v5480_v38  ;;  %v5711_v19 = vpop.permute.xlu0 %5710  ;;  %5324 = vrot.lane.b32.xlu1 %v12830_v1, %s7167_s21  ;;  %v15910_v7 = vld [vmem:[#allocation14_spill] sm:$0xff] }
 0xeb8   :  { %v5600_v24 = vmul.f32 %v15906_v13, %v5569_v45  ;;  %v5603_v6 = vmul.f32 %v15907_v32, %v5551_v37  ;;  %v5650_v36 = vmul.f32 %v15904_v44, %v5596_v43  ;;  %v5653_v18 = vmul.f32 %v15904_v44, %v5599_v21  ;;  %v15913_v43 = vld [vmem:[#allocation153_spill] sm:$0xff]  ;;  %v15914_v45 = vld [vmem:[#allocation123_spill] sm:$0xff] }
 0xeb9   :  { %v5752_v5 = vsel %vm1232_vm6, %v5711_v19, %v15908_v15  ;;  %v5758_v14 = vsel %vm1232_vm6, %v15909_v53, %v5711_v19  ;;  %v5713_v11 = vpop.permute.xlu1 %5712  ;;  %5346 = vrot.lane.b32.xlu0 %v12847_v0, %s7167_s21  ;;  %v5679_v44 = vadd.f32 %v5655_v56, %v5483_v20  ;;  %v5680_v51 = vadd.f32 %v5656_v40, %v5484_v12 }
 0xeba   :  { %v5654_v38 = vmul.f32 %v15905_v42, %v5600_v24  ;;  %v5657_v17 = vmul.f32 %v15905_v42, %v5603_v6  ;;  %v5792_v62 = vmul.f32 %v15910_v7, %v5758_v14  ;;  %v5793_v3 = vmul.f32 %v15911_v35, %v5752_v5  ;;  %v15916_v5 = vld [vmem:[#allocation117_spill] sm:$0xff] }
 0xebb   :  { %v5753_v34 = vsel %vm1232_vm6, %v5713_v11, %v15912_v50  ;;  %v5759_v21 = vsel %vm1232_vm6, %v15913_v43, %v5713_v11  ;;  %v5674_v37 = vadd.f32 %v5650_v36, %v5478_v10  ;;  %v5677_v42 = vadd.f32 %v5653_v18, %v5481_v41  ;;  %v5735_v19 = vpop.permute.xlu0 %5734  ;;  %5348 = vrot.lane.b32.xlu1 %v12849_v27, %s7167_s21  ;;  %v15915_v36 = vld [vmem:[#allocation111_spill] sm:$0xff] }
 0xebc   :  { %v5846_v24 = vmul.f32 %v15914_v45, %v5792_v62  ;;  %v5847_v6 = vmul.f32 %v15914_v45, %v5793_v3  ;;  %v5796_v20 = vmul.f32 %v15910_v7, %v5759_v21  ;;  %v5797_v12 = vmul.f32 %v15911_v35, %v5753_v34  ;;  %v15917_v3 = vld [vmem:[#allocation43_spill] sm:$0xff] }
 0xebd   :  { %v5746_v56 = vsel %vm1232_vm6, %v15908_v15, %v5735_v19  ;;  %v5764_v10 = vsel %vm1232_vm6, %v5735_v19, %v15909_v53  ;;  %v5678_v41 = vadd.f32 %v5654_v38, %v5482_v48  ;;  %v5681_v40 = vadd.f32 %v5657_v17, %v5485_v55  ;;  %v5737_v62 = vpop.permute.xlu1 %5736  ;;  %5518 = vrot.lane.b32.xlu0 %v12828_v8, %s7168_s22 }
 0xebe   :  { %v5794_v18 = vmul.f32 %v15915_v36, %v5746_v56  ;;  %v5795_v14 = vmul.f32 %v15916_v5, %v5764_v10  ;;  %v5850_v11 = vmul.f32 %v15917_v3, %v5796_v20  ;;  %v5851_v34 = vmul.f32 %v15917_v3, %v5797_v12  ;;  %v15918_v12 = vld [vmem:[#allocation133_spill] sm:$0xff]  ;;  %v15919_v56 = vld [vmem:[#allocation164_spill] sm:$0xff] }
 0xebf   :  { %v5747_v15 = vsel %vm1232_vm6, %v15912_v50, %v5737_v62  ;;  %v5765_v48 = vsel %vm1232_vm6, %v5737_v62, %v15913_v43  ;;  %v5907_v21 = vpop.permute.xlu0 %5906  ;;  %5520 = vrot.lane.b32.xlu1 %v12830_v1, %s7168_s22  ;;  %v5870_v19 = vadd.f32 %v5846_v24, %v5674_v37  ;;  %v5871_v20 = vadd.f32 %v5847_v6, %v5675_v9  ;;  %v15920_v37 = vld [vmem:[#allocation26_spill] sm:$0xff] }
 0xec0   :  { %v5848_v55 = vmul.f32 %v15914_v45, %v5794_v18  ;;  %v5849_v53 = vmul.f32 %v15914_v45, %v5795_v14  ;;  %v5798_v38 = vmul.f32 %v15915_v36, %v5747_v15  ;;  %v5799_v17 = vmul.f32 %v15916_v5, %v5765_v48  ;;  %v15921_v24 = vld [vmem:[#allocation50_spill] sm:$0xff]  ;;  %v15922_v15 = vld [vmem:[#allocation145_spill] sm:$0xff]  ;;  %v15923_v5 = vld [vmem:[#allocation140_spill] sm:$0xff] }
 0xec1   :  { %v5948_v50 = vsel %vm1430_vm7, %v5907_v21, %v15918_v12  ;;  %v5954_v43 = vsel %vm1430_vm7, %v15919_v56, %v5907_v21  ;;  %v5874_v10 = vadd.f32 %v5850_v11, %v5678_v41  ;;  %v5875_v45 = vadd.f32 %v5851_v34, %v5679_v44  ;;  %v5909_v62 = vpop.permute.xlu1 %5908  ;;  %5542 = vrot.lane.b32.xlu0 %v12847_v0, %s7168_s22  ;;  %v15968_v36 = vld [vmem:[#allocation92_spill] sm:$0xff] }
 0xec2   :  { %v5852_v18 = vmul.f32 %v15917_v3, %v5798_v38  ;;  %v5853_v14 = vmul.f32 %v15917_v3, %v5799_v17  ;;  %v5988_v9 = vmul.f32 %v15920_v37, %v5954_v43  ;;  %v5989_v6 = vmul.f32 %v15921_v24, %v5948_v50  ;;  %v15924_v17 = vld [vmem:[#allocation37_spill] sm:$0xff] }
 0xec3   :  { %v5949_v48 = vsel %vm1430_vm7, %v5909_v62, %v15922_v15  ;;  %v5955_v44 = vsel %vm1430_vm7, %v15923_v5, %v5909_v62  ;;  %v5872_v41 = vadd.f32 %v5848_v55, %v5676_v61  ;;  %v5873_v11 = vadd.f32 %v5849_v53, %v5677_v42  ;;  %v5931_v38 = vpop.permute.xlu0 %5930  ;;  %5544 = vrot.lane.b32.xlu1 %v12849_v27, %s7168_s22  ;;  %v15925_v42 = vld [vmem:[#allocation78_spill] sm:$0xff]  ;;  %v15926_v62 = vld [vmem:[#allocation165_spill] sm:$0xff] }
 0xec4   :  { %v5992_v3 = vmul.f32 %v15920_v37, %v5955_v44  ;;  %v5993_v34 = vmul.f32 %v15921_v24, %v5949_v48  ;;  %v6042_v21 = vmul.f32 %v15924_v17, %v5988_v9  ;;  %v6043_v50 = vmul.f32 %v15924_v17, %v5989_v6  ;;  %v15927_v44 = vld [vmem:[#allocation154_spill] sm:$0xff] }
 0xec5   :  { %v5942_v43 = vsel %vm1430_vm7, %v15918_v12, %v5931_v38  ;;  %v5960_v61 = vsel %vm1430_vm7, %v5931_v38, %v15919_v56  ;;  %v5933_v37 = vpop.permute.xlu1 %5932  ;;  %5714 = vrot.lane.b32.xlu0 %v12828_v8, %s7169_s23  ;;  %v5876_v9 = vadd.f32 %v5852_v18, %v5680_v51  ;;  %v5877_v6 = vadd.f32 %v5853_v14, %v5681_v40  ;;  %v15928_v18 = vld [vmem:[#allocation90_spill] sm:$0xff] }
 0xec6   :  { %v6046_v55 = vmul.f32 %v15925_v42, %v5992_v3  ;;  %v6047_v53 = vmul.f32 %v15925_v42, %v5993_v34  ;;  %v5990_v48 = vmul.f32 %v15926_v62, %v5942_v43  ;;  %v5991_v24 = vmul.f32 %v15927_v44, %v5960_v61 }
 0xec7   :  { %v5943_v12 = vsel %vm1430_vm7, %v15922_v15, %v5933_v37  ;;  %v5961_v56 = vsel %vm1430_vm7, %v5933_v37, %v15923_v5  ;;  %v6066_v3 = vadd.f32 %v6042_v21, %v5870_v19  ;;  %v6067_v34 = vadd.f32 %v6043_v50, %v5871_v20  ;;  %v6103_v61 = vpop.permute.xlu0 %6102  ;;  %5716 = vrot.lane.b32.xlu1 %v12830_v1, %s7169_s23  ;;  %v15929_v15 = vld [vmem:[#allocation33_spill] sm:$0xff]  ;;  %v15930_v37 = vld [vmem:[#allocation156_spill] sm:$0xff] }
 0xec8   :  { %v6044_v38 = vmul.f32 %v15924_v17, %v5990_v48  ;;  %v6045_v43 = vmul.f32 %v15924_v17, %v5991_v24  ;;  %v5994_v51 = vmul.f32 %v15926_v62, %v5943_v12  ;;  %v5995_v40 = vmul.f32 %v15927_v44, %v5961_v56  ;;  %v15931_v17 = vld [vmem:[#allocation3_spill] sm:$0xff]  ;;  %v15932_v56 = vld [vmem:[#allocation25_spill] sm:$0xff] }
 0xec9   :  { %v6144_v14 = vsel %vm1628_vm8, %v6103_v61, %v15928_v18  ;;  %v6150_v5 = vsel %vm1628_vm8, %v15929_v15, %v6103_v61  ;;  %v6070_v19 = vadd.f32 %v6046_v55, %v5874_v10  ;;  %v6071_v20 = vadd.f32 %v6047_v53, %v5875_v45  ;;  %v6105_v50 = vpop.permute.xlu1 %6104  ;;  %5738 = vrot.lane.b32.xlu0 %v12847_v0, %s7169_s23  ;;  %v15933_v62 = vld [vmem:[#allocation35_spill] sm:$0xff]  ;;  %v15934_v45 = vld [vmem:[#allocation137_spill] sm:$0xff] }
 0xeca   :  { %v6184_v24 = vmul.f32 %v15930_v37, %v6150_v5  ;;  %v6185_v21 = vmul.f32 %v15931_v17, %v6144_v14  ;;  %v6048_v48 = vmul.f32 %v15925_v42, %v5994_v51  ;;  %v6049_v12 = vmul.f32 %v15925_v42, %v5995_v40 }
 0xecb   :  { %v6145_v44 = vsel %vm1628_vm8, %v6105_v50, %v15932_v56  ;;  %v6151_v10 = vsel %vm1628_vm8, %v15933_v62, %v6105_v50  ;;  %v6127_v5 = vpop.permute.xlu0 %6126  ;;  %5740 = vrot.lane.b32.xlu1 %v12849_v27, %s7169_s23  ;;  %v6068_v42 = vadd.f32 %v6044_v38, %v5872_v41  ;;  %v6069_v51 = vadd.f32 %v6045_v43, %v5873_v11 }
 0xecc   :  { %v6238_v55 = vmul.f32 %v15934_v45, %v6184_v24  ;;  %v6239_v53 = vmul.f32 %v15934_v45, %v6185_v21  ;;  %v6188_v61 = vmul.f32 %v15930_v37, %v6151_v10  ;;  %v6189_v14 = vmul.f32 %v15931_v17, %v6145_v44  ;;  %v15935_v10 = vld [vmem:[#allocation151_spill] sm:$0xff] }
 0xecd   :  { %v6138_v40 = vsel %vm1628_vm8, %v15928_v18, %v6127_v5  ;;  %v6156_v24 = vsel %vm1628_vm8, %v6127_v5, %v15929_v15  ;;  %v6072_v50 = vadd.f32 %v6048_v48, %v5876_v9  ;;  %v13296_v21 = vadd.f32 %v6049_v12, %v5877_v6  ;;  %v6129_v17 = vpop.permute.xlu1 %6128  ;;  %5910 = vrot.lane.b32.xlu0 %v12828_v8, %s7170_s28  ;;  %v15937_v5 = vld [vmem:[#allocation113_spill] sm:$0xff] }
 0xece   :  { %v6242_v37 = vmul.f32 %v15935_v10, %v6188_v61  ;;  %v6243_v44 = vmul.f32 %v15935_v10, %v6189_v14  ;;  %v6186_v41 = vmul.f32 %v12971_v39, %v6138_v40  ;;  %v6187_v11 = vmul.f32 %v12974_v31, %v6156_v24  ;;  %v15936_v14 = vld [vmem:[#allocation69_spill] sm:$0xff]  ;;  %v15938_v24 = vld [vmem:[#allocation110_spill] sm:$0xff] }
 0xecf   :  { %v6139_v38 = vsel %vm1628_vm8, %v15932_v56, %v6129_v17  ;;  %v6157_v9 = vsel %vm1628_vm8, %v6129_v17, %v15933_v62  ;;  %v6262_v6 = vadd.f32 %v6238_v55, %v6066_v3  ;;  %v6263_v43 = vadd.f32 %v6239_v53, %v6067_v34  ;;  %v6299_v48 = vpop.permute.xlu0 %6298  ;;  %5912 = vrot.lane.b32.xlu1 %v12830_v1, %s7170_s28 }
 0xed0   :  { %v6190_v18 = vmul.f32 %v12971_v39, %v6139_v38  ;;  %v6191_v15 = vmul.f32 %v12974_v31, %v6157_v9  ;;  %v6240_v12 = vmul.f32 %v15934_v45, %v6186_v41  ;;  %v6241_v61 = vmul.f32 %v15934_v45, %v6187_v11  ;;  %v15939_v11 = vld [vmem:[#allocation93_spill] sm:$0xff]  ;;  %v15963_v39 = vld [vmem:[#allocation54_spill] sm:$0xff] }
 0xed1   :  { %v6340_v56 = vsel %vm1826_vm9, %v6299_v48, %v15936_v14  ;;  %v6346_v62 = vsel %vm1826_vm9, %v15937_v5, %v6299_v48  ;;  %v6266_v3 = vadd.f32 %v6242_v37, %v6070_v19  ;;  %v6267_v34 = vadd.f32 %v6243_v44, %v6071_v20  ;;  %v6301_v53 = vpop.permute.xlu1 %6300  ;;  %5934 = vrot.lane.b32.xlu0 %v12847_v0, %s7170_s28  ;;  %v15940_v44 = vld [vmem:[#allocation15_spill] sm:$0xff]  ;;  %v15962_v31 = vld [vmem:[#allocation169_spill] sm:$0xff] }
 0xed2   :  { %v6380_v17 = vmul.f32 %v12989_v22, %v6346_v62  ;;  %v6381_v55 = vmul.f32 %v12992_v49, %v6340_v56  ;;  %v6244_v45 = vmul.f32 %v15935_v10, %v6190_v18  ;;  %v6245_v40 = vmul.f32 %v15935_v10, %v6191_v15 }
 0xed3   :  { %v6341_v41 = vsel %vm1826_vm9, %v6301_v53, %v15938_v24  ;;  %v6347_v19 = vsel %vm1826_vm9, %v15939_v11, %v6301_v53  ;;  %v6264_v20 = vadd.f32 %v6240_v12, %v6068_v42  ;;  %v6265_v37 = vadd.f32 %v6241_v61, %v6069_v51  ;;  %v6323_v48 = vpop.permute.xlu0 %6322  ;;  %5936 = vrot.lane.b32.xlu1 %v12849_v27, %s7170_s28 }
 0xed4   :  { %v6434_v38 = vmul.f32 %v15940_v44, %v6380_v17  ;;  %v6435_v9 = vmul.f32 %v15940_v44, %v6381_v55  ;;  %v6384_v10 = vmul.f32 %v12989_v22, %v6347_v19  ;;  %v6385_v18 = vmul.f32 %v12992_v49, %v6341_v41  ;;  %v15941_v17 = vld [vmem:[#allocation89_spill] sm:$0xff] }
 0xed5   :  { %v6334_v15 = vsel %vm1826_vm9, %v15936_v14, %v6323_v48  ;;  %v6352_v42 = vsel %vm1826_vm9, %v6323_v48, %v15937_v5  ;;  %v6325_v56 = vpop.permute.xlu1 %6324  ;;  %6106 = vrot.lane.b32.xlu0 %v12828_v8, %s15539_s30 }
 0xed6   :  { %v6458_v51 = vadd.f32 %v6434_v38, %v6262_v6  ;;  %v6382_v12 = vmul.f32 %v12999_v57, %v6334_v15  ;;  %v6383_v61 = vmul.f32 %v13002_v47, %v6352_v42  ;;  %v6459_v62 = vadd.f32 %v6435_v9, %v6263_v43 }
 0xed7   :  { %v6438_v55 = vmul.f32 %v15941_v17, %v6384_v10  ;;  %v6439_v53 = vmul.f32 %v15941_v17, %v6385_v18  ;;  %v6335_v14 = vsel %vm1826_vm9, %v15938_v24, %v6325_v56  ;;  %v6353_v6 = vsel %vm1826_vm9, %v6325_v56, %v15939_v11  ;;  %v13361_v43 = vpop.permute.xlu0 %4918  ;;  %6108 = vrot.lane.b32.xlu1 %v12830_v1, %s15539_s30 }
 0xed8   :  { %v6482_v5 = vmax.f32 %v6458_v51, 0.0  ;;  %v6436_v41 = vmul.f32 %v15940_v44, %v6382_v12  ;;  %v6437_v19 = vmul.f32 %v15940_v44, %v6383_v61  ;;  %v6386_v38 = vmul.f32 %v12999_v57, %v6335_v14 }
 0xed9   :  { %v6462_v9 = vadd.f32 %v6438_v55, %v6266_v3  ;;  %v6387_v48 = vmul.f32 %v13002_v47, %v6353_v6  ;;  %v6463_v24 = vadd.f32 %v6439_v53, %v6267_v34  ;;  %v6483_v10 = vmax.f32 %v6459_v62, 0.0  ;;  %6130 = vrot.lane.b32.xlu0 %v12847_v0, %s15539_s30  ;;  %v13369_v44 = vpop.permute.xlu1 %4920 }
 0xeda   :  { %v6268_v18 = vadd.f32 %v6244_v45, %v6072_v50  ;;  %v6460_v15 = vadd.f32 %v6436_v41, %v6264_v20  ;;  %v6440_v11 = vmul.f32 %v15941_v17, %v6386_v38  ;;  %v6461_v42 = vadd.f32 %v6437_v19, %v6265_v37  ;;  %v15942_v41 = vld [vmem:[#allocation127_spill] sm:$0xff] }
 0xedb   :  { %v6269_v51 = vadd.f32 %v6245_v40, %v13296_v21  ;;  %v6486_v12 = vmax.f32 %v6462_v9, 0.0  ;;  %v6441_v61 = vmul.f32 %v15941_v17, %v6387_v48  ;;  %v6487_v3 = vmax.f32 %v6463_v24, 0.0  ;;  %v13373_v34 = vpop.permute.xlu0 %4942  ;;  %6132 = vrot.lane.b32.xlu1 %v12849_v27, %s15539_s30 }
 0xedc   :  { %v6484_v56 = vmax.f32 %v6460_v15, 0.0  ;;  %v6464_v55 = vadd.f32 %v6440_v11, %v6268_v18  ;;  %v6507_v50 = vmin.f32 %v6483_v10, 6.0  ;;  %v6506_v45 = vmin.f32 %v6482_v5, 6.0  ;;  %v15943_v10 = vld [vmem:[#allocation130_spill] sm:$0xff] }
 0xedd   :  { %v6511_v20 = vmin.f32 %v6487_v3, 6.0  ;;  %v6510_v62 = vmin.f32 %v6486_v12, 6.0  ;;  %v6465_v53 = vadd.f32 %v6441_v61, %v6269_v51  ;;  %v6485_v14 = vmax.f32 %v6461_v42, 0.0  ;;  %6302 = vrot.lane.b32.xlu0 %v12828_v8, %s15543_s27  ;;  %v13379_v21 = vpop.permute.xlu1 %4944  ;;  %v15944_v12 = vld [vmem:[#allocation136_spill] sm:$0xff] }
 0xede   :  { %v6488_v37 = vmax.f32 %v6464_v55, 0.0  ;;  %v4765_v19 = vmax.f32 %v15942_v41, 0.0  ;;  %v6508_v5 = vmin.f32 %v6484_v56, 6.0  ;;  %v4769_v18 = vmax.f32 %v15943_v10, 0.0  ;;  %v15945_v55 = vld [vmem:[#allocation132_spill] sm:$0xff] }
 0xedf   :  { %v6533_v40 = vpack.c.bf16 %v6511_v20, %v6507_v50  ;;  %v6532_v17 = vpack.c.bf16 %v6510_v62, %v6506_v45  ;;  %v6489_v6 = vmax.f32 %v6465_v53, 0.0  ;;  %v13382_v38 = vpop.permute.xlu0 %5114  ;;  %6304 = vrot.lane.b32.xlu1 %v12830_v1, %s15543_s27  ;;  %v6509_v48 = vmin.f32 %v6485_v14, 6.0 }
 0xee0   :  { %v6512_v9 = vmin.f32 %v6488_v37, 6.0  ;;  %v13391_v51 = vmin.f32 %v4765_v19, 6.0  ;;  %v4767_v61 = vmax.f32 %v15944_v12, 0.0  ;;  %v13398_v56 = vmin.f32 %v4769_v18, 6.0 }
 0xee1   :  { %6547 = vmatprep.subr.bf16.mxu0 %v6533_v40  ;;  %v6513_v24 = vmin.f32 %v6489_v6, 6.0  ;;  %6326 = vrot.lane.b32.xlu0 %v12847_v0, %s15543_s27  ;;  %v13389_v15 = vpop.permute.xlu1 %5116  ;;  %v4771_v50 = vmax.f32 %v15945_v55, 0.0 }
 0xee2   :  { %6548 = vmatpush1.bf16.msra.mxu0 %v6532_v17  ;;  %v6534_v11 = vpack.c.bf16 %v6512_v9, %v6508_v5  ;;  %v13405_v20 = vmin.f32 %v4767_v61, 6.0 }
 0xee3   :  { %v6535_v42 = vpack.c.bf16 %v6513_v24, %v6509_v48  ;;  %v13394_v3 = vpop.permute.xlu0 %5138  ;;  %6328 = vrot.lane.b32.xlu1 %v12849_v27, %s15543_s27  ;;  %v13411_v53 = vmin.f32 %v4771_v50, 6.0 }
 0xee5   :  { %6588 = vmatprep.subr.bf16.mxu1 %v6535_v42  ;;  %v13401_v45 = vpop.permute.xlu1 %5140  ;;  %4922 = vrot.lane.b32.xlu0 %v13391_v51, %s7165_s19 }
 0xee6   :  { %6589 = vmatpush1.bf16.msra.mxu1 %v6534_v11 }
 0xee7   :  { %v13407_v62 = vpop.permute.xlu0 %5310  ;;  %4924 = vrot.lane.b32.xlu1 %v13398_v56, %s7165_s19 }
 0xee9   :  { %v13413_v14 = vpop.permute.xlu1 %5312  ;;  %4946 = vrot.lane.b32.xlu0 %v13405_v20, %s7165_s19 }
 0xeeb   :  { %v13417_v37 = vpop.permute.xlu0 %5334  ;;  %4948 = vrot.lane.b32.xlu1 %v13411_v53, %s7165_s19 }
 0xeed   :  { %v13421_v40 = vpop.permute.xlu1 %5336  ;;  %5118 = vrot.lane.b32.xlu0 %v13391_v51, %s7166_s20 }
 0xeef   :  { %v13425_v17 = vpop.permute.xlu0 %5506  ;;  %5120 = vrot.lane.b32.xlu1 %v13398_v56, %s7166_s20 }
 0xef1   :  { %v13429_v6 = vpop.permute.xlu1 %5508  ;;  %5142 = vrot.lane.b32.xlu0 %v13405_v20, %s7166_s20 }
 0xef3   :  { %v13433_v41 = vpop.permute.xlu0 %5530  ;;  %5144 = vrot.lane.b32.xlu1 %v13411_v53, %s7166_s20 }
 0xef5   :  { %v13437_v19 = vpop.permute.xlu1 %5532  ;;  %5314 = vrot.lane.b32.xlu0 %v13391_v51, %s7167_s21 }
 0xef7   :  { %v13441_v5 = vpop.permute.xlu0 %5702  ;;  %5316 = vrot.lane.b32.xlu1 %v13398_v56, %s7167_s21 }
 0xef8   :  { %15946 = vst [vmem:[#allocation45_spill] sm:$0xff] %v13441_v5 }
 0xef9   :  { %v13445_v9 = vpop.permute.xlu1 %5704  ;;  %5338 = vrot.lane.b32.xlu0 %v13405_v20, %s7167_s21 }
 0xefa   :  { %15947 = vst [vmem:[#allocation30_spill] sm:$0xff] %v13445_v9  ;;  %v15969_v9 = vld [vmem:[#allocation85_spill] sm:$0xff] }
 0xefb   :  { %v13449_v48 = vpop.permute.xlu0 %5726  ;;  %5340 = vrot.lane.b32.xlu1 %v13411_v53, %s7167_s21 }
 0xefc   :  { %15948 = vst [vmem:[#allocation18_spill] sm:$0xff] %v13449_v48 }
 0xefd   :  { %v13453_v24 = vpop.permute.xlu1 %5728  ;;  %5510 = vrot.lane.b32.xlu0 %v13391_v51, %s7168_s22 }
 0xefe   :  { %15949 = vst [vmem:[#allocation55_spill] sm:$0xff] %v13453_v24 }
 0xeff   :  { %v13457_v10 = vpop.permute.xlu0 %5898  ;;  %5512 = vrot.lane.b32.xlu1 %v13398_v56, %s7168_s22 }
 0xf00   :  { %15950 = vst [vmem:[#allocation57_spill] sm:$0xff] %v13457_v10 }
 0xf01   :  { %v13461_v18 = vpop.permute.xlu1 %5900  ;;  %5534 = vrot.lane.b32.xlu0 %v13405_v20, %s7168_s22 }
 0xf02   :  { %15951 = vst [vmem:[#allocation56_spill] sm:$0xff] %v13461_v18 }
 0xf03   :  { %v13465_v11 = vpop.permute.xlu0 %5922  ;;  %5536 = vrot.lane.b32.xlu1 %v13411_v53, %s7168_s22 }
 0xf04   :  { %15952 = vst [vmem:[#allocation32_spill] sm:$0xff] %v13465_v11 }
 0xf05   :  { %v13469_v42 = vpop.permute.xlu1 %5924  ;;  %5706 = vrot.lane.b32.xlu0 %v13391_v51, %s7169_s23 }
 0xf06   :  { %15953 = vst [vmem:[#allocation47_spill] sm:$0xff] %v13469_v42  ;;  %v15966_v42 = vld [vmem:[#allocation83_spill] sm:$0xff] }
 0xf07   :  { %v13473_v12 = vpop.permute.xlu0 %6094  ;;  %5708 = vrot.lane.b32.xlu1 %v13398_v56, %s7169_s23  ;;  %v4768_v10 = vmax.f32 %v15966_v42, 0.0  ;;  %v15970_v42 = vld [vmem:[#allocation64_spill] sm:$0xff] }
 0xf08   :  { %15954 = vst [vmem:[#allocation100_spill] sm:$0xff] %v13473_v12 }
 0xf09   :  { %v13477_v61 = vpop.permute.xlu1 %6096  ;;  %5730 = vrot.lane.b32.xlu0 %v13405_v20, %s7169_s23 }
 0xf0a   :  { %15955 = vst [vmem:[#allocation13_spill] sm:$0xff] %v13477_v61  ;;  %v4898_v61 = vmul.f32 %v15963_v39, %v12692_v4 }
 0xf0b   :  { %v13481_v55 = vpop.permute.xlu0 %6118  ;;  %5732 = vrot.lane.b32.xlu1 %v13411_v53, %s7169_s23 }
 0xf0c   :  { %15956 = vst [vmem:[#allocation11_spill] sm:$0xff] %v13481_v55 }
 0xf0d   :  { %v13485_v50 = vpop.permute.xlu1 %6120  ;;  %5902 = vrot.lane.b32.xlu0 %v13391_v51, %s7170_s28 }
 0xf0e   :  { %15957 = vst [vmem:[#allocation159_spill] sm:$0xff] %v13485_v50 }
 0xf0f   :  { %v13489_v47 = vpop.permute.xlu0 %6290  ;;  %5904 = vrot.lane.b32.xlu1 %v13398_v56, %s7170_s28 }
 0xf10   :  { %15958 = vst [vmem:[#allocation63_spill] sm:$0xff] %v13489_v47  ;;  %v4766_v47 = vmax.f32 %v15962_v31, 0.0  ;;  %v15965_v31 = vld [vmem:[#allocation7_spill] sm:$0xff] }
 0xf11   :  { %v13493_v57 = vpop.permute.xlu1 %6292  ;;  %5926 = vrot.lane.b32.xlu0 %v13405_v20, %s7170_s28  ;;  %v4770_v18 = vmax.f32 %v15965_v31, 0.0 }
 0xf12   :  { %15959 = vst [vmem:[#allocation58_spill] sm:$0xff] %v13493_v57  ;;  %v4900_v57 = vmul.f32 %v15963_v39, %v12706_v52  ;;  %v4901_v52 = vmul.f32 %v15963_v39, %v12847_v0  ;;  %v13535_v35 = vmin.f32 %v4766_v47, 6.0 }
 0xf13   :  { %v13497_v49 = vpop.permute.xlu0 %6314  ;;  %5928 = vrot.lane.b32.xlu1 %v13411_v53, %s7170_s28 }
 0xf14   :  { %15960 = vst [vmem:[#allocation102_spill] sm:$0xff] %v13497_v49  ;;  %v4899_v49 = vmul.f32 %v15963_v39, %v12828_v8 }
 0xf15   :  { %v13501_v22 = vpop.permute.xlu1 %6316  ;;  %6098 = vrot.lane.b32.xlu0 %v13391_v51, %s15539_s30 }
 0xf16   :  { %15961 = vst [vmem:[#allocation94_spill] sm:$0xff] %v13501_v22  ;;  %v15964_v22 = vld [vmem:[#allocation46_spill] sm:$0xff] }
 0xf17   :  { %v4931_v50 = vpop.permute.xlu0 %4930  ;;  %6100 = vrot.lane.b32.xlu1 %v13398_v56, %s15539_s30  ;;  %v4903_v12 = vmul.f32 %v15964_v22, %v12830_v1  ;;  %v13518_v55 = vmul.f32 %v15964_v22, %v12699_v30  ;;  %v15967_v1 = vld [vmem:[#allocation9_spill] sm:$0xff] }
 0xf18   :  { %v4970_v4 = vsel %vm441_vm2, %v4931_v50, %v13373_v34  ;;  %v4976_v8 = vsel %vm441_vm2, %v13361_v43, %v4931_v50  ;;  %v4772_v11 = vmax.f32 %v15967_v1, 0.0  ;;  %v4904_v50 = vmul.f32 %v15964_v22, %v12712_v33 }
 0xf19   :  { %v5017_v30 = vmul.f32 %v15968_v36, %v4976_v8  ;;  %v5018_v24 = vmul.f32 %v15969_v9, %v4970_v4  ;;  %v4933_v31 = vpop.permute.xlu1 %4932  ;;  %6122 = vrot.lane.b32.xlu0 %v13405_v20, %s15539_s30  ;;  %v13551_v33 = vmin.f32 %v4770_v18, 6.0 }
 0xf1a   :  { %v4971_v0 = vsel %vm441_vm2, %v4933_v31, %v13379_v21  ;;  %v4977_v39 = vsel %vm441_vm2, %v13369_v44, %v4933_v31  ;;  %v13561_v31 = vmin.f32 %v4768_v10, 6.0 }
 0xf1b   :  { %v5071_v8 = vmul.f32 %v15970_v42, %v5017_v30  ;;  %v5072_v4 = vmul.f32 %v15970_v42, %v5018_v24  ;;  %v5021_v1 = vmul.f32 %v15968_v36, %v4977_v39  ;;  %v5022_v47 = vmul.f32 %v15969_v9, %v4971_v0  ;;  %v4955_v7 = vpop.permute.xlu0 %4954  ;;  %6124 = vrot.lane.b32.xlu1 %v13411_v53, %s15539_s30  ;;  %v15971_v39 = vld [vmem:[#allocation166_spill] sm:$0xff] }
 0xf1c   :  { %v4964_v5 = vsel %vm441_vm2, %v13373_v34, %v4955_v7  ;;  %v4982_v30 = vsel %vm441_vm2, %v4955_v7, %v13361_v43  ;;  %v4905_v24 = vmul.f32 %v15964_v22, %v12849_v27  ;;  %v13563_v0 = vmin.f32 %v4772_v11, 6.0 }
 0xf1d   :  { %v5075_v9 = vmul.f32 %v15971_v39, %v5021_v1  ;;  %v5076_v18 = vmul.f32 %v15971_v39, %v5022_v47  ;;  %v4957_v36 = vpop.permute.xlu1 %4956  ;;  %6294 = vrot.lane.b32.xlu0 %v13391_v51, %s15543_s27  ;;  %v5016_v34 = vmul.f32 %v12865_v58, %v4982_v30  ;;  %v5019_v48 = vmul.f32 %v12868_v23, %v4964_v5 }
 0xf1e   :  { %v4965_v27 = vsel %vm441_vm2, %v13379_v21, %v4957_v36  ;;  %v4983_v22 = vsel %vm441_vm2, %v4957_v36, %v13369_v44  ;;  %v5095_v7 = vadd.f32 %v5071_v8, %v4899_v49  ;;  %v5096_v43 = vadd.f32 %v5072_v4, %v4900_v57 }
 0xf1f   :  { %v5020_v10 = vmul.f32 %v12865_v58, %v4983_v22  ;;  %v5023_v11 = vmul.f32 %v12868_v23, %v4965_v27  ;;  %v5127_v1 = vpop.permute.xlu0 %5126  ;;  %6296 = vrot.lane.b32.xlu1 %v13398_v56, %s15543_s27  ;;  %v5070_v5 = vmul.f32 %v15970_v42, %v5016_v34  ;;  %v5073_v47 = vmul.f32 %v15970_v42, %v5019_v48  ;;  %v15972_v22 = vld [vmem:[#allocation82_spill] sm:$0xff] }
 0xf20   :  { %v5166_v21 = vsel %vm638_vm3, %v5127_v1, %v13394_v3  ;;  %v5172_v49 = vsel %vm638_vm3, %v13382_v38, %v5127_v1  ;;  %v5099_v48 = vadd.f32 %v5075_v9, %v4903_v12  ;;  %v5100_v42 = vadd.f32 %v5076_v18, %v4904_v50 }
 0xf21   :  { %v5074_v57 = vmul.f32 %v15971_v39, %v5020_v10  ;;  %v5077_v36 = vmul.f32 %v15971_v39, %v5023_v11  ;;  %v5213_v44 = vmul.f32 %v12871_v29, %v5172_v49  ;;  %v5214_v8 = vmul.f32 %v12874_v25, %v5166_v21  ;;  %v5129_v4 = vpop.permute.xlu1 %5128  ;;  %6318 = vrot.lane.b32.xlu0 %v13405_v20, %s15543_s27  ;;  %v15973_v49 = vld [vmem:[#allocation65_spill] sm:$0xff] }
 0xf22   :  { %v5167_v30 = vsel %vm638_vm3, %v5129_v4, %v13401_v45  ;;  %v5173_v34 = vsel %vm638_vm3, %v13389_v15, %v5129_v4  ;;  %v5094_v27 = vadd.f32 %v5070_v5, %v4898_v61  ;;  %v5097_v39 = vadd.f32 %v5073_v47, %v4901_v52 }
 0xf23   :  { %v5267_v10 = vmul.f32 %v15972_v22, %v5213_v44  ;;  %v5268_v11 = vmul.f32 %v15972_v22, %v5214_v8  ;;  %v5151_v1 = vpop.permute.xlu0 %5150  ;;  %6320 = vrot.lane.b32.xlu1 %v13411_v53, %s15543_s27  ;;  %v5217_v9 = vmul.f32 %v12871_v29, %v5173_v34  ;;  %v5218_v12 = vmul.f32 %v12874_v25, %v5167_v30 }
 0xf24   :  { %v5160_v50 = vsel %vm638_vm3, %v13394_v3, %v5151_v1  ;;  %v5178_v61 = vsel %vm638_vm3, %v5151_v1, %v13382_v38  ;;  %v5098_v52 = vadd.f32 %v5074_v57, %v13518_v55  ;;  %v5101_v18 = vadd.f32 %v5077_v36, %v4905_v24 }
 0xf25   :  { %v5212_v5 = vmul.f32 %v12880_v63, %v5178_v61  ;;  %v5215_v47 = vmul.f32 %v12883_v2, %v5160_v50  ;;  %v5153_v21 = vpop.permute.xlu1 %5152  ;;  %4934 = vrot.lane.b32.xlu0 %v13535_v35, %s7165_s19  ;;  %v5271_v44 = vmul.f32 %v15973_v49, %v5217_v9  ;;  %v5272_v8 = vmul.f32 %v15973_v49, %v5218_v12 }
 0xf26   :  { %v5161_v3 = vsel %vm638_vm3, %v13401_v45, %v5153_v21  ;;  %v5179_v38 = vsel %vm638_vm3, %v5153_v21, %v13389_v15  ;;  %v5291_v30 = vadd.f32 %v5267_v10, %v5095_v7  ;;  %v5292_v34 = vadd.f32 %v5268_v11, %v5096_v43  ;;  %v15974_v21 = vld [vmem:[#allocation6_spill] sm:$0xff] }
 0xf27   :  { %v5266_v55 = vmul.f32 %v15972_v22, %v5212_v5  ;;  %v5269_v24 = vmul.f32 %v15972_v22, %v5215_v47  ;;  %v5216_v57 = vmul.f32 %v12880_v63, %v5179_v38  ;;  %v5219_v36 = vmul.f32 %v12883_v2, %v5161_v3  ;;  %v5323_v4 = vpop.permute.xlu0 %5322  ;;  %4936 = vrot.lane.b32.xlu1 %v13551_v33, %s7165_s19 }
 0xf28   :  { %v5362_v45 = vsel %vm836_vm4, %v5323_v4, %v13417_v37  ;;  %v5368_v15 = vsel %vm836_vm4, %v13407_v62, %v5323_v4  ;;  %v5295_v1 = vadd.f32 %v5271_v44, %v5099_v48  ;;  %v5296_v22 = vadd.f32 %v5272_v8, %v5100_v42 }
 0xf29   :  { %v5270_v9 = vmul.f32 %v15973_v49, %v5216_v57  ;;  %v5273_v12 = vmul.f32 %v15973_v49, %v5219_v36  ;;  %v5325_v50 = vpop.permute.xlu1 %5324  ;;  %4958 = vrot.lane.b32.xlu0 %v13561_v31, %s7165_s19  ;;  %v5409_v7 = vmul.f32 %v12886_v16, %v5368_v15  ;;  %v5410_v43 = vmul.f32 %v12889_v26, %v5362_v45 }
 0xf2a   :  { %v5363_v10 = vsel %vm836_vm4, %v5325_v50, %v13421_v40  ;;  %v5369_v48 = vsel %vm836_vm4, %v13413_v14, %v5325_v50  ;;  %v5290_v42 = vadd.f32 %v5266_v55, %v5094_v27  ;;  %v5293_v11 = vadd.f32 %v5269_v24, %v5097_v39  ;;  %v15975_v39 = vld [vmem:[#allocation131_spill] sm:$0xff] }
 0xf2b   :  { %v5413_v61 = vmul.f32 %v12886_v16, %v5369_v48  ;;  %v5414_v5 = vmul.f32 %v12889_v26, %v5363_v10  ;;  %v5347_v47 = vpop.permute.xlu0 %5346  ;;  %4960 = vrot.lane.b32.xlu1 %v13563_v0, %s7165_s19  ;;  %v5463_v49 = vmul.f32 %v15974_v21, %v5409_v7  ;;  %v5464_v44 = vmul.f32 %v15974_v21, %v5410_v43 }
 0xf2c   :  { %v5356_v8 = vsel %vm836_vm4, %v13417_v37, %v5347_v47  ;;  %v5374_v27 = vsel %vm836_vm4, %v5347_v47, %v13407_v62  ;;  %v5294_v36 = vadd.f32 %v5270_v9, %v5098_v52  ;;  %v5297_v4 = vadd.f32 %v5273_v12, %v5101_v18 }
 0xf2d   :  { %v5467_v3 = vmul.f32 %v15975_v39, %v5413_v61  ;;  %v5468_v38 = vmul.f32 %v15975_v39, %v5414_v5  ;;  %v5408_v55 = vmul.f32 %v12899_v59, %v5374_v27  ;;  %v5411_v24 = vmul.f32 %v15897_v28, %v5356_v8  ;;  %v5349_v57 = vpop.permute.xlu1 %5348  ;;  %5130 = vrot.lane.b32.xlu0 %v13535_v35, %s7166_s20 }
 0xf2e   :  { %v5357_v37 = vsel %vm836_vm4, %v13421_v40, %v5349_v57  ;;  %v5375_v62 = vsel %vm836_vm4, %v5349_v57, %v13413_v14  ;;  %v5487_v45 = vadd.f32 %v5463_v49, %v5291_v30  ;;  %v5488_v15 = vadd.f32 %v5464_v44, %v5292_v34  ;;  %v15977_v57 = vld [vmem:[#allocation5_spill] sm:$0xff] }
 0xf2f   :  { %v5462_v50 = vmul.f32 %v15974_v21, %v5408_v55  ;;  %v5465_v7 = vmul.f32 %v15974_v21, %v5411_v24  ;;  %v5519_v43 = vpop.permute.xlu0 %5518  ;;  %5132 = vrot.lane.b32.xlu1 %v13551_v33, %s7166_s20  ;;  %v5412_v52 = vmul.f32 %v12899_v59, %v5375_v62  ;;  %v5415_v18 = vmul.f32 %v15897_v28, %v5357_v37 }
 0xf30   :  { %v5558_v40 = vsel %vm1034_vm5, %v5519_v43, %v13433_v41  ;;  %v5564_v14 = vsel %vm1034_vm5, %v13425_v17, %v5519_v43  ;;  %v5491_v30 = vadd.f32 %v5467_v3, %v5295_v1  ;;  %v5492_v34 = vadd.f32 %v5468_v38, %v5296_v22  ;;  %v15976_v22 = vld [vmem:[#allocation80_spill] sm:$0xff] }
 0xf31   :  { %v5605_v9 = vmul.f32 %v15900_v54, %v5564_v14  ;;  %v5606_v12 = vmul.f32 %v15901_v60, %v5558_v40  ;;  %v5521_v10 = vpop.permute.xlu1 %5520  ;;  %5154 = vrot.lane.b32.xlu0 %v13561_v31, %s7166_s20  ;;  %v5466_v48 = vmul.f32 %v15975_v39, %v5412_v52  ;;  %v5469_v61 = vmul.f32 %v15975_v39, %v5415_v18  ;;  %v15978_v14 = vld [vmem:[#allocation18_spill] sm:$0xff] }
 0xf32   :  { %v5559_v5 = vsel %vm1034_vm5, %v5521_v10, %v13437_v19  ;;  %v5565_v1 = vsel %vm1034_vm5, %v13429_v6, %v5521_v10  ;;  %v5486_v27 = vadd.f32 %v5462_v50, %v5290_v42  ;;  %v5489_v39 = vadd.f32 %v5465_v7, %v5293_v11 }
 0xf33   :  { %v5659_v47 = vmul.f32 %v15976_v22, %v5605_v9  ;;  %v5660_v21 = vmul.f32 %v15976_v22, %v5606_v12  ;;  %v5609_v49 = vmul.f32 %v15900_v54, %v5565_v1  ;;  %v5610_v44 = vmul.f32 %v15901_v60, %v5559_v5  ;;  %v5543_v8 = vpop.permute.xlu0 %5542  ;;  %5156 = vrot.lane.b32.xlu1 %v13563_v0, %s7166_s20  ;;  %v15979_v9 = vld [vmem:[#allocation45_spill] sm:$0xff]  ;;  %v15980_v12 = vld [vmem:[#allocation14_spill] sm:$0xff] }
 0xf34   :  { %v5552_v3 = vsel %vm1034_vm5, %v13433_v41, %v5543_v8  ;;  %v5570_v38 = vsel %vm1034_vm5, %v5543_v8, %v13425_v17  ;;  %v5490_v55 = vadd.f32 %v5466_v48, %v5294_v36  ;;  %v5493_v24 = vadd.f32 %v5469_v61, %v5297_v4  ;;  %v15981_v48 = vld [vmem:[#allocation112_spill] sm:$0xff] }
 0xf35   :  { %v5663_v37 = vmul.f32 %v15977_v57, %v5609_v49  ;;  %v5664_v62 = vmul.f32 %v15977_v57, %v5610_v44  ;;  %v5545_v43 = vpop.permute.xlu1 %5544  ;;  %5326 = vrot.lane.b32.xlu0 %v13535_v35, %s7167_s21  ;;  %v5604_v42 = vmul.f32 %v15906_v13, %v5570_v38  ;;  %v5607_v11 = vmul.f32 %v15907_v32, %v5552_v3  ;;  %v15983_v49 = vld [vmem:[#allocation30_spill] sm:$0xff]  ;;  %v15984_v38 = vld [vmem:[#allocation129_spill] sm:$0xff] }
 0xf36   :  { %v5553_v41 = vsel %vm1034_vm5, %v13437_v19, %v5545_v43  ;;  %v5571_v17 = vsel %vm1034_vm5, %v5545_v43, %v13429_v6  ;;  %v5683_v36 = vadd.f32 %v5659_v47, %v5487_v45  ;;  %v5684_v4 = vadd.f32 %v5660_v21, %v5488_v15  ;;  %v15982_v47 = vld [vmem:[#allocation55_spill] sm:$0xff] }
 0xf37   :  { %v5608_v50 = vmul.f32 %v15906_v13, %v5571_v17  ;;  %v5611_v7 = vmul.f32 %v15907_v32, %v5553_v41  ;;  %v5715_v52 = vpop.permute.xlu0 %5714  ;;  %5328 = vrot.lane.b32.xlu1 %v13551_v33, %s7167_s21  ;;  %v5658_v18 = vmul.f32 %v15976_v22, %v5604_v42  ;;  %v5661_v40 = vmul.f32 %v15976_v22, %v5607_v11  ;;  %v15985_v11 = vld [vmem:[#allocation111_spill] sm:$0xff]  ;;  %v15986_v17 = vld [vmem:[#allocation117_spill] sm:$0xff] }
 0xf38   :  { %v5754_v19 = vsel %vm1232_vm6, %v5715_v52, %v15978_v14  ;;  %v5760_v6 = vsel %vm1232_vm6, %v15979_v9, %v5715_v52  ;;  %v5687_v1 = vadd.f32 %v5663_v37, %v5491_v30  ;;  %v5688_v22 = vadd.f32 %v5664_v62, %v5492_v34  ;;  %v15987_v52 = vld [vmem:[#allocation122_spill] sm:$0xff] }
 0xf39   :  { %v5662_v45 = vmul.f32 %v15977_v57, %v5608_v50  ;;  %v5665_v15 = vmul.f32 %v15977_v57, %v5611_v7  ;;  %v5800_v10 = vmul.f32 %v15980_v12, %v5760_v6  ;;  %v5801_v61 = vmul.f32 %v15981_v48, %v5754_v19  ;;  %v5717_v5 = vpop.permute.xlu1 %5716  ;;  %5350 = vrot.lane.b32.xlu0 %v13561_v31, %s7167_s21 }
 0xf3a   :  { %v5755_v21 = vsel %vm1232_vm6, %v5717_v5, %v15982_v47  ;;  %v5761_v44 = vsel %vm1232_vm6, %v15983_v49, %v5717_v5  ;;  %v5682_v8 = vadd.f32 %v5658_v18, %v5486_v27  ;;  %v5685_v3 = vadd.f32 %v5661_v40, %v5489_v39 }
 0xf3b   :  { %v5854_v57 = vmul.f32 %v15984_v38, %v5800_v10  ;;  %v5855_v43 = vmul.f32 %v15984_v38, %v5801_v61  ;;  %v5739_v42 = vpop.permute.xlu0 %5738  ;;  %5352 = vrot.lane.b32.xlu1 %v13563_v0, %s7167_s21  ;;  %v5804_v30 = vmul.f32 %v15980_v12, %v5761_v44  ;;  %v5805_v34 = vmul.f32 %v15981_v48, %v5755_v21  ;;  %v15988_v61 = vld [vmem:[#allocation32_spill] sm:$0xff] }
 0xf3c   :  { %v5748_v37 = vsel %vm1232_vm6, %v15978_v14, %v5739_v42  ;;  %v5766_v27 = vsel %vm1232_vm6, %v5739_v42, %v15979_v9  ;;  %v5686_v39 = vadd.f32 %v5662_v45, %v5490_v55  ;;  %v5689_v62 = vadd.f32 %v5665_v15, %v5493_v24 }
 0xf3d   :  { %v5802_v41 = vmul.f32 %v15985_v11, %v5748_v37  ;;  %v5803_v50 = vmul.f32 %v15986_v17, %v5766_v27  ;;  %v5741_v7 = vpop.permute.xlu1 %5740  ;;  %5522 = vrot.lane.b32.xlu0 %v13535_v35, %s7168_s22  ;;  %v5858_v18 = vmul.f32 %v15987_v52, %v5804_v30  ;;  %v5859_v40 = vmul.f32 %v15987_v52, %v5805_v34  ;;  %v15992_v34 = vld [vmem:[#allocation47_spill] sm:$0xff]  ;;  %v15993_v27 = vld [vmem:[#allocation56_spill] sm:$0xff] }
 0xf3e   :  { %v5749_v14 = vsel %vm1232_vm6, %v15982_v47, %v5741_v7  ;;  %v5767_v55 = vsel %vm1232_vm6, %v5741_v7, %v15983_v49  ;;  %v5878_v15 = vadd.f32 %v5854_v57, %v5682_v8  ;;  %v5879_v10 = vadd.f32 %v5855_v43, %v5683_v36  ;;  %v15989_v47 = vld [vmem:[#allocation57_spill] sm:$0xff]  ;;  %v15990_v8 = vld [vmem:[#allocation26_spill] sm:$0xff] }
 0xf3f   :  { %v5856_v24 = vmul.f32 %v15984_v38, %v5802_v41  ;;  %v5857_v19 = vmul.f32 %v15984_v38, %v5803_v50  ;;  %v5806_v9 = vmul.f32 %v15985_v11, %v5749_v14  ;;  %v5807_v6 = vmul.f32 %v15986_v17, %v5767_v55  ;;  %v5911_v45 = vpop.permute.xlu0 %5910  ;;  %5524 = vrot.lane.b32.xlu1 %v13551_v33, %s7168_s22  ;;  %v15991_v57 = vld [vmem:[#allocation50_spill] sm:$0xff] }
 0xf40   :  { %v5950_v5 = vsel %vm1430_vm7, %v5911_v45, %v15988_v61  ;;  %v5956_v21 = vsel %vm1430_vm7, %v15989_v47, %v5911_v45  ;;  %v5882_v49 = vadd.f32 %v5858_v18, %v5686_v39  ;;  %v5883_v44 = vadd.f32 %v5859_v40, %v5687_v1  ;;  %v15994_v18 = vld [vmem:[#allocation146_spill] sm:$0xff] }
 0xf41   :  { %v5860_v38 = vmul.f32 %v15987_v52, %v5806_v9  ;;  %v5861_v42 = vmul.f32 %v15987_v52, %v5807_v6  ;;  %v5913_v30 = vpop.permute.xlu1 %5912  ;;  %5546 = vrot.lane.b32.xlu0 %v13561_v31, %s7168_s22  ;;  %v5996_v36 = vmul.f32 %v15990_v8, %v5956_v21  ;;  %v5997_v43 = vmul.f32 %v15991_v57, %v5950_v5  ;;  %v15996_v9 = vld [vmem:[#allocation165_spill] sm:$0xff]  ;;  %v15997_v45 = vld [vmem:[#allocation154_spill] sm:$0xff] }
 0xf42   :  { %v5951_v37 = vsel %vm1430_vm7, %v5913_v30, %v15992_v34  ;;  %v5957_v1 = vsel %vm1430_vm7, %v15993_v27, %v5913_v30  ;;  %v5880_v39 = vadd.f32 %v5856_v24, %v5684_v4  ;;  %v5881_v41 = vadd.f32 %v5857_v19, %v5685_v3  ;;  %v15995_v3 = vld [vmem:[#allocation138_spill] sm:$0xff] }
 0xf43   :  { %v6000_v50 = vmul.f32 %v15990_v8, %v5957_v1  ;;  %v6001_v7 = vmul.f32 %v15991_v57, %v5951_v37  ;;  %v5935_v52 = vpop.permute.xlu0 %5934  ;;  %5548 = vrot.lane.b32.xlu1 %v13563_v0, %s7168_s22  ;;  %v6050_v40 = vmul.f32 %v15994_v18, %v5996_v36  ;;  %v6051_v14 = vmul.f32 %v15994_v18, %v5997_v43 }
 0xf44   :  { %v5944_v55 = vsel %vm1430_vm7, %v15988_v61, %v5935_v52  ;;  %v5962_v4 = vsel %vm1430_vm7, %v5935_v52, %v15989_v47  ;;  %v5884_v30 = vadd.f32 %v5860_v38, %v5688_v22  ;;  %v5885_v36 = vadd.f32 %v5861_v42, %v5689_v62  ;;  %v15998_v38 = vld [vmem:[#allocation11_spill] sm:$0xff]  ;;  %v16000_v52 = vld [vmem:[#allocation156_spill] sm:$0xff] }
 0xf45   :  { %v6054_v24 = vmul.f32 %v15995_v3, %v6000_v50  ;;  %v6055_v19 = vmul.f32 %v15995_v3, %v6001_v7  ;;  %v5998_v6 = vmul.f32 %v15996_v9, %v5944_v55  ;;  %v5999_v5 = vmul.f32 %v15997_v45, %v5962_v4  ;;  %v5937_v21 = vpop.permute.xlu1 %5936  ;;  %5718 = vrot.lane.b32.xlu0 %v13535_v35, %s7169_s23 }
 0xf46   :  { %v5945_v61 = vsel %vm1430_vm7, %v15992_v34, %v5937_v21  ;;  %v5963_v47 = vsel %vm1430_vm7, %v5937_v21, %v15993_v27  ;;  %v6074_v43 = vadd.f32 %v6050_v40, %v5878_v15  ;;  %v6075_v37 = vadd.f32 %v6051_v14, %v5879_v10  ;;  %v15999_v34 = vld [vmem:[#allocation100_spill] sm:$0xff]  ;;  %v16001_v40 = vld [vmem:[#allocation3_spill] sm:$0xff] }
 0xf47   :  { %v6052_v1 = vmul.f32 %v15994_v18, %v5998_v6  ;;  %v6053_v50 = vmul.f32 %v15994_v18, %v5999_v5  ;;  %v6107_v7 = vpop.permute.xlu0 %6106  ;;  %5720 = vrot.lane.b32.xlu1 %v13551_v33, %s7169_s23  ;;  %v6002_v22 = vmul.f32 %v15996_v9, %v5945_v61  ;;  %v6003_v62 = vmul.f32 %v15997_v45, %v5963_v47  ;;  %v16002_v5 = vld [vmem:[#allocation159_spill] sm:$0xff]  ;;  %v16003_v61 = vld [vmem:[#allocation13_spill] sm:$0xff] }
 0xf48   :  { %v6146_v42 = vsel %vm1628_vm8, %v6107_v7, %v15998_v38  ;;  %v6152_v15 = vsel %vm1628_vm8, %v15999_v34, %v6107_v7  ;;  %v6078_v10 = vadd.f32 %v6054_v24, %v5882_v49  ;;  %v6079_v27 = vadd.f32 %v6055_v19, %v5883_v44  ;;  %v16004_v44 = vld [vmem:[#allocation104_spill] sm:$0xff] }
 0xf49   :  { %v6192_v18 = vmul.f32 %v16000_v52, %v6152_v15  ;;  %v6193_v14 = vmul.f32 %v16001_v40, %v6146_v42  ;;  %v6109_v55 = vpop.permute.xlu1 %6108  ;;  %5742 = vrot.lane.b32.xlu0 %v13561_v31, %s7169_s23  ;;  %v6056_v4 = vmul.f32 %v15995_v3, %v6002_v22  ;;  %v6057_v6 = vmul.f32 %v15995_v3, %v6003_v62 }
 0xf4a   :  { %v6147_v21 = vsel %vm1628_vm8, %v6109_v55, %v16002_v5  ;;  %v6153_v49 = vsel %vm1628_vm8, %v16003_v61, %v6109_v55  ;;  %v6076_v3 = vadd.f32 %v6052_v1, %v5880_v39  ;;  %v6077_v22 = vadd.f32 %v6053_v50, %v5881_v41  ;;  %v16005_v55 = vld [vmem:[#allocation97_spill] sm:$0xff]  ;;  %v16006_v39 = vld [vmem:[#allocation172_spill] sm:$0xff]  ;;  %v16007_v1 = vld [vmem:[#allocation38_spill] sm:$0xff] }
 0xf4b   :  { %v6246_v24 = vmul.f32 %v16004_v44, %v6192_v18  ;;  %v6247_v19 = vmul.f32 %v16004_v44, %v6193_v14  ;;  %v6196_v47 = vmul.f32 %v16000_v52, %v6153_v49  ;;  %v6197_v7 = vmul.f32 %v16001_v40, %v6147_v21  ;;  %v6131_v42 = vpop.permute.xlu0 %6130  ;;  %5744 = vrot.lane.b32.xlu1 %v13563_v0, %s7169_s23 }
 0xf4c   :  { %v6140_v62 = vsel %vm1628_vm8, %v15998_v38, %v6131_v42  ;;  %v6158_v15 = vsel %vm1628_vm8, %v6131_v42, %v15999_v34  ;;  %v6080_v18 = vadd.f32 %v6056_v4, %v5884_v30  ;;  %v13854_v14 = vadd.f32 %v6057_v6, %v5885_v36 }
 0xf4d   :  { %v6250_v49 = vmul.f32 %v16005_v55, %v6196_v47  ;;  %v6251_v21 = vmul.f32 %v16005_v55, %v6197_v7  ;;  %v6133_v40 = vpop.permute.xlu1 %6132  ;;  %5914 = vrot.lane.b32.xlu0 %v13535_v35, %s7170_s28  ;;  %v6194_v41 = vmul.f32 %v16006_v39, %v6140_v62  ;;  %v6195_v50 = vmul.f32 %v16007_v1, %v6158_v15  ;;  %v16008_v62 = vld [vmem:[#allocation102_spill] sm:$0xff]  ;;  %v16009_v15 = vld [vmem:[#allocation63_spill] sm:$0xff] }
 0xf4e   :  { %v6141_v38 = vsel %vm1628_vm8, %v16002_v5, %v6133_v40  ;;  %v6159_v30 = vsel %vm1628_vm8, %v6133_v40, %v16003_v61  ;;  %v6270_v36 = vadd.f32 %v6246_v24, %v6074_v43  ;;  %v6271_v34 = vadd.f32 %v6247_v19, %v6075_v37  ;;  %v16010_v61 = vld [vmem:[#allocation155_spill] sm:$0xff]  ;;  %v16011_v19 = vld [vmem:[#allocation48_spill] sm:$0xff] }
 0xf4f   :  { %v6198_v4 = vmul.f32 %v16006_v39, %v6141_v38  ;;  %v6199_v6 = vmul.f32 %v16007_v1, %v6159_v30  ;;  %v6303_v47 = vpop.permute.xlu0 %6302  ;;  %5916 = vrot.lane.b32.xlu1 %v13551_v33, %s7170_s28  ;;  %v6248_v7 = vmul.f32 %v16004_v44, %v6194_v41  ;;  %v6249_v42 = vmul.f32 %v16004_v44, %v6195_v50  ;;  %v16012_v50 = vld [vmem:[#allocation94_spill] sm:$0xff] }
 0xf50   :  { %v6342_v5 = vsel %vm1826_vm9, %v6303_v47, %v16008_v62  ;;  %v6348_v43 = vsel %vm1826_vm9, %v16009_v15, %v6303_v47  ;;  %v6274_v37 = vadd.f32 %v6250_v49, %v6078_v10  ;;  %v6275_v40 = vadd.f32 %v6251_v21, %v6079_v27  ;;  %v16013_v39 = vld [vmem:[#allocation58_spill] sm:$0xff]  ;;  %v16014_v21 = vld [vmem:[#allocation91_spill] sm:$0xff] }
 0xf51   :  { %v6388_v24 = vmul.f32 %v16010_v61, %v6348_v43  ;;  %v6389_v38 = vmul.f32 %v16011_v19, %v6342_v5  ;;  %v6305_v30 = vpop.permute.xlu1 %6304  ;;  %5938 = vrot.lane.b32.xlu0 %v13561_v31, %s7170_s28  ;;  %v6252_v44 = vmul.f32 %v16005_v55, %v6198_v4  ;;  %v6253_v41 = vmul.f32 %v16005_v55, %v6199_v6 }
 0xf52   :  { %v6343_v1 = vsel %vm1826_vm9, %v6305_v30, %v16012_v50  ;;  %v6349_v10 = vsel %vm1826_vm9, %v16013_v39, %v6305_v30  ;;  %v6272_v27 = vadd.f32 %v6248_v7, %v6076_v3  ;;  %v6273_v49 = vadd.f32 %v6249_v42, %v6077_v22  ;;  %v16015_v42 = vld [vmem:[#allocation31_spill] sm:$0xff] }
 0xf53   :  { %v6442_v47 = vmul.f32 %v16014_v21, %v6388_v24  ;;  %v6443_v5 = vmul.f32 %v16014_v21, %v6389_v38  ;;  %v6327_v43 = vpop.permute.xlu0 %6326  ;;  %5940 = vrot.lane.b32.xlu1 %v13563_v0, %s7170_s28  ;;  %v6392_v55 = vmul.f32 %v16010_v61, %v6349_v10  ;;  %v6393_v4 = vmul.f32 %v16011_v19, %v6343_v1  ;;  %v16016_v38 = vld [vmem:[#allocation40_spill] sm:$0xff]  ;;  %v16017_v10 = vld [vmem:[#allocation115_spill] sm:$0xff] }
 0xf54   :  { %v6336_v6 = vsel %vm1826_vm9, %v16008_v62, %v6327_v43  ;;  %v6354_v3 = vsel %vm1826_vm9, %v6327_v43, %v16009_v15 }
 0xf55   :  { %v6466_v22 = vadd.f32 %v6442_v47, %v6270_v36  ;;  %v6467_v7 = vadd.f32 %v6443_v5, %v6271_v34  ;;  %v6390_v24 = vmul.f32 %v16015_v42, %v6336_v6  ;;  %v6391_v30 = vmul.f32 %v16016_v38, %v6354_v3  ;;  %v6329_v52 = vpop.permute.xlu1 %6328  ;;  %6110 = vrot.lane.b32.xlu0 %v13535_v35, %s15539_s30 }
 0xf56   :  { %v6446_v1 = vmul.f32 %v16017_v10, %v6392_v55  ;;  %v6447_v19 = vmul.f32 %v16017_v10, %v6393_v4  ;;  %v6337_v62 = vsel %vm1826_vm9, %v16012_v50, %v6329_v52  ;;  %v6355_v36 = vsel %vm1826_vm9, %v6329_v52, %v16013_v39 }
 0xf57   :  { %v6490_v34 = vmax.f32 %v6466_v22, 0.0  ;;  %v6444_v15 = vmul.f32 %v16014_v21, %v6390_v24  ;;  %v6445_v47 = vmul.f32 %v16014_v21, %v6391_v30  ;;  %v6394_v5 = vmul.f32 %v16015_v42, %v6337_v62  ;;  %v13919_v43 = vpop.permute.xlu0 %4922  ;;  %6112 = vrot.lane.b32.xlu1 %v13551_v33, %s15539_s30 }
 0xf58   :  { %v6470_v55 = vadd.f32 %v6446_v1, %v6274_v37  ;;  %v6471_v4 = vadd.f32 %v6447_v19, %v6275_v40  ;;  %v6395_v50 = vmul.f32 %v16016_v38, %v6355_v36  ;;  %v6491_v6 = vmax.f32 %v6467_v7, 0.0 }
 0xf59   :  { %v6276_v3 = vadd.f32 %v6252_v44, %v6080_v18  ;;  %v6468_v61 = vadd.f32 %v6444_v15, %v6272_v27  ;;  %v6469_v52 = vadd.f32 %v6445_v47, %v6273_v49  ;;  %v6448_v39 = vmul.f32 %v16017_v10, %v6394_v5  ;;  %6134 = vrot.lane.b32.xlu0 %v13561_v31, %s15539_s30  ;;  %v13927_v21 = vpop.permute.xlu1 %4924 }
 0xf5a   :  { %v6277_v22 = vadd.f32 %v6253_v41, %v13854_v14  ;;  %v6494_v24 = vmax.f32 %v6470_v55, 0.0  ;;  %v6449_v30 = vmul.f32 %v16017_v10, %v6395_v50  ;;  %v6495_v37 = vmax.f32 %v6471_v4, 0.0 }
 0xf5b   :  { %v6514_v40 = vmin.f32 %v6490_v34, 6.0  ;;  %v6492_v19 = vmax.f32 %v6468_v61, 0.0  ;;  %v6472_v1 = vadd.f32 %v6448_v39, %v6276_v3  ;;  %v13931_v7 = vpop.permute.xlu0 %4946  ;;  %6136 = vrot.lane.b32.xlu1 %v13563_v0, %s15539_s30  ;;  %v6515_v18 = vmin.f32 %v6491_v6, 6.0 }
 0xf5c   :  { %v6518_v44 = vmin.f32 %v6494_v24, 6.0  ;;  %v6473_v27 = vadd.f32 %v6449_v30, %v6277_v22  ;;  %v6519_v49 = vmin.f32 %v6495_v37, 6.0  ;;  %v6493_v62 = vmax.f32 %v6469_v52, 0.0 }
 0xf5d   :  { %v6496_v36 = vmax.f32 %v6472_v1, 0.0  ;;  %6306 = vrot.lane.b32.xlu0 %v13535_v35, %s15543_s27  ;;  %v13937_v14 = vpop.permute.xlu1 %4948  ;;  %v6516_v34 = vmin.f32 %v6492_v19, 6.0 }
 0xf5e   :  { %v6537_v41 = vpack.c.bf16 %v6519_v49, %v6515_v18  ;;  %v6536_v10 = vpack.c.bf16 %v6518_v44, %v6514_v40  ;;  %v6497_v61 = vmax.f32 %v6473_v27, 0.0  ;;  %v6517_v5 = vmin.f32 %v6493_v62, 6.0 }
 0xf5f   :  { %v6520_v15 = vmin.f32 %v6496_v36, 6.0  ;;  %v13939_v47 = vpop.permute.xlu0 %5118  ;;  %6308 = vrot.lane.b32.xlu1 %v13551_v33, %s15543_s27 }
 0xf60   :  { %6549 = vmatprep.subr.bf16.mxu0 %v6537_v41  ;;  %v6521_v55 = vmin.f32 %v6497_v61, 6.0 }
 0xf61   :  { %6550 = vmatpush1.bf16.msra.mxu0 %v6536_v10  ;;  %6330 = vrot.lane.b32.xlu0 %v13561_v31, %s15543_s27  ;;  %v13945_v4 = vpop.permute.xlu1 %5120  ;;  %v6538_v50 = vpack.c.bf16 %v6520_v15, %v6516_v34 }
 0xf62   :  { %v6539_v6 = vpack.c.bf16 %v6521_v55, %v6517_v5 }
 0xf63   :  { %v13947_v3 = vpop.permute.xlu0 %5142  ;;  %6332 = vrot.lane.b32.xlu1 %v13563_v0, %s15543_s27 }
 0xf64   :  { %6590 = vmatprep.subr.bf16.mxu1 %v6539_v6 }
 0xf65   :  { %6591 = vmatpush1.bf16.msra.mxu1 %v6538_v50  ;;  %v13951_v52 = vpop.permute.xlu1 %5144 }
 0xf67   :  { %v13953_v39 = vpop.permute.xlu0 %5314 }
 0xf69   :  { %v13955_v22 = vpop.permute.xlu1 %5316 }
 0xf6b   :  { %v13957_v24 = vpop.permute.xlu0 %5338 }
 0xf6d   :  { %v13959_v30 = vpop.permute.xlu1 %5340 }
 0xf6f   :  { %v13961_v37 = vpop.permute.xlu0 %5510 }
 0xf71   :  { %v13963_v40 = vpop.permute.xlu1 %5512 }
 0xf73   :  { %v13965_v19 = vpop.permute.xlu0 %5534 }
 0xf75   :  { %v13967_v1 = vpop.permute.xlu1 %5536 }
 0xf77   :  { %v13969_v18 = vpop.permute.xlu0 %5706 }
 0xf79   :  { %v13971_v44 = vpop.permute.xlu1 %5708 }
 0xf7b   :  { %v13973_v27 = vpop.permute.xlu0 %5730 }
 0xf7d   :  { %v13975_v49 = vpop.permute.xlu1 %5732 }
 0xf7f   :  { %v13977_v62 = vpop.permute.xlu0 %5902 }
 0xf80   :  { %16018 = vst [vmem:[#allocation73_spill] sm:$0xff] %v13977_v62 }
 0xf81   :  { %v13979_v36 = vpop.permute.xlu1 %5904 }
 0xf82   :  { %16019 = vst [vmem:[#allocation147_spill] sm:$0xff] %v13979_v36  ;;  %v16033_v36 = vld [vmem:[#allocation81_spill] sm:$0xff] }
 0xf83   :  { %v13981_v41 = vpop.permute.xlu0 %5926 }
 0xf84   :  { %16020 = vst [vmem:[#allocation162_spill] sm:$0xff] %v13981_v41 }
 0xf85   :  { %v13983_v10 = vpop.permute.xlu1 %5928 }
 0xf86   :  { %16021 = vst [vmem:[#allocation75_spill] sm:$0xff] %v13983_v10  ;;  %v4910_v10 = vmul.f32 %v16033_v36, %v13398_v56 }
 0xf87   :  { %v13985_v61 = vpop.permute.xlu0 %6098 }
 0xf88   :  { %16022 = vst [vmem:[#allocation24_spill] sm:$0xff] %v13985_v61  ;;  %v16030_v61 = vld [vmem:[#allocation4_spill] sm:$0xff] }
 0xf89   :  { %v13987_v34 = vpop.permute.xlu1 %6100  ;;  %v4908_v57 = vmul.f32 %v16030_v61, %v13405_v20  ;;  %v4909_v41 = vmul.f32 %v16030_v61, %v13561_v31 }
 0xf8a   :  { %16023 = vst [vmem:[#allocation98_spill] sm:$0xff] %v13987_v34 }
 0xf8b   :  { %v13989_v15 = vpop.permute.xlu0 %6122 }
 0xf8c   :  { %16024 = vst [vmem:[#allocation12_spill] sm:$0xff] %v13989_v15 }
 0xf8d   :  { %v13991_v5 = vpop.permute.xlu1 %6124 }
 0xf8e   :  { %16025 = vst [vmem:[#allocation116_spill] sm:$0xff] %v13991_v5  ;;  %v4906_v5 = vmul.f32 %v16030_v61, %v13391_v51 }
 0xf8f   :  { %v13993_v55 = vpop.permute.xlu0 %6294 }
 0xf90   :  { %16026 = vst [vmem:[#allocation51_spill] sm:$0xff] %v13993_v55  ;;  %v4907_v55 = vmul.f32 %v16030_v61, %v13535_v35 }
 0xf91   :  { %v13995_v50 = vpop.permute.xlu1 %6296 }
 0xf92   :  { %16027 = vst [vmem:[#allocation42_spill] sm:$0xff] %v13995_v50  ;;  %v16031_v50 = vld [vmem:[#allocation92_spill] sm:$0xff] }
 0xf93   :  { %v13997_v6 = vpop.permute.xlu0 %6318 }
 0xf94   :  { %16028 = vst [vmem:[#allocation49_spill] sm:$0xff] %v13997_v6  ;;  %v16032_v6 = vld [vmem:[#allocation85_spill] sm:$0xff] }
 0xf95   :  { %v13999_v38 = vpop.permute.xlu1 %6320 }
 0xf96   :  { %16029 = vst [vmem:[#allocation39_spill] sm:$0xff] %v13999_v38 }
 0xf97   :  { %v4935_v42 = vpop.permute.xlu0 %4934 }
 0xf98   :  { %v4972_v45 = vsel %vm441_vm2, %v4935_v42, %v13931_v7  ;;  %v4978_v34 = vsel %vm441_vm2, %v13919_v43, %v4935_v42  ;;  %v4911_v42 = vmul.f32 %v16033_v36, %v13551_v33  ;;  %v4912_v33 = vmul.f32 %v16033_v36, %v13411_v53 }
 0xf99   :  { %v5025_v15 = vmul.f32 %v16031_v50, %v4978_v34  ;;  %v5026_v9 = vmul.f32 %v16032_v6, %v4972_v45  ;;  %v4937_v38 = vpop.permute.xlu1 %4936  ;;  %v16034_v34 = vld [vmem:[#allocation128_spill] sm:$0xff] }
 0xf9a   :  { %v4973_v51 = vsel %vm441_vm2, %v4937_v38, %v13937_v14  ;;  %v4979_v35 = vsel %vm441_vm2, %v13927_v21, %v4937_v38 }
 0xf9b   :  { %v5079_v45 = vmul.f32 %v16034_v34, %v5025_v15  ;;  %v5080_v8 = vmul.f32 %v16034_v34, %v5026_v9  ;;  %v5029_v56 = vmul.f32 %v16031_v50, %v4979_v35  ;;  %v5030_v62 = vmul.f32 %v16032_v6, %v4973_v51  ;;  %v4959_v20 = vpop.permute.xlu0 %4958  ;;  %v16035_v15 = vld [vmem:[#allocation167_spill] sm:$0xff] }
 0xf9c   :  { %v4966_v17 = vsel %vm441_vm2, %v13931_v7, %v4959_v20  ;;  %v4984_v38 = vsel %vm441_vm2, %v4959_v20, %v13919_v43  ;;  %v4913_v51 = vmul.f32 %v16033_v36, %v13563_v0 }
 0xf9d   :  { %v5103_v9 = vadd.f32 %v5079_v45, %v4907_v55  ;;  %v5083_v50 = vmul.f32 %v16035_v15, %v5029_v56  ;;  %v5084_v6 = vmul.f32 %v16035_v15, %v5030_v62  ;;  %v4961_v53 = vpop.permute.xlu1 %4960  ;;  %v5024_v35 = vmul.f32 %v12865_v58, %v4984_v38 }
 0xf9e   :  { %v5027_v31 = vmul.f32 %v12868_v23, %v4966_v17  ;;  %v4967_v7 = vsel %vm441_vm2, %v13937_v14, %v4961_v53  ;;  %v4985_v43 = vsel %vm441_vm2, %v4961_v53, %v13927_v21  ;;  %v5104_v61 = vadd.f32 %v5080_v8, %v4908_v57 }
 0xf9f   :  { %v5107_v55 = vadd.f32 %v5083_v50, %v4911_v42  ;;  %v5028_v62 = vmul.f32 %v12865_v58, %v4985_v43  ;;  %v5031_v45 = vmul.f32 %v12868_v23, %v4967_v7  ;;  %v5131_v0 = vpop.permute.xlu0 %5130  ;;  %v5078_v36 = vmul.f32 %v16034_v34, %v5024_v35  ;;  %v16036_v35 = vld [vmem:[#allocation20_spill] sm:$0xff] }
 0xfa0   :  { %v5081_v56 = vmul.f32 %v16034_v34, %v5027_v31  ;;  %v5168_v17 = vsel %vm638_vm3, %v5131_v0, %v13947_v3  ;;  %v5174_v14 = vsel %vm638_vm3, %v13939_v47, %v5131_v0  ;;  %v5108_v42 = vadd.f32 %v5084_v6, %v4912_v33 }
 0xfa1   :  { %v5082_v8 = vmul.f32 %v16035_v15, %v5028_v62  ;;  %v5085_v57 = vmul.f32 %v16035_v15, %v5031_v45  ;;  %v5221_v58 = vmul.f32 %v12871_v29, %v5174_v14  ;;  %v5222_v23 = vmul.f32 %v12874_v25, %v5168_v17  ;;  %v5133_v21 = vpop.permute.xlu1 %5132 }
 0xfa2   :  { %v5102_v20 = vadd.f32 %v5078_v36, %v4906_v5  ;;  %v5169_v34 = vsel %vm638_vm3, %v5133_v21, %v13951_v52  ;;  %v5175_v38 = vsel %vm638_vm3, %v13945_v4, %v5133_v21  ;;  %v5105_v50 = vadd.f32 %v5081_v56, %v4909_v41  ;;  %v16037_v36 = vld [vmem:[#allocation10_spill] sm:$0xff] }
 0xfa3   :  { %v5106_v53 = vadd.f32 %v5082_v8, %v4910_v10  ;;  %v5275_v31 = vmul.f32 %v16036_v35, %v5221_v58  ;;  %v5276_v15 = vmul.f32 %v16036_v35, %v5222_v23  ;;  %v5155_v7 = vpop.permute.xlu0 %5154  ;;  %v5225_v43 = vmul.f32 %v12871_v29, %v5175_v38 }
 0xfa4   :  { %v5226_v33 = vmul.f32 %v12874_v25, %v5169_v34  ;;  %v5162_v5 = vsel %vm638_vm3, %v13947_v3, %v5155_v7  ;;  %v5180_v6 = vsel %vm638_vm3, %v5155_v7, %v13939_v47  ;;  %v5109_v62 = vadd.f32 %v5085_v57, %v4913_v51  ;;  %v16038_v7 = vld [vmem:[#allocation143_spill] sm:$0xff] }
 0xfa5   :  { %v5300_v41 = vadd.f32 %v5276_v15, %v5104_v61  ;;  %v5220_v10 = vmul.f32 %v12880_v63, %v5180_v6  ;;  %v5223_v45 = vmul.f32 %v12883_v2, %v5162_v5  ;;  %v5157_v0 = vpop.permute.xlu1 %5156  ;;  %v5279_v56 = vmul.f32 %v16037_v36, %v5225_v43 }
 0xfa6   :  { %v5280_v29 = vmul.f32 %v16037_v36, %v5226_v33  ;;  %v5163_v25 = vsel %vm638_vm3, %v13951_v52, %v5157_v0  ;;  %v5181_v3 = vsel %vm638_vm3, %v5157_v0, %v13945_v4  ;;  %v5299_v8 = vadd.f32 %v5275_v31, %v5103_v9 }
 0xfa7   :  { %v5274_v47 = vmul.f32 %v16036_v35, %v5220_v10  ;;  %v5277_v51 = vmul.f32 %v16036_v35, %v5223_v45  ;;  %v5224_v61 = vmul.f32 %v12880_v63, %v5181_v3  ;;  %v5227_v17 = vmul.f32 %v12883_v2, %v5163_v25  ;;  %v5327_v14 = vpop.permute.xlu0 %5326  ;;  %v16039_v10 = vld [vmem:[#allocation8_spill] sm:$0xff] }
 0xfa8   :  { %v5304_v57 = vadd.f32 %v5280_v29, %v5108_v42  ;;  %v5364_v58 = vsel %vm836_vm4, %v5327_v14, %v13957_v24  ;;  %v5370_v52 = vsel %vm836_vm4, %v13953_v39, %v5327_v14  ;;  %v5303_v4 = vadd.f32 %v5279_v56, %v5107_v55 }
 0xfa9   :  { %v5301_v23 = vadd.f32 %v5277_v51, %v5105_v50  ;;  %v5278_v21 = vmul.f32 %v16037_v36, %v5224_v61  ;;  %v5281_v34 = vmul.f32 %v16037_v36, %v5227_v17  ;;  %v5329_v63 = vpop.permute.xlu1 %5328  ;;  %v5417_v2 = vmul.f32 %v12886_v16, %v5370_v52  ;;  %v16040_v52 = vld [vmem:[#allocation141_spill] sm:$0xff] }
 0xfaa   :  { %v5418_v9 = vmul.f32 %v12889_v26, %v5364_v58  ;;  %v5365_v42 = vsel %vm836_vm4, %v5329_v63, %v13959_v30  ;;  %v5371_v38 = vsel %vm836_vm4, %v13955_v22, %v5329_v63  ;;  %v5298_v35 = vadd.f32 %v5274_v47, %v5102_v20 }
 0xfab   :  { %v5305_v55 = vadd.f32 %v5281_v34, %v5109_v62  ;;  %v5421_v50 = vmul.f32 %v12886_v16, %v5371_v38  ;;  %v5422_v31 = vmul.f32 %v12889_v26, %v5365_v42  ;;  %v5351_v15 = vpop.permute.xlu0 %5350  ;;  %v5471_v43 = vmul.f32 %v16038_v7, %v5417_v2 }
 0xfac   :  { %v5472_v33 = vmul.f32 %v16038_v7, %v5418_v9  ;;  %v5358_v5 = vsel %vm836_vm4, %v13957_v24, %v5351_v15  ;;  %v5376_v6 = vsel %vm836_vm4, %v5351_v15, %v13953_v39  ;;  %v5302_v0 = vadd.f32 %v5278_v21, %v5106_v53  ;;  %v16041_v15 = vld [vmem:[#allocation124_spill] sm:$0xff] }
 0xfad   :  { %v5475_v20 = vmul.f32 %v16039_v10, %v5421_v50  ;;  %v5476_v62 = vmul.f32 %v16039_v10, %v5422_v31  ;;  %v5416_v16 = vmul.f32 %v12899_v59, %v5376_v6  ;;  %v5419_v26 = vmul.f32 %v15897_v28, %v5358_v5  ;;  %v5353_v45 = vpop.permute.xlu1 %5352 }
 0xfae   :  { %v5496_v36 = vadd.f32 %v5472_v33, %v5300_v41  ;;  %v5359_v56 = vsel %vm836_vm4, %v13959_v30, %v5353_v45  ;;  %v5377_v24 = vsel %vm836_vm4, %v5353_v45, %v13955_v22  ;;  %v5495_v39 = vadd.f32 %v5471_v43, %v5299_v8 }
 0xfaf   :  { %v5500_v29 = vadd.f32 %v5476_v62, %v5304_v57  ;;  %v5470_v25 = vmul.f32 %v16038_v7, %v5416_v16  ;;  %v5473_v3 = vmul.f32 %v16038_v7, %v5419_v26  ;;  %v5523_v47 = vpop.permute.xlu0 %5522  ;;  %v5420_v51 = vmul.f32 %v12899_v59, %v5377_v24 }
 0xfb0   :  { %v5423_v53 = vmul.f32 %v15897_v28, %v5359_v56  ;;  %v5560_v41 = vsel %vm1034_vm5, %v5523_v47, %v13965_v19  ;;  %v5566_v30 = vsel %vm1034_vm5, %v13961_v37, %v5523_v47  ;;  %v5499_v22 = vadd.f32 %v5475_v20, %v5303_v4 }
 0xfb1   :  { %v5497_v61 = vadd.f32 %v5473_v3, %v5301_v23  ;;  %v5613_v17 = vmul.f32 %v15900_v54, %v5566_v30  ;;  %v5614_v14 = vmul.f32 %v15901_v60, %v5560_v41  ;;  %v5525_v8 = vpop.permute.xlu1 %5524  ;;  %v5474_v57 = vmul.f32 %v16039_v10, %v5420_v51 }
 0xfb2   :  { %v5477_v59 = vmul.f32 %v16039_v10, %v5423_v53  ;;  %v5561_v28 = vsel %vm1034_vm5, %v5525_v8, %v13967_v1  ;;  %v5567_v58 = vsel %vm1034_vm5, %v13963_v40, %v5525_v8  ;;  %v5494_v2 = vadd.f32 %v5470_v25, %v5298_v35  ;;  %v16042_v25 = vld [vmem:[#allocation148_spill] sm:$0xff]  ;;  %v16043_v8 = vld [vmem:[#allocation117_spill] sm:$0xff] }
 0xfb3   :  { %v5667_v4 = vmul.f32 %v16040_v52, %v5613_v17  ;;  %v5668_v23 = vmul.f32 %v16040_v52, %v5614_v14  ;;  %v5617_v21 = vmul.f32 %v15900_v54, %v5567_v58  ;;  %v5618_v34 = vmul.f32 %v15901_v60, %v5561_v28  ;;  %v5547_v63 = vpop.permute.xlu0 %5546  ;;  %v16044_v28 = vld [vmem:[#allocation152_spill] sm:$0xff] }
 0xfb4   :  { %v5501_v9 = vadd.f32 %v5477_v59, %v5305_v55  ;;  %v5554_v42 = vsel %vm1034_vm5, %v13965_v19, %v5547_v63  ;;  %v5572_v38 = vsel %vm1034_vm5, %v5547_v63, %v13961_v37  ;;  %v5498_v50 = vadd.f32 %v5474_v57, %v5302_v0 }
 0xfb5   :  { %v5692_v31 = vadd.f32 %v5668_v23, %v5496_v36  ;;  %v5671_v7 = vmul.f32 %v16041_v15, %v5617_v21  ;;  %v5672_v43 = vmul.f32 %v16041_v15, %v5618_v34  ;;  %v5549_v54 = vpop.permute.xlu1 %5548  ;;  %v5612_v60 = vmul.f32 %v15906_v13, %v5572_v38 }
 0xfb6   :  { %v5615_v35 = vmul.f32 %v15907_v32, %v5554_v42  ;;  %v5555_v55 = vsel %vm1034_vm5, %v13967_v1, %v5549_v54  ;;  %v5573_v19 = vsel %vm1034_vm5, %v5549_v54, %v13963_v40  ;;  %v5691_v37 = vadd.f32 %v5667_v4, %v5495_v39  ;;  %v16048_v54 = vld [vmem:[#allocation50_spill] sm:$0xff] }
 0xfb7   :  { %v5696_v33 = vadd.f32 %v5672_v43, %v5500_v29  ;;  %v5616_v5 = vmul.f32 %v15906_v13, %v5573_v19  ;;  %v5619_v6 = vmul.f32 %v15907_v32, %v5555_v55  ;;  %v5719_v10 = vpop.permute.xlu0 %5718  ;;  %v5666_v20 = vmul.f32 %v16040_v52, %v5612_v60  ;;  %v16050_v19 = vld [vmem:[#allocation147_spill] sm:$0xff] }
 0xfb8   :  { %v5669_v62 = vmul.f32 %v16040_v52, %v5615_v35  ;;  %v5756_v16 = vsel %vm1232_vm6, %v5719_v10, %v13973_v27  ;;  %v5762_v1 = vsel %vm1232_vm6, %v13969_v18, %v5719_v10  ;;  %v5695_v0 = vadd.f32 %v5671_v7, %v5499_v22  ;;  %v16047_v7 = vld [vmem:[#allocation26_spill] sm:$0xff]  ;;  %v16049_v35 = vld [vmem:[#allocation75_spill] sm:$0xff] }
 0xfb9   :  { %v5670_v40 = vmul.f32 %v16041_v15, %v5616_v5  ;;  %v5673_v26 = vmul.f32 %v16041_v15, %v5619_v6  ;;  %v5808_v13 = vmul.f32 %v15980_v12, %v5762_v1  ;;  %v5809_v32 = vmul.f32 %v15981_v48, %v5756_v16  ;;  %v5721_v45 = vpop.permute.xlu1 %5720 }
 0xfba   :  { %v5693_v36 = vadd.f32 %v5669_v62, %v5497_v61  ;;  %v5757_v56 = vsel %vm1232_vm6, %v5721_v45, %v13975_v49  ;;  %v5763_v24 = vsel %vm1232_vm6, %v13971_v44, %v5721_v45  ;;  %v5690_v39 = vadd.f32 %v5666_v20, %v5494_v2  ;;  %v16045_v2 = vld [vmem:[#allocation162_spill] sm:$0xff]  ;;  %v16051_v62 = vld [vmem:[#allocation19_spill] sm:$0xff]  ;;  %v16053_v45 = vld [vmem:[#allocation165_spill] sm:$0xff] }
 0xfbb   :  { %v5697_v29 = vadd.f32 %v5673_v26, %v5501_v9  ;;  %v5862_v3 = vmul.f32 %v16042_v25, %v5808_v13  ;;  %v5863_v47 = vmul.f32 %v16042_v25, %v5809_v32  ;;  %v5743_v51 = vpop.permute.xlu0 %5742  ;;  %v5812_v53 = vmul.f32 %v15980_v12, %v5763_v24  ;;  %v16052_v13 = vld [vmem:[#allocation144_spill] sm:$0xff] }
 0xfbc   :  { %v5813_v41 = vmul.f32 %v15981_v48, %v5757_v56  ;;  %v5750_v30 = vsel %vm1232_vm6, %v13973_v27, %v5743_v51  ;;  %v5768_v22 = vsel %vm1232_vm6, %v5743_v51, %v13969_v18  ;;  %v5694_v61 = vadd.f32 %v5670_v40, %v5498_v50 }
 0xfbd   :  { %v5886_v17 = vadd.f32 %v5862_v3, %v5690_v39  ;;  %v5810_v14 = vmul.f32 %v15985_v11, %v5750_v30  ;;  %v5811_v57 = vmul.f32 %v16043_v8, %v5768_v22  ;;  %v5745_v59 = vpop.permute.xlu1 %5744  ;;  %v5866_v58 = vmul.f32 %v16044_v28, %v5812_v53 }
 0xfbe   :  { %v5867_v12 = vmul.f32 %v16044_v28, %v5813_v41  ;;  %v5751_v48 = vsel %vm1232_vm6, %v13975_v49, %v5745_v59  ;;  %v5769_v27 = vsel %vm1232_vm6, %v5745_v59, %v13971_v44  ;;  %v5887_v34 = vadd.f32 %v5863_v47, %v5691_v37  ;;  %v16046_v49 = vld [vmem:[#allocation73_spill] sm:$0xff] }
 0xfbf   :  { %v5864_v18 = vmul.f32 %v16042_v25, %v5810_v14  ;;  %v5865_v52 = vmul.f32 %v16042_v25, %v5811_v57  ;;  %v5814_v4 = vmul.f32 %v15985_v11, %v5751_v48  ;;  %v5815_v23 = vmul.f32 %v16043_v8, %v5769_v27  ;;  %v5915_v21 = vpop.permute.xlu0 %5914  ;;  %v16055_v14 = vld [vmem:[#allocation12_spill] sm:$0xff]  ;;  %v16058_v48 = vld [vmem:[#allocation3_spill] sm:$0xff] }
 0xfc0   :  { %v5890_v63 = vadd.f32 %v5866_v58, %v5694_v61  ;;  %v5952_v9 = vsel %vm1430_vm7, %v5915_v21, %v16045_v2  ;;  %v5958_v42 = vsel %vm1430_vm7, %v16046_v49, %v5915_v21  ;;  %v5891_v44 = vadd.f32 %v5867_v12, %v5695_v0  ;;  %v16056_v57 = vld [vmem:[#allocation24_spill] sm:$0xff] }
 0xfc1   :  { %v5888_v38 = vadd.f32 %v5864_v18, %v5692_v31  ;;  %v5868_v50 = vmul.f32 %v16044_v28, %v5814_v4  ;;  %v5869_v15 = vmul.f32 %v16044_v28, %v5815_v23  ;;  %v5917_v11 = vpop.permute.xlu1 %5916  ;;  %v6004_v43 = vmul.f32 %v16047_v7, %v5958_v42  ;;  %v16057_v58 = vld [vmem:[#allocation156_spill] sm:$0xff] }
 0xfc2   :  { %v6005_v60 = vmul.f32 %v16048_v54, %v5952_v9  ;;  %v5953_v55 = vsel %vm1430_vm7, %v5917_v11, %v16049_v35  ;;  %v5959_v37 = vsel %vm1430_vm7, %v16050_v19, %v5917_v11  ;;  %v5889_v5 = vadd.f32 %v5865_v52, %v5693_v36  ;;  %v16054_v36 = vld [vmem:[#allocation154_spill] sm:$0xff]  ;;  %v16059_v23 = vld [vmem:[#allocation116_spill] sm:$0xff] }
 0xfc3   :  { %v5892_v6 = vadd.f32 %v5868_v50, %v5696_v33  ;;  %v6008_v31 = vmul.f32 %v16047_v7, %v5959_v37  ;;  %v6009_v10 = vmul.f32 %v16048_v54, %v5953_v55  ;;  %v5939_v20 = vpop.permute.xlu0 %5938  ;;  %v6058_v16 = vmul.f32 %v16051_v62, %v6004_v43  ;;  %v16061_v9 = vld [vmem:[#allocation74_spill] sm:$0xff]  ;;  %v16063_v37 = vld [vmem:[#allocation172_spill] sm:$0xff] }
 0xfc4   :  { %v6059_v1 = vmul.f32 %v16051_v62, %v6005_v60  ;;  %v5946_v40 = vsel %vm1430_vm7, %v16045_v2, %v5939_v20  ;;  %v5964_v26 = vsel %vm1430_vm7, %v5939_v20, %v16046_v49  ;;  %v5893_v39 = vadd.f32 %v5869_v15, %v5697_v29  ;;  %v16062_v60 = vld [vmem:[#allocation105_spill] sm:$0xff] }
 0xfc5   :  { %v6062_v32 = vmul.f32 %v16052_v13, %v6008_v31  ;;  %v6063_v33 = vmul.f32 %v16052_v13, %v6009_v10  ;;  %v6006_v0 = vmul.f32 %v16053_v45, %v5946_v40  ;;  %v6007_v56 = vmul.f32 %v16054_v36, %v5964_v26  ;;  %v5941_v24 = vpop.permute.xlu1 %5940  ;;  %v16064_v10 = vld [vmem:[#allocation38_spill] sm:$0xff] }
 0xfc6   :  { %v6083_v25 = vadd.f32 %v6059_v1, %v5887_v34  ;;  %v5947_v3 = vsel %vm1430_vm7, %v16049_v35, %v5941_v24  ;;  %v5965_v47 = vsel %vm1430_vm7, %v5941_v24, %v16050_v19  ;;  %v6082_v51 = vadd.f32 %v6058_v16, %v5886_v17  ;;  %v16060_v34 = vld [vmem:[#allocation98_spill] sm:$0xff] }
 0xfc7   :  { %v6087_v53 = vadd.f32 %v6063_v33, %v5891_v44  ;;  %v6060_v41 = vmul.f32 %v16051_v62, %v6006_v0  ;;  %v6061_v30 = vmul.f32 %v16051_v62, %v6007_v56  ;;  %v6111_v22 = vpop.permute.xlu0 %6110  ;;  %v6010_v61 = vmul.f32 %v16053_v45, %v5947_v3  ;;  %v16065_v33 = vld [vmem:[#allocation49_spill] sm:$0xff]  ;;  %v16066_v0 = vld [vmem:[#allocation51_spill] sm:$0xff]  ;;  %v16068_v3 = vld [vmem:[#allocation48_spill] sm:$0xff] }
 0xfc8   :  { %v6011_v29 = vmul.f32 %v16054_v36, %v5965_v47  ;;  %v6148_v8 = vsel %vm1628_vm8, %v6111_v22, %v16055_v14  ;;  %v6154_v59 = vsel %vm1628_vm8, %v16056_v57, %v6111_v22  ;;  %v6086_v28 = vadd.f32 %v6062_v32, %v5890_v63 }
 0xfc9   :  { %v6084_v17 = vadd.f32 %v6060_v41, %v5888_v38  ;;  %v6200_v12 = vmul.f32 %v16057_v58, %v6154_v59  ;;  %v6201_v27 = vmul.f32 %v16058_v48, %v6148_v8  ;;  %v6113_v18 = vpop.permute.xlu1 %6112  ;;  %v6064_v52 = vmul.f32 %v16052_v13, %v6010_v61  ;;  %v16070_v61 = vld [vmem:[#allocation42_spill] sm:$0xff] }
 0xfca   :  { %v6065_v4 = vmul.f32 %v16052_v13, %v6011_v29  ;;  %v6149_v21 = vsel %vm1628_vm8, %v6113_v18, %v16059_v23  ;;  %v6155_v2 = vsel %vm1628_vm8, %v16060_v34, %v6113_v18  ;;  %v6085_v50 = vadd.f32 %v6061_v30, %v5889_v5  ;;  %v16069_v30 = vld [vmem:[#allocation39_spill] sm:$0xff] }
 0xfcb   :  { %v6254_v63 = vmul.f32 %v16061_v9, %v6200_v12  ;;  %v6255_v49 = vmul.f32 %v16061_v9, %v6201_v27  ;;  %v6204_v42 = vmul.f32 %v16057_v58, %v6155_v2  ;;  %v6205_v44 = vmul.f32 %v16058_v48, %v6149_v21  ;;  %v6135_v38 = vpop.permute.xlu0 %6134  ;;  %v16073_v21 = vld [vmem:[#allocation40_spill] sm:$0xff] }
 0xfcc   :  { %v6088_v15 = vadd.f32 %v6064_v52, %v5892_v6  ;;  %v6142_v11 = vsel %vm1628_vm8, %v16055_v14, %v6135_v38  ;;  %v6160_v7 = vsel %vm1628_vm8, %v6135_v38, %v16056_v57  ;;  %v6089_v43 = vadd.f32 %v6065_v4, %v5893_v39  ;;  %v16067_v39 = vld [vmem:[#allocation155_spill] sm:$0xff]  ;;  %v16071_v57 = vld [vmem:[#allocation72_spill] sm:$0xff] }
 0xfcd   :  { %v6279_v54 = vadd.f32 %v6255_v49, %v6083_v25  ;;  %v6258_v35 = vmul.f32 %v16062_v60, %v6204_v42  ;;  %v6259_v55 = vmul.f32 %v16062_v60, %v6205_v44  ;;  %v6137_v19 = vpop.permute.xlu1 %6136  ;;  %v6202_v31 = vmul.f32 %v16063_v37, %v6142_v11  ;;  %v16072_v4 = vld [vmem:[#allocation31_spill] sm:$0xff] }
 0xfce   :  { %v6203_v5 = vmul.f32 %v16064_v10, %v6160_v7  ;;  %v6143_v6 = vsel %vm1628_vm8, %v16059_v23, %v6137_v19  ;;  %v6161_v20 = vsel %vm1628_vm8, %v6137_v19, %v16060_v34  ;;  %v6278_v62 = vadd.f32 %v6254_v63, %v6082_v51 }
 0xfcf   :  { %v6283_v16 = vadd.f32 %v6259_v55, %v6087_v53  ;;  %v6206_v1 = vmul.f32 %v16063_v37, %v6143_v6  ;;  %v6207_v40 = vmul.f32 %v16064_v10, %v6161_v20  ;;  %v6307_v26 = vpop.permute.xlu0 %6306  ;;  %v6256_v13 = vmul.f32 %v16061_v9, %v6202_v31 }
 0xfd0   :  { %v6257_v32 = vmul.f32 %v16061_v9, %v6203_v5  ;;  %v6344_v45 = vsel %vm1826_vm9, %v6307_v26, %v16065_v33  ;;  %v6350_v36 = vsel %vm1826_vm9, %v16066_v0, %v6307_v26  ;;  %v6282_v56 = vadd.f32 %v6258_v35, %v6086_v28  ;;  %v16074_v9 = vld [vmem:[#allocation106_spill] sm:$0xff] }
 0xfd1   :  { %v6260_v24 = vmul.f32 %v16062_v60, %v6206_v1  ;;  %v6396_v25 = vmul.f32 %v16067_v39, %v6350_v36  ;;  %v6397_v47 = vmul.f32 %v16068_v3, %v6344_v45  ;;  %v6309_v51 = vpop.permute.xlu1 %6308  ;;  %v6280_v53 = vadd.f32 %v6256_v13, %v6084_v17 }
 0xfd2   :  { %v6261_v41 = vmul.f32 %v16062_v60, %v6207_v40  ;;  %v6345_v22 = vsel %vm1826_vm9, %v6309_v51, %v16069_v30  ;;  %v6351_v29 = vsel %vm1826_vm9, %v16070_v61, %v6309_v51  ;;  %v6281_v14 = vadd.f32 %v6257_v32, %v6085_v50  ;;  %v16076_v51 = vld [vmem:[#allocation68_spill] sm:$0xff] }
 0xfd3   :  { %v6284_v8 = vadd.f32 %v6260_v24, %v6088_v15  ;;  %v6450_v59 = vmul.f32 %v16071_v57, %v6396_v25  ;;  %v6451_v28 = vmul.f32 %v16071_v57, %v6397_v47  ;;  %v6331_v58 = vpop.permute.xlu0 %6330  ;;  %v6400_v12 = vmul.f32 %v16067_v39, %v6351_v29  ;;  %v7097_v39 = vld [vmem:[%s14417_s4 + $0x8] sm:$0xf] }
 0xfd4   :  { %v6401_v17 = vmul.f32 %v16068_v3, %v6345_v22  ;;  %v6338_v48 = vsel %vm1826_vm9, %v16065_v33, %v6331_v58  ;;  %v6356_v27 = vsel %vm1826_vm9, %v6331_v58, %v16066_v0  ;;  %v6285_v31 = vadd.f32 %v6261_v41, %v6089_v43  ;;  %v16075_v3 = vld [vmem:[#allocation84_spill] sm:$0xff] }
 0xfd5   :  { %v6474_v18 = vadd.f32 %v6450_v59, %v6278_v62  ;;  %v6475_v52 = vadd.f32 %v6451_v28, %v6279_v54  ;;  %v6398_v23 = vmul.f32 %v16072_v4, %v6338_v48  ;;  %v6399_v34 = vmul.f32 %v16073_v21, %v6356_v27  ;;  %v6333_v2 = vpop.permute.xlu1 %6332 }
 0xfd6   :  { %v6454_v63 = vmul.f32 %v16074_v9, %v6400_v12  ;;  %v6455_v49 = vmul.f32 %v16074_v9, %v6401_v17  ;;  %v6339_v42 = vsel %vm1826_vm9, %v16069_v30, %v6333_v2  ;;  %v6357_v44 = vsel %vm1826_vm9, %v6333_v2, %v16070_v61  ;;  %v16079_v30 = vld [vmem:[#allocation71_spill] sm:$0xff]  ;;  %v7100_v17 = vld [vmem:[%s14418_s5 + $0x10] sm:$0xff] }
 0xfd7   :  { %v6498_v38 = vmax.f32 %v6474_v18, 0.0  ;;  %v6452_v50 = vmul.f32 %v16071_v57, %v6398_v23  ;;  %v6453_v15 = vmul.f32 %v16071_v57, %v6399_v34  ;;  %v6402_v11 = vmul.f32 %v16072_v4, %v6339_v42 }
 0xfd8   :  { %v6478_v7 = vadd.f32 %v6454_v63, %v6282_v56  ;;  %v6479_v54 = vadd.f32 %v6455_v49, %v6283_v16  ;;  %v6403_v60 = vmul.f32 %v16073_v21, %v6357_v44  ;;  %v6499_v35 = vmax.f32 %v6475_v52, 0.0 }
 0xfd9   :  { %v6476_v55 = vadd.f32 %v6452_v50, %v6280_v53  ;;  %v6477_v19 = vadd.f32 %v6453_v15, %v6281_v14  ;;  %v6456_v37 = vmul.f32 %v16074_v9, %v6402_v11  ;;  %v6522_v6 = vmin.f32 %v6498_v38, 6.0  ;;  %v16077_v53 = vld [vmem:[#allocation70_spill] sm:$0xff]  ;;  %v7101_v15 = vld [vmem:[%s14419_s6 + $0x2] sm:$0x1] }
 0xfda   :  { %v6502_v10 = vmax.f32 %v6478_v7, 0.0  ;;  %v6457_v46 = vmul.f32 %v16074_v9, %v6403_v60  ;;  %v6503_v5 = vmax.f32 %v6479_v54, 0.0  ;;  %v6523_v1 = vmin.f32 %v6499_v35, 6.0 }
 0xfdb   :  { %v6500_v20 = vmax.f32 %v6476_v55, 0.0  ;;  %v6480_v62 = vadd.f32 %v6456_v37, %v6284_v8  ;;  %v6501_v16 = vmax.f32 %v6477_v19, 0.0  ;;  %v16078_v41 = vmov 0   ;;  %v7102_v19 = vld [vmem:[%s14420_s7 + $0x10] sm:$0xff]  ;;  %v16080_v37 = vld [vmem:[#allocation134_spill] sm:$0xff] }
 0xfdc   :  { %v6526_v40 = vmin.f32 %v6502_v10, 6.0  ;;  %v6481_v26 = vadd.f32 %v6457_v46, %v6285_v31  ;;  %v6527_v13 = vmin.f32 %v6503_v5, 6.0 }
 0xfdd   :  { %v6504_v32 = vmax.f32 %v6480_v62, 0.0  ;;  %v6524_v36 = vmin.f32 %v6500_v20, 6.0  ;;  %v6525_v43 = vmin.f32 %v6501_v16, 6.0 }
 0xfde   :  { %v6541_v33 = vpack.c.bf16 %v6527_v13, %v6523_v1  ;;  %v6540_v45 = vpack.c.bf16 %v6526_v40, %v6522_v6  ;;  %v6505_v0 = vmax.f32 %v6481_v26, 0.0  ;;  %v7103_v40 = vld [vmem:[%s14421_s8 + $0x10] sm:$0xff] }
 0xfdf   :  { %v6528_v56 = vmin.f32 %v6504_v32, 6.0 }
 0xfe0   :  { %6551 = vmatprep.subr.bf16.mxu0 %v6541_v33  ;;  %v6529_v24 = vmin.f32 %v6505_v0, 6.0 }
 0xfe1   :  { %6552 = vmatpush1.bf16.msra.mxu0 %v6540_v45  ;;  %v6542_v25 = vpack.c.bf16 %v6528_v56, %v6524_v36 }
 0xfe2   :  { %6746 = vmatprep.subr.bf16.mxu0 %v16075_v3  ;;  %v6543_v47 = vpack.c.bf16 %v6529_v24, %v6525_v43 }
 0xfe4   :  { %7098 = vmatmul.mubr.msk.bf16.vlgmr.msra.gmra.mrb[52].mxu0 %vm2037_vm10, %v7097_v39  ;;  %6592 = vmatprep.subr.bf16.mxu1 %v6543_v47 }
 0xfe5   :  { %6593 = vmatpush1.bf16.msra.mxu1 %v6542_v25  ;;  %6747 = vmatpush1.bf16.msra.mxu0 %v16076_v51  ;;  %v7160_v51 = vld [vmem:[%s14425_s13] sm:$0xff] }
 0xfe6   :  { %6787 = vmatprep.subr.bf16.mxu1 %v16077_v53  ;;  %6778 = vmatprep.mubr.bf16.mxu0 %v16078_v41 }
 0xfe8   :  { %7099 = vmatmul.mubr.msk.bf16.vlgmr.msra.gmra.mrb[52].mxu1 %vm2037_vm10, %v7097_v39 }
 0xfe9   :  { %6788 = vmatpush1.bf16.msra.mxu1 %v16079_v30  ;;  %6819 = vmatprep.mubr.bf16.mxu1 %v16078_v41  ;;  %v7161_v41 = vld [vmem:[%s14425_s13 + $0x8] sm:$0xff] }
0x10b7   :  { %v14348_v22 = vpop.f32.mrb[52].mxu0 }
0x10b8   :  { %v14350_v61 = vpop.f32.mrb[53].mxu0 }
0x10b9   :  { %v6629_v29 = vadd.f32 %v14350_v61, %v14348_v22  ;;  %v6585_v14 = vpop.f32.mrb[54].mxu0 }
0x10ba   :  { %v6586_v8 = vpop.f32.mrb[55].mxu0  ;;  %v16081_v14 = vld [vmem:[#allocation142_spill] sm:$0xff] }
0x10bb   :  { %v14354_v57 = vpop.f32.mrb[52].mxu1  ;;  %6630 = vadd.xlane.f32.xlu0 %v6629_v29 }
0x10bc   :  { %v14356_v59 = vpop.f32.mrb[53].mxu1 }
0x10bd   :  { %v6671_v28 = vadd.f32 %v14356_v59, %v14354_v57  ;;  %v6626_v58 = vpop.f32.mrb[54].mxu1 }
0x10be   :  { %v6627_v12 = vpop.f32.mrb[55].mxu1 }
0x10bf   :  { %6672 = vadd.xlane.f32.xlu1 %v6671_v28 }
0x1148   :  { %v6631_v48 = vpop.xlane.xlu0 %6630 }
0x1149   :  { %v6632_v27 = vmul.f32 0.00390625, %v6631_v48  ;;  %v7163_v48 = vld [vmem:[%s14425_s13 + $0x18] sm:$0xff] }
0x114b   :  { %v6635_v18 = vmul.f32 %v7100_v17, %v6632_v27 }
0x114c   :  { %v6673_v52 = vpop.xlane.xlu1 %6672 }
0x114d   :  { %v6636_v4 = vsel %vm2130_vm11, %v6635_v18, 0.0  ;;  %v6674_v23 = vmul.f32 0.00390625, %v6673_v52  ;;  %v16084_v52 = vld [vmem:[#allocation119_spill] sm:$0xff] }
0x114e   :  { %v6637_v21 = vrot.slane %v6636_v4, 4 }
0x114f   :  { %v6675_v34 = vmul.f32 %v7100_v17, %v6674_v23 }
0x1150   :  { %v6638_v2 = vadd.f32 %v6637_v21, %v6636_v4 }
0x1151   :  { %v6676_v9 = vsel %vm2130_vm11, %v6675_v34, 0.0 }
0x1152   :  { %v6639_v63 = vrot.slane %v6638_v2, 2  ;;  %v6677_v49 = vrot.slane %v6676_v9, 4 }
0x1154   :  { %v6640_v42 = vadd.f32 %v6639_v63, %v6638_v2  ;;  %v6678_v44 = vadd.f32 %v6677_v49, %v6676_v9 }
0x1156   :  { %v6641_v38 = vrot.slane %v6640_v42, 1  ;;  %v6679_v50 = vrot.slane %v6678_v44, 2 }
0x1158   :  { %v6642_v11 = vadd.f32 %v6641_v38, %v6640_v42  ;;  %v6680_v7 = vadd.f32 %v6679_v50, %v6678_v44 }
0x115a   :  { %v6681_v54 = vrot.slane %v6680_v7, 1  ;;  %v6645_v60 = vadd.f32 %v7101_v15, %v6642_v11 }
0x115c   :  { %v6682_v35 = vadd.f32 %v6681_v54, %v6680_v7  ;;  %v6646_v55 = vmax.f32 %v6645_v60, 0.0 }
0x115e   :  { %v6652_v31 = vrot.slane %v6646_v55, %v16080_v37  ;;  %v6683_v10 = vadd.f32 %v7101_v15, %v6682_v35 }
0x1160   :  { %v6653_v46 = vmul.f32 %v7102_v19, %v6652_v31  ;;  %v6684_v5 = vmax.f32 %v6683_v10, 0.0 }
0x1162   :  { %v6654_v6 = vsel %vm2130_vm11, %v6653_v46, 0.0  ;;  %v6688_v20 = vrot.slane %v6684_v5, %v16080_v37 }
0x1163   :  { %6655 = vadd.xlane.f32.xlu0 %v6654_v6 }
0x1164   :  { %v6689_v62 = vmul.f32 %v7102_v19, %v6688_v20 }
0x1166   :  { %v6690_v1 = vsel %vm2130_vm11, %v6689_v62, 0.0 }
0x1167   :  { %6691 = vadd.xlane.f32.xlu0 %v6690_v1 }
0x11f0   :  { %v6656_v26 = vpop.xlane.xlu0 %6655 }
0x11f1   :  { %v6659_v13 = vadd.f32 %v7103_v40, %v6656_v26 }
0x11f3   :  { %v7104_v16 = vmul.f32 -1.442695, %v6659_v13 }
0x11f4   :  { %v6692_v32 = vpop.xlane.xlu0 %6691 }
0x11f5   :  { %7144 = vpow2.f32 %v7104_v16  ;;  %v6693_v33 = vadd.f32 %v7103_v40, %v6692_v32 }
0x11f7   :  { %v7105_v45 = vmul.f32 -1.442695, %v6693_v33 }
0x11f9   :  { %7146 = vpow2.f32 %v7105_v45 }
0x11ff   :  { %v7145_v0 = vpop.eup %7144 }
0x1200   :  { %v6663_v36 = vadd.f32 1.0, %v7145_v0 }
0x1202   :  { %7148 = vrcp.f32 %v6663_v36 }
0x1203   :  { %v7147_v56 = vpop.eup %7146 }
0x1204   :  { %v6697_v43 = vadd.f32 1.0, %v7147_v56 }
0x1206   :  { %7150 = vrcp.f32 %v6697_v43 }
0x120c   :  { %v7149_v24 = vpop.eup %7148 }
0x120d   :  { %6668 = vperm.xlu1 %7118, %v7149_v24  }
0x1210   :  { %v7151_v39 = vpop.eup %7150 }
0x1211   :  { %6702 = vperm.xlu0 %7117, %v7151_v39  }
0x128c   :  { %v6669_v25 = vpop.permute.xlu1 %6668 }
0x128d   :  { %v6705_v3 = vmul.f32 %v6669_v25, %v14348_v22  ;;  %v6706_v47 = vmul.f32 %v6669_v25, %v14350_v61  ;;  %v16082_v22 = vld [vmem:[#allocation79_spill] sm:$0xff]  ;;  %v7162_v61 = vld [vmem:[%s14425_s13 + $0x10] sm:$0xff] }
0x128f   :  { %v6709_v53 = vadd.f32 %v7160_v51, %v6705_v3  ;;  %v6710_v30 = vadd.f32 %v7161_v41, %v6706_v47 }
0x1290   :  { %v6703_v29 = vpop.permute.xlu0 %6702 }
0x1291   :  { %v6738_v8 = vpack.c.bf16 %v6709_v53, %v16081_v14  ;;  %v6707_v28 = vmul.f32 %v6703_v29, %v14354_v57  ;;  %v6708_v58 = vmul.f32 %v6703_v29, %v14356_v59  ;;  %v6739_v12 = vpack.c.bf16 %v6710_v30, %v16082_v22  ;;  %v6717_v57 = vld [vmem:[%s14426_s11] sm:$0xf]  ;;  %v16083_v59 = vld [vmem:[#allocation118_spill] sm:$0xff] }
0x1293   :  { %v6711_v17 = vadd.f32 %v7162_v61, %v6707_v28  ;;  %v6712_v27 = vadd.f32 %v7163_v48, %v6708_v58  ;;  %6748 = vmatprep.subr.bf16.mxu0 %v6739_v12 }
0x1294   :  { %6749 = vmatpush1.bf16.msra.mxu0 %v6738_v8 }
0x1295   :  { %v6740_v18 = vpack.c.bf16 %v6711_v17, %v16083_v59  ;;  %v6741_v4 = vpack.c.bf16 %v6712_v27, %v16084_v52 }
0x1297   :  { %6789 = vmatprep.subr.bf16.mxu1 %v6741_v4  ;;  %7106 = vmatmul.mubr.msk.bf16.vlgmr.msra.gmra.mrb[56].mxu0 %vm6742_vm14, %v6717_v57 }
0x1298   :  { %6790 = vmatpush1.bf16.msra.mxu1 %v6740_v18 }
0x129b   :  { %7107 = vmatmul.mubr.msk.bf16.vlgmr.msra.gmra.mrb[56].mxu1 %vm6742_vm14, %v6717_v57 }
0x136a   :  { %v6780_v23 = vpop.f32.mrb[56].mxu0 }
0x136b   :  { %v6828_v21 = vmax.f32 %v6780_v23, 0.0  ;;  %v6782_v34 = vpop.f32.mrb[57].mxu0 }
0x136c   :  { %v6829_v2 = vmax.f32 %v6782_v34, 0.0  ;;  %v6784_v9 = vpop.f32.mrb[58].mxu0 }
0x136d   :  { %6840 = vst [vmem:[%s14427_s14] sm:$0xff] %v6828_v21  ;;  %v6785_v63 = vpop.f32.mrb[59].mxu0 }
0x136e   :  { %v6821_v49 = vpop.f32.mrb[56].mxu1  ;;  %6841 = vst [vmem:[%s14427_s14 + $0x8] sm:$0xff] %v6829_v2 }
0x136f   :  { %v6830_v42 = vmax.f32 %v6821_v49, 0.0  ;;  %v6823_v44 = vpop.f32.mrb[57].mxu1 }
0x1370   :  { %v6831_v38 = vmax.f32 %v6823_v44, 0.0  ;;  %v6825_v50 = vpop.f32.mrb[58].mxu1 }
0x1371   :  { %6842 = vst [vmem:[%s14427_s14 + $0x10] sm:$0xff] %v6830_v42  ;;  %v6826_v15 = vpop.f32.mrb[59].mxu1 }
0x1372   :  { %6843 = vst [vmem:[%s14427_s14 + $0x18] sm:$0xff] %v6831_v38 }

</bundles_post_ra>
